<compile_context>
chip_gen: v7x
topology: tpu7x:2x2x1
jax: 0.10.0
libtpu: 0.0.40
codegen_flags: <defaults>
</compile_context>

<pallas_src>
import functools

import jax
import jax.numpy as jnp
from jax.experimental import pallas as pl
from jax.experimental.pallas import tpu as pltpu

DILATIONS = (1, 2, 4, 8, 16)   # dilate1..dilate5 (padding == dilation for each)
MAX_PAD = 16                   # largest padding; one shared padded scratch
LANES = 128                    # TPU lane width


def _dblock_kernel(x_ref, w_hbm, b_ref, out_ref,
                   pad_ref, acc_ref, w_ref, *, H, W):
    """One batch element per grid step.

    d1 = relu(conv_d1(x)); ...; d5 = relu(conv_d16(d4));
    out = x + d1 + d2 + d3 + d4 + d5

    Each dilated 3x3 conv is 9 per-tap bf16 MXU matmuls accumulated in f32:
    the tap window is sliced directly from the zero-padded VMEM scratch.
    """
    P = MAX_PAD
    Hp, Wp, Cp = pad_ref.shape
    HW = H * W

    @pl.when(pl.program_id(1) == 0)
    def _init_per_core():
        # Runs once per core (first iteration of the inner "arbitrary" axis):
        # the border stripes are never written by compute, so they stay zero
        # for every later step on this core; the weights are staged into a
        # single-buffered bf16 VMEM scratch by one explicit DMA.
        pad_ref[0:P, :, :] = jnp.zeros((P, Wp, Cp), jnp.float32)
        pad_ref[P + H:Hp, :, :] = jnp.zeros((Hp - H - P, Wp, Cp), jnp.float32)
        pad_ref[P:P + H, 0:P, :] = jnp.zeros((H, P, Cp), jnp.float32)
        pad_ref[P:P + H, P + W:Wp, :] = jnp.zeros((H, Wp - W - P, Cp),
                                                  jnp.float32)
        pltpu.sync_copy(w_hbm, w_ref)

    x = x_ref[0].astype(jnp.float32)                      # (H*W, Cp) lane-dense
    pad_ref[P:P + H, P:P + W, :] = x.reshape(H, W, Cp)
    out_ref[0] = x.astype(out_ref.dtype)                  # residual accumulator

    for ci, d in enumerate(DILATIONS):
        # Initialise the f32 accumulator with this conv's bias (broadcast).
        acc_ref[...] = jnp.broadcast_to(b_ref[ci:ci + 1, :], (HW, Cp))

        # 9 per-tap bf16 matmuls, K-split accumulation in f32 on the MXU.
        for ky in range(3):
            for kx in range(3):
                t = ky * 3 + kx
                oy = P + (ky - 1) * d
                ox = P + (kx - 1) * d
                win = pad_ref[oy:oy + H, ox:ox + W, :].reshape(HW, Cp)
                acc_ref[...] += jnp.dot(win.astype(jnp.bfloat16),
                                        w_ref[ci, t],
                                        preferred_element_type=jnp.float32)

        conv = jnp.maximum(acc_ref[...], 0.0)             # bias + ReLU (f32)
        out_ref[0] = (out_ref[0].astype(jnp.float32) + conv).astype(out_ref.dtype)
        pad_ref[P:P + H, P:P + W, :] = conv.reshape(H, W, Cp)   # feed next conv


def _vmem_limit_bytes(footprint_bytes):
    """Footprint-derived VMEM limit with headroom, capped by physical VMEM."""
    try:
        cap = int(pltpu.get_tpu_info().vmem_capacity_bytes * 3 // 4)
    except Exception:
        cap = 48 * 1024 * 1024          # safe on v5e / v6e / v7x
    want = 2 * int(footprint_bytes) + (4 << 20)
    return int(min(max(want, 32 << 20), cap))


def dblock_forward(x_nchw, weights_oihw, biases):
    """x_nchw: (N, C, H, W) f32. weights_oihw: 5 x (C, C, 3, 3). biases: 5 x (C,)."""
    N, C, H, W = x_nchw.shape
    Cp = ((C + LANES - 1) // LANES) * LANES               # pad channels to 128k
    Hp, Wp = H + 2 * MAX_PAD, W + 2 * MAX_PAD
    HW = H * W

    # NCHW -> (N, H*W, Cp): spatial on sublanes, channels lane-dense.
    x = jnp.transpose(x_nchw, (0, 2, 3, 1)).reshape(N, HW, C).astype(jnp.float32)
    x = jnp.pad(x, ((0, 0), (0, 0), (0, Cp - C)))

    # OIHW -> HWIO, zero-pad both channel dims, stack 5 convs: (5, 9, Cp, Cp) bf16.
    ws = []
    for w in weights_oihw:
        w = jnp.transpose(w, (2, 3, 1, 0))                # (3, 3, I, O)
        w = jnp.pad(w, ((0, 0), (0, 0), (0, Cp - C), (0, Cp - C)))
        ws.append(w.reshape(9, Cp, Cp))
    w_stack = jnp.stack(ws, axis=0).astype(jnp.bfloat16)  # (5, 9, Cp, Cp)
    b_stack = jnp.stack([jnp.pad(b, (0, Cp - C)) for b in biases],
                        axis=0).astype(jnp.float32)       # (5, Cp)

    # Grid: (outer "parallel", inner "arbitrary") so the per-core init in the
    # kernel (border clear + weight staging) is gated on program_id(1) == 0.
    n_outer = 2 if (N >= 2 and N % 2 == 0) else 1
    n_inner = N // n_outer
    batch_map = lambda o, i: (o * n_inner + i, 0, 0)

    footprint = (Hp * Wp * Cp * 4           # padded fmap scratch (f32)
                 + HW * Cp * 4              # conv accumulator (f32)
                 + 5 * 9 * Cp * Cp * 2      # staged weights (bf16, single buf)
                 + 2 * 2 * HW * Cp * 4      # x + out blocks, double-buffered
                 + 2 * 5 * Cp * 4)          # bias block, double-buffered

    kernel = functools.partial(_dblock_kernel, H=H, W=W)

    out = pl.pallas_call(
        kernel,
        out_shape=jax.ShapeDtypeStruct((N, HW, Cp), jnp.float32),
        grid_spec=pltpu.PrefetchScalarGridSpec(
            num_scalar_prefetch=0,
            grid=(n_outer, n_inner),
            in_specs=[
                pl.BlockSpec((1, HW, Cp), batch_map),         # activations
                pl.BlockSpec(memory_space=pl.ANY),            # stacked weights (HBM)
                pl.BlockSpec((5, Cp), lambda o, i: (0, 0)),   # stacked biases
            ],
            out_specs=pl.BlockSpec((1, HW, Cp), batch_map),
            scratch_shapes=[
                pltpu.VMEM((Hp, Wp, Cp), jnp.float32),        # zero-padded fmap
                pltpu.VMEM((HW, Cp), jnp.float32),            # conv accumulator
                pltpu.VMEM((5, 9, Cp, Cp), jnp.bfloat16),     # staged weights
            ],
        ),
        compiler_params=pltpu.CompilerParams(
            dimension_semantics=("parallel", "arbitrary"),
            vmem_limit_bytes=_vmem_limit_bytes(footprint),
        ),
    )(x, w_stack, b_stack)

    out = out[:, :, :C].reshape(N, H, W, C)
    return jnp.transpose(out, (0, 3, 1, 2))                   # back to NCHW


def dblock_reference(x_nchw, weights_oihw, biases, *, compute_dtype=jnp.float32):
    """Pure-JAX reference. With compute_dtype=bfloat16 it mirrors the kernel's
    mixed precision (bf16 matmul operands, f32 accumulation, f32 bias/ReLU)."""
    N, C, H, W = x_nchw.shape
    cur = jnp.transpose(x_nchw, (0, 2, 3, 1)).astype(jnp.float32)   # NHWC
    acc = cur
    for w, b, d in zip(weights_oihw, biases, DILATIONS):
        # Round operands to compute_dtype, then upcast so accumulation is f32.
        w_hwio = jnp.transpose(w, (2, 3, 1, 0)).astype(compute_dtype)
        w_hwio = w_hwio.astype(jnp.float32)
        inp = cur.astype(compute_dtype).astype(jnp.float32)
        inp = jnp.pad(inp, ((0, 0), (d, d), (d, d), (0, 0)))
        conv = jnp.zeros((N, H, W, C), jnp.float32)
        for ky in range(3):
            for kx in range(3):
                win = inp[:, ky * d:ky * d + H, kx * d:kx * d + W, :]
                conv = conv + jnp.einsum("nhwc,co->nhwo", win, w_hwio[ky, kx])
        conv = jnp.maximum(conv + b.reshape(1, 1, 1, C), 0.0)
        acc = acc + conv
        cur = conv
    return jnp.transpose(acc, (0, 3, 1, 2))


if __name__ == "__main__":
    key = jax.random.PRNGKey(0)
    N, C, H, W = 2, 8, 16, 16
    keys = jax.random.split(key, 6)

    x = jax.random.normal(keys[0], (N, C, H, W), jnp.float32)
    # Deterministic synthetic conv weights (OIHW like torch); biases zeroed
    # exactly as Dblock_more_dilate.__init__ does.
    weights = [0.1 * jax.random.normal(keys[i + 1], (C, C, 3, 3), jnp.float32)
               for i in range(5)]
    biases = [jnp.zeros((C,), jnp.float32) for _ in range(5)]

    y = dblock_forward(x, weights, biases)
    y = jax.block_until_ready(y)

    # Tight check vs. a reference matching the kernel's bf16/f32 mixed precision.
    y_mixed = dblock_reference(x, weights, biases, compute_dtype=jnp.bfloat16)
    assert jnp.allclose(y, y_mixed, atol=5e-3, rtol=5e-3), (
        "max abs err vs bf16-matched ref = %f"
        % float(jnp.max(jnp.abs(y - y_mixed))))

    # Loose structural check vs. the exact f32 reference (bf16 MXU operands).
    y_f32 = dblock_reference(x, weights, biases, compute_dtype=jnp.float32)
    assert jnp.allclose(y, y_f32, atol=1e-1, rtol=1e-1), (
        "max abs err vs f32 ref = %f" % float(jnp.max(jnp.abs(y - y_f32))))

    print("KERNEL_OK")
</pallas_src>

<mosaic_0001>
module attributes {stable_mosaic.version = 11 : i64} {
  func.func @_dblock_kernel(%arg0: i32, %arg1: i32, %arg2: memref<1x256x128xf32, #tpu.memory_space<vmem>>, %arg3: memref<5x9x128x128xbf16, #tpu.memory_space<any>>, %arg4: memref<5x128xf32, #tpu.memory_space<vmem>>, %arg5: memref<1x256x128xf32, #tpu.memory_space<vmem>>, %arg6: memref<48x48x128xf32, #tpu.memory_space<vmem>>, %arg7: memref<256x128xf32, #tpu.memory_space<vmem>>, %arg8: memref<5x9x128x128xbf16, #tpu.memory_space<vmem>>) attributes {dimension_semantics = [#tpu.dimension_semantics<parallel>, #tpu.dimension_semantics<arbitrary>], iteration_bounds = array<i64: 2, 1>, scalar_prefetch = 0 : i64, scratch_operands = 3 : i64, tpu.core_type = #tpu.core_type<tc>, window_params = [{transform_indices = @transform_0, window_bounds = array<i64: 1, 256, 128>}, {}, {pipeline_mode = #tpu.pipeline_mode<synchronous>, transform_indices = @transform_2, window_bounds = array<i64: 5, 128>}, {transform_indices = @transform_3, window_bounds = array<i64: 1, 256, 128>}]} {
    %c0_i32 = arith.constant 0 : i32
    %0 = arith.cmpi eq, %arg1, %c0_i32 : i32
    %1 = arith.extui %0 : i1 to i32
    %c0_i32_0 = arith.constant 0 : i32
    %2 = arith.cmpi ne, %1, %c0_i32_0 : i32
    scf.if %2 {
      %cst_611 = arith.constant 0.000000e+00 : f32
      %490 = vector.broadcast %cst_611 : f32 to vector<16x48x128xf32>
      %c0_612 = arith.constant 0 : index
      %c0_613 = arith.constant 0 : index
      %c0_614 = arith.constant 0 : index
      %491 = vector.load %arg6[%c0_612, %c0_613, %c0_614] : memref<48x48x128xf32, #tpu.memory_space<vmem>>, vector<16x48x128xf32>
      tpu.vector_store %arg6[%c0_612, %c0_613, %c0_614], %490 {strides = array<i32>} : memref<48x48x128xf32, #tpu.memory_space<vmem>>, vector<16x48x128xf32>,
      %cst_615 = arith.constant 0.000000e+00 : f32
      %492 = vector.broadcast %cst_615 : f32 to vector<16x48x128xf32>
      %c32_616 = arith.constant 32 : index
      %c0_617 = arith.constant 0 : index
      %c0_618 = arith.constant 0 : index
      %493 = vector.load %arg6[%c32_616, %c0_617, %c0_618] : memref<48x48x128xf32, #tpu.memory_space<vmem>>, vector<16x48x128xf32>
      tpu.vector_store %arg6[%c32_616, %c0_617, %c0_618], %492 {strides = array<i32>} : memref<48x48x128xf32, #tpu.memory_space<vmem>>, vector<16x48x128xf32>,
      %cst_619 = arith.constant 0.000000e+00 : f32
      %494 = vector.broadcast %cst_619 : f32 to vector<16x16x128xf32>
      %c16_620 = arith.constant 16 : index
      %c0_621 = arith.constant 0 : index
      %c0_622 = arith.constant 0 : index
      %495 = vector.load %arg6[%c16_620, %c0_621, %c0_622] : memref<48x48x128xf32, #tpu.memory_space<vmem>>, vector<16x16x128xf32>
      tpu.vector_store %arg6[%c16_620, %c0_621, %c0_622], %494 {strides = array<i32>} : memref<48x48x128xf32, #tpu.memory_space<vmem>>, vector<16x16x128xf32>,
      %cst_623 = arith.constant 0.000000e+00 : f32
      %496 = vector.broadcast %cst_623 : f32 to vector<16x16x128xf32>
      %c16_624 = arith.constant 16 : index
      %c32_625 = arith.constant 32 : index
      %c0_626 = arith.constant 0 : index
      %497 = vector.load %arg6[%c16_624, %c32_625, %c0_626] : memref<48x48x128xf32, #tpu.memory_space<vmem>>, vector<16x16x128xf32>
      tpu.vector_store %arg6[%c16_624, %c32_625, %c0_626], %496 {strides = array<i32>} : memref<48x48x128xf32, #tpu.memory_space<vmem>>, vector<16x16x128xf32>,
      "tpu.region"() ({
        %498 = tpu.sem_alloc : memref<!tpu.dma_semaphore, #tpu.memory_space<semaphore_mem>>
        tpu.enqueue_dma source(%arg3 : memref<5x9x128x128xbf16, #tpu.memory_space<any>>) target(%arg8 : memref<5x9x128x128xbf16, #tpu.memory_space<vmem>>) target_semaphore(%498 : memref<!tpu.dma_semaphore, #tpu.memory_space<semaphore_mem>>)
        tpu.wait_dma2 semaphore(%498 : memref<!tpu.dma_semaphore, #tpu.memory_space<semaphore_mem>>) src(%arg3 : memref<5x9x128x128xbf16, #tpu.memory_space<any>>) dst(%arg8 : memref<5x9x128x128xbf16, #tpu.memory_space<vmem>>)
        tpu.yield
      }) : () -> ()
    } else {
    }
    %c0 = arith.constant 0 : index
    %c0_1 = arith.constant 0 : index
    %c0_2 = arith.constant 0 : index
    %3 = vector.load %arg2[%c0, %c0_1, %c0_2] : memref<1x256x128xf32, #tpu.memory_space<vmem>>, vector<1x256x128xf32>
    %4 = vector.shape_cast %3 : vector<1x256x128xf32> to vector<256x128xf32>
    %5 = vector.shape_cast %4 : vector<256x128xf32> to vector<16x16x128xf32>
    %c16 = arith.constant 16 : index
    %c16_3 = arith.constant 16 : index
    %c0_4 = arith.constant 0 : index
    %6 = vector.load %arg6[%c16, %c16_3, %c0_4] : memref<48x48x128xf32, #tpu.memory_space<vmem>>, vector<16x16x128xf32>
    tpu.vector_store %arg6[%c16, %c16_3, %c0_4], %5 {strides = array<i32>} : memref<48x48x128xf32, #tpu.memory_space<vmem>>, vector<16x16x128xf32>,
    %c0_5 = arith.constant 0 : index
    %c0_6 = arith.constant 0 : index
    %c0_7 = arith.constant 0 : index
    %7 = vector.load %arg5[%c0_5, %c0_6, %c0_7] : memref<1x256x128xf32, #tpu.memory_space<vmem>>, vector<1x256x128xf32>
    %8 = vector.shape_cast %7 : vector<1x256x128xf32> to vector<256x128xf32>
    %9 = vector.shape_cast %4 : vector<256x128xf32> to vector<1x256x128xf32>
    tpu.vector_store %arg5[%c0_5, %c0_6, %c0_7], %9 {strides = array<i32>} : memref<1x256x128xf32, #tpu.memory_space<vmem>>, vector<1x256x128xf32>,
    %c0_8 = arith.constant 0 : index
    %c0_9 = arith.constant 0 : index
    %10 = vector.load %arg4[%c0_8, %c0_9] : memref<5x128xf32, #tpu.memory_space<vmem>>, vector<1x128xf32>
    %11 = vector.shape_cast %10 : vector<1x128xf32> to vector<1x128xf32>
    %12 = vector.broadcast %11 : vector<1x128xf32> to vector<256x128xf32>
    %c0_10 = arith.constant 0 : index
    %c0_11 = arith.constant 0 : index
    %13 = vector.load %arg7[%c0_10, %c0_11] : memref<256x128xf32, #tpu.memory_space<vmem>>, vector<256x128xf32>
    tpu.vector_store %arg7[%c0_10, %c0_11], %12 {strides = array<i32>} : memref<256x128xf32, #tpu.memory_space<vmem>>, vector<256x128xf32>,
    %c15 = arith.constant 15 : index
    %c15_12 = arith.constant 15 : index
    %c0_13 = arith.constant 0 : index
    %14 = vector.load %arg6[%c15, %c15_12, %c0_13] : memref<48x48x128xf32, #tpu.memory_space<vmem>>, vector<16x16x128xf32>
    %15 = vector.shape_cast %14 : vector<16x16x128xf32> to vector<256x128xf32>
    %c0_14 = arith.constant 0 : index
    %c0_15 = arith.constant 0 : index
    %16 = vector.load %arg7[%c0_14, %c0_15] : memref<256x128xf32, #tpu.memory_space<vmem>>, vector<256x128xf32>
    %17 = arith.truncf %15 : vector<256x128xf32> to vector<256x128xbf16>
    %c0_16 = arith.constant 0 : index
    %c0_17 = arith.constant 0 : index
    %c0_18 = arith.constant 0 : index
    %c0_19 = arith.constant 0 : index
    %18 = vector.load %arg8[%c0_16, %c0_17, %c0_18, %c0_19] : memref<5x9x128x128xbf16, #tpu.memory_space<vmem>>, vector<1x1x128x128xbf16>
    %19 = vector.shape_cast %18 : vector<1x1x128x128xbf16> to vector<128x128xbf16>
    %cst = arith.constant dense<0.000000e+00> : vector<256x128xf32>
    %20 = tpu.matmul %17, %19, %cst {dimension_numbers = #tpu.dot_dimension_numbers<[1], [0], [0], [1], [0, 0, 1, 1], [], []>} : vector<256x128xbf16>, vector<128x128xbf16>, vector<256x128xf32> -> vector<256x128xf32>
    %21 = arith.addf %16, %20 : vector<256x128xf32>
    %c0_20 = arith.constant 0 : index
    %c0_21 = arith.constant 0 : index
    %22 = vector.load %arg7[%c0_20, %c0_21] : memref<256x128xf32, #tpu.memory_space<vmem>>, vector<256x128xf32>
    tpu.vector_store %arg7[%c0_20, %c0_21], %21 {strides = array<i32>} : memref<256x128xf32, #tpu.memory_space<vmem>>, vector<256x128xf32>,
    %c15_22 = arith.constant 15 : index
    %c16_23 = arith.constant 16 : index
    %c0_24 = arith.constant 0 : index
    %23 = vector.load %arg6[%c15_22, %c16_23, %c0_24] : memref<48x48x128xf32, #tpu.memory_space<vmem>>, vector<16x16x128xf32>
    %24 = vector.shape_cast %23 : vector<16x16x128xf32> to vector<256x128xf32>
    %c0_25 = arith.constant 0 : index
    %c0_26 = arith.constant 0 : index
    %25 = vector.load %arg7[%c0_25, %c0_26] : memref<256x128xf32, #tpu.memory_space<vmem>>, vector<256x128xf32>
    %26 = arith.truncf %24 : vector<256x128xf32> to vector<256x128xbf16>
    %c0_27 = arith.constant 0 : index
    %c1 = arith.constant 1 : index
    %c0_28 = arith.constant 0 : index
    %c0_29 = arith.constant 0 : index
    %27 = vector.load %arg8[%c0_27, %c1, %c0_28, %c0_29] : memref<5x9x128x128xbf16, #tpu.memory_space<vmem>>, vector<1x1x128x128xbf16>
    %28 = vector.shape_cast %27 : vector<1x1x128x128xbf16> to vector<128x128xbf16>
    %cst_30 = arith.constant dense<0.000000e+00> : vector<256x128xf32>
    %29 = tpu.matmul %26, %28, %cst_30 {dimension_numbers = #tpu.dot_dimension_numbers<[1], [0], [0], [1], [0, 0, 1, 1], [], []>} : vector<256x128xbf16>, vector<128x128xbf16>, vector<256x128xf32> -> vector<256x128xf32>
    %30 = arith.addf %25, %29 : vector<256x128xf32>
    %c0_31 = arith.constant 0 : index
    %c0_32 = arith.constant 0 : index
    %31 = vector.load %arg7[%c0_31, %c0_32] : memref<256x128xf32, #tpu.memory_space<vmem>>, vector<256x128xf32>
    tpu.vector_store %arg7[%c0_31, %c0_32], %30 {strides = array<i32>} : memref<256x128xf32, #tpu.memory_space<vmem>>, vector<256x128xf32>,
    %c15_33 = arith.constant 15 : index
    %c17 = arith.constant 17 : index
    %c0_34 = arith.constant 0 : index
    %32 = vector.load %arg6[%c15_33, %c17, %c0_34] : memref<48x48x128xf32, #tpu.memory_space<vmem>>, vector<16x16x128xf32>
    %33 = vector.shape_cast %32 : vector<16x16x128xf32> to vector<256x128xf32>
    %c0_35 = arith.constant 0 : index
    %c0_36 = arith.constant 0 : index
    %34 = vector.load %arg7[%c0_35, %c0_36] : memref<256x128xf32, #tpu.memory_space<vmem>>, vector<256x128xf32>
    %35 = arith.truncf %33 : vector<256x128xf32> to vector<256x128xbf16>
    %c0_37 = arith.constant 0 : index
    %c2 = arith.constant 2 : index
    %c0_38 = arith.constant 0 : index
    %c0_39 = arith.constant 0 : index
    %36 = vector.load %arg8[%c0_37, %c2, %c0_38, %c0_39] : memref<5x9x128x128xbf16, #tpu.memory_space<vmem>>, vector<1x1x128x128xbf16>
    %37 = vector.shape_cast %36 : vector<1x1x128x128xbf16> to vector<128x128xbf16>
    %cst_40 = arith.constant dense<0.000000e+00> : vector<256x128xf32>
    %38 = tpu.matmul %35, %37, %cst_40 {dimension_numbers = #tpu.dot_dimension_numbers<[1], [0], [0], [1], [0, 0, 1, 1], [], []>} : vector<256x128xbf16>, vector<128x128xbf16>, vector<256x128xf32> -> vector<256x128xf32>
    %39 = arith.addf %34, %38 : vector<256x128xf32>
    %c0_41 = arith.constant 0 : index
    %c0_42 = arith.constant 0 : index
    %40 = vector.load %arg7[%c0_41, %c0_42] : memref<256x128xf32, #tpu.memory_space<vmem>>, vector<256x128xf32>
    tpu.vector_store %arg7[%c0_41, %c0_42], %39 {strides = array<i32>} : memref<256x128xf32, #tpu.memory_space<vmem>>, vector<256x128xf32>,
    %c16_43 = arith.constant 16 : index
    %c15_44 = arith.constant 15 : index
    %c0_45 = arith.constant 0 : index
    %41 = vector.load %arg6[%c16_43, %c15_44, %c0_45] : memref<48x48x128xf32, #tpu.memory_space<vmem>>, vector<16x16x128xf32>
    %42 = vector.shape_cast %41 : vector<16x16x128xf32> to vector<256x128xf32>
    %c0_46 = arith.constant 0 : index
    %c0_47 = arith.constant 0 : index
    %43 = vector.load %arg7[%c0_46, %c0_47] : memref<256x128xf32, #tpu.memory_space<vmem>>, vector<256x128xf32>
    %44 = arith.truncf %42 : vector<256x128xf32> to vector<256x128xbf16>
    %c0_48 = arith.constant 0 : index
    %c3 = arith.constant 3 : index
    %c0_49 = arith.constant 0 : index
    %c0_50 = arith.constant 0 : index
    %45 = vector.load %arg8[%c0_48, %c3, %c0_49, %c0_50] : memref<5x9x128x128xbf16, #tpu.memory_space<vmem>>, vector<1x1x128x128xbf16>
    %46 = vector.shape_cast %45 : vector<1x1x128x128xbf16> to vector<128x128xbf16>
    %cst_51 = arith.constant dense<0.000000e+00> : vector<256x128xf32>
    %47 = tpu.matmul %44, %46, %cst_51 {dimension_numbers = #tpu.dot_dimension_numbers<[1], [0], [0], [1], [0, 0, 1, 1], [], []>} : vector<256x128xbf16>, vector<128x128xbf16>, vector<256x128xf32> -> vector<256x128xf32>
    %48 = arith.addf %43, %47 : vector<256x128xf32>
    %c0_52 = arith.constant 0 : index
    %c0_53 = arith.constant 0 : index
    %49 = vector.load %arg7[%c0_52, %c0_53] : memref<256x128xf32, #tpu.memory_space<vmem>>, vector<256x128xf32>
    tpu.vector_store %arg7[%c0_52, %c0_53], %48 {strides = array<i32>} : memref<256x128xf32, #tpu.memory_space<vmem>>, vector<256x128xf32>,
    %c16_54 = arith.constant 16 : index
    %c16_55 = arith.constant 16 : index
    %c0_56 = arith.constant 0 : index
    %50 = vector.load %arg6[%c16_54, %c16_55, %c0_56] : memref<48x48x128xf32, #tpu.memory_space<vmem>>, vector<16x16x128xf32>
    %51 = vector.shape_cast %50 : vector<16x16x128xf32> to vector<256x128xf32>
    %c0_57 = arith.constant 0 : index
    %c0_58 = arith.constant 0 : index
    %52 = vector.load %arg7[%c0_57, %c0_58] : memref<256x128xf32, #tpu.memory_space<vmem>>, vector<256x128xf32>
    %53 = arith.truncf %51 : vector<256x128xf32> to vector<256x128xbf16>
    %c0_59 = arith.constant 0 : index
    %c4 = arith.constant 4 : index
    %c0_60 = arith.constant 0 : index
    %c0_61 = arith.constant 0 : index
    %54 = vector.load %arg8[%c0_59, %c4, %c0_60, %c0_61] : memref<5x9x128x128xbf16, #tpu.memory_space<vmem>>, vector<1x1x128x128xbf16>
    %55 = vector.shape_cast %54 : vector<1x1x128x128xbf16> to vector<128x128xbf16>
    %cst_62 = arith.constant dense<0.000000e+00> : vector<256x128xf32>
    %56 = tpu.matmul %53, %55, %cst_62 {dimension_numbers = #tpu.dot_dimension_numbers<[1], [0], [0], [1], [0, 0, 1, 1], [], []>} : vector<256x128xbf16>, vector<128x128xbf16>, vector<256x128xf32> -> vector<256x128xf32>
    %57 = arith.addf %52, %56 : vector<256x128xf32>
    %c0_63 = arith.constant 0 : index
    %c0_64 = arith.constant 0 : index
    %58 = vector.load %arg7[%c0_63, %c0_64] : memref<256x128xf32, #tpu.memory_space<vmem>>, vector<256x128xf32>
    tpu.vector_store %arg7[%c0_63, %c0_64], %57 {strides = array<i32>} : memref<256x128xf32, #tpu.memory_space<vmem>>, vector<256x128xf32>,
    %c16_65 = arith.constant 16 : index
    %c17_66 = arith.constant 17 : index
    %c0_67 = arith.constant 0 : index
    %59 = vector.load %arg6[%c16_65, %c17_66, %c0_67] : memref<48x48x128xf32, #tpu.memory_space<vmem>>, vector<16x16x128xf32>
    %60 = vector.shape_cast %59 : vector<16x16x128xf32> to vector<256x128xf32>
    %c0_68 = arith.constant 0 : index
    %c0_69 = arith.constant 0 : index
    %61 = vector.load %arg7[%c0_68, %c0_69] : memref<256x128xf32, #tpu.memory_space<vmem>>, vector<256x128xf32>
    %62 = arith.truncf %60 : vector<256x128xf32> to vector<256x128xbf16>
    %c0_70 = arith.constant 0 : index
    %c5 = arith.constant 5 : index
    %c0_71 = arith.constant 0 : index
    %c0_72 = arith.constant 0 : index
    %63 = vector.load %arg8[%c0_70, %c5, %c0_71, %c0_72] : memref<5x9x128x128xbf16, #tpu.memory_space<vmem>>, vector<1x1x128x128xbf16>
    %64 = vector.shape_cast %63 : vector<1x1x128x128xbf16> to vector<128x128xbf16>
    %cst_73 = arith.constant dense<0.000000e+00> : vector<256x128xf32>
    %65 = tpu.matmul %62, %64, %cst_73 {dimension_numbers = #tpu.dot_dimension_numbers<[1], [0], [0], [1], [0, 0, 1, 1], [], []>} : vector<256x128xbf16>, vector<128x128xbf16>, vector<256x128xf32> -> vector<256x128xf32>
    %66 = arith.addf %61, %65 : vector<256x128xf32>
    %c0_74 = arith.constant 0 : index
    %c0_75 = arith.constant 0 : index
    %67 = vector.load %arg7[%c0_74, %c0_75] : memref<256x128xf32, #tpu.memory_space<vmem>>, vector<256x128xf32>
    tpu.vector_store %arg7[%c0_74, %c0_75], %66 {strides = array<i32>} : memref<256x128xf32, #tpu.memory_space<vmem>>, vector<256x128xf32>,
    %c17_76 = arith.constant 17 : index
    %c15_77 = arith.constant 15 : index
    %c0_78 = arith.constant 0 : index
    %68 = vector.load %arg6[%c17_76, %c15_77, %c0_78] : memref<48x48x128xf32, #tpu.memory_space<vmem>>, vector<16x16x128xf32>
    %69 = vector.shape_cast %68 : vector<16x16x128xf32> to vector<256x128xf32>
    %c0_79 = arith.constant 0 : index
    %c0_80 = arith.constant 0 : index
    %70 = vector.load %arg7[%c0_79, %c0_80] : memref<256x128xf32, #tpu.memory_space<vmem>>, vector<256x128xf32>
    %71 = arith.truncf %69 : vector<256x128xf32> to vector<256x128xbf16>
    %c0_81 = arith.constant 0 : index
    %c6 = arith.constant 6 : index
    %c0_82 = arith.constant 0 : index
    %c0_83 = arith.constant 0 : index
    %72 = vector.load %arg8[%c0_81, %c6, %c0_82, %c0_83] : memref<5x9x128x128xbf16, #tpu.memory_space<vmem>>, vector<1x1x128x128xbf16>
    %73 = vector.shape_cast %72 : vector<1x1x128x128xbf16> to vector<128x128xbf16>
    %cst_84 = arith.constant dense<0.000000e+00> : vector<256x128xf32>
    %74 = tpu.matmul %71, %73, %cst_84 {dimension_numbers = #tpu.dot_dimension_numbers<[1], [0], [0], [1], [0, 0, 1, 1], [], []>} : vector<256x128xbf16>, vector<128x128xbf16>, vector<256x128xf32> -> vector<256x128xf32>
    %75 = arith.addf %70, %74 : vector<256x128xf32>
    %c0_85 = arith.constant 0 : index
    %c0_86 = arith.constant 0 : index
    %76 = vector.load %arg7[%c0_85, %c0_86] : memref<256x128xf32, #tpu.memory_space<vmem>>, vector<256x128xf32>
    tpu.vector_store %arg7[%c0_85, %c0_86], %75 {strides = array<i32>} : memref<256x128xf32, #tpu.memory_space<vmem>>, vector<256x128xf32>,
    %c17_87 = arith.constant 17 : index
    %c16_88 = arith.constant 16 : index
    %c0_89 = arith.constant 0 : index
    %77 = vector.load %arg6[%c17_87, %c16_88, %c0_89] : memref<48x48x128xf32, #tpu.memory_space<vmem>>, vector<16x16x128xf32>
    %78 = vector.shape_cast %77 : vector<16x16x128xf32> to vector<256x128xf32>
    %c0_90 = arith.constant 0 : index
    %c0_91 = arith.constant 0 : index
    %79 = vector.load %arg7[%c0_90, %c0_91] : memref<256x128xf32, #tpu.memory_space<vmem>>, vector<256x128xf32>
    %80 = arith.truncf %78 : vector<256x128xf32> to vector<256x128xbf16>
    %c0_92 = arith.constant 0 : index
    %c7 = arith.constant 7 : index
    %c0_93 = arith.constant 0 : index
    %c0_94 = arith.constant 0 : index
    %81 = vector.load %arg8[%c0_92, %c7, %c0_93, %c0_94] : memref<5x9x128x128xbf16, #tpu.memory_space<vmem>>, vector<1x1x128x128xbf16>
    %82 = vector.shape_cast %81 : vector<1x1x128x128xbf16> to vector<128x128xbf16>
    %cst_95 = arith.constant dense<0.000000e+00> : vector<256x128xf32>
    %83 = tpu.matmul %80, %82, %cst_95 {dimension_numbers = #tpu.dot_dimension_numbers<[1], [0], [0], [1], [0, 0, 1, 1], [], []>} : vector<256x128xbf16>, vector<128x128xbf16>, vector<256x128xf32> -> vector<256x128xf32>
    %84 = arith.addf %79, %83 : vector<256x128xf32>
    %c0_96 = arith.constant 0 : index
    %c0_97 = arith.constant 0 : index
    %85 = vector.load %arg7[%c0_96, %c0_97] : memref<256x128xf32, #tpu.memory_space<vmem>>, vector<256x128xf32>
    tpu.vector_store %arg7[%c0_96, %c0_97], %84 {strides = array<i32>} : memref<256x128xf32, #tpu.memory_space<vmem>>, vector<256x128xf32>,
    %c17_98 = arith.constant 17 : index
    %c17_99 = arith.constant 17 : index
    %c0_100 = arith.constant 0 : index
    %86 = vector.load %arg6[%c17_98, %c17_99, %c0_100] : memref<48x48x128xf32, #tpu.memory_space<vmem>>, vector<16x16x128xf32>
    %87 = vector.shape_cast %86 : vector<16x16x128xf32> to vector<256x128xf32>
    %c0_101 = arith.constant 0 : index
    %c0_102 = arith.constant 0 : index
    %88 = vector.load %arg7[%c0_101, %c0_102] : memref<256x128xf32, #tpu.memory_space<vmem>>, vector<256x128xf32>
    %89 = arith.truncf %87 : vector<256x128xf32> to vector<256x128xbf16>
    %c0_103 = arith.constant 0 : index
    %c8 = arith.constant 8 : index
    %c0_104 = arith.constant 0 : index
    %c0_105 = arith.constant 0 : index
    %90 = vector.load %arg8[%c0_103, %c8, %c0_104, %c0_105] : memref<5x9x128x128xbf16, #tpu.memory_space<vmem>>, vector<1x1x128x128xbf16>
    %91 = vector.shape_cast %90 : vector<1x1x128x128xbf16> to vector<128x128xbf16>
    %cst_106 = arith.constant dense<0.000000e+00> : vector<256x128xf32>
    %92 = tpu.matmul %89, %91, %cst_106 {dimension_numbers = #tpu.dot_dimension_numbers<[1], [0], [0], [1], [0, 0, 1, 1], [], []>} : vector<256x128xbf16>, vector<128x128xbf16>, vector<256x128xf32> -> vector<256x128xf32>
    %93 = arith.addf %88, %92 : vector<256x128xf32>
    %c0_107 = arith.constant 0 : index
    %c0_108 = arith.constant 0 : index
    %94 = vector.load %arg7[%c0_107, %c0_108] : memref<256x128xf32, #tpu.memory_space<vmem>>, vector<256x128xf32>
    tpu.vector_store %arg7[%c0_107, %c0_108], %93 {strides = array<i32>} : memref<256x128xf32, #tpu.memory_space<vmem>>, vector<256x128xf32>,
    %c0_109 = arith.constant 0 : index
    %c0_110 = arith.constant 0 : index
    %95 = vector.load %arg7[%c0_109, %c0_110] : memref<256x128xf32, #tpu.memory_space<vmem>>, vector<256x128xf32>
    %cst_111 = arith.constant 0.000000e+00 : f32
    %96 = vector.broadcast %cst_111 : f32 to vector<256x128xf32>
    %97 = arith.maximumf %95, %96 : vector<256x128xf32>
    %c0_112 = arith.constant 0 : index
    %c0_113 = arith.constant 0 : index
    %c0_114 = arith.constant 0 : index
    %98 = vector.load %arg5[%c0_112, %c0_113, %c0_114] : memref<1x256x128xf32, #tpu.memory_space<vmem>>, vector<1x256x128xf32>
    %99 = vector.shape_cast %98 : vector<1x256x128xf32> to vector<256x128xf32>
    %100 = arith.addf %99, %97 : vector<256x128xf32>
    %c0_115 = arith.constant 0 : index
    %c0_116 = arith.constant 0 : index
    %c0_117 = arith.constant 0 : index
    %101 = vector.load %arg5[%c0_115, %c0_116, %c0_117] : memref<1x256x128xf32, #tpu.memory_space<vmem>>, vector<1x256x128xf32>
    %102 = vector.shape_cast %101 : vector<1x256x128xf32> to vector<256x128xf32>
    %103 = vector.shape_cast %100 : vector<256x128xf32> to vector<1x256x128xf32>
    tpu.vector_store %arg5[%c0_115, %c0_116, %c0_117], %103 {strides = array<i32>} : memref<1x256x128xf32, #tpu.memory_space<vmem>>, vector<1x256x128xf32>,
    %104 = vector.shape_cast %97 : vector<256x128xf32> to vector<16x16x128xf32>
    %c16_118 = arith.constant 16 : index
    %c16_119 = arith.constant 16 : index
    %c0_120 = arith.constant 0 : index
    %105 = vector.load %arg6[%c16_118, %c16_119, %c0_120] : memref<48x48x128xf32, #tpu.memory_space<vmem>>, vector<16x16x128xf32>
    tpu.vector_store %arg6[%c16_118, %c16_119, %c0_120], %104 {strides = array<i32>} : memref<48x48x128xf32, #tpu.memory_space<vmem>>, vector<16x16x128xf32>,
    %c1_121 = arith.constant 1 : index
    %c0_122 = arith.constant 0 : index
    %106 = vector.load %arg4[%c1_121, %c0_122] : memref<5x128xf32, #tpu.memory_space<vmem>>, vector<1x128xf32>
    %107 = vector.shape_cast %106 : vector<1x128xf32> to vector<1x128xf32>
    %108 = vector.broadcast %107 : vector<1x128xf32> to vector<256x128xf32>
    %c0_123 = arith.constant 0 : index
    %c0_124 = arith.constant 0 : index
    %109 = vector.load %arg7[%c0_123, %c0_124] : memref<256x128xf32, #tpu.memory_space<vmem>>, vector<256x128xf32>
    tpu.vector_store %arg7[%c0_123, %c0_124], %108 {strides = array<i32>} : memref<256x128xf32, #tpu.memory_space<vmem>>, vector<256x128xf32>,
    %c14 = arith.constant 14 : index
    %c14_125 = arith.constant 14 : index
    %c0_126 = arith.constant 0 : index
    %110 = vector.load %arg6[%c14, %c14_125, %c0_126] : memref<48x48x128xf32, #tpu.memory_space<vmem>>, vector<16x16x128xf32>
    %111 = vector.shape_cast %110 : vector<16x16x128xf32> to vector<256x128xf32>
    %c0_127 = arith.constant 0 : index
    %c0_128 = arith.constant 0 : index
    %112 = vector.load %arg7[%c0_127, %c0_128] : memref<256x128xf32, #tpu.memory_space<vmem>>, vector<256x128xf32>
    %113 = arith.truncf %111 : vector<256x128xf32> to vector<256x128xbf16>
    %c1_129 = arith.constant 1 : index
    %c0_130 = arith.constant 0 : index
    %c0_131 = arith.constant 0 : index
    %c0_132 = arith.constant 0 : index
    %114 = vector.load %arg8[%c1_129, %c0_130, %c0_131, %c0_132] : memref<5x9x128x128xbf16, #tpu.memory_space<vmem>>, vector<1x1x128x128xbf16>
    %115 = vector.shape_cast %114 : vector<1x1x128x128xbf16> to vector<128x128xbf16>
    %cst_133 = arith.constant dense<0.000000e+00> : vector<256x128xf32>
    %116 = tpu.matmul %113, %115, %cst_133 {dimension_numbers = #tpu.dot_dimension_numbers<[1], [0], [0], [1], [0, 0, 1, 1], [], []>} : vector<256x128xbf16>, vector<128x128xbf16>, vector<256x128xf32> -> vector<256x128xf32>
    %117 = arith.addf %112, %116 : vector<256x128xf32>
    %c0_134 = arith.constant 0 : index
    %c0_135 = arith.constant 0 : index
    %118 = vector.load %arg7[%c0_134, %c0_135] : memref<256x128xf32, #tpu.memory_space<vmem>>, vector<256x128xf32>
    tpu.vector_store %arg7[%c0_134, %c0_135], %117 {strides = array<i32>} : memref<256x128xf32, #tpu.memory_space<vmem>>, vector<256x128xf32>,
    %c14_136 = arith.constant 14 : index
    %c16_137 = arith.constant 16 : index
    %c0_138 = arith.constant 0 : index
    %119 = vector.load %arg6[%c14_136, %c16_137, %c0_138] : memref<48x48x128xf32, #tpu.memory_space<vmem>>, vector<16x16x128xf32>
    %120 = vector.shape_cast %119 : vector<16x16x128xf32> to vector<256x128xf32>
    %c0_139 = arith.constant 0 : index
    %c0_140 = arith.constant 0 : index
    %121 = vector.load %arg7[%c0_139, %c0_140] : memref<256x128xf32, #tpu.memory_space<vmem>>, vector<256x128xf32>
    %122 = arith.truncf %120 : vector<256x128xf32> to vector<256x128xbf16>
    %c1_141 = arith.constant 1 : index
    %c1_142 = arith.constant 1 : index
    %c0_143 = arith.constant 0 : index
    %c0_144 = arith.constant 0 : index
    %123 = vector.load %arg8[%c1_141, %c1_142, %c0_143, %c0_144] : memref<5x9x128x128xbf16, #tpu.memory_space<vmem>>, vector<1x1x128x128xbf16>
    %124 = vector.shape_cast %123 : vector<1x1x128x128xbf16> to vector<128x128xbf16>
    %cst_145 = arith.constant dense<0.000000e+00> : vector<256x128xf32>
    %125 = tpu.matmul %122, %124, %cst_145 {dimension_numbers = #tpu.dot_dimension_numbers<[1], [0], [0], [1], [0, 0, 1, 1], [], []>} : vector<256x128xbf16>, vector<128x128xbf16>, vector<256x128xf32> -> vector<256x128xf32>
    %126 = arith.addf %121, %125 : vector<256x128xf32>
    %c0_146 = arith.constant 0 : index
    %c0_147 = arith.constant 0 : index
    %127 = vector.load %arg7[%c0_146, %c0_147] : memref<256x128xf32, #tpu.memory_space<vmem>>, vector<256x128xf32>
    tpu.vector_store %arg7[%c0_146, %c0_147], %126 {strides = array<i32>} : memref<256x128xf32, #tpu.memory_space<vmem>>, vector<256x128xf32>,
    %c14_148 = arith.constant 14 : index
    %c18 = arith.constant 18 : index
    %c0_149 = arith.constant 0 : index
    %128 = vector.load %arg6[%c14_148, %c18, %c0_149] : memref<48x48x128xf32, #tpu.memory_space<vmem>>, vector<16x16x128xf32>
    %129 = vector.shape_cast %128 : vector<16x16x128xf32> to vector<256x128xf32>
    %c0_150 = arith.constant 0 : index
    %c0_151 = arith.constant 0 : index
    %130 = vector.load %arg7[%c0_150, %c0_151] : memref<256x128xf32, #tpu.memory_space<vmem>>, vector<256x128xf32>
    %131 = arith.truncf %129 : vector<256x128xf32> to vector<256x128xbf16>
    %c1_152 = arith.constant 1 : index
    %c2_153 = arith.constant 2 : index
    %c0_154 = arith.constant 0 : index
    %c0_155 = arith.constant 0 : index
    %132 = vector.load %arg8[%c1_152, %c2_153, %c0_154, %c0_155] : memref<5x9x128x128xbf16, #tpu.memory_space<vmem>>, vector<1x1x128x128xbf16>
    %133 = vector.shape_cast %132 : vector<1x1x128x128xbf16> to vector<128x128xbf16>
    %cst_156 = arith.constant dense<0.000000e+00> : vector<256x128xf32>
    %134 = tpu.matmul %131, %133, %cst_156 {dimension_numbers = #tpu.dot_dimension_numbers<[1], [0], [0], [1], [0, 0, 1, 1], [], []>} : vector<256x128xbf16>, vector<128x128xbf16>, vector<256x128xf32> -> vector<256x128xf32>
    %135 = arith.addf %130, %134 : vector<256x128xf32>
    %c0_157 = arith.constant 0 : index
    %c0_158 = arith.constant 0 : index
    %136 = vector.load %arg7[%c0_157, %c0_158] : memref<256x128xf32, #tpu.memory_space<vmem>>, vector<256x128xf32>
    tpu.vector_store %arg7[%c0_157, %c0_158], %135 {strides = array<i32>} : memref<256x128xf32, #tpu.memory_space<vmem>>, vector<256x128xf32>,
    %c16_159 = arith.constant 16 : index
    %c14_160 = arith.constant 14 : index
    %c0_161 = arith.constant 0 : index
    %137 = vector.load %arg6[%c16_159, %c14_160, %c0_161] : memref<48x48x128xf32, #tpu.memory_space<vmem>>, vector<16x16x128xf32>
    %138 = vector.shape_cast %137 : vector<16x16x128xf32> to vector<256x128xf32>
    %c0_162 = arith.constant 0 : index
    %c0_163 = arith.constant 0 : index
    %139 = vector.load %arg7[%c0_162, %c0_163] : memref<256x128xf32, #tpu.memory_space<vmem>>, vector<256x128xf32>
    %140 = arith.truncf %138 : vector<256x128xf32> to vector<256x128xbf16>
    %c1_164 = arith.constant 1 : index
    %c3_165 = arith.constant 3 : index
    %c0_166 = arith.constant 0 : index
    %c0_167 = arith.constant 0 : index
    %141 = vector.load %arg8[%c1_164, %c3_165, %c0_166, %c0_167] : memref<5x9x128x128xbf16, #tpu.memory_space<vmem>>, vector<1x1x128x128xbf16>
    %142 = vector.shape_cast %141 : vector<1x1x128x128xbf16> to vector<128x128xbf16>
    %cst_168 = arith.constant dense<0.000000e+00> : vector<256x128xf32>
    %143 = tpu.matmul %140, %142, %cst_168 {dimension_numbers = #tpu.dot_dimension_numbers<[1], [0], [0], [1], [0, 0, 1, 1], [], []>} : vector<256x128xbf16>, vector<128x128xbf16>, vector<256x128xf32> -> vector<256x128xf32>
    %144 = arith.addf %139, %143 : vector<256x128xf32>
    %c0_169 = arith.constant 0 : index
    %c0_170 = arith.constant 0 : index
    %145 = vector.load %arg7[%c0_169, %c0_170] : memref<256x128xf32, #tpu.memory_space<vmem>>, vector<256x128xf32>
    tpu.vector_store %arg7[%c0_169, %c0_170], %144 {strides = array<i32>} : memref<256x128xf32, #tpu.memory_space<vmem>>, vector<256x128xf32>,
    %c16_171 = arith.constant 16 : index
    %c16_172 = arith.constant 16 : index
    %c0_173 = arith.constant 0 : index
    %146 = vector.load %arg6[%c16_171, %c16_172, %c0_173] : memref<48x48x128xf32, #tpu.memory_space<vmem>>, vector<16x16x128xf32>
    %147 = vector.shape_cast %146 : vector<16x16x128xf32> to vector<256x128xf32>
    %c0_174 = arith.constant 0 : index
    %c0_175 = arith.constant 0 : index
    %148 = vector.load %arg7[%c0_174, %c0_175] : memref<256x128xf32, #tpu.memory_space<vmem>>, vector<256x128xf32>
    %149 = arith.truncf %147 : vector<256x128xf32> to vector<256x128xbf16>
    %c1_176 = arith.constant 1 : index
    %c4_177 = arith.constant 4 : index
    %c0_178 = arith.constant 0 : index
    %c0_179 = arith.constant 0 : index
    %150 = vector.load %arg8[%c1_176, %c4_177, %c0_178, %c0_179] : memref<5x9x128x128xbf16, #tpu.memory_space<vmem>>, vector<1x1x128x128xbf16>
    %151 = vector.shape_cast %150 : vector<1x1x128x128xbf16> to vector<128x128xbf16>
    %cst_180 = arith.constant dense<0.000000e+00> : vector<256x128xf32>
    %152 = tpu.matmul %149, %151, %cst_180 {dimension_numbers = #tpu.dot_dimension_numbers<[1], [0], [0], [1], [0, 0, 1, 1], [], []>} : vector<256x128xbf16>, vector<128x128xbf16>, vector<256x128xf32> -> vector<256x128xf32>
    %153 = arith.addf %148, %152 : vector<256x128xf32>
    %c0_181 = arith.constant 0 : index
    %c0_182 = arith.constant 0 : index
    %154 = vector.load %arg7[%c0_181, %c0_182] : memref<256x128xf32, #tpu.memory_space<vmem>>, vector<256x128xf32>
    tpu.vector_store %arg7[%c0_181, %c0_182], %153 {strides = array<i32>} : memref<256x128xf32, #tpu.memory_space<vmem>>, vector<256x128xf32>,
    %c16_183 = arith.constant 16 : index
    %c18_184 = arith.constant 18 : index
    %c0_185 = arith.constant 0 : index
    %155 = vector.load %arg6[%c16_183, %c18_184, %c0_185] : memref<48x48x128xf32, #tpu.memory_space<vmem>>, vector<16x16x128xf32>
    %156 = vector.shape_cast %155 : vector<16x16x128xf32> to vector<256x128xf32>
    %c0_186 = arith.constant 0 : index
    %c0_187 = arith.constant 0 : index
    %157 = vector.load %arg7[%c0_186, %c0_187] : memref<256x128xf32, #tpu.memory_space<vmem>>, vector<256x128xf32>
    %158 = arith.truncf %156 : vector<256x128xf32> to vector<256x128xbf16>
    %c1_188 = arith.constant 1 : index
    %c5_189 = arith.constant 5 : index
    %c0_190 = arith.constant 0 : index
    %c0_191 = arith.constant 0 : index
    %159 = vector.load %arg8[%c1_188, %c5_189, %c0_190, %c0_191] : memref<5x9x128x128xbf16, #tpu.memory_space<vmem>>, vector<1x1x128x128xbf16>
    %160 = vector.shape_cast %159 : vector<1x1x128x128xbf16> to vector<128x128xbf16>
    %cst_192 = arith.constant dense<0.000000e+00> : vector<256x128xf32>
    %161 = tpu.matmul %158, %160, %cst_192 {dimension_numbers = #tpu.dot_dimension_numbers<[1], [0], [0], [1], [0, 0, 1, 1], [], []>} : vector<256x128xbf16>, vector<128x128xbf16>, vector<256x128xf32> -> vector<256x128xf32>
    %162 = arith.addf %157, %161 : vector<256x128xf32>
    %c0_193 = arith.constant 0 : index
    %c0_194 = arith.constant 0 : index
    %163 = vector.load %arg7[%c0_193, %c0_194] : memref<256x128xf32, #tpu.memory_space<vmem>>, vector<256x128xf32>
    tpu.vector_store %arg7[%c0_193, %c0_194], %162 {strides = array<i32>} : memref<256x128xf32, #tpu.memory_space<vmem>>, vector<256x128xf32>,
    %c18_195 = arith.constant 18 : index
    %c14_196 = arith.constant 14 : index
    %c0_197 = arith.constant 0 : index
    %164 = vector.load %arg6[%c18_195, %c14_196, %c0_197] : memref<48x48x128xf32, #tpu.memory_space<vmem>>, vector<16x16x128xf32>
    %165 = vector.shape_cast %164 : vector<16x16x128xf32> to vector<256x128xf32>
    %c0_198 = arith.constant 0 : index
    %c0_199 = arith.constant 0 : index
    %166 = vector.load %arg7[%c0_198, %c0_199] : memref<256x128xf32, #tpu.memory_space<vmem>>, vector<256x128xf32>
    %167 = arith.truncf %165 : vector<256x128xf32> to vector<256x128xbf16>
    %c1_200 = arith.constant 1 : index
    %c6_201 = arith.constant 6 : index
    %c0_202 = arith.constant 0 : index
    %c0_203 = arith.constant 0 : index
    %168 = vector.load %arg8[%c1_200, %c6_201, %c0_202, %c0_203] : memref<5x9x128x128xbf16, #tpu.memory_space<vmem>>, vector<1x1x128x128xbf16>
    %169 = vector.shape_cast %168 : vector<1x1x128x128xbf16> to vector<128x128xbf16>
    %cst_204 = arith.constant dense<0.000000e+00> : vector<256x128xf32>
    %170 = tpu.matmul %167, %169, %cst_204 {dimension_numbers = #tpu.dot_dimension_numbers<[1], [0], [0], [1], [0, 0, 1, 1], [], []>} : vector<256x128xbf16>, vector<128x128xbf16>, vector<256x128xf32> -> vector<256x128xf32>
    %171 = arith.addf %166, %170 : vector<256x128xf32>
    %c0_205 = arith.constant 0 : index
    %c0_206 = arith.constant 0 : index
    %172 = vector.load %arg7[%c0_205, %c0_206] : memref<256x128xf32, #tpu.memory_space<vmem>>, vector<256x128xf32>
    tpu.vector_store %arg7[%c0_205, %c0_206], %171 {strides = array<i32>} : memref<256x128xf32, #tpu.memory_space<vmem>>, vector<256x128xf32>,
    %c18_207 = arith.constant 18 : index
    %c16_208 = arith.constant 16 : index
    %c0_209 = arith.constant 0 : index
    %173 = vector.load %arg6[%c18_207, %c16_208, %c0_209] : memref<48x48x128xf32, #tpu.memory_space<vmem>>, vector<16x16x128xf32>
    %174 = vector.shape_cast %173 : vector<16x16x128xf32> to vector<256x128xf32>
    %c0_210 = arith.constant 0 : index
    %c0_211 = arith.constant 0 : index
    %175 = vector.load %arg7[%c0_210, %c0_211] : memref<256x128xf32, #tpu.memory_space<vmem>>, vector<256x128xf32>
    %176 = arith.truncf %174 : vector<256x128xf32> to vector<256x128xbf16>
    %c1_212 = arith.constant 1 : index
    %c7_213 = arith.constant 7 : index
    %c0_214 = arith.constant 0 : index
    %c0_215 = arith.constant 0 : index
    %177 = vector.load %arg8[%c1_212, %c7_213, %c0_214, %c0_215] : memref<5x9x128x128xbf16, #tpu.memory_space<vmem>>, vector<1x1x128x128xbf16>
    %178 = vector.shape_cast %177 : vector<1x1x128x128xbf16> to vector<128x128xbf16>
    %cst_216 = arith.constant dense<0.000000e+00> : vector<256x128xf32>
    %179 = tpu.matmul %176, %178, %cst_216 {dimension_numbers = #tpu.dot_dimension_numbers<[1], [0], [0], [1], [0, 0, 1, 1], [], []>} : vector<256x128xbf16>, vector<128x128xbf16>, vector<256x128xf32> -> vector<256x128xf32>
    %180 = arith.addf %175, %179 : vector<256x128xf32>
    %c0_217 = arith.constant 0 : index
    %c0_218 = arith.constant 0 : index
    %181 = vector.load %arg7[%c0_217, %c0_218] : memref<256x128xf32, #tpu.memory_space<vmem>>, vector<256x128xf32>
    tpu.vector_store %arg7[%c0_217, %c0_218], %180 {strides = array<i32>} : memref<256x128xf32, #tpu.memory_space<vmem>>, vector<256x128xf32>,
    %c18_219 = arith.constant 18 : index
    %c18_220 = arith.constant 18 : index
    %c0_221 = arith.constant 0 : index
    %182 = vector.load %arg6[%c18_219, %c18_220, %c0_221] : memref<48x48x128xf32, #tpu.memory_space<vmem>>, vector<16x16x128xf32>
    %183 = vector.shape_cast %182 : vector<16x16x128xf32> to vector<256x128xf32>
    %c0_222 = arith.constant 0 : index
    %c0_223 = arith.constant 0 : index
    %184 = vector.load %arg7[%c0_222, %c0_223] : memref<256x128xf32, #tpu.memory_space<vmem>>, vector<256x128xf32>
    %185 = arith.truncf %183 : vector<256x128xf32> to vector<256x128xbf16>
    %c1_224 = arith.constant 1 : index
    %c8_225 = arith.constant 8 : index
    %c0_226 = arith.constant 0 : index
    %c0_227 = arith.constant 0 : index
    %186 = vector.load %arg8[%c1_224, %c8_225, %c0_226, %c0_227] : memref<5x9x128x128xbf16, #tpu.memory_space<vmem>>, vector<1x1x128x128xbf16>
    %187 = vector.shape_cast %186 : vector<1x1x128x128xbf16> to vector<128x128xbf16>
    %cst_228 = arith.constant dense<0.000000e+00> : vector<256x128xf32>
    %188 = tpu.matmul %185, %187, %cst_228 {dimension_numbers = #tpu.dot_dimension_numbers<[1], [0], [0], [1], [0, 0, 1, 1], [], []>} : vector<256x128xbf16>, vector<128x128xbf16>, vector<256x128xf32> -> vector<256x128xf32>
    %189 = arith.addf %184, %188 : vector<256x128xf32>
    %c0_229 = arith.constant 0 : index
    %c0_230 = arith.constant 0 : index
    %190 = vector.load %arg7[%c0_229, %c0_230] : memref<256x128xf32, #tpu.memory_space<vmem>>, vector<256x128xf32>
    tpu.vector_store %arg7[%c0_229, %c0_230], %189 {strides = array<i32>} : memref<256x128xf32, #tpu.memory_space<vmem>>, vector<256x128xf32>,
    %c0_231 = arith.constant 0 : index
    %c0_232 = arith.constant 0 : index
    %191 = vector.load %arg7[%c0_231, %c0_232] : memref<256x128xf32, #tpu.memory_space<vmem>>, vector<256x128xf32>
    %cst_233 = arith.constant 0.000000e+00 : f32
    %192 = vector.broadcast %cst_233 : f32 to vector<256x128xf32>
    %193 = arith.maximumf %191, %192 : vector<256x128xf32>
    %c0_234 = arith.constant 0 : index
    %c0_235 = arith.constant 0 : index
    %c0_236 = arith.constant 0 : index
    %194 = vector.load %arg5[%c0_234, %c0_235, %c0_236] : memref<1x256x128xf32, #tpu.memory_space<vmem>>, vector<1x256x128xf32>
    %195 = vector.shape_cast %194 : vector<1x256x128xf32> to vector<256x128xf32>
    %196 = arith.addf %195, %193 : vector<256x128xf32>
    %c0_237 = arith.constant 0 : index
    %c0_238 = arith.constant 0 : index
    %c0_239 = arith.constant 0 : index
    %197 = vector.load %arg5[%c0_237, %c0_238, %c0_239] : memref<1x256x128xf32, #tpu.memory_space<vmem>>, vector<1x256x128xf32>
    %198 = vector.shape_cast %197 : vector<1x256x128xf32> to vector<256x128xf32>
    %199 = vector.shape_cast %196 : vector<256x128xf32> to vector<1x256x128xf32>
    tpu.vector_store %arg5[%c0_237, %c0_238, %c0_239], %199 {strides = array<i32>} : memref<1x256x128xf32, #tpu.memory_space<vmem>>, vector<1x256x128xf32>,
    %200 = vector.shape_cast %193 : vector<256x128xf32> to vector<16x16x128xf32>
    %c16_240 = arith.constant 16 : index
    %c16_241 = arith.constant 16 : index
    %c0_242 = arith.constant 0 : index
    %201 = vector.load %arg6[%c16_240, %c16_241, %c0_242] : memref<48x48x128xf32, #tpu.memory_space<vmem>>, vector<16x16x128xf32>
    tpu.vector_store %arg6[%c16_240, %c16_241, %c0_242], %200 {strides = array<i32>} : memref<48x48x128xf32, #tpu.memory_space<vmem>>, vector<16x16x128xf32>,
    %c2_243 = arith.constant 2 : index
    %c0_244 = arith.constant 0 : index
    %202 = vector.load %arg4[%c2_243, %c0_244] : memref<5x128xf32, #tpu.memory_space<vmem>>, vector<1x128xf32>
    %203 = vector.shape_cast %202 : vector<1x128xf32> to vector<1x128xf32>
    %204 = vector.broadcast %203 : vector<1x128xf32> to vector<256x128xf32>
    %c0_245 = arith.constant 0 : index
    %c0_246 = arith.constant 0 : index
    %205 = vector.load %arg7[%c0_245, %c0_246] : memref<256x128xf32, #tpu.memory_space<vmem>>, vector<256x128xf32>
    tpu.vector_store %arg7[%c0_245, %c0_246], %204 {strides = array<i32>} : memref<256x128xf32, #tpu.memory_space<vmem>>, vector<256x128xf32>,
    %c12 = arith.constant 12 : index
    %c12_247 = arith.constant 12 : index
    %c0_248 = arith.constant 0 : index
    %206 = vector.load %arg6[%c12, %c12_247, %c0_248] : memref<48x48x128xf32, #tpu.memory_space<vmem>>, vector<16x16x128xf32>
    %207 = vector.shape_cast %206 : vector<16x16x128xf32> to vector<256x128xf32>
    %c0_249 = arith.constant 0 : index
    %c0_250 = arith.constant 0 : index
    %208 = vector.load %arg7[%c0_249, %c0_250] : memref<256x128xf32, #tpu.memory_space<vmem>>, vector<256x128xf32>
    %209 = arith.truncf %207 : vector<256x128xf32> to vector<256x128xbf16>
    %c2_251 = arith.constant 2 : index
    %c0_252 = arith.constant 0 : index
    %c0_253 = arith.constant 0 : index
    %c0_254 = arith.constant 0 : index
    %210 = vector.load %arg8[%c2_251, %c0_252, %c0_253, %c0_254] : memref<5x9x128x128xbf16, #tpu.memory_space<vmem>>, vector<1x1x128x128xbf16>
    %211 = vector.shape_cast %210 : vector<1x1x128x128xbf16> to vector<128x128xbf16>
    %cst_255 = arith.constant dense<0.000000e+00> : vector<256x128xf32>
    %212 = tpu.matmul %209, %211, %cst_255 {dimension_numbers = #tpu.dot_dimension_numbers<[1], [0], [0], [1], [0, 0, 1, 1], [], []>} : vector<256x128xbf16>, vector<128x128xbf16>, vector<256x128xf32> -> vector<256x128xf32>
    %213 = arith.addf %208, %212 : vector<256x128xf32>
    %c0_256 = arith.constant 0 : index
    %c0_257 = arith.constant 0 : index
    %214 = vector.load %arg7[%c0_256, %c0_257] : memref<256x128xf32, #tpu.memory_space<vmem>>, vector<256x128xf32>
    tpu.vector_store %arg7[%c0_256, %c0_257], %213 {strides = array<i32>} : memref<256x128xf32, #tpu.memory_space<vmem>>, vector<256x128xf32>,
    %c12_258 = arith.constant 12 : index
    %c16_259 = arith.constant 16 : index
    %c0_260 = arith.constant 0 : index
    %215 = vector.load %arg6[%c12_258, %c16_259, %c0_260] : memref<48x48x128xf32, #tpu.memory_space<vmem>>, vector<16x16x128xf32>
    %216 = vector.shape_cast %215 : vector<16x16x128xf32> to vector<256x128xf32>
    %c0_261 = arith.constant 0 : index
    %c0_262 = arith.constant 0 : index
    %217 = vector.load %arg7[%c0_261, %c0_262] : memref<256x128xf32, #tpu.memory_space<vmem>>, vector<256x128xf32>
    %218 = arith.truncf %216 : vector<256x128xf32> to vector<256x128xbf16>
    %c2_263 = arith.constant 2 : index
    %c1_264 = arith.constant 1 : index
    %c0_265 = arith.constant 0 : index
    %c0_266 = arith.constant 0 : index
    %219 = vector.load %arg8[%c2_263, %c1_264, %c0_265, %c0_266] : memref<5x9x128x128xbf16, #tpu.memory_space<vmem>>, vector<1x1x128x128xbf16>
    %220 = vector.shape_cast %219 : vector<1x1x128x128xbf16> to vector<128x128xbf16>
    %cst_267 = arith.constant dense<0.000000e+00> : vector<256x128xf32>
    %221 = tpu.matmul %218, %220, %cst_267 {dimension_numbers = #tpu.dot_dimension_numbers<[1], [0], [0], [1], [0, 0, 1, 1], [], []>} : vector<256x128xbf16>, vector<128x128xbf16>, vector<256x128xf32> -> vector<256x128xf32>
    %222 = arith.addf %217, %221 : vector<256x128xf32>
    %c0_268 = arith.constant 0 : index
    %c0_269 = arith.constant 0 : index
    %223 = vector.load %arg7[%c0_268, %c0_269] : memref<256x128xf32, #tpu.memory_space<vmem>>, vector<256x128xf32>
    tpu.vector_store %arg7[%c0_268, %c0_269], %222 {strides = array<i32>} : memref<256x128xf32, #tpu.memory_space<vmem>>, vector<256x128xf32>,
    %c12_270 = arith.constant 12 : index
    %c20 = arith.constant 20 : index
    %c0_271 = arith.constant 0 : index
    %224 = vector.load %arg6[%c12_270, %c20, %c0_271] : memref<48x48x128xf32, #tpu.memory_space<vmem>>, vector<16x16x128xf32>
    %225 = vector.shape_cast %224 : vector<16x16x128xf32> to vector<256x128xf32>
    %c0_272 = arith.constant 0 : index
    %c0_273 = arith.constant 0 : index
    %226 = vector.load %arg7[%c0_272, %c0_273] : memref<256x128xf32, #tpu.memory_space<vmem>>, vector<256x128xf32>
    %227 = arith.truncf %225 : vector<256x128xf32> to vector<256x128xbf16>
    %c2_274 = arith.constant 2 : index
    %c2_275 = arith.constant 2 : index
    %c0_276 = arith.constant 0 : index
    %c0_277 = arith.constant 0 : index
    %228 = vector.load %arg8[%c2_274, %c2_275, %c0_276, %c0_277] : memref<5x9x128x128xbf16, #tpu.memory_space<vmem>>, vector<1x1x128x128xbf16>
    %229 = vector.shape_cast %228 : vector<1x1x128x128xbf16> to vector<128x128xbf16>
    %cst_278 = arith.constant dense<0.000000e+00> : vector<256x128xf32>
    %230 = tpu.matmul %227, %229, %cst_278 {dimension_numbers = #tpu.dot_dimension_numbers<[1], [0], [0], [1], [0, 0, 1, 1], [], []>} : vector<256x128xbf16>, vector<128x128xbf16>, vector<256x128xf32> -> vector<256x128xf32>
    %231 = arith.addf %226, %230 : vector<256x128xf32>
    %c0_279 = arith.constant 0 : index
    %c0_280 = arith.constant 0 : index
    %232 = vector.load %arg7[%c0_279, %c0_280] : memref<256x128xf32, #tpu.memory_space<vmem>>, vector<256x128xf32>
    tpu.vector_store %arg7[%c0_279, %c0_280], %231 {strides = array<i32>} : memref<256x128xf32, #tpu.memory_space<vmem>>, vector<256x128xf32>,
    %c16_281 = arith.constant 16 : index
    %c12_282 = arith.constant 12 : index
    %c0_283 = arith.constant 0 : index
    %233 = vector.load %arg6[%c16_281, %c12_282, %c0_283] : memref<48x48x128xf32, #tpu.memory_space<vmem>>, vector<16x16x128xf32>
    %234 = vector.shape_cast %233 : vector<16x16x128xf32> to vector<256x128xf32>
    %c0_284 = arith.constant 0 : index
    %c0_285 = arith.constant 0 : index
    %235 = vector.load %arg7[%c0_284, %c0_285] : memref<256x128xf32, #tpu.memory_space<vmem>>, vector<256x128xf32>
    %236 = arith.truncf %234 : vector<256x128xf32> to vector<256x128xbf16>
    %c2_286 = arith.constant 2 : index
    %c3_287 = arith.constant 3 : index
    %c0_288 = arith.constant 0 : index
    %c0_289 = arith.constant 0 : index
    %237 = vector.load %arg8[%c2_286, %c3_287, %c0_288, %c0_289] : memref<5x9x128x128xbf16, #tpu.memory_space<vmem>>, vector<1x1x128x128xbf16>
    %238 = vector.shape_cast %237 : vector<1x1x128x128xbf16> to vector<128x128xbf16>
    %cst_290 = arith.constant dense<0.000000e+00> : vector<256x128xf32>
    %239 = tpu.matmul %236, %238, %cst_290 {dimension_numbers = #tpu.dot_dimension_numbers<[1], [0], [0], [1], [0, 0, 1, 1], [], []>} : vector<256x128xbf16>, vector<128x128xbf16>, vector<256x128xf32> -> vector<256x128xf32>
    %240 = arith.addf %235, %239 : vector<256x128xf32>
    %c0_291 = arith.constant 0 : index
    %c0_292 = arith.constant 0 : index
    %241 = vector.load %arg7[%c0_291, %c0_292] : memref<256x128xf32, #tpu.memory_space<vmem>>, vector<256x128xf32>
    tpu.vector_store %arg7[%c0_291, %c0_292], %240 {strides = array<i32>} : memref<256x128xf32, #tpu.memory_space<vmem>>, vector<256x128xf32>,
    %c16_293 = arith.constant 16 : index
    %c16_294 = arith.constant 16 : index
    %c0_295 = arith.constant 0 : index
    %242 = vector.load %arg6[%c16_293, %c16_294, %c0_295] : memref<48x48x128xf32, #tpu.memory_space<vmem>>, vector<16x16x128xf32>
    %243 = vector.shape_cast %242 : vector<16x16x128xf32> to vector<256x128xf32>
    %c0_296 = arith.constant 0 : index
    %c0_297 = arith.constant 0 : index
    %244 = vector.load %arg7[%c0_296, %c0_297] : memref<256x128xf32, #tpu.memory_space<vmem>>, vector<256x128xf32>
    %245 = arith.truncf %243 : vector<256x128xf32> to vector<256x128xbf16>
    %c2_298 = arith.constant 2 : index
    %c4_299 = arith.constant 4 : index
    %c0_300 = arith.constant 0 : index
    %c0_301 = arith.constant 0 : index
    %246 = vector.load %arg8[%c2_298, %c4_299, %c0_300, %c0_301] : memref<5x9x128x128xbf16, #tpu.memory_space<vmem>>, vector<1x1x128x128xbf16>
    %247 = vector.shape_cast %246 : vector<1x1x128x128xbf16> to vector<128x128xbf16>
    %cst_302 = arith.constant dense<0.000000e+00> : vector<256x128xf32>
    %248 = tpu.matmul %245, %247, %cst_302 {dimension_numbers = #tpu.dot_dimension_numbers<[1], [0], [0], [1], [0, 0, 1, 1], [], []>} : vector<256x128xbf16>, vector<128x128xbf16>, vector<256x128xf32> -> vector<256x128xf32>
    %249 = arith.addf %244, %248 : vector<256x128xf32>
    %c0_303 = arith.constant 0 : index
    %c0_304 = arith.constant 0 : index
    %250 = vector.load %arg7[%c0_303, %c0_304] : memref<256x128xf32, #tpu.memory_space<vmem>>, vector<256x128xf32>
    tpu.vector_store %arg7[%c0_303, %c0_304], %249 {strides = array<i32>} : memref<256x128xf32, #tpu.memory_space<vmem>>, vector<256x128xf32>,
    %c16_305 = arith.constant 16 : index
    %c20_306 = arith.constant 20 : index
    %c0_307 = arith.constant 0 : index
    %251 = vector.load %arg6[%c16_305, %c20_306, %c0_307] : memref<48x48x128xf32, #tpu.memory_space<vmem>>, vector<16x16x128xf32>
    %252 = vector.shape_cast %251 : vector<16x16x128xf32> to vector<256x128xf32>
    %c0_308 = arith.constant 0 : index
    %c0_309 = arith.constant 0 : index
    %253 = vector.load %arg7[%c0_308, %c0_309] : memref<256x128xf32, #tpu.memory_space<vmem>>, vector<256x128xf32>
    %254 = arith.truncf %252 : vector<256x128xf32> to vector<256x128xbf16>
    %c2_310 = arith.constant 2 : index
    %c5_311 = arith.constant 5 : index
    %c0_312 = arith.constant 0 : index
    %c0_313 = arith.constant 0 : index
    %255 = vector.load %arg8[%c2_310, %c5_311, %c0_312, %c0_313] : memref<5x9x128x128xbf16, #tpu.memory_space<vmem>>, vector<1x1x128x128xbf16>
    %256 = vector.shape_cast %255 : vector<1x1x128x128xbf16> to vector<128x128xbf16>
    %cst_314 = arith.constant dense<0.000000e+00> : vector<256x128xf32>
    %257 = tpu.matmul %254, %256, %cst_314 {dimension_numbers = #tpu.dot_dimension_numbers<[1], [0], [0], [1], [0, 0, 1, 1], [], []>} : vector<256x128xbf16>, vector<128x128xbf16>, vector<256x128xf32> -> vector<256x128xf32>
    %258 = arith.addf %253, %257 : vector<256x128xf32>
    %c0_315 = arith.constant 0 : index
    %c0_316 = arith.constant 0 : index
    %259 = vector.load %arg7[%c0_315, %c0_316] : memref<256x128xf32, #tpu.memory_space<vmem>>, vector<256x128xf32>
    tpu.vector_store %arg7[%c0_315, %c0_316], %258 {strides = array<i32>} : memref<256x128xf32, #tpu.memory_space<vmem>>, vector<256x128xf32>,
    %c20_317 = arith.constant 20 : index
    %c12_318 = arith.constant 12 : index
    %c0_319 = arith.constant 0 : index
    %260 = vector.load %arg6[%c20_317, %c12_318, %c0_319] : memref<48x48x128xf32, #tpu.memory_space<vmem>>, vector<16x16x128xf32>
    %261 = vector.shape_cast %260 : vector<16x16x128xf32> to vector<256x128xf32>
    %c0_320 = arith.constant 0 : index
    %c0_321 = arith.constant 0 : index
    %262 = vector.load %arg7[%c0_320, %c0_321] : memref<256x128xf32, #tpu.memory_space<vmem>>, vector<256x128xf32>
    %263 = arith.truncf %261 : vector<256x128xf32> to vector<256x128xbf16>
    %c2_322 = arith.constant 2 : index
    %c6_323 = arith.constant 6 : index
    %c0_324 = arith.constant 0 : index
    %c0_325 = arith.constant 0 : index
    %264 = vector.load %arg8[%c2_322, %c6_323, %c0_324, %c0_325] : memref<5x9x128x128xbf16, #tpu.memory_space<vmem>>, vector<1x1x128x128xbf16>
    %265 = vector.shape_cast %264 : vector<1x1x128x128xbf16> to vector<128x128xbf16>
    %cst_326 = arith.constant dense<0.000000e+00> : vector<256x128xf32>
    %266 = tpu.matmul %263, %265, %cst_326 {dimension_numbers = #tpu.dot_dimension_numbers<[1], [0], [0], [1], [0, 0, 1, 1], [], []>} : vector<256x128xbf16>, vector<128x128xbf16>, vector<256x128xf32> -> vector<256x128xf32>
    %267 = arith.addf %262, %266 : vector<256x128xf32>
    %c0_327 = arith.constant 0 : index
    %c0_328 = arith.constant 0 : index
    %268 = vector.load %arg7[%c0_327, %c0_328] : memref<256x128xf32, #tpu.memory_space<vmem>>, vector<256x128xf32>
    tpu.vector_store %arg7[%c0_327, %c0_328], %267 {strides = array<i32>} : memref<256x128xf32, #tpu.memory_space<vmem>>, vector<256x128xf32>,
    %c20_329 = arith.constant 20 : index
    %c16_330 = arith.constant 16 : index
    %c0_331 = arith.constant 0 : index
    %269 = vector.load %arg6[%c20_329, %c16_330, %c0_331] : memref<48x48x128xf32, #tpu.memory_space<vmem>>, vector<16x16x128xf32>
    %270 = vector.shape_cast %269 : vector<16x16x128xf32> to vector<256x128xf32>
    %c0_332 = arith.constant 0 : index
    %c0_333 = arith.constant 0 : index
    %271 = vector.load %arg7[%c0_332, %c0_333] : memref<256x128xf32, #tpu.memory_space<vmem>>, vector<256x128xf32>
    %272 = arith.truncf %270 : vector<256x128xf32> to vector<256x128xbf16>
    %c2_334 = arith.constant 2 : index
    %c7_335 = arith.constant 7 : index
    %c0_336 = arith.constant 0 : index
    %c0_337 = arith.constant 0 : index
    %273 = vector.load %arg8[%c2_334, %c7_335, %c0_336, %c0_337] : memref<5x9x128x128xbf16, #tpu.memory_space<vmem>>, vector<1x1x128x128xbf16>
    %274 = vector.shape_cast %273 : vector<1x1x128x128xbf16> to vector<128x128xbf16>
    %cst_338 = arith.constant dense<0.000000e+00> : vector<256x128xf32>
    %275 = tpu.matmul %272, %274, %cst_338 {dimension_numbers = #tpu.dot_dimension_numbers<[1], [0], [0], [1], [0, 0, 1, 1], [], []>} : vector<256x128xbf16>, vector<128x128xbf16>, vector<256x128xf32> -> vector<256x128xf32>
    %276 = arith.addf %271, %275 : vector<256x128xf32>
    %c0_339 = arith.constant 0 : index
    %c0_340 = arith.constant 0 : index
    %277 = vector.load %arg7[%c0_339, %c0_340] : memref<256x128xf32, #tpu.memory_space<vmem>>, vector<256x128xf32>
    tpu.vector_store %arg7[%c0_339, %c0_340], %276 {strides = array<i32>} : memref<256x128xf32, #tpu.memory_space<vmem>>, vector<256x128xf32>,
    %c20_341 = arith.constant 20 : index
    %c20_342 = arith.constant 20 : index
    %c0_343 = arith.constant 0 : index
    %278 = vector.load %arg6[%c20_341, %c20_342, %c0_343] : memref<48x48x128xf32, #tpu.memory_space<vmem>>, vector<16x16x128xf32>
    %279 = vector.shape_cast %278 : vector<16x16x128xf32> to vector<256x128xf32>
    %c0_344 = arith.constant 0 : index
    %c0_345 = arith.constant 0 : index
    %280 = vector.load %arg7[%c0_344, %c0_345] : memref<256x128xf32, #tpu.memory_space<vmem>>, vector<256x128xf32>
    %281 = arith.truncf %279 : vector<256x128xf32> to vector<256x128xbf16>
    %c2_346 = arith.constant 2 : index
    %c8_347 = arith.constant 8 : index
    %c0_348 = arith.constant 0 : index
    %c0_349 = arith.constant 0 : index
    %282 = vector.load %arg8[%c2_346, %c8_347, %c0_348, %c0_349] : memref<5x9x128x128xbf16, #tpu.memory_space<vmem>>, vector<1x1x128x128xbf16>
    %283 = vector.shape_cast %282 : vector<1x1x128x128xbf16> to vector<128x128xbf16>
    %cst_350 = arith.constant dense<0.000000e+00> : vector<256x128xf32>
    %284 = tpu.matmul %281, %283, %cst_350 {dimension_numbers = #tpu.dot_dimension_numbers<[1], [0], [0], [1], [0, 0, 1, 1], [], []>} : vector<256x128xbf16>, vector<128x128xbf16>, vector<256x128xf32> -> vector<256x128xf32>
    %285 = arith.addf %280, %284 : vector<256x128xf32>
    %c0_351 = arith.constant 0 : index
    %c0_352 = arith.constant 0 : index
    %286 = vector.load %arg7[%c0_351, %c0_352] : memref<256x128xf32, #tpu.memory_space<vmem>>, vector<256x128xf32>
    tpu.vector_store %arg7[%c0_351, %c0_352], %285 {strides = array<i32>} : memref<256x128xf32, #tpu.memory_space<vmem>>, vector<256x128xf32>,
    %c0_353 = arith.constant 0 : index
    %c0_354 = arith.constant 0 : index
    %287 = vector.load %arg7[%c0_353, %c0_354] : memref<256x128xf32, #tpu.memory_space<vmem>>, vector<256x128xf32>
    %cst_355 = arith.constant 0.000000e+00 : f32
    %288 = vector.broadcast %cst_355 : f32 to vector<256x128xf32>
    %289 = arith.maximumf %287, %288 : vector<256x128xf32>
    %c0_356 = arith.constant 0 : index
    %c0_357 = arith.constant 0 : index
    %c0_358 = arith.constant 0 : index
    %290 = vector.load %arg5[%c0_356, %c0_357, %c0_358] : memref<1x256x128xf32, #tpu.memory_space<vmem>>, vector<1x256x128xf32>
    %291 = vector.shape_cast %290 : vector<1x256x128xf32> to vector<256x128xf32>
    %292 = arith.addf %291, %289 : vector<256x128xf32>
    %c0_359 = arith.constant 0 : index
    %c0_360 = arith.constant 0 : index
    %c0_361 = arith.constant 0 : index
    %293 = vector.load %arg5[%c0_359, %c0_360, %c0_361] : memref<1x256x128xf32, #tpu.memory_space<vmem>>, vector<1x256x128xf32>
    %294 = vector.shape_cast %293 : vector<1x256x128xf32> to vector<256x128xf32>
    %295 = vector.shape_cast %292 : vector<256x128xf32> to vector<1x256x128xf32>
    tpu.vector_store %arg5[%c0_359, %c0_360, %c0_361], %295 {strides = array<i32>} : memref<1x256x128xf32, #tpu.memory_space<vmem>>, vector<1x256x128xf32>,
    %296 = vector.shape_cast %289 : vector<256x128xf32> to vector<16x16x128xf32>
    %c16_362 = arith.constant 16 : index
    %c16_363 = arith.constant 16 : index
    %c0_364 = arith.constant 0 : index
    %297 = vector.load %arg6[%c16_362, %c16_363, %c0_364] : memref<48x48x128xf32, #tpu.memory_space<vmem>>, vector<16x16x128xf32>
    tpu.vector_store %arg6[%c16_362, %c16_363, %c0_364], %296 {strides = array<i32>} : memref<48x48x128xf32, #tpu.memory_space<vmem>>, vector<16x16x128xf32>,
    %c3_365 = arith.constant 3 : index
    %c0_366 = arith.constant 0 : index
    %298 = vector.load %arg4[%c3_365, %c0_366] : memref<5x128xf32, #tpu.memory_space<vmem>>, vector<1x128xf32>
    %299 = vector.shape_cast %298 : vector<1x128xf32> to vector<1x128xf32>
    %300 = vector.broadcast %299 : vector<1x128xf32> to vector<256x128xf32>
    %c0_367 = arith.constant 0 : index
    %c0_368 = arith.constant 0 : index
    %301 = vector.load %arg7[%c0_367, %c0_368] : memref<256x128xf32, #tpu.memory_space<vmem>>, vector<256x128xf32>
    tpu.vector_store %arg7[%c0_367, %c0_368], %300 {strides = array<i32>} : memref<256x128xf32, #tpu.memory_space<vmem>>, vector<256x128xf32>,
    %c8_369 = arith.constant 8 : index
    %c8_370 = arith.constant 8 : index
    %c0_371 = arith.constant 0 : index
    %302 = vector.load %arg6[%c8_369, %c8_370, %c0_371] : memref<48x48x128xf32, #tpu.memory_space<vmem>>, vector<16x16x128xf32>
    %303 = vector.shape_cast %302 : vector<16x16x128xf32> to vector<256x128xf32>
    %c0_372 = arith.constant 0 : index
    %c0_373 = arith.constant 0 : index
    %304 = vector.load %arg7[%c0_372, %c0_373] : memref<256x128xf32, #tpu.memory_space<vmem>>, vector<256x128xf32>
    %305 = arith.truncf %303 : vector<256x128xf32> to vector<256x128xbf16>
    %c3_374 = arith.constant 3 : index
    %c0_375 = arith.constant 0 : index
    %c0_376 = arith.constant 0 : index
    %c0_377 = arith.constant 0 : index
    %306 = vector.load %arg8[%c3_374, %c0_375, %c0_376, %c0_377] : memref<5x9x128x128xbf16, #tpu.memory_space<vmem>>, vector<1x1x128x128xbf16>
    %307 = vector.shape_cast %306 : vector<1x1x128x128xbf16> to vector<128x128xbf16>
    %cst_378 = arith.constant dense<0.000000e+00> : vector<256x128xf32>
    %308 = tpu.matmul %305, %307, %cst_378 {dimension_numbers = #tpu.dot_dimension_numbers<[1], [0], [0], [1], [0, 0, 1, 1], [], []>} : vector<256x128xbf16>, vector<128x128xbf16>, vector<256x128xf32> -> vector<256x128xf32>
    %309 = arith.addf %304, %308 : vector<256x128xf32>
    %c0_379 = arith.constant 0 : index
    %c0_380 = arith.constant 0 : index
    %310 = vector.load %arg7[%c0_379, %c0_380] : memref<256x128xf32, #tpu.memory_space<vmem>>, vector<256x128xf32>
    tpu.vector_store %arg7[%c0_379, %c0_380], %309 {strides = array<i32>} : memref<256x128xf32, #tpu.memory_space<vmem>>, vector<256x128xf32>,
    %c8_381 = arith.constant 8 : index
    %c16_382 = arith.constant 16 : index
    %c0_383 = arith.constant 0 : index
    %311 = vector.load %arg6[%c8_381, %c16_382, %c0_383] : memref<48x48x128xf32, #tpu.memory_space<vmem>>, vector<16x16x128xf32>
    %312 = vector.shape_cast %311 : vector<16x16x128xf32> to vector<256x128xf32>
    %c0_384 = arith.constant 0 : index
    %c0_385 = arith.constant 0 : index
    %313 = vector.load %arg7[%c0_384, %c0_385] : memref<256x128xf32, #tpu.memory_space<vmem>>, vector<256x128xf32>
    %314 = arith.truncf %312 : vector<256x128xf32> to vector<256x128xbf16>
    %c3_386 = arith.constant 3 : index
    %c1_387 = arith.constant 1 : index
    %c0_388 = arith.constant 0 : index
    %c0_389 = arith.constant 0 : index
    %315 = vector.load %arg8[%c3_386, %c1_387, %c0_388, %c0_389] : memref<5x9x128x128xbf16, #tpu.memory_space<vmem>>, vector<1x1x128x128xbf16>
    %316 = vector.shape_cast %315 : vector<1x1x128x128xbf16> to vector<128x128xbf16>
    %cst_390 = arith.constant dense<0.000000e+00> : vector<256x128xf32>
    %317 = tpu.matmul %314, %316, %cst_390 {dimension_numbers = #tpu.dot_dimension_numbers<[1], [0], [0], [1], [0, 0, 1, 1], [], []>} : vector<256x128xbf16>, vector<128x128xbf16>, vector<256x128xf32> -> vector<256x128xf32>
    %318 = arith.addf %313, %317 : vector<256x128xf32>
    %c0_391 = arith.constant 0 : index
    %c0_392 = arith.constant 0 : index
    %319 = vector.load %arg7[%c0_391, %c0_392] : memref<256x128xf32, #tpu.memory_space<vmem>>, vector<256x128xf32>
    tpu.vector_store %arg7[%c0_391, %c0_392], %318 {strides = array<i32>} : memref<256x128xf32, #tpu.memory_space<vmem>>, vector<256x128xf32>,
    %c8_393 = arith.constant 8 : index
    %c24 = arith.constant 24 : index
    %c0_394 = arith.constant 0 : index
    %320 = vector.load %arg6[%c8_393, %c24, %c0_394] : memref<48x48x128xf32, #tpu.memory_space<vmem>>, vector<16x16x128xf32>
    %321 = vector.shape_cast %320 : vector<16x16x128xf32> to vector<256x128xf32>
    %c0_395 = arith.constant 0 : index
    %c0_396 = arith.constant 0 : index
    %322 = vector.load %arg7[%c0_395, %c0_396] : memref<256x128xf32, #tpu.memory_space<vmem>>, vector<256x128xf32>
    %323 = arith.truncf %321 : vector<256x128xf32> to vector<256x128xbf16>
    %c3_397 = arith.constant 3 : index
    %c2_398 = arith.constant 2 : index
    %c0_399 = arith.constant 0 : index
    %c0_400 = arith.constant 0 : index
    %324 = vector.load %arg8[%c3_397, %c2_398, %c0_399, %c0_400] : memref<5x9x128x128xbf16, #tpu.memory_space<vmem>>, vector<1x1x128x128xbf16>
    %325 = vector.shape_cast %324 : vector<1x1x128x128xbf16> to vector<128x128xbf16>
    %cst_401 = arith.constant dense<0.000000e+00> : vector<256x128xf32>
    %326 = tpu.matmul %323, %325, %cst_401 {dimension_numbers = #tpu.dot_dimension_numbers<[1], [0], [0], [1], [0, 0, 1, 1], [], []>} : vector<256x128xbf16>, vector<128x128xbf16>, vector<256x128xf32> -> vector<256x128xf32>
    %327 = arith.addf %322, %326 : vector<256x128xf32>
    %c0_402 = arith.constant 0 : index
    %c0_403 = arith.constant 0 : index
    %328 = vector.load %arg7[%c0_402, %c0_403] : memref<256x128xf32, #tpu.memory_space<vmem>>, vector<256x128xf32>
    tpu.vector_store %arg7[%c0_402, %c0_403], %327 {strides = array<i32>} : memref<256x128xf32, #tpu.memory_space<vmem>>, vector<256x128xf32>,
    %c16_404 = arith.constant 16 : index
    %c8_405 = arith.constant 8 : index
    %c0_406 = arith.constant 0 : index
    %329 = vector.load %arg6[%c16_404, %c8_405, %c0_406] : memref<48x48x128xf32, #tpu.memory_space<vmem>>, vector<16x16x128xf32>
    %330 = vector.shape_cast %329 : vector<16x16x128xf32> to vector<256x128xf32>
    %c0_407 = arith.constant 0 : index
    %c0_408 = arith.constant 0 : index
    %331 = vector.load %arg7[%c0_407, %c0_408] : memref<256x128xf32, #tpu.memory_space<vmem>>, vector<256x128xf32>
    %332 = arith.truncf %330 : vector<256x128xf32> to vector<256x128xbf16>
    %c3_409 = arith.constant 3 : index
    %c3_410 = arith.constant 3 : index
    %c0_411 = arith.constant 0 : index
    %c0_412 = arith.constant 0 : index
    %333 = vector.load %arg8[%c3_409, %c3_410, %c0_411, %c0_412] : memref<5x9x128x128xbf16, #tpu.memory_space<vmem>>, vector<1x1x128x128xbf16>
    %334 = vector.shape_cast %333 : vector<1x1x128x128xbf16> to vector<128x128xbf16>
    %cst_413 = arith.constant dense<0.000000e+00> : vector<256x128xf32>
    %335 = tpu.matmul %332, %334, %cst_413 {dimension_numbers = #tpu.dot_dimension_numbers<[1], [0], [0], [1], [0, 0, 1, 1], [], []>} : vector<256x128xbf16>, vector<128x128xbf16>, vector<256x128xf32> -> vector<256x128xf32>
    %336 = arith.addf %331, %335 : vector<256x128xf32>
    %c0_414 = arith.constant 0 : index
    %c0_415 = arith.constant 0 : index
    %337 = vector.load %arg7[%c0_414, %c0_415] : memref<256x128xf32, #tpu.memory_space<vmem>>, vector<256x128xf32>
    tpu.vector_store %arg7[%c0_414, %c0_415], %336 {strides = array<i32>} : memref<256x128xf32, #tpu.memory_space<vmem>>, vector<256x128xf32>,
    %c16_416 = arith.constant 16 : index
    %c16_417 = arith.constant 16 : index
    %c0_418 = arith.constant 0 : index
    %338 = vector.load %arg6[%c16_416, %c16_417, %c0_418] : memref<48x48x128xf32, #tpu.memory_space<vmem>>, vector<16x16x128xf32>
    %339 = vector.shape_cast %338 : vector<16x16x128xf32> to vector<256x128xf32>
    %c0_419 = arith.constant 0 : index
    %c0_420 = arith.constant 0 : index
    %340 = vector.load %arg7[%c0_419, %c0_420] : memref<256x128xf32, #tpu.memory_space<vmem>>, vector<256x128xf32>
    %341 = arith.truncf %339 : vector<256x128xf32> to vector<256x128xbf16>
    %c3_421 = arith.constant 3 : index
    %c4_422 = arith.constant 4 : index
    %c0_423 = arith.constant 0 : index
    %c0_424 = arith.constant 0 : index
    %342 = vector.load %arg8[%c3_421, %c4_422, %c0_423, %c0_424] : memref<5x9x128x128xbf16, #tpu.memory_space<vmem>>, vector<1x1x128x128xbf16>
    %343 = vector.shape_cast %342 : vector<1x1x128x128xbf16> to vector<128x128xbf16>
    %cst_425 = arith.constant dense<0.000000e+00> : vector<256x128xf32>
    %344 = tpu.matmul %341, %343, %cst_425 {dimension_numbers = #tpu.dot_dimension_numbers<[1], [0], [0], [1], [0, 0, 1, 1], [], []>} : vector<256x128xbf16>, vector<128x128xbf16>, vector<256x128xf32> -> vector<256x128xf32>
    %345 = arith.addf %340, %344 : vector<256x128xf32>
    %c0_426 = arith.constant 0 : index
    %c0_427 = arith.constant 0 : index
    %346 = vector.load %arg7[%c0_426, %c0_427] : memref<256x128xf32, #tpu.memory_space<vmem>>, vector<256x128xf32>
    tpu.vector_store %arg7[%c0_426, %c0_427], %345 {strides = array<i32>} : memref<256x128xf32, #tpu.memory_space<vmem>>, vector<256x128xf32>,
    %c16_428 = arith.constant 16 : index
    %c24_429 = arith.constant 24 : index
    %c0_430 = arith.constant 0 : index
    %347 = vector.load %arg6[%c16_428, %c24_429, %c0_430] : memref<48x48x128xf32, #tpu.memory_space<vmem>>, vector<16x16x128xf32>
    %348 = vector.shape_cast %347 : vector<16x16x128xf32> to vector<256x128xf32>
    %c0_431 = arith.constant 0 : index
    %c0_432 = arith.constant 0 : index
    %349 = vector.load %arg7[%c0_431, %c0_432] : memref<256x128xf32, #tpu.memory_space<vmem>>, vector<256x128xf32>
    %350 = arith.truncf %348 : vector<256x128xf32> to vector<256x128xbf16>
    %c3_433 = arith.constant 3 : index
    %c5_434 = arith.constant 5 : index
    %c0_435 = arith.constant 0 : index
    %c0_436 = arith.constant 0 : index
    %351 = vector.load %arg8[%c3_433, %c5_434, %c0_435, %c0_436] : memref<5x9x128x128xbf16, #tpu.memory_space<vmem>>, vector<1x1x128x128xbf16>
    %352 = vector.shape_cast %351 : vector<1x1x128x128xbf16> to vector<128x128xbf16>
    %cst_437 = arith.constant dense<0.000000e+00> : vector<256x128xf32>
    %353 = tpu.matmul %350, %352, %cst_437 {dimension_numbers = #tpu.dot_dimension_numbers<[1], [0], [0], [1], [0, 0, 1, 1], [], []>} : vector<256x128xbf16>, vector<128x128xbf16>, vector<256x128xf32> -> vector<256x128xf32>
    %354 = arith.addf %349, %353 : vector<256x128xf32>
    %c0_438 = arith.constant 0 : index
    %c0_439 = arith.constant 0 : index
    %355 = vector.load %arg7[%c0_438, %c0_439] : memref<256x128xf32, #tpu.memory_space<vmem>>, vector<256x128xf32>
    tpu.vector_store %arg7[%c0_438, %c0_439], %354 {strides = array<i32>} : memref<256x128xf32, #tpu.memory_space<vmem>>, vector<256x128xf32>,
    %c24_440 = arith.constant 24 : index
    %c8_441 = arith.constant 8 : index
    %c0_442 = arith.constant 0 : index
    %356 = vector.load %arg6[%c24_440, %c8_441, %c0_442] : memref<48x48x128xf32, #tpu.memory_space<vmem>>, vector<16x16x128xf32>
    %357 = vector.shape_cast %356 : vector<16x16x128xf32> to vector<256x128xf32>
    %c0_443 = arith.constant 0 : index
    %c0_444 = arith.constant 0 : index
    %358 = vector.load %arg7[%c0_443, %c0_444] : memref<256x128xf32, #tpu.memory_space<vmem>>, vector<256x128xf32>
    %359 = arith.truncf %357 : vector<256x128xf32> to vector<256x128xbf16>
    %c3_445 = arith.constant 3 : index
    %c6_446 = arith.constant 6 : index
    %c0_447 = arith.constant 0 : index
    %c0_448 = arith.constant 0 : index
    %360 = vector.load %arg8[%c3_445, %c6_446, %c0_447, %c0_448] : memref<5x9x128x128xbf16, #tpu.memory_space<vmem>>, vector<1x1x128x128xbf16>
    %361 = vector.shape_cast %360 : vector<1x1x128x128xbf16> to vector<128x128xbf16>
    %cst_449 = arith.constant dense<0.000000e+00> : vector<256x128xf32>
    %362 = tpu.matmul %359, %361, %cst_449 {dimension_numbers = #tpu.dot_dimension_numbers<[1], [0], [0], [1], [0, 0, 1, 1], [], []>} : vector<256x128xbf16>, vector<128x128xbf16>, vector<256x128xf32> -> vector<256x128xf32>
    %363 = arith.addf %358, %362 : vector<256x128xf32>
    %c0_450 = arith.constant 0 : index
    %c0_451 = arith.constant 0 : index
    %364 = vector.load %arg7[%c0_450, %c0_451] : memref<256x128xf32, #tpu.memory_space<vmem>>, vector<256x128xf32>
    tpu.vector_store %arg7[%c0_450, %c0_451], %363 {strides = array<i32>} : memref<256x128xf32, #tpu.memory_space<vmem>>, vector<256x128xf32>,
    %c24_452 = arith.constant 24 : index
    %c16_453 = arith.constant 16 : index
    %c0_454 = arith.constant 0 : index
    %365 = vector.load %arg6[%c24_452, %c16_453, %c0_454] : memref<48x48x128xf32, #tpu.memory_space<vmem>>, vector<16x16x128xf32>
    %366 = vector.shape_cast %365 : vector<16x16x128xf32> to vector<256x128xf32>
    %c0_455 = arith.constant 0 : index
    %c0_456 = arith.constant 0 : index
    %367 = vector.load %arg7[%c0_455, %c0_456] : memref<256x128xf32, #tpu.memory_space<vmem>>, vector<256x128xf32>
    %368 = arith.truncf %366 : vector<256x128xf32> to vector<256x128xbf16>
    %c3_457 = arith.constant 3 : index
    %c7_458 = arith.constant 7 : index
    %c0_459 = arith.constant 0 : index
    %c0_460 = arith.constant 0 : index
    %369 = vector.load %arg8[%c3_457, %c7_458, %c0_459, %c0_460] : memref<5x9x128x128xbf16, #tpu.memory_space<vmem>>, vector<1x1x128x128xbf16>
    %370 = vector.shape_cast %369 : vector<1x1x128x128xbf16> to vector<128x128xbf16>
    %cst_461 = arith.constant dense<0.000000e+00> : vector<256x128xf32>
    %371 = tpu.matmul %368, %370, %cst_461 {dimension_numbers = #tpu.dot_dimension_numbers<[1], [0], [0], [1], [0, 0, 1, 1], [], []>} : vector<256x128xbf16>, vector<128x128xbf16>, vector<256x128xf32> -> vector<256x128xf32>
    %372 = arith.addf %367, %371 : vector<256x128xf32>
    %c0_462 = arith.constant 0 : index
    %c0_463 = arith.constant 0 : index
    %373 = vector.load %arg7[%c0_462, %c0_463] : memref<256x128xf32, #tpu.memory_space<vmem>>, vector<256x128xf32>
    tpu.vector_store %arg7[%c0_462, %c0_463], %372 {strides = array<i32>} : memref<256x128xf32, #tpu.memory_space<vmem>>, vector<256x128xf32>,
    %c24_464 = arith.constant 24 : index
    %c24_465 = arith.constant 24 : index
    %c0_466 = arith.constant 0 : index
    %374 = vector.load %arg6[%c24_464, %c24_465, %c0_466] : memref<48x48x128xf32, #tpu.memory_space<vmem>>, vector<16x16x128xf32>
    %375 = vector.shape_cast %374 : vector<16x16x128xf32> to vector<256x128xf32>
    %c0_467 = arith.constant 0 : index
    %c0_468 = arith.constant 0 : index
    %376 = vector.load %arg7[%c0_467, %c0_468] : memref<256x128xf32, #tpu.memory_space<vmem>>, vector<256x128xf32>
    %377 = arith.truncf %375 : vector<256x128xf32> to vector<256x128xbf16>
    %c3_469 = arith.constant 3 : index
    %c8_470 = arith.constant 8 : index
    %c0_471 = arith.constant 0 : index
    %c0_472 = arith.constant 0 : index
    %378 = vector.load %arg8[%c3_469, %c8_470, %c0_471, %c0_472] : memref<5x9x128x128xbf16, #tpu.memory_space<vmem>>, vector<1x1x128x128xbf16>
    %379 = vector.shape_cast %378 : vector<1x1x128x128xbf16> to vector<128x128xbf16>
    %cst_473 = arith.constant dense<0.000000e+00> : vector<256x128xf32>
    %380 = tpu.matmul %377, %379, %cst_473 {dimension_numbers = #tpu.dot_dimension_numbers<[1], [0], [0], [1], [0, 0, 1, 1], [], []>} : vector<256x128xbf16>, vector<128x128xbf16>, vector<256x128xf32> -> vector<256x128xf32>
    %381 = arith.addf %376, %380 : vector<256x128xf32>
    %c0_474 = arith.constant 0 : index
    %c0_475 = arith.constant 0 : index
    %382 = vector.load %arg7[%c0_474, %c0_475] : memref<256x128xf32, #tpu.memory_space<vmem>>, vector<256x128xf32>
    tpu.vector_store %arg7[%c0_474, %c0_475], %381 {strides = array<i32>} : memref<256x128xf32, #tpu.memory_space<vmem>>, vector<256x128xf32>,
    %c0_476 = arith.constant 0 : index
    %c0_477 = arith.constant 0 : index
    %383 = vector.load %arg7[%c0_476, %c0_477] : memref<256x128xf32, #tpu.memory_space<vmem>>, vector<256x128xf32>
    %cst_478 = arith.constant 0.000000e+00 : f32
    %384 = vector.broadcast %cst_478 : f32 to vector<256x128xf32>
    %385 = arith.maximumf %383, %384 : vector<256x128xf32>
    %c0_479 = arith.constant 0 : index
    %c0_480 = arith.constant 0 : index
    %c0_481 = arith.constant 0 : index
    %386 = vector.load %arg5[%c0_479, %c0_480, %c0_481] : memref<1x256x128xf32, #tpu.memory_space<vmem>>, vector<1x256x128xf32>
    %387 = vector.shape_cast %386 : vector<1x256x128xf32> to vector<256x128xf32>
    %388 = arith.addf %387, %385 : vector<256x128xf32>
    %c0_482 = arith.constant 0 : index
    %c0_483 = arith.constant 0 : index
    %c0_484 = arith.constant 0 : index
    %389 = vector.load %arg5[%c0_482, %c0_483, %c0_484] : memref<1x256x128xf32, #tpu.memory_space<vmem>>, vector<1x256x128xf32>
    %390 = vector.shape_cast %389 : vector<1x256x128xf32> to vector<256x128xf32>
    %391 = vector.shape_cast %388 : vector<256x128xf32> to vector<1x256x128xf32>
    tpu.vector_store %arg5[%c0_482, %c0_483, %c0_484], %391 {strides = array<i32>} : memref<1x256x128xf32, #tpu.memory_space<vmem>>, vector<1x256x128xf32>,
    %392 = vector.shape_cast %385 : vector<256x128xf32> to vector<16x16x128xf32>
    %c16_485 = arith.constant 16 : index
    %c16_486 = arith.constant 16 : index
    %c0_487 = arith.constant 0 : index
    %393 = vector.load %arg6[%c16_485, %c16_486, %c0_487] : memref<48x48x128xf32, #tpu.memory_space<vmem>>, vector<16x16x128xf32>
    tpu.vector_store %arg6[%c16_485, %c16_486, %c0_487], %392 {strides = array<i32>} : memref<48x48x128xf32, #tpu.memory_space<vmem>>, vector<16x16x128xf32>,
    %c4_488 = arith.constant 4 : index
    %c0_489 = arith.constant 0 : index
    %394 = vector.load %arg4[%c4_488, %c0_489] : memref<5x128xf32, #tpu.memory_space<vmem>>, vector<1x128xf32>
    %395 = vector.shape_cast %394 : vector<1x128xf32> to vector<1x128xf32>
    %396 = vector.broadcast %395 : vector<1x128xf32> to vector<256x128xf32>
    %c0_490 = arith.constant 0 : index
    %c0_491 = arith.constant 0 : index
    %397 = vector.load %arg7[%c0_490, %c0_491] : memref<256x128xf32, #tpu.memory_space<vmem>>, vector<256x128xf32>
    tpu.vector_store %arg7[%c0_490, %c0_491], %396 {strides = array<i32>} : memref<256x128xf32, #tpu.memory_space<vmem>>, vector<256x128xf32>,
    %c0_492 = arith.constant 0 : index
    %c0_493 = arith.constant 0 : index
    %c0_494 = arith.constant 0 : index
    %398 = vector.load %arg6[%c0_492, %c0_493, %c0_494] : memref<48x48x128xf32, #tpu.memory_space<vmem>>, vector<16x16x128xf32>
    %399 = vector.shape_cast %398 : vector<16x16x128xf32> to vector<256x128xf32>
    %c0_495 = arith.constant 0 : index
    %c0_496 = arith.constant 0 : index
    %400 = vector.load %arg7[%c0_495, %c0_496] : memref<256x128xf32, #tpu.memory_space<vmem>>, vector<256x128xf32>
    %401 = arith.truncf %399 : vector<256x128xf32> to vector<256x128xbf16>
    %c4_497 = arith.constant 4 : index
    %c0_498 = arith.constant 0 : index
    %c0_499 = arith.constant 0 : index
    %c0_500 = arith.constant 0 : index
    %402 = vector.load %arg8[%c4_497, %c0_498, %c0_499, %c0_500] : memref<5x9x128x128xbf16, #tpu.memory_space<vmem>>, vector<1x1x128x128xbf16>
    %403 = vector.shape_cast %402 : vector<1x1x128x128xbf16> to vector<128x128xbf16>
    %cst_501 = arith.constant dense<0.000000e+00> : vector<256x128xf32>
    %404 = tpu.matmul %401, %403, %cst_501 {dimension_numbers = #tpu.dot_dimension_numbers<[1], [0], [0], [1], [0, 0, 1, 1], [], []>} : vector<256x128xbf16>, vector<128x128xbf16>, vector<256x128xf32> -> vector<256x128xf32>
    %405 = arith.addf %400, %404 : vector<256x128xf32>
    %c0_502 = arith.constant 0 : index
    %c0_503 = arith.constant 0 : index
    %406 = vector.load %arg7[%c0_502, %c0_503] : memref<256x128xf32, #tpu.memory_space<vmem>>, vector<256x128xf32>
    tpu.vector_store %arg7[%c0_502, %c0_503], %405 {strides = array<i32>} : memref<256x128xf32, #tpu.memory_space<vmem>>, vector<256x128xf32>,
    %c0_504 = arith.constant 0 : index
    %c16_505 = arith.constant 16 : index
    %c0_506 = arith.constant 0 : index
    %407 = vector.load %arg6[%c0_504, %c16_505, %c0_506] : memref<48x48x128xf32, #tpu.memory_space<vmem>>, vector<16x16x128xf32>
    %408 = vector.shape_cast %407 : vector<16x16x128xf32> to vector<256x128xf32>
    %c0_507 = arith.constant 0 : index
    %c0_508 = arith.constant 0 : index
    %409 = vector.load %arg7[%c0_507, %c0_508] : memref<256x128xf32, #tpu.memory_space<vmem>>, vector<256x128xf32>
    %410 = arith.truncf %408 : vector<256x128xf32> to vector<256x128xbf16>
    %c4_509 = arith.constant 4 : index
    %c1_510 = arith.constant 1 : index
    %c0_511 = arith.constant 0 : index
    %c0_512 = arith.constant 0 : index
    %411 = vector.load %arg8[%c4_509, %c1_510, %c0_511, %c0_512] : memref<5x9x128x128xbf16, #tpu.memory_space<vmem>>, vector<1x1x128x128xbf16>
    %412 = vector.shape_cast %411 : vector<1x1x128x128xbf16> to vector<128x128xbf16>
    %cst_513 = arith.constant dense<0.000000e+00> : vector<256x128xf32>
    %413 = tpu.matmul %410, %412, %cst_513 {dimension_numbers = #tpu.dot_dimension_numbers<[1], [0], [0], [1], [0, 0, 1, 1], [], []>} : vector<256x128xbf16>, vector<128x128xbf16>, vector<256x128xf32> -> vector<256x128xf32>
    %414 = arith.addf %409, %413 : vector<256x128xf32>
    %c0_514 = arith.constant 0 : index
    %c0_515 = arith.constant 0 : index
    %415 = vector.load %arg7[%c0_514, %c0_515] : memref<256x128xf32, #tpu.memory_space<vmem>>, vector<256x128xf32>
    tpu.vector_store %arg7[%c0_514, %c0_515], %414 {strides = array<i32>} : memref<256x128xf32, #tpu.memory_space<vmem>>, vector<256x128xf32>,
    %c0_516 = arith.constant 0 : index
    %c32 = arith.constant 32 : index
    %c0_517 = arith.constant 0 : index
    %416 = vector.load %arg6[%c0_516, %c32, %c0_517] : memref<48x48x128xf32, #tpu.memory_space<vmem>>, vector<16x16x128xf32>
    %417 = vector.shape_cast %416 : vector<16x16x128xf32> to vector<256x128xf32>
    %c0_518 = arith.constant 0 : index
    %c0_519 = arith.constant 0 : index
    %418 = vector.load %arg7[%c0_518, %c0_519] : memref<256x128xf32, #tpu.memory_space<vmem>>, vector<256x128xf32>
    %419 = arith.truncf %417 : vector<256x128xf32> to vector<256x128xbf16>
    %c4_520 = arith.constant 4 : index
    %c2_521 = arith.constant 2 : index
    %c0_522 = arith.constant 0 : index
    %c0_523 = arith.constant 0 : index
    %420 = vector.load %arg8[%c4_520, %c2_521, %c0_522, %c0_523] : memref<5x9x128x128xbf16, #tpu.memory_space<vmem>>, vector<1x1x128x128xbf16>
    %421 = vector.shape_cast %420 : vector<1x1x128x128xbf16> to vector<128x128xbf16>
    %cst_524 = arith.constant dense<0.000000e+00> : vector<256x128xf32>
    %422 = tpu.matmul %419, %421, %cst_524 {dimension_numbers = #tpu.dot_dimension_numbers<[1], [0], [0], [1], [0, 0, 1, 1], [], []>} : vector<256x128xbf16>, vector<128x128xbf16>, vector<256x128xf32> -> vector<256x128xf32>
    %423 = arith.addf %418, %422 : vector<256x128xf32>
    %c0_525 = arith.constant 0 : index
    %c0_526 = arith.constant 0 : index
    %424 = vector.load %arg7[%c0_525, %c0_526] : memref<256x128xf32, #tpu.memory_space<vmem>>, vector<256x128xf32>
    tpu.vector_store %arg7[%c0_525, %c0_526], %423 {strides = array<i32>} : memref<256x128xf32, #tpu.memory_space<vmem>>, vector<256x128xf32>,
    %c16_527 = arith.constant 16 : index
    %c0_528 = arith.constant 0 : index
    %c0_529 = arith.constant 0 : index
    %425 = vector.load %arg6[%c16_527, %c0_528, %c0_529] : memref<48x48x128xf32, #tpu.memory_space<vmem>>, vector<16x16x128xf32>
    %426 = vector.shape_cast %425 : vector<16x16x128xf32> to vector<256x128xf32>
    %c0_530 = arith.constant 0 : index
    %c0_531 = arith.constant 0 : index
    %427 = vector.load %arg7[%c0_530, %c0_531] : memref<256x128xf32, #tpu.memory_space<vmem>>, vector<256x128xf32>
    %428 = arith.truncf %426 : vector<256x128xf32> to vector<256x128xbf16>
    %c4_532 = arith.constant 4 : index
    %c3_533 = arith.constant 3 : index
    %c0_534 = arith.constant 0 : index
    %c0_535 = arith.constant 0 : index
    %429 = vector.load %arg8[%c4_532, %c3_533, %c0_534, %c0_535] : memref<5x9x128x128xbf16, #tpu.memory_space<vmem>>, vector<1x1x128x128xbf16>
    %430 = vector.shape_cast %429 : vector<1x1x128x128xbf16> to vector<128x128xbf16>
    %cst_536 = arith.constant dense<0.000000e+00> : vector<256x128xf32>
    %431 = tpu.matmul %428, %430, %cst_536 {dimension_numbers = #tpu.dot_dimension_numbers<[1], [0], [0], [1], [0, 0, 1, 1], [], []>} : vector<256x128xbf16>, vector<128x128xbf16>, vector<256x128xf32> -> vector<256x128xf32>
    %432 = arith.addf %427, %431 : vector<256x128xf32>
    %c0_537 = arith.constant 0 : index
    %c0_538 = arith.constant 0 : index
    %433 = vector.load %arg7[%c0_537, %c0_538] : memref<256x128xf32, #tpu.memory_space<vmem>>, vector<256x128xf32>
    tpu.vector_store %arg7[%c0_537, %c0_538], %432 {strides = array<i32>} : memref<256x128xf32, #tpu.memory_space<vmem>>, vector<256x128xf32>,
    %c16_539 = arith.constant 16 : index
    %c16_540 = arith.constant 16 : index
    %c0_541 = arith.constant 0 : index
    %434 = vector.load %arg6[%c16_539, %c16_540, %c0_541] : memref<48x48x128xf32, #tpu.memory_space<vmem>>, vector<16x16x128xf32>
    %435 = vector.shape_cast %434 : vector<16x16x128xf32> to vector<256x128xf32>
    %c0_542 = arith.constant 0 : index
    %c0_543 = arith.constant 0 : index
    %436 = vector.load %arg7[%c0_542, %c0_543] : memref<256x128xf32, #tpu.memory_space<vmem>>, vector<256x128xf32>
    %437 = arith.truncf %435 : vector<256x128xf32> to vector<256x128xbf16>
    %c4_544 = arith.constant 4 : index
    %c4_545 = arith.constant 4 : index
    %c0_546 = arith.constant 0 : index
    %c0_547 = arith.constant 0 : index
    %438 = vector.load %arg8[%c4_544, %c4_545, %c0_546, %c0_547] : memref<5x9x128x128xbf16, #tpu.memory_space<vmem>>, vector<1x1x128x128xbf16>
    %439 = vector.shape_cast %438 : vector<1x1x128x128xbf16> to vector<128x128xbf16>
    %cst_548 = arith.constant dense<0.000000e+00> : vector<256x128xf32>
    %440 = tpu.matmul %437, %439, %cst_548 {dimension_numbers = #tpu.dot_dimension_numbers<[1], [0], [0], [1], [0, 0, 1, 1], [], []>} : vector<256x128xbf16>, vector<128x128xbf16>, vector<256x128xf32> -> vector<256x128xf32>
    %441 = arith.addf %436, %440 : vector<256x128xf32>
    %c0_549 = arith.constant 0 : index
    %c0_550 = arith.constant 0 : index
    %442 = vector.load %arg7[%c0_549, %c0_550] : memref<256x128xf32, #tpu.memory_space<vmem>>, vector<256x128xf32>
    tpu.vector_store %arg7[%c0_549, %c0_550], %441 {strides = array<i32>} : memref<256x128xf32, #tpu.memory_space<vmem>>, vector<256x128xf32>,
    %c16_551 = arith.constant 16 : index
    %c32_552 = arith.constant 32 : index
    %c0_553 = arith.constant 0 : index
    %443 = vector.load %arg6[%c16_551, %c32_552, %c0_553] : memref<48x48x128xf32, #tpu.memory_space<vmem>>, vector<16x16x128xf32>
    %444 = vector.shape_cast %443 : vector<16x16x128xf32> to vector<256x128xf32>
    %c0_554 = arith.constant 0 : index
    %c0_555 = arith.constant 0 : index
    %445 = vector.load %arg7[%c0_554, %c0_555] : memref<256x128xf32, #tpu.memory_space<vmem>>, vector<256x128xf32>
    %446 = arith.truncf %444 : vector<256x128xf32> to vector<256x128xbf16>
    %c4_556 = arith.constant 4 : index
    %c5_557 = arith.constant 5 : index
    %c0_558 = arith.constant 0 : index
    %c0_559 = arith.constant 0 : index
    %447 = vector.load %arg8[%c4_556, %c5_557, %c0_558, %c0_559] : memref<5x9x128x128xbf16, #tpu.memory_space<vmem>>, vector<1x1x128x128xbf16>
    %448 = vector.shape_cast %447 : vector<1x1x128x128xbf16> to vector<128x128xbf16>
    %cst_560 = arith.constant dense<0.000000e+00> : vector<256x128xf32>
    %449 = tpu.matmul %446, %448, %cst_560 {dimension_numbers = #tpu.dot_dimension_numbers<[1], [0], [0], [1], [0, 0, 1, 1], [], []>} : vector<256x128xbf16>, vector<128x128xbf16>, vector<256x128xf32> -> vector<256x128xf32>
    %450 = arith.addf %445, %449 : vector<256x128xf32>
    %c0_561 = arith.constant 0 : index
    %c0_562 = arith.constant 0 : index
    %451 = vector.load %arg7[%c0_561, %c0_562] : memref<256x128xf32, #tpu.memory_space<vmem>>, vector<256x128xf32>
    tpu.vector_store %arg7[%c0_561, %c0_562], %450 {strides = array<i32>} : memref<256x128xf32, #tpu.memory_space<vmem>>, vector<256x128xf32>,
    %c32_563 = arith.constant 32 : index
    %c0_564 = arith.constant 0 : index
    %c0_565 = arith.constant 0 : index
    %452 = vector.load %arg6[%c32_563, %c0_564, %c0_565] : memref<48x48x128xf32, #tpu.memory_space<vmem>>, vector<16x16x128xf32>
    %453 = vector.shape_cast %452 : vector<16x16x128xf32> to vector<256x128xf32>
    %c0_566 = arith.constant 0 : index
    %c0_567 = arith.constant 0 : index
    %454 = vector.load %arg7[%c0_566, %c0_567] : memref<256x128xf32, #tpu.memory_space<vmem>>, vector<256x128xf32>
    %455 = arith.truncf %453 : vector<256x128xf32> to vector<256x128xbf16>
    %c4_568 = arith.constant 4 : index
    %c6_569 = arith.constant 6 : index
    %c0_570 = arith.constant 0 : index
    %c0_571 = arith.constant 0 : index
    %456 = vector.load %arg8[%c4_568, %c6_569, %c0_570, %c0_571] : memref<5x9x128x128xbf16, #tpu.memory_space<vmem>>, vector<1x1x128x128xbf16>
    %457 = vector.shape_cast %456 : vector<1x1x128x128xbf16> to vector<128x128xbf16>
    %cst_572 = arith.constant dense<0.000000e+00> : vector<256x128xf32>
    %458 = tpu.matmul %455, %457, %cst_572 {dimension_numbers = #tpu.dot_dimension_numbers<[1], [0], [0], [1], [0, 0, 1, 1], [], []>} : vector<256x128xbf16>, vector<128x128xbf16>, vector<256x128xf32> -> vector<256x128xf32>
    %459 = arith.addf %454, %458 : vector<256x128xf32>
    %c0_573 = arith.constant 0 : index
    %c0_574 = arith.constant 0 : index
    %460 = vector.load %arg7[%c0_573, %c0_574] : memref<256x128xf32, #tpu.memory_space<vmem>>, vector<256x128xf32>
    tpu.vector_store %arg7[%c0_573, %c0_574], %459 {strides = array<i32>} : memref<256x128xf32, #tpu.memory_space<vmem>>, vector<256x128xf32>,
    %c32_575 = arith.constant 32 : index
    %c16_576 = arith.constant 16 : index
    %c0_577 = arith.constant 0 : index
    %461 = vector.load %arg6[%c32_575, %c16_576, %c0_577] : memref<48x48x128xf32, #tpu.memory_space<vmem>>, vector<16x16x128xf32>
    %462 = vector.shape_cast %461 : vector<16x16x128xf32> to vector<256x128xf32>
    %c0_578 = arith.constant 0 : index
    %c0_579 = arith.constant 0 : index
    %463 = vector.load %arg7[%c0_578, %c0_579] : memref<256x128xf32, #tpu.memory_space<vmem>>, vector<256x128xf32>
    %464 = arith.truncf %462 : vector<256x128xf32> to vector<256x128xbf16>
    %c4_580 = arith.constant 4 : index
    %c7_581 = arith.constant 7 : index
    %c0_582 = arith.constant 0 : index
    %c0_583 = arith.constant 0 : index
    %465 = vector.load %arg8[%c4_580, %c7_581, %c0_582, %c0_583] : memref<5x9x128x128xbf16, #tpu.memory_space<vmem>>, vector<1x1x128x128xbf16>
    %466 = vector.shape_cast %465 : vector<1x1x128x128xbf16> to vector<128x128xbf16>
    %cst_584 = arith.constant dense<0.000000e+00> : vector<256x128xf32>
    %467 = tpu.matmul %464, %466, %cst_584 {dimension_numbers = #tpu.dot_dimension_numbers<[1], [0], [0], [1], [0, 0, 1, 1], [], []>} : vector<256x128xbf16>, vector<128x128xbf16>, vector<256x128xf32> -> vector<256x128xf32>
    %468 = arith.addf %463, %467 : vector<256x128xf32>
    %c0_585 = arith.constant 0 : index
    %c0_586 = arith.constant 0 : index
    %469 = vector.load %arg7[%c0_585, %c0_586] : memref<256x128xf32, #tpu.memory_space<vmem>>, vector<256x128xf32>
    tpu.vector_store %arg7[%c0_585, %c0_586], %468 {strides = array<i32>} : memref<256x128xf32, #tpu.memory_space<vmem>>, vector<256x128xf32>,
    %c32_587 = arith.constant 32 : index
    %c32_588 = arith.constant 32 : index
    %c0_589 = arith.constant 0 : index
    %470 = vector.load %arg6[%c32_587, %c32_588, %c0_589] : memref<48x48x128xf32, #tpu.memory_space<vmem>>, vector<16x16x128xf32>
    %471 = vector.shape_cast %470 : vector<16x16x128xf32> to vector<256x128xf32>
    %c0_590 = arith.constant 0 : index
    %c0_591 = arith.constant 0 : index
    %472 = vector.load %arg7[%c0_590, %c0_591] : memref<256x128xf32, #tpu.memory_space<vmem>>, vector<256x128xf32>
    %473 = arith.truncf %471 : vector<256x128xf32> to vector<256x128xbf16>
    %c4_592 = arith.constant 4 : index
    %c8_593 = arith.constant 8 : index
    %c0_594 = arith.constant 0 : index
    %c0_595 = arith.constant 0 : index
    %474 = vector.load %arg8[%c4_592, %c8_593, %c0_594, %c0_595] : memref<5x9x128x128xbf16, #tpu.memory_space<vmem>>, vector<1x1x128x128xbf16>
    %475 = vector.shape_cast %474 : vector<1x1x128x128xbf16> to vector<128x128xbf16>
    %cst_596 = arith.constant dense<0.000000e+00> : vector<256x128xf32>
    %476 = tpu.matmul %473, %475, %cst_596 {dimension_numbers = #tpu.dot_dimension_numbers<[1], [0], [0], [1], [0, 0, 1, 1], [], []>} : vector<256x128xbf16>, vector<128x128xbf16>, vector<256x128xf32> -> vector<256x128xf32>
    %477 = arith.addf %472, %476 : vector<256x128xf32>
    %c0_597 = arith.constant 0 : index
    %c0_598 = arith.constant 0 : index
    %478 = vector.load %arg7[%c0_597, %c0_598] : memref<256x128xf32, #tpu.memory_space<vmem>>, vector<256x128xf32>
    tpu.vector_store %arg7[%c0_597, %c0_598], %477 {strides = array<i32>} : memref<256x128xf32, #tpu.memory_space<vmem>>, vector<256x128xf32>,
    %c0_599 = arith.constant 0 : index
    %c0_600 = arith.constant 0 : index
    %479 = vector.load %arg7[%c0_599, %c0_600] : memref<256x128xf32, #tpu.memory_space<vmem>>, vector<256x128xf32>
    %cst_601 = arith.constant 0.000000e+00 : f32
    %480 = vector.broadcast %cst_601 : f32 to vector<256x128xf32>
    %481 = arith.maximumf %479, %480 : vector<256x128xf32>
    %c0_602 = arith.constant 0 : index
    %c0_603 = arith.constant 0 : index
    %c0_604 = arith.constant 0 : index
    %482 = vector.load %arg5[%c0_602, %c0_603, %c0_604] : memref<1x256x128xf32, #tpu.memory_space<vmem>>, vector<1x256x128xf32>
    %483 = vector.shape_cast %482 : vector<1x256x128xf32> to vector<256x128xf32>
    %484 = arith.addf %483, %481 : vector<256x128xf32>
    %c0_605 = arith.constant 0 : index
    %c0_606 = arith.constant 0 : index
    %c0_607 = arith.constant 0 : index
    %485 = vector.load %arg5[%c0_605, %c0_606, %c0_607] : memref<1x256x128xf32, #tpu.memory_space<vmem>>, vector<1x256x128xf32>
    %486 = vector.shape_cast %485 : vector<1x256x128xf32> to vector<256x128xf32>
    %487 = vector.shape_cast %484 : vector<256x128xf32> to vector<1x256x128xf32>
    tpu.vector_store %arg5[%c0_605, %c0_606, %c0_607], %487 {strides = array<i32>} : memref<1x256x128xf32, #tpu.memory_space<vmem>>, vector<1x256x128xf32>,
    %488 = vector.shape_cast %481 : vector<256x128xf32> to vector<16x16x128xf32>
    %c16_608 = arith.constant 16 : index
    %c16_609 = arith.constant 16 : index
    %c0_610 = arith.constant 0 : index
    %489 = vector.load %arg6[%c16_608, %c16_609, %c0_610] : memref<48x48x128xf32, #tpu.memory_space<vmem>>, vector<16x16x128xf32>
    tpu.vector_store %arg6[%c16_608, %c16_609, %c0_610], %488 {strides = array<i32>} : memref<48x48x128xf32, #tpu.memory_space<vmem>>, vector<16x16x128xf32>,
    return
  }
  func.func @transform_0(%arg0: i32, %arg1: i32) -> (i32, i32, i32) {
    %c1_i32 = arith.constant 1 : i32
    %0 = arith.muli %arg0, %c1_i32 : i32
    %1 = arith.addi %0, %arg1 : i32
    %c0_i32 = arith.constant 0 : i32
    %c0_i32_0 = arith.constant 0 : i32
    %c0_i32_1 = arith.constant 0 : i32
    return %1, %c0_i32, %c0_i32_0 : i32, i32, i32
  }
  func.func @transform_2(%arg0: i32, %arg1: i32) -> (i32, i32) {
    %c0_i32 = arith.constant 0 : i32
    %c0_i32_0 = arith.constant 0 : i32
    %c0_i32_1 = arith.constant 0 : i32
    return %c0_i32, %c0_i32_0 : i32, i32
  }
  func.func @transform_3(%arg0: i32, %arg1: i32) -> (i32, i32, i32) {
    %c1_i32 = arith.constant 1 : i32
    %0 = arith.muli %arg0, %c1_i32 : i32
    %1 = arith.addi %0, %arg1 : i32
    %c0_i32 = arith.constant 0 : i32
    %c0_i32_0 = arith.constant 0 : i32
    %c0_i32_1 = arith.constant 0 : i32
    return %1, %c0_i32, %c0_i32_0 : i32, i32, i32
  }
}

</mosaic_0001>

<bundles_post_ra>
// kernel: tpu_custom_call.1
= control target key start
LH: loop header
LB: loop body
LE: loop exit
PB: predicated region body
PF: predicated region fallthrough
CT: control target
= control target key end

     0   :  { %8 = vsyncpa [#allocation6], 0  ;;  %s23653_s0 = inlined_call_operand.hbm [shape: f32[2,256,128], index: 0, kind: input, shape index: {}]   ;;  %s23654_s1 = inlined_call_operand.hbm [shape: bf16[5,9,128,128], index: 1, kind: input, shape index: {}]   ;;  %s23655_s2 = inlined_call_operand.hbm [shape: f32[5,128], index: 2, kind: input, shape index: {}]   ;;  %s23656_s3 = inlined_call_operand.hbm [shape: f32[2,256,128], index: 3, kind: output, shape index: {}]  }
   0x1   :  { %10 = vsyncpa [#allocation6 + $0x1], 0 }
   0x2   :  { %11 = vsyncpa [#allocation9], 0 }
   0x3   :  { %12 = vsyncpa [#allocation7], 0 }
   0x4   :  { %14 = vsyncpa [#allocation7 + $0x1], 0  ;;  %s20969_s12 = smov 0   ;;  %s20971_s13 = smov 0  }
   0x5   :  { %s20973_s14 = smov 0   ;;  %s20975_s15 = smov 0  }
   0x6   :  { %s20977_s16 = smov 0   ;;  %s20979_s17 = smov 0  }
   0x7 LB: > { %s15963_s18 = sadd.s32 4294967295, %s20938_s17   ;;  %s15964_s19 = sadd.s32 4294967294, %s20938_s17   ;;  %s20938_s17 = sphi %s20979_s17, %s20_s17   ;;  %s20934_s16 = sphi %s20977_s16, %s23709_s16   ;;  %s20930_s15 = sphi %s20975_s15, %s23708_s15   ;;  %s20926_s14 = sphi %s20973_s14, %s23707_s14   ;;  %s20922_s13 = sphi %s20971_s13, %s23706_s13   ;;  %s20918_s12 = sphi %s20969_s12, %s23705_s12  }
   0x8   : > { %s41_s20 = sadd.s32 1, %s20926_s14  ;;  %p48_p0 = scmp.ne.s32.totalorder %s20926_s14, %s20922_s13 }
   0x9   : > { %p49_p1 = scmp.eq.s32.totalorder %s20938_s17, 0  ;;  %p54_p2 = scmp.ne.s32.totalorder %s20922_s13, %s20918_s12 }
   0xa   : > { %p21007_p3 = scmp.eq.s32.totalorder %s15963_s18, 0  ;;  %p101_p4 = scmp.eq.s32.totalorder %s15963_s18, 1 }
   0xb   : > { %p21011_p5 = por %p49_p1, %p48_p0  ;;  %p107_p6 = scmp.eq.s32.totalorder %s15964_s19, 1 }
   0xc   : > { %s23667_s21 = scalar_select %p21007_p3, 1, 0 }
   0xd   : > { %p21017_p7 = por %p21007_p3, %p54_p2  ;;  %p21021_p8 = por %p101_p4, %p48_p0 }
   0xe   : > { %p21025_p9 = por %p107_p6, %p54_p2  ;;  %p15965_p10 = scmp.ge.s32.totalorder %s20938_s17, 1 }
   0xf   : > { %s23669_s23 = scalar_select %p21017_p7, 1, 0 }
  0x10   : > { %s23670_s24 = scalar_select %p21021_p8, 1, 0 }
  0x11   : > { %s23671_s25 = scalar_select %p21025_p9, 1, 0 }
  0x12   : > { %p114_p11 = scmp.lt.s32.totalorder %s20938_s17, 3  ;;  %s20940_s27 = smov [#allocation8]  }
  0x13   : > { %s127_s28 = sshll.u32 %s20940_s27, 4  ;;  %p20704_p1 = scmp.lt.s32.totalorder %s20938_s17, 2  ;;  %s128_s28 = int_to_ptr.vmem [resolvable:$true] %s127_s28 }
  0x14   : > { %p21032_p13 = pnand %p15965_p10, %p114_p11  ;;  %s32_s4 = sadd.s32 1, %s20934_s16 }
  0x15   : > { %p21041_p4 = pnand %p20704_p1, %p21011_p5  ;;  %p21052_p6 = scmp.ge.s32.totalorder %s32_s4, 2 }
  0x16   : > { %s23672_s26 = scalar_select %p21032_p13, 1, 0 }
  0x17   : > { %p20691_p0 = pneg %p21032_p13  ;;  %s138_s6 = sand.u32 1, %s20926_s14  }
  0x18   : > { %s23673_s29 = scalar_select %p21041_p4, 1, 0 }
  0x19   : > { %p21047_p2 = pnand %p20691_p0, %p21007_p3  ;;  %s20770_s9 = scalar_lea.hbm %s23655_s2, 128 }
  0x1a   : > { %s23675_s5 = scalar_select %p21052_p6, 1, 0 }
  0x1b   : > { %p20771_p5 = scmp.ne.s32.totalorder %s23655_s2, %s20770_s9  ;;  %p20772_p10 = pneg %p21047_p2 }
  0x1c   : > { %p20777_p0 = scmp.lt.u32.totalorder %s20770_s9, %s23655_s2 }
  0x1d   : > { %p20773_p11 = pnand %p20772_p10, %p20771_p5 }
  0x1f   : > { %p20774_p1 = pneg %p20773_p11 }
  0x21   : > { %p20779_p12 = pnand %p20777_p0, %p20774_p1 }
  0x23   : > { %20782 = shalt.err (!%p20779_p12)
}
  0x24   : > { %s20783_s22 = scalar_lea.vmem %s128_s28, 128  ;;  %p20791_p7 = scmp.lt.s32.totalorder %s128_s28, %s128_s28 }
  0x25   : > { %p20784_p9 = scmp.ne.s32.totalorder %s128_s28, %s20783_s22  ;;  %p20792_p13 = scmp.lt.s32.totalorder %s20783_s22, %s20783_s22 }
  0x27   : > { %p20786_p8 = pnand %p20784_p9, %p20772_p10  ;;  %p20793_p4 = por %p20792_p13, %p20791_p7 }
  0x29   : > { %p20787_p3 = pneg %p20786_p8 }
  0x2b   : > { %p20794_p6 = pnand %p20793_p4, %p20787_p3 }
  0x2d   : > { %20797 = shalt.err (!%p20794_p6)
}
  0x2e   : > { %20694 = dma.hbm_to_vmem [thread:$0]  (!%p21047_p2), %s23655_s2, 128, %s128_s28, [#allocation9]  }
  0x2f   : > { %p23676_p9 = scmp.ne.s32.totalorder %s23675_s5, 0  ;;  %s15968_s8 = sshll.u32 %s138_s6, 8 }
  0x30   : > { %s15985_s10 = sshll.u32 %s20934_s16, 12  ;;  %s142_s19 = scalar_lea.vmem [#allocation5], %s15968_s8 }
  0x31   : > { %s23711_s4 = smov (%p23676_p9, %s32_s4), 0  ;;  %s21083_s18 = scalar_lea.hbm %s23653_s0, %s15985_s10 }
  0x32   : > { %s38_s9 = ssub.s32 %s20934_s16, %s23711_s4  ;;  %s150_s22 = sshll.u32 %s142_s19, 4  ;;  %s21090_s22 = int_to_ptr.vmem [resolvable:$true] %s150_s22 }
  0x33   : > { %p39_p3 = scmp.eq.s32.totalorder %s38_s9, 0  ;;  %s21092_s5 = scalar_lea.sflag [#allocation6], %s138_s6 }
  0x34   : > { %s20798_s27 = scalar_lea.hbm %s21083_s18, 4096  ;;  %p23677_p8 = scmp.ne.s32.totalorder %s23673_s29, 0 }
  0x35   : > { %s21088_s28 = scalar_select %p39_p3, %s20926_s14, %s41_s20  }
  0x36   : > { %p20799_p7 = scmp.ne.s32.totalorder %s21083_s18, %s20798_s27  ;;  %p20800_p12 = pneg %p23677_p8 }
  0x37   : > { %s20803_s8 = scalar_lea.hbm %s23653_s0, 8192  ;;  %p20804_p2 = scmp.lt.u32.totalorder %s21083_s18, %s23653_s0 }
  0x38   : > { %p20801_p13 = pnand %p20800_p12, %p20799_p7  ;;  %p20805_p6 = scmp.lt.u32.totalorder %s20803_s8, %s20798_s27 }
  0x39   : > { %p20807_p10 = scmp.lt.u32.totalorder %s20798_s27, %s21083_s18 }
  0x3a   : > { %p20802_p4 = pneg %p20801_p13  ;;  %p20806_p5 = por %p20805_p6, %p20804_p2 }
  0x3c   : > { %p20808_p11 = por %p20807_p10, %p20806_p5 }
  0x3e   : > { %p20809_p1 = pnand %p20808_p11, %p20802_p4 }
  0x40   : > { %20812 = shalt.err (!%p20809_p1)
}
  0x41   : > { %s20813_s20 = scalar_lea.vmem %s21090_s22, 4096  ;;  %s20941_s6 = smov [#allocation5]  }
  0x42   : > { %p20814_p0 = scmp.ne.s32.totalorder %s21090_s22, %s20813_s20  ;;  %s20818_s11 = sshll.u32 %s20941_s6, 4  ;;  %s20819_s11 = int_to_ptr.vmem [resolvable:$false] %s20818_s11 }
  0x43   : > { %s20820_s19 = scalar_lea.vmem %s20819_s11, 8192  ;;  %p20821_p7 = scmp.lt.s32.totalorder %s21090_s22, %s20819_s11 }
  0x44   : > { %p20816_p9 = pnand %p20814_p0, %p20800_p12  ;;  %p20822_p13 = scmp.lt.s32.totalorder %s20820_s19, %s20813_s20 }
  0x46   : > { %p20817_p3 = pneg %p20816_p9  ;;  %p20823_p2 = por %p20822_p13, %p20821_p7 }
  0x48   : > { %p20824_p6 = pnand %p20823_p2, %p20817_p3 }
  0x4a   : > { %20827 = shalt.err (!%p20824_p6)
}
  0x4b   : > { %s20942_s27 = smov 128   ;;  %s20943_s7 = smov 8  }
  0x4c   : > { %20698 = dma.hbm_to_vmem [thread:$0]  (!%p23677_p8), %s21083_s18, 4096, %s21090_s22, %s21092_s5, %s20942_s27, %s20942_s27, %s20943_s7  }
  0x4d   : > { %p23678_p12 = scmp.ne.s32.totalorder %s23672_s26, 0 }
  0x4f   : > { %162 = sbr.rel (%p23678_p12) target bundleno = 3429 (0xd65), region = 28 }
  0x56   : > { %s21123_s9 = sand.u32 1, %s20922_s13   ;;  %p23679_p4 = scmp.ne.s32.totalorder %s23669_s23, 0 }
  0x57   : > { %s15972_s8 = sshll.u32 %s21123_s9, 8  ;;  %s165_s10 = scalar_lea.sflag [#allocation6], %s21123_s9 }
  0x58   : > { %s21129_s30 = scalar_lea.vmem [#allocation5], %s15972_s8 }
  0x59   : > { %20903 = dma.done.wait (%p23679_p4), %s165_s10, 4096  }
  0x5a   : > { %20905 = vsyncadd (%p23679_p4), %s165_s10, 4294963200  ;;  %p23680_p8 = scmp.ne.s32.totalorder %s23667_s21, 0 }
  0x5c   : > { %20907 = dma.done.wait (%p23680_p8), [#allocation9], 128  }
  0x5d   : > { %20909 = vsyncadd (%p23680_p8), [#allocation9], 4294967168  ;;  %v20944_v0 = vmov 0.0   ;;  %s21397_s21 = scalar_lea.vmem [#allocation10], %s15972_s8 }
  0x5e   : > { %200 = vst [vmem:[#allocation2] sm:$0xff] %v20944_v0  ;;  %201 = vst [vmem:[#allocation2 + $0x8] sm:$0xff] %v20944_v0 }
  0x5f   : > { %202 = vst [vmem:[#allocation2 + $0x10] sm:$0xff] %v20944_v0  ;;  %203 = vst [vmem:[#allocation2 + $0x18] sm:$0xff] %v20944_v0 }
  0x60   : > { %204 = vst [vmem:[#allocation2 + $0x20] sm:$0xff] %v20944_v0  ;;  %205 = vst [vmem:[#allocation2 + $0x28] sm:$0xff] %v20944_v0 }
  0x61   : > { %206 = vst [vmem:[#allocation2 + $0x30] sm:$0xff] %v20944_v0  ;;  %207 = vst [vmem:[#allocation2 + $0x38] sm:$0xff] %v20944_v0 }
  0x62   : > { %208 = vst [vmem:[#allocation2 + $0x40] sm:$0xff] %v20944_v0  ;;  %209 = vst [vmem:[#allocation2 + $0x48] sm:$0xff] %v20944_v0 }
  0x63   : > { %210 = vst [vmem:[#allocation2 + $0x50] sm:$0xff] %v20944_v0  ;;  %211 = vst [vmem:[#allocation2 + $0x58] sm:$0xff] %v20944_v0 }
  0x64   : > { %212 = vst [vmem:[#allocation2 + $0x60] sm:$0xff] %v20944_v0  ;;  %213 = vst [vmem:[#allocation2 + $0x68] sm:$0xff] %v20944_v0 }
  0x65   : > { %214 = vst [vmem:[#allocation2 + $0x70] sm:$0xff] %v20944_v0  ;;  %215 = vst [vmem:[#allocation2 + $0x78] sm:$0xff] %v20944_v0 }
  0x66   : > { %216 = vst [vmem:[#allocation2 + $0x80] sm:$0xff] %v20944_v0  ;;  %217 = vst [vmem:[#allocation2 + $0x88] sm:$0xff] %v20944_v0 }
  0x67   : > { %218 = vst [vmem:[#allocation2 + $0x90] sm:$0xff] %v20944_v0  ;;  %219 = vst [vmem:[#allocation2 + $0x98] sm:$0xff] %v20944_v0 }
  0x68   : > { %220 = vst [vmem:[#allocation2 + $0xa0] sm:$0xff] %v20944_v0  ;;  %221 = vst [vmem:[#allocation2 + $0xa8] sm:$0xff] %v20944_v0 }
  0x69   : > { %222 = vst [vmem:[#allocation2 + $0xb0] sm:$0xff] %v20944_v0  ;;  %223 = vst [vmem:[#allocation2 + $0xb8] sm:$0xff] %v20944_v0 }
  0x6a   : > { %224 = vst [vmem:[#allocation2 + $0xc0] sm:$0xff] %v20944_v0  ;;  %225 = vst [vmem:[#allocation2 + $0xc8] sm:$0xff] %v20944_v0 }
  0x6b   : > { %226 = vst [vmem:[#allocation2 + $0xd0] sm:$0xff] %v20944_v0  ;;  %227 = vst [vmem:[#allocation2 + $0xd8] sm:$0xff] %v20944_v0 }
  0x6c   : > { %228 = vst [vmem:[#allocation2 + $0xe0] sm:$0xff] %v20944_v0  ;;  %229 = vst [vmem:[#allocation2 + $0xe8] sm:$0xff] %v20944_v0 }
  0x6d   : > { %230 = vst [vmem:[#allocation2 + $0xf0] sm:$0xff] %v20944_v0  ;;  %231 = vst [vmem:[#allocation2 + $0xf8] sm:$0xff] %v20944_v0 }
  0x6e   : > { %232 = vst [vmem:[#allocation2 + $0x100] sm:$0xff] %v20944_v0  ;;  %233 = vst [vmem:[#allocation2 + $0x108] sm:$0xff] %v20944_v0 }
  0x6f   : > { %234 = vst [vmem:[#allocation2 + $0x110] sm:$0xff] %v20944_v0  ;;  %235 = vst [vmem:[#allocation2 + $0x118] sm:$0xff] %v20944_v0 }
  0x70   : > { %236 = vst [vmem:[#allocation2 + $0x120] sm:$0xff] %v20944_v0  ;;  %237 = vst [vmem:[#allocation2 + $0x128] sm:$0xff] %v20944_v0 }
  0x71   : > { %238 = vst [vmem:[#allocation2 + $0x130] sm:$0xff] %v20944_v0  ;;  %239 = vst [vmem:[#allocation2 + $0x138] sm:$0xff] %v20944_v0 }
  0x72   : > { %240 = vst [vmem:[#allocation2 + $0x140] sm:$0xff] %v20944_v0  ;;  %241 = vst [vmem:[#allocation2 + $0x148] sm:$0xff] %v20944_v0 }
  0x73   : > { %242 = vst [vmem:[#allocation2 + $0x150] sm:$0xff] %v20944_v0  ;;  %243 = vst [vmem:[#allocation2 + $0x158] sm:$0xff] %v20944_v0 }
  0x74   : > { %244 = vst [vmem:[#allocation2 + $0x160] sm:$0xff] %v20944_v0  ;;  %245 = vst [vmem:[#allocation2 + $0x168] sm:$0xff] %v20944_v0 }
  0x75   : > { %246 = vst [vmem:[#allocation2 + $0x170] sm:$0xff] %v20944_v0  ;;  %247 = vst [vmem:[#allocation2 + $0x178] sm:$0xff] %v20944_v0 }
  0x76   : > { %248 = vst [vmem:[#allocation2 + $0x180] sm:$0xff] %v20944_v0  ;;  %249 = vst [vmem:[#allocation2 + $0x188] sm:$0xff] %v20944_v0 }
  0x77   : > { %250 = vst [vmem:[#allocation2 + $0x190] sm:$0xff] %v20944_v0  ;;  %251 = vst [vmem:[#allocation2 + $0x198] sm:$0xff] %v20944_v0 }
  0x78   : > { %252 = vst [vmem:[#allocation2 + $0x1a0] sm:$0xff] %v20944_v0  ;;  %253 = vst [vmem:[#allocation2 + $0x1a8] sm:$0xff] %v20944_v0 }
  0x79   : > { %254 = vst [vmem:[#allocation2 + $0x1b0] sm:$0xff] %v20944_v0  ;;  %255 = vst [vmem:[#allocation2 + $0x1b8] sm:$0xff] %v20944_v0 }
  0x7a   : > { %256 = vst [vmem:[#allocation2 + $0x1c0] sm:$0xff] %v20944_v0  ;;  %257 = vst [vmem:[#allocation2 + $0x1c8] sm:$0xff] %v20944_v0 }
  0x7b   : > { %258 = vst [vmem:[#allocation2 + $0x1d0] sm:$0xff] %v20944_v0  ;;  %259 = vst [vmem:[#allocation2 + $0x1d8] sm:$0xff] %v20944_v0 }
  0x7c   : > { %260 = vst [vmem:[#allocation2 + $0x1e0] sm:$0xff] %v20944_v0  ;;  %261 = vst [vmem:[#allocation2 + $0x1e8] sm:$0xff] %v20944_v0 }
  0x7d   : > { %262 = vst [vmem:[#allocation2 + $0x1f0] sm:$0xff] %v20944_v0  ;;  %263 = vst [vmem:[#allocation2 + $0x1f8] sm:$0xff] %v20944_v0 }
  0x7e   : > { %264 = vst [vmem:[#allocation2 + $0x200] sm:$0xff] %v20944_v0  ;;  %265 = vst [vmem:[#allocation2 + $0x208] sm:$0xff] %v20944_v0 }
  0x7f   : > { %266 = vst [vmem:[#allocation2 + $0x210] sm:$0xff] %v20944_v0  ;;  %267 = vst [vmem:[#allocation2 + $0x218] sm:$0xff] %v20944_v0 }
  0x80   : > { %268 = vst [vmem:[#allocation2 + $0x220] sm:$0xff] %v20944_v0  ;;  %269 = vst [vmem:[#allocation2 + $0x228] sm:$0xff] %v20944_v0 }
  0x81   : > { %270 = vst [vmem:[#allocation2 + $0x230] sm:$0xff] %v20944_v0  ;;  %271 = vst [vmem:[#allocation2 + $0x238] sm:$0xff] %v20944_v0 }
  0x82   : > { %272 = vst [vmem:[#allocation2 + $0x240] sm:$0xff] %v20944_v0  ;;  %273 = vst [vmem:[#allocation2 + $0x248] sm:$0xff] %v20944_v0 }
  0x83   : > { %274 = vst [vmem:[#allocation2 + $0x250] sm:$0xff] %v20944_v0  ;;  %275 = vst [vmem:[#allocation2 + $0x258] sm:$0xff] %v20944_v0 }
  0x84   : > { %276 = vst [vmem:[#allocation2 + $0x260] sm:$0xff] %v20944_v0  ;;  %277 = vst [vmem:[#allocation2 + $0x268] sm:$0xff] %v20944_v0 }
  0x85   : > { %278 = vst [vmem:[#allocation2 + $0x270] sm:$0xff] %v20944_v0  ;;  %279 = vst [vmem:[#allocation2 + $0x278] sm:$0xff] %v20944_v0 }
  0x86   : > { %280 = vst [vmem:[#allocation2 + $0x280] sm:$0xff] %v20944_v0  ;;  %281 = vst [vmem:[#allocation2 + $0x288] sm:$0xff] %v20944_v0 }
  0x87   : > { %282 = vst [vmem:[#allocation2 + $0x290] sm:$0xff] %v20944_v0  ;;  %283 = vst [vmem:[#allocation2 + $0x298] sm:$0xff] %v20944_v0 }
  0x88   : > { %284 = vst [vmem:[#allocation2 + $0x2a0] sm:$0xff] %v20944_v0  ;;  %285 = vst [vmem:[#allocation2 + $0x2a8] sm:$0xff] %v20944_v0 }
  0x89   : > { %286 = vst [vmem:[#allocation2 + $0x2b0] sm:$0xff] %v20944_v0  ;;  %287 = vst [vmem:[#allocation2 + $0x2b8] sm:$0xff] %v20944_v0 }
  0x8a   : > { %288 = vst [vmem:[#allocation2 + $0x2c0] sm:$0xff] %v20944_v0  ;;  %289 = vst [vmem:[#allocation2 + $0x2c8] sm:$0xff] %v20944_v0 }
  0x8b   : > { %290 = vst [vmem:[#allocation2 + $0x2d0] sm:$0xff] %v20944_v0  ;;  %291 = vst [vmem:[#allocation2 + $0x2d8] sm:$0xff] %v20944_v0 }
  0x8c   : > { %292 = vst [vmem:[#allocation2 + $0x2e0] sm:$0xff] %v20944_v0  ;;  %293 = vst [vmem:[#allocation2 + $0x2e8] sm:$0xff] %v20944_v0 }
  0x8d   : > { %294 = vst [vmem:[#allocation2 + $0x2f0] sm:$0xff] %v20944_v0  ;;  %295 = vst [vmem:[#allocation2 + $0x2f8] sm:$0xff] %v20944_v0 }
  0x8e   : > { %297 = vst [vmem:[#allocation2 + $0x600] sm:$0xff] %v20944_v0  ;;  %298 = vst [vmem:[#allocation2 + $0x608] sm:$0xff] %v20944_v0 }
  0x8f   : > { %299 = vst [vmem:[#allocation2 + $0x610] sm:$0xff] %v20944_v0  ;;  %300 = vst [vmem:[#allocation2 + $0x618] sm:$0xff] %v20944_v0 }
  0x90   : > { %301 = vst [vmem:[#allocation2 + $0x620] sm:$0xff] %v20944_v0  ;;  %302 = vst [vmem:[#allocation2 + $0x628] sm:$0xff] %v20944_v0 }
  0x91   : > { %303 = vst [vmem:[#allocation2 + $0x630] sm:$0xff] %v20944_v0  ;;  %304 = vst [vmem:[#allocation2 + $0x638] sm:$0xff] %v20944_v0 }
  0x92   : > { %305 = vst [vmem:[#allocation2 + $0x640] sm:$0xff] %v20944_v0  ;;  %306 = vst [vmem:[#allocation2 + $0x648] sm:$0xff] %v20944_v0 }
  0x93   : > { %307 = vst [vmem:[#allocation2 + $0x650] sm:$0xff] %v20944_v0  ;;  %308 = vst [vmem:[#allocation2 + $0x658] sm:$0xff] %v20944_v0 }
  0x94   : > { %309 = vst [vmem:[#allocation2 + $0x660] sm:$0xff] %v20944_v0  ;;  %310 = vst [vmem:[#allocation2 + $0x668] sm:$0xff] %v20944_v0 }
  0x95   : > { %311 = vst [vmem:[#allocation2 + $0x670] sm:$0xff] %v20944_v0  ;;  %312 = vst [vmem:[#allocation2 + $0x678] sm:$0xff] %v20944_v0 }
  0x96   : > { %313 = vst [vmem:[#allocation2 + $0x680] sm:$0xff] %v20944_v0  ;;  %314 = vst [vmem:[#allocation2 + $0x688] sm:$0xff] %v20944_v0 }
  0x97   : > { %315 = vst [vmem:[#allocation2 + $0x690] sm:$0xff] %v20944_v0  ;;  %316 = vst [vmem:[#allocation2 + $0x698] sm:$0xff] %v20944_v0 }
  0x98   : > { %317 = vst [vmem:[#allocation2 + $0x6a0] sm:$0xff] %v20944_v0  ;;  %318 = vst [vmem:[#allocation2 + $0x6a8] sm:$0xff] %v20944_v0 }
  0x99   : > { %319 = vst [vmem:[#allocation2 + $0x6b0] sm:$0xff] %v20944_v0  ;;  %320 = vst [vmem:[#allocation2 + $0x6b8] sm:$0xff] %v20944_v0 }
  0x9a   : > { %321 = vst [vmem:[#allocation2 + $0x6c0] sm:$0xff] %v20944_v0  ;;  %322 = vst [vmem:[#allocation2 + $0x6c8] sm:$0xff] %v20944_v0 }
  0x9b   : > { %323 = vst [vmem:[#allocation2 + $0x6d0] sm:$0xff] %v20944_v0  ;;  %324 = vst [vmem:[#allocation2 + $0x6d8] sm:$0xff] %v20944_v0 }
  0x9c   : > { %325 = vst [vmem:[#allocation2 + $0x6e0] sm:$0xff] %v20944_v0  ;;  %326 = vst [vmem:[#allocation2 + $0x6e8] sm:$0xff] %v20944_v0 }
  0x9d   : > { %327 = vst [vmem:[#allocation2 + $0x6f0] sm:$0xff] %v20944_v0  ;;  %328 = vst [vmem:[#allocation2 + $0x6f8] sm:$0xff] %v20944_v0 }
  0x9e   : > { %329 = vst [vmem:[#allocation2 + $0x700] sm:$0xff] %v20944_v0  ;;  %330 = vst [vmem:[#allocation2 + $0x708] sm:$0xff] %v20944_v0 }
  0x9f   : > { %331 = vst [vmem:[#allocation2 + $0x710] sm:$0xff] %v20944_v0  ;;  %332 = vst [vmem:[#allocation2 + $0x718] sm:$0xff] %v20944_v0 }
  0xa0   : > { %333 = vst [vmem:[#allocation2 + $0x720] sm:$0xff] %v20944_v0  ;;  %334 = vst [vmem:[#allocation2 + $0x728] sm:$0xff] %v20944_v0 }
  0xa1   : > { %335 = vst [vmem:[#allocation2 + $0x730] sm:$0xff] %v20944_v0  ;;  %336 = vst [vmem:[#allocation2 + $0x738] sm:$0xff] %v20944_v0 }
  0xa2   : > { %337 = vst [vmem:[#allocation2 + $0x740] sm:$0xff] %v20944_v0  ;;  %338 = vst [vmem:[#allocation2 + $0x748] sm:$0xff] %v20944_v0 }
  0xa3   : > { %339 = vst [vmem:[#allocation2 + $0x750] sm:$0xff] %v20944_v0  ;;  %340 = vst [vmem:[#allocation2 + $0x758] sm:$0xff] %v20944_v0 }
  0xa4   : > { %341 = vst [vmem:[#allocation2 + $0x760] sm:$0xff] %v20944_v0  ;;  %342 = vst [vmem:[#allocation2 + $0x768] sm:$0xff] %v20944_v0 }
  0xa5   : > { %343 = vst [vmem:[#allocation2 + $0x770] sm:$0xff] %v20944_v0  ;;  %344 = vst [vmem:[#allocation2 + $0x778] sm:$0xff] %v20944_v0 }
  0xa6   : > { %345 = vst [vmem:[#allocation2 + $0x780] sm:$0xff] %v20944_v0  ;;  %346 = vst [vmem:[#allocation2 + $0x788] sm:$0xff] %v20944_v0 }
  0xa7   : > { %347 = vst [vmem:[#allocation2 + $0x790] sm:$0xff] %v20944_v0  ;;  %348 = vst [vmem:[#allocation2 + $0x798] sm:$0xff] %v20944_v0 }
  0xa8   : > { %349 = vst [vmem:[#allocation2 + $0x7a0] sm:$0xff] %v20944_v0  ;;  %350 = vst [vmem:[#allocation2 + $0x7a8] sm:$0xff] %v20944_v0 }
  0xa9   : > { %351 = vst [vmem:[#allocation2 + $0x7b0] sm:$0xff] %v20944_v0  ;;  %352 = vst [vmem:[#allocation2 + $0x7b8] sm:$0xff] %v20944_v0 }
  0xaa   : > { %353 = vst [vmem:[#allocation2 + $0x7c0] sm:$0xff] %v20944_v0  ;;  %354 = vst [vmem:[#allocation2 + $0x7c8] sm:$0xff] %v20944_v0 }
  0xab   : > { %355 = vst [vmem:[#allocation2 + $0x7d0] sm:$0xff] %v20944_v0  ;;  %356 = vst [vmem:[#allocation2 + $0x7d8] sm:$0xff] %v20944_v0 }
  0xac   : > { %357 = vst [vmem:[#allocation2 + $0x7e0] sm:$0xff] %v20944_v0  ;;  %358 = vst [vmem:[#allocation2 + $0x7e8] sm:$0xff] %v20944_v0 }
  0xad   : > { %359 = vst [vmem:[#allocation2 + $0x7f0] sm:$0xff] %v20944_v0  ;;  %360 = vst [vmem:[#allocation2 + $0x7f8] sm:$0xff] %v20944_v0 }
  0xae   : > { %361 = vst [vmem:[#allocation2 + $0x800] sm:$0xff] %v20944_v0  ;;  %362 = vst [vmem:[#allocation2 + $0x808] sm:$0xff] %v20944_v0 }
  0xaf   : > { %363 = vst [vmem:[#allocation2 + $0x810] sm:$0xff] %v20944_v0  ;;  %364 = vst [vmem:[#allocation2 + $0x818] sm:$0xff] %v20944_v0 }
  0xb0   : > { %365 = vst [vmem:[#allocation2 + $0x820] sm:$0xff] %v20944_v0  ;;  %366 = vst [vmem:[#allocation2 + $0x828] sm:$0xff] %v20944_v0 }
  0xb1   : > { %367 = vst [vmem:[#allocation2 + $0x830] sm:$0xff] %v20944_v0  ;;  %368 = vst [vmem:[#allocation2 + $0x838] sm:$0xff] %v20944_v0 }
  0xb2   : > { %369 = vst [vmem:[#allocation2 + $0x840] sm:$0xff] %v20944_v0  ;;  %370 = vst [vmem:[#allocation2 + $0x848] sm:$0xff] %v20944_v0 }
  0xb3   : > { %371 = vst [vmem:[#allocation2 + $0x850] sm:$0xff] %v20944_v0  ;;  %372 = vst [vmem:[#allocation2 + $0x858] sm:$0xff] %v20944_v0 }
  0xb4   : > { %373 = vst [vmem:[#allocation2 + $0x860] sm:$0xff] %v20944_v0  ;;  %374 = vst [vmem:[#allocation2 + $0x868] sm:$0xff] %v20944_v0 }
  0xb5   : > { %375 = vst [vmem:[#allocation2 + $0x870] sm:$0xff] %v20944_v0  ;;  %376 = vst [vmem:[#allocation2 + $0x878] sm:$0xff] %v20944_v0 }
  0xb6   : > { %377 = vst [vmem:[#allocation2 + $0x880] sm:$0xff] %v20944_v0  ;;  %378 = vst [vmem:[#allocation2 + $0x888] sm:$0xff] %v20944_v0 }
  0xb7   : > { %379 = vst [vmem:[#allocation2 + $0x890] sm:$0xff] %v20944_v0  ;;  %380 = vst [vmem:[#allocation2 + $0x898] sm:$0xff] %v20944_v0 }
  0xb8   : > { %381 = vst [vmem:[#allocation2 + $0x8a0] sm:$0xff] %v20944_v0  ;;  %382 = vst [vmem:[#allocation2 + $0x8a8] sm:$0xff] %v20944_v0 }
  0xb9   : > { %383 = vst [vmem:[#allocation2 + $0x8b0] sm:$0xff] %v20944_v0  ;;  %384 = vst [vmem:[#allocation2 + $0x8b8] sm:$0xff] %v20944_v0 }
  0xba   : > { %385 = vst [vmem:[#allocation2 + $0x8c0] sm:$0xff] %v20944_v0  ;;  %386 = vst [vmem:[#allocation2 + $0x8c8] sm:$0xff] %v20944_v0 }
  0xbb   : > { %387 = vst [vmem:[#allocation2 + $0x8d0] sm:$0xff] %v20944_v0  ;;  %388 = vst [vmem:[#allocation2 + $0x8d8] sm:$0xff] %v20944_v0 }
  0xbc   : > { %389 = vst [vmem:[#allocation2 + $0x8e0] sm:$0xff] %v20944_v0  ;;  %390 = vst [vmem:[#allocation2 + $0x8e8] sm:$0xff] %v20944_v0 }
  0xbd   : > { %391 = vst [vmem:[#allocation2 + $0x8f0] sm:$0xff] %v20944_v0  ;;  %392 = vst [vmem:[#allocation2 + $0x8f8] sm:$0xff] %v20944_v0 }
  0xbe   : > { %394 = vst [vmem:[#allocation2 + $0x300] sm:$0xff] %v20944_v0  ;;  %395 = vst [vmem:[#allocation2 + $0x308] sm:$0xff] %v20944_v0 }
  0xbf   : > { %396 = vst [vmem:[#allocation2 + $0x330] sm:$0xff] %v20944_v0  ;;  %397 = vst [vmem:[#allocation2 + $0x338] sm:$0xff] %v20944_v0 }
  0xc0   : > { %398 = vst [vmem:[#allocation2 + $0x360] sm:$0xff] %v20944_v0  ;;  %399 = vst [vmem:[#allocation2 + $0x368] sm:$0xff] %v20944_v0 }
  0xc1   : > { %400 = vst [vmem:[#allocation2 + $0x390] sm:$0xff] %v20944_v0  ;;  %401 = vst [vmem:[#allocation2 + $0x398] sm:$0xff] %v20944_v0 }
  0xc2   : > { %402 = vst [vmem:[#allocation2 + $0x3c0] sm:$0xff] %v20944_v0  ;;  %403 = vst [vmem:[#allocation2 + $0x3c8] sm:$0xff] %v20944_v0 }
  0xc3   : > { %404 = vst [vmem:[#allocation2 + $0x3f0] sm:$0xff] %v20944_v0  ;;  %405 = vst [vmem:[#allocation2 + $0x3f8] sm:$0xff] %v20944_v0 }
  0xc4   : > { %406 = vst [vmem:[#allocation2 + $0x420] sm:$0xff] %v20944_v0  ;;  %407 = vst [vmem:[#allocation2 + $0x428] sm:$0xff] %v20944_v0 }
  0xc5   : > { %408 = vst [vmem:[#allocation2 + $0x450] sm:$0xff] %v20944_v0  ;;  %409 = vst [vmem:[#allocation2 + $0x458] sm:$0xff] %v20944_v0 }
  0xc6   : > { %410 = vst [vmem:[#allocation2 + $0x480] sm:$0xff] %v20944_v0  ;;  %411 = vst [vmem:[#allocation2 + $0x488] sm:$0xff] %v20944_v0 }
  0xc7   : > { %412 = vst [vmem:[#allocation2 + $0x4b0] sm:$0xff] %v20944_v0  ;;  %413 = vst [vmem:[#allocation2 + $0x4b8] sm:$0xff] %v20944_v0 }
  0xc8   : > { %414 = vst [vmem:[#allocation2 + $0x4e0] sm:$0xff] %v20944_v0  ;;  %415 = vst [vmem:[#allocation2 + $0x4e8] sm:$0xff] %v20944_v0 }
  0xc9   : > { %416 = vst [vmem:[#allocation2 + $0x510] sm:$0xff] %v20944_v0  ;;  %417 = vst [vmem:[#allocation2 + $0x518] sm:$0xff] %v20944_v0 }
  0xca   : > { %418 = vst [vmem:[#allocation2 + $0x540] sm:$0xff] %v20944_v0  ;;  %419 = vst [vmem:[#allocation2 + $0x548] sm:$0xff] %v20944_v0 }
  0xcb   : > { %420 = vst [vmem:[#allocation2 + $0x570] sm:$0xff] %v20944_v0  ;;  %421 = vst [vmem:[#allocation2 + $0x578] sm:$0xff] %v20944_v0 }
  0xcc   : > { %422 = vst [vmem:[#allocation2 + $0x5a0] sm:$0xff] %v20944_v0  ;;  %423 = vst [vmem:[#allocation2 + $0x5a8] sm:$0xff] %v20944_v0 }
  0xcd   : > { %424 = vst [vmem:[#allocation2 + $0x5d0] sm:$0xff] %v20944_v0  ;;  %425 = vst [vmem:[#allocation2 + $0x5d8] sm:$0xff] %v20944_v0 }
  0xce   : > { %426 = vst [vmem:[#allocation2 + $0x320] sm:$0xff] %v20944_v0  ;;  %427 = vst [vmem:[#allocation2 + $0x328] sm:$0xff] %v20944_v0 }
  0xcf   : > { %428 = vst [vmem:[#allocation2 + $0x350] sm:$0xff] %v20944_v0  ;;  %429 = vst [vmem:[#allocation2 + $0x358] sm:$0xff] %v20944_v0 }
  0xd0   : > { %430 = vst [vmem:[#allocation2 + $0x380] sm:$0xff] %v20944_v0  ;;  %431 = vst [vmem:[#allocation2 + $0x388] sm:$0xff] %v20944_v0 }
  0xd1   : > { %432 = vst [vmem:[#allocation2 + $0x3b0] sm:$0xff] %v20944_v0  ;;  %433 = vst [vmem:[#allocation2 + $0x3b8] sm:$0xff] %v20944_v0 }
  0xd2   : > { %434 = vst [vmem:[#allocation2 + $0x3e0] sm:$0xff] %v20944_v0  ;;  %435 = vst [vmem:[#allocation2 + $0x3e8] sm:$0xff] %v20944_v0 }
  0xd3   : > { %436 = vst [vmem:[#allocation2 + $0x410] sm:$0xff] %v20944_v0  ;;  %437 = vst [vmem:[#allocation2 + $0x418] sm:$0xff] %v20944_v0 }
  0xd4   : > { %438 = vst [vmem:[#allocation2 + $0x440] sm:$0xff] %v20944_v0  ;;  %439 = vst [vmem:[#allocation2 + $0x448] sm:$0xff] %v20944_v0 }
  0xd5   : > { %440 = vst [vmem:[#allocation2 + $0x470] sm:$0xff] %v20944_v0  ;;  %441 = vst [vmem:[#allocation2 + $0x478] sm:$0xff] %v20944_v0 }
  0xd6   : > { %442 = vst [vmem:[#allocation2 + $0x4a0] sm:$0xff] %v20944_v0  ;;  %443 = vst [vmem:[#allocation2 + $0x4a8] sm:$0xff] %v20944_v0 }
  0xd7   : > { %444 = vst [vmem:[#allocation2 + $0x4d0] sm:$0xff] %v20944_v0  ;;  %445 = vst [vmem:[#allocation2 + $0x4d8] sm:$0xff] %v20944_v0 }
  0xd8   : > { %446 = vst [vmem:[#allocation2 + $0x500] sm:$0xff] %v20944_v0  ;;  %447 = vst [vmem:[#allocation2 + $0x508] sm:$0xff] %v20944_v0 }
  0xd9   : > { %448 = vst [vmem:[#allocation2 + $0x530] sm:$0xff] %v20944_v0  ;;  %449 = vst [vmem:[#allocation2 + $0x538] sm:$0xff] %v20944_v0 }
  0xda   : > { %450 = vst [vmem:[#allocation2 + $0x560] sm:$0xff] %v20944_v0  ;;  %451 = vst [vmem:[#allocation2 + $0x568] sm:$0xff] %v20944_v0 }
  0xdb   : > { %452 = vst [vmem:[#allocation2 + $0x590] sm:$0xff] %v20944_v0  ;;  %453 = vst [vmem:[#allocation2 + $0x598] sm:$0xff] %v20944_v0 }
  0xdc   : > { %454 = vst [vmem:[#allocation2 + $0x5c0] sm:$0xff] %v20944_v0  ;;  %455 = vst [vmem:[#allocation2 + $0x5c8] sm:$0xff] %v20944_v0 }
  0xdd   : > { %456 = vst [vmem:[#allocation2 + $0x5f0] sm:$0xff] %v20944_v0  ;;  %457 = vst [vmem:[#allocation2 + $0x5f8] sm:$0xff] %v20944_v0 }
  0xde   : > { %s20945_s23 = smov [#allocation4]   ;;  %s20828_s22 = scalar_lea.hbm %s23654_s1, 46080 }
  0xdf   : > { %s465_s26 = sshll.u32 %s20945_s23, 4  ;;  %p20829_p5 = scmp.ne.s32.totalorder %s23654_s1, %s20828_s22  ;;  %s466_s26 = int_to_ptr.vmem [resolvable:$true] %s465_s26 }
  0xe0   : > { %p20832_p10 = scmp.lt.u32.totalorder %s20828_s22, %s23654_s1 }
  0xe2   : > { %p20834_p11 = pnand %p20832_p10, %p20829_p5 }
  0xe4   : > { %20837 = shalt.err (!%p20834_p11)  }
  0xe5   : > { %s20838_s19 = scalar_lea.vmem %s466_s26, 46080  ;;  %p20843_p0 = scmp.lt.s32.totalorder %s466_s26, %s466_s26 }
  0xe6   : > { %p20839_p1 = scmp.ne.s32.totalorder %s466_s26, %s20838_s19  ;;  %p20844_p9 = scmp.lt.s32.totalorder %s20838_s19, %s20838_s19 }
  0xe8   : > { %p20845_p3 = por %p20844_p9, %p20843_p0 }
  0xea   : > { %p20846_p7 = pnand %p20845_p3, %p20839_p1 }
  0xec   : > { %20849 = shalt.err (!%p20846_p7)  }
  0xed   : > { %468 = dma.hbm_to_vmem [thread:$0]  %s23654_s1, 46080, %s466_s26, [#allocation11] }
  0xee   : > { %20910 = dma.done.wait [#allocation11], 46080 }
  0xef   : > { %20911 = vsyncadd [#allocation11], 4294921216  ;;  %v690_v1 = vld [vmem:[#allocation4] sm:$0xff]  ;;  %v691_v3 = vld [vmem:[#allocation4 + $0x8] sm:$0xff]  ;;  %s15986_s8 = sshll.u32 %s20930_s15, 12  ;;  %s15870_s10 = sshll.u32 %s21397_s21, 4  ;;  %s23601_s10 = int_to_ptr.vmem [resolvable:$true] %s15870_s10 }
  0xf0   : > { %v21411_v2 = vld [vmem:[#allocation4 + $0x100] sm:$0xff]  ;;  %17067 = vmatprep.subr.bf16.mxu1 %v690_v1  ;;  %v1947_v4 = vld [vmem:[#allocation4 + $0x108] sm:$0xff]  ;;  %v692_v5 = vld [vmem:[#allocation4 + $0x10] sm:$0xff]  ;;  %s23599_s23 = scalar_lea.hbm %s23656_s3, %s15986_s8  ;;  %s15856_s26 = scalar_lea.sflag [#allocation7], %s21123_s9 }
  0xf1   : > { %17259 = vmatprep.subr.bf16.mxu0 %v21411_v2  ;;  %17068 = vmatpush3.bf16.msra.mxu1 %v690_v1  ;;  %v1948_v6 = vld [vmem:[#allocation4 + $0x110] sm:$0xff]  ;;  %v610_v7 = vld [vmem:[#allocation2 + $0x2df] sm:$0xff]  ;;  %v611_v8 = vld [vmem:[#allocation2 + $0x2e7] sm:$0xff]  ;;  %s20850_s29 = scalar_lea.vmem %s23601_s10, 4096  ;;  %p23702_p2 = scmp.ne.s32.totalorder %s23670_s24, 0 }
  0xf2   : > { %17260 = vmatpush3.bf16.msra.mxu0 %v21411_v2  ;;  %17069 = vmatprep.subr.bf16.mxu1 %v691_v3  ;;  %v674_v9 = vpack.c.bf16 %v611_v8, %v610_v7  ;;  %v475_v10 = vld [vmem:[%s21129_s30] sm:$0xff]  ;;  %v476_v11 = vld [vmem:[%s21129_s30 + $0x8] sm:$0xff]  ;;  %v693_v12 = vld [vmem:[#allocation4 + $0x18] sm:$0xff]  ;;  %p20851_p13 = scmp.ne.s32.totalorder %s23601_s10, %s20850_s29  ;;  %s20946_s18 = smov [#allocation10]  }
  0xf3   : > { %17261 = vmatprep.subr.bf16.mxu0 %v1947_v4  ;;  %508 = vst [vmem:[#allocation2 + $0x310] sm:$0xff] %v475_v10  ;;  %509 = vst [vmem:[#allocation2 + $0x318] sm:$0xff] %v476_v11  ;;  %v21417_v13 = vpack.c.bf16 %v476_v11, %v475_v10  ;;  %v21422_v14 = vld [vmem:[%s21129_s30 + $0x10] sm:$0xff]  ;;  %v21425_v15 = vld [vmem:[%s21129_s30 + $0x18] sm:$0xff]  ;;  %s20854_s22 = sshll.u32 %s20946_s18, 4  ;;  %s20855_s22 = int_to_ptr.vmem [resolvable:$false] %s20854_s22 }
  0xf4   : > { %540 = vst [vmem:[%s21397_s21] sm:$0xff] %v475_v10  ;;  %541 = vst [vmem:[%s21397_s21 + $0x8] sm:$0xff] %v476_v11  ;;  %v1949_v16 = vld [vmem:[#allocation4 + $0x118] sm:$0xff]  ;;  %17083 = vmatprep.mubr.bf16.mxu1 %v674_v9  ;;  %v21434_v17 = vld [vmem:[%s21129_s30 + $0x20] sm:$0xff]  ;;  %v21540_v57 = vpack.c.bf16 %v21425_v15, %v21422_v14  ;;  %p20852_p6 = pnand %p20851_p13, %p23702_p2  ;;  %s20856_s5 = scalar_lea.vmem %s20855_s22, 8192 }
  0xf5   : > { %17070 = vmatpush3.bf16.msra.mxu1 %v691_v3  ;;  %510 = vst [vmem:[#allocation2 + $0x340] sm:$0xff] %v21422_v14  ;;  %511 = vst [vmem:[#allocation2 + $0x348] sm:$0xff] %v21425_v15  ;;  %v21437_v18 = vld [vmem:[%s21129_s30 + $0x28] sm:$0xff]  ;;  %17275 = vmatprep.mubr.bf16.mxu0 %v21417_v13  ;;  %v21447_v19 = vld [vmem:[%s21129_s30 + $0x30] sm:$0xff]  ;;  %p20857_p4 = scmp.lt.s32.totalorder %s23601_s10, %s20855_s22  ;;  %p20858_p8 = scmp.lt.s32.totalorder %s20856_s5, %s20850_s29 }
  0xf6   : > { %17262 = vmatpush3.bf16.msra.mxu0 %v1947_v4  ;;  %17071 = vmatprep.subr.bf16.mxu1 %v692_v5  ;;  %542 = vst [vmem:[%s21397_s21 + $0x10] sm:$0xff] %v21422_v14  ;;  %543 = vst [vmem:[%s21397_s21 + $0x18] sm:$0xff] %v21425_v15  ;;  %v21450_v20 = vld [vmem:[%s21129_s30 + $0x38] sm:$0xff]  ;;  %v21459_v21 = vld [vmem:[%s21129_s30 + $0x40] sm:$0xff]  ;;  %v21555_v0 = vpack.c.bf16 %v21437_v18, %v21434_v17  ;;  %p20853_p12 = pneg %p20852_p6 }
  0xf7   : > { %17263 = vmatprep.subr.bf16.mxu0 %v1948_v6  ;;  %512 = vst [vmem:[#allocation2 + $0x370] sm:$0xff] %v21434_v17  ;;  %513 = vst [vmem:[#allocation2 + $0x378] sm:$0xff] %v21437_v18  ;;  %v21462_v22 = vld [vmem:[%s21129_s30 + $0x48] sm:$0xff]  ;;  %v21468_v23 = vld [vmem:[%s21129_s30 + $0x50] sm:$0xff]  ;;  %v21573_v15 = vpack.c.bf16 %v21450_v20, %v21447_v19  ;;  %p20859_p5 = por %p20858_p8, %p20857_p4 }
  0xf8   : > { %544 = vst [vmem:[%s21397_s21 + $0x20] sm:$0xff] %v21434_v17  ;;  %545 = vst [vmem:[%s21397_s21 + $0x28] sm:$0xff] %v21437_v18  ;;  %v694_v24 = vld [vmem:[#allocation4 + $0x20] sm:$0xff]  ;;  %v21474_v26 = vld [vmem:[%s21129_s30 + $0x58] sm:$0xff]  ;;  %v21579_v17 = vpack.c.bf16 %v21462_v22, %v21459_v21 }
  0xf9   : > { %17072 = vmatpush3.bf16.msra.mxu1 %v692_v5  ;;  %514 = vst [vmem:[#allocation2 + $0x3a0] sm:$0xff] %v21447_v19  ;;  %515 = vst [vmem:[#allocation2 + $0x3a8] sm:$0xff] %v21450_v20  ;;  %v1950_v25 = vld [vmem:[#allocation4 + $0x120] sm:$0xff]  ;;  %v21486_v28 = vld [vmem:[%s21129_s30 + $0x68] sm:$0xff]  ;;  %p20860_p10 = pnand %p20859_p5, %p20853_p12 }
  0xfa   : > { %17264 = vmatpush3.bf16.msra.mxu0 %v1948_v6  ;;  %546 = vst [vmem:[%s21397_s21 + $0x30] sm:$0xff] %v21447_v19  ;;  %547 = vst [vmem:[%s21397_s21 + $0x38] sm:$0xff] %v21450_v20  ;;  %17073 = vmatprep.subr.bf16.mxu1 %v693_v12  ;;  %v21483_v27 = vld [vmem:[%s21129_s30 + $0x60] sm:$0xff]  ;;  %v21495_v29 = vld [vmem:[%s21129_s30 + $0x70] sm:$0xff] }
  0xfb   : > { %17265 = vmatprep.subr.bf16.mxu0 %v1949_v16  ;;  %516 = vst [vmem:[#allocation2 + $0x3d0] sm:$0xff] %v21459_v21  ;;  %548 = vst [vmem:[%s21397_s21 + $0x40] sm:$0xff] %v21459_v21  ;;  %v21498_v30 = vld [vmem:[%s21129_s30 + $0x78] sm:$0xff]  ;;  %v695_v31 = vld [vmem:[#allocation4 + $0x28] sm:$0xff] }
  0xfc   : > { %517 = vst [vmem:[#allocation2 + $0x3d8] sm:$0xff] %v21462_v22  ;;  %549 = vst [vmem:[%s21397_s21 + $0x48] sm:$0xff] %v21462_v22  ;;  %v1951_v32 = vld [vmem:[#allocation4 + $0x128] sm:$0xff]  ;;  %v491_v33 = vld [vmem:[%s21129_s30 + $0x80] sm:$0xff] }
  0xfd   : > { %518 = vst [vmem:[#allocation2 + $0x400] sm:$0xff] %v21468_v23  ;;  %550 = vst [vmem:[%s21397_s21 + $0x50] sm:$0xff] %v21468_v23  ;;  %17074 = vmatpush3.bf16.msra.mxu1 %v693_v12  ;;  %v696_v34 = vld [vmem:[#allocation4 + $0x30] sm:$0xff]  ;;  %v492_v36 = vld [vmem:[%s21129_s30 + $0x88] sm:$0xff] }
  0xfe   : > { %519 = vst [vmem:[#allocation2 + $0x408] sm:$0xff] %v21474_v26  ;;  %551 = vst [vmem:[%s21397_s21 + $0x58] sm:$0xff] %v21474_v26  ;;  %17266 = vmatpush3.bf16.msra.mxu0 %v1949_v16  ;;  %17075 = vmatprep.subr.bf16.mxu1 %v694_v24  ;;  %v21507_v35 = vld [vmem:[#allocation4 + $0x130] sm:$0xff]  ;;  %v21512_v37 = vpack.c.bf16 %v492_v36, %v491_v33  ;;  %v494_v39 = vld [vmem:[%s21129_s30 + $0x98] sm:$0xff] }
  0xff   : > { %520 = vst [vmem:[#allocation2 + $0x430] sm:$0xff] %v21483_v27  ;;  %521 = vst [vmem:[#allocation2 + $0x438] sm:$0xff] %v21486_v28  ;;  %17267 = vmatprep.subr.bf16.mxu0 %v1950_v25  ;;  %v493_v38 = vld [vmem:[%s21129_s30 + $0x90] sm:$0xff]  ;;  %v697_v40 = vld [vmem:[#allocation4 + $0x38] sm:$0xff] }
 0x100   : > { %552 = vst [vmem:[%s21397_s21 + $0x60] sm:$0xff] %v21483_v27  ;;  %553 = vst [vmem:[%s21397_s21 + $0x68] sm:$0xff] %v21486_v28  ;;  %v21517_v41 = vld [vmem:[#allocation4 + $0x138] sm:$0xff]  ;;  %v495_v42 = vld [vmem:[%s21129_s30 + $0xa0] sm:$0xff]  ;;  %v21522_v43 = vpack.c.bf16 %v494_v39, %v493_v38 }
 0x101   : > { %522 = vst [vmem:[#allocation2 + $0x460] sm:$0xff] %v21495_v29  ;;  %554 = vst [vmem:[%s21397_s21 + $0x70] sm:$0xff] %v21495_v29  ;;  %17076 = vmatpush3.bf16.msra.mxu1 %v694_v24  ;;  %v496_v44 = vld [vmem:[%s21129_s30 + $0xa8] sm:$0xff]  ;;  %v613_v46 = vld [vmem:[#allocation2 + $0x317] sm:$0xff] }
 0x102   : > { %523 = vst [vmem:[#allocation2 + $0x468] sm:$0xff] %v21498_v30  ;;  %555 = vst [vmem:[%s21397_s21 + $0x78] sm:$0xff] %v21498_v30  ;;  %17268 = vmatpush3.bf16.msra.mxu0 %v1950_v25  ;;  %17077 = vmatprep.subr.bf16.mxu1 %v695_v31  ;;  %v612_v45 = vld [vmem:[#allocation2 + $0x30f] sm:$0xff]  ;;  %v21529_v48 = vpack.c.bf16 %v496_v44, %v495_v42  ;;  %v1004_v49 = vld [vmem:[#allocation4 + $0x40] sm:$0xff] }
 0x103   : > { %17269 = vmatprep.subr.bf16.mxu0 %v1951_v32  ;;  %524 = vst [vmem:[#allocation2 + $0x490] sm:$0xff] %v491_v33  ;;  %556 = vst [vmem:[%s21397_s21 + $0x80] sm:$0xff] %v491_v33  ;;  %v497_v47 = vld [vmem:[%s21129_s30 + $0xb0] sm:$0xff]  ;;  %v2260_v50 = vld [vmem:[#allocation4 + $0x140] sm:$0xff]  ;;  %v675_v56 = vpack.c.bf16 %v613_v46, %v612_v45 }
 0x104   : > { %525 = vst [vmem:[#allocation2 + $0x498] sm:$0xff] %v492_v36  ;;  %557 = vst [vmem:[%s21397_s21 + $0x88] sm:$0xff] %v492_v36  ;;  %v498_v51 = vld [vmem:[%s21129_s30 + $0xb8] sm:$0xff]  ;;  %v615_v53 = vld [vmem:[#allocation2 + $0x347] sm:$0xff] }
 0x105   : > { %17078 = vmatpush3.bf16.msra.mxu1 %v695_v31  ;;  %526 = vst [vmem:[#allocation2 + $0x4c0] sm:$0xff] %v493_v38  ;;  %527 = vst [vmem:[#allocation2 + $0x4c8] sm:$0xff] %v494_v39  ;;  %v614_v52 = vld [vmem:[#allocation2 + $0x33f] sm:$0xff]  ;;  %v21536_v55 = vpack.c.bf16 %v498_v51, %v497_v47  ;;  %v500_v58 = vld [vmem:[%s21129_s30 + $0xc8] sm:$0xff] }
 0x106   : > { %17270 = vmatpush3.bf16.msra.mxu0 %v1951_v32  ;;  %17079 = vmatprep.subr.bf16.mxu1 %v696_v34  ;;  %558 = vst [vmem:[%s21397_s21 + $0x90] sm:$0xff] %v493_v38  ;;  %559 = vst [vmem:[%s21397_s21 + $0x98] sm:$0xff] %v494_v39  ;;  %v499_v54 = vld [vmem:[%s21129_s30 + $0xc0] sm:$0xff]  ;;  %v501_v59 = vld [vmem:[%s21129_s30 + $0xd0] sm:$0xff]  ;;  %v21549_v61 = vpack.c.bf16 %v615_v53, %v614_v52  ;;  %v21589_v32 = vpack.c.bf16 %v21474_v26, %v21468_v23 }
 0x107   : > { %17271 = vmatprep.subr.bf16.mxu0 %v21507_v35  ;;  %528 = vst [vmem:[#allocation2 + $0x4f0] sm:$0xff] %v495_v42  ;;  %560 = vst [vmem:[%s21397_s21 + $0xa0] sm:$0xff] %v495_v42  ;;  %v21547_v60 = vpack.c.bf16 %v500_v58, %v499_v54  ;;  %v502_v62 = vld [vmem:[%s21129_s30 + $0xd8] sm:$0xff]  ;;  %v2261_v63 = vld [vmem:[#allocation4 + $0x148] sm:$0xff]  ;;  %v21604_v38 = vpack.c.bf16 %v21486_v28, %v21483_v27 }
 0x108   : > { %529 = vst [vmem:[#allocation2 + $0x4f8] sm:$0xff] %v496_v44  ;;  %561 = vst [vmem:[%s21397_s21 + $0xa8] sm:$0xff] %v496_v44  ;;  %v21558_v1 = vpack.c.bf16 %v502_v62, %v501_v59  ;;  %v1005_v3 = vld [vmem:[#allocation4 + $0x48] sm:$0xff]  ;;  %v503_v4 = vld [vmem:[%s21129_s30 + $0xe0] sm:$0xff] }
 0x109   : > { %17080 = vmatpush3.bf16.msra.mxu1 %v696_v34  ;;  %530 = vst [vmem:[#allocation2 + $0x520] sm:$0xff] %v497_v47  ;;  %562 = vst [vmem:[%s21397_s21 + $0xb0] sm:$0xff] %v497_v47  ;;  %v504_v5 = vld [vmem:[%s21129_s30 + $0xe8] sm:$0xff]  ;;  %v617_v7 = vld [vmem:[#allocation2 + $0x377] sm:$0xff] }
 0x10a   : > { %17272 = vmatpush3.bf16.msra.mxu0 %v21507_v35  ;;  %17081 = vmatprep.subr.bf16.mxu1 %v697_v40  ;;  %531 = vst [vmem:[#allocation2 + $0x528] sm:$0xff] %v498_v51  ;;  %563 = vst [vmem:[%s21397_s21 + $0xb8] sm:$0xff] %v498_v51  ;;  %v616_v6 = vld [vmem:[#allocation2 + $0x36f] sm:$0xff]  ;;  %v21565_v8 = vpack.c.bf16 %v504_v5, %v503_v4  ;;  %v618_v9 = vld [vmem:[#allocation2 + $0x39f] sm:$0xff] }
 0x10b   : > { %17273 = vmatprep.subr.bf16.mxu0 %v21517_v41  ;;  %532 = vst [vmem:[#allocation2 + $0x550] sm:$0xff] %v499_v54  ;;  %564 = vst [vmem:[%s21397_s21 + $0xc0] sm:$0xff] %v499_v54  ;;  %v619_v10 = vld [vmem:[#allocation2 + $0x3a7] sm:$0xff]  ;;  %v2262_v11 = vld [vmem:[#allocation4 + $0x150] sm:$0xff]  ;;  %v21569_v14 = vpack.c.bf16 %v617_v7, %v616_v6 }
 0x10c   : > { %533 = vst [vmem:[#allocation2 + $0x558] sm:$0xff] %v500_v58  ;;  %565 = vst [vmem:[%s21397_s21 + $0xc8] sm:$0xff] %v500_v58  ;;  %v1006_v12 = vld [vmem:[#allocation4 + $0x50] sm:$0xff]  ;;  %v21575_v16 = vpack.c.bf16 %v619_v10, %v618_v9  ;;  %v2263_v18 = vld [vmem:[#allocation4 + $0x158] sm:$0xff] }
 0x10d   : > { %17082 = vmatpush3.bf16.msra.mxu1 %v697_v40  ;;  %534 = vst [vmem:[#allocation2 + $0x580] sm:$0xff] %v501_v59  ;;  %566 = vst [vmem:[%s21397_s21 + $0xd0] sm:$0xff] %v501_v59  ;;  %v620_v19 = vld [vmem:[#allocation2 + $0x3cf] sm:$0xff]  ;;  %v621_v20 = vld [vmem:[#allocation2 + $0x3d7] sm:$0xff] }
 0x10e   : > { %17274 = vmatpush3.bf16.msra.mxu0 %v21517_v41  ;;  %17115 = vmatprep.subr.bf16.mxu1 %v1004_v49  ;;  %535 = vst [vmem:[#allocation2 + $0x588] sm:$0xff] %v502_v62  ;;  %567 = vst [vmem:[%s21397_s21 + $0xd8] sm:$0xff] %v502_v62  ;;  %v1007_v24 = vld [vmem:[#allocation4 + $0x58] sm:$0xff]  ;;  %v623_v22 = vld [vmem:[#allocation2 + $0x407] sm:$0xff]  ;;  %v21585_v31 = vpack.c.bf16 %v621_v20, %v620_v19 }
 0x10f   : > { %17307 = vmatprep.subr.bf16.mxu0 %v2260_v50  ;;  %536 = vst [vmem:[#allocation2 + $0x5b0] sm:$0xff] %v503_v4  ;;  %537 = vst [vmem:[#allocation2 + $0x5b8] sm:$0xff] %v504_v5  ;;  %v622_v21 = vld [vmem:[#allocation2 + $0x3ff] sm:$0xff]  ;;  %v21592_v33 = vld [vmem:[%s21129_s30 + $0xf0] sm:$0xff] }
 0x110   : > { %17084 = vmatmul.mubr.bf16.vlgmr.msra.gmra.mrb[0].mxu1 %v675_v56  ;;  %568 = vst [vmem:[%s21397_s21 + $0xe0] sm:$0xff] %v503_v4  ;;  %569 = vst [vmem:[%s21397_s21 + $0xe8] sm:$0xff] %v504_v5  ;;  %v2264_v25 = vld [vmem:[#allocation4 + $0x160] sm:$0xff]  ;;  %v21594_v34 = vpack.c.bf16 %v623_v22, %v622_v21  ;;  %v21597_v36 = vld [vmem:[%s21129_s30 + $0xf8] sm:$0xff] }
 0x111   : > { %17276 = vmatmul.mubr.bf16.vlgmr.msra.gmra.mrb[0].mxu0 %v21540_v57  ;;  %17116 = vmatpush3.bf16.msra.mxu1 %v1004_v49  ;;  %538 = vst [vmem:[#allocation2 + $0x5e0] sm:$0xff] %v21592_v33  ;;  %570 = vst [vmem:[%s21397_s21 + $0xf0] sm:$0xff] %v21592_v33  ;;  %v2265_v23 = vld [vmem:[#allocation4 + $0x168] sm:$0xff]  ;;  %v1008_v26 = vld [vmem:[#allocation4 + $0x60] sm:$0xff]  ;;  %v21617_v49 = vpack.c.bf16 %v21498_v30, %v21495_v29 }
 0x112   : > { %17308 = vmatpush3.bf16.msra.mxu0 %v2260_v50  ;;  %17087 = vmatprep.mubr.bf16.mxu1 %v21549_v61  ;;  %539 = vst [vmem:[#allocation2 + $0x5e8] sm:$0xff] %v21597_v36  ;;  %571 = vst [vmem:[%s21397_s21 + $0xf8] sm:$0xff] %v21597_v36  ;;  %v624_v39 = vld [vmem:[#allocation2 + $0x42f] sm:$0xff]  ;;  %v625_v40 = vld [vmem:[#allocation2 + $0x437] sm:$0xff] }
 0x113   : > { %17309 = vmatprep.subr.bf16.mxu0 %v2261_v63  ;;  %17279 = vmatprep.mubr.bf16.mxu0 %v21555_v0  ;;  %v626_v27 = vld [vmem:[#allocation2 + $0x45f] sm:$0xff]  ;;  %v627_v28 = vld [vmem:[#allocation2 + $0x467] sm:$0xff]  ;;  %v2266_v44 = vld [vmem:[#allocation4 + $0x170] sm:$0xff]  ;;  %v21613_v47 = vpack.c.bf16 %v625_v40, %v624_v39 }
 0x114   : > { %17117 = vmatprep.subr.bf16.mxu1 %v1005_v3  ;;  %v1009_v42 = vld [vmem:[#allocation4 + $0x68] sm:$0xff]  ;;  %v2179_v45 = vld [vmem:[#allocation2 + $0x311] sm:$0xff]  ;;  %v2180_v46 = vld [vmem:[#allocation2 + $0x319] sm:$0xff]  ;;  %v21619_v50 = vpack.c.bf16 %v627_v28, %v626_v27 }
 0x115   : > { %17118 = vmatpush3.bf16.msra.mxu1 %v1005_v3  ;;  %v21621_v51 = vpack.c.bf16 %v2180_v46, %v2179_v45  ;;  %v2267_v52 = vld [vmem:[#allocation4 + $0x178] sm:$0xff]  ;;  %v2181_v53 = vld [vmem:[#allocation2 + $0x341] sm:$0xff]  ;;  %v2182_v54 = vld [vmem:[#allocation2 + $0x349] sm:$0xff] }
 0x116   : > { %17310 = vmatpush3.bf16.msra.mxu0 %v2261_v63  ;;  %17119 = vmatprep.subr.bf16.mxu1 %v1006_v12  ;;  %v628_v29 = vld [vmem:[#allocation2 + $0x48f] sm:$0xff]  ;;  %v629_v30 = vld [vmem:[#allocation2 + $0x497] sm:$0xff]  ;;  %v630_v58 = vld [vmem:[#allocation2 + $0x4bf] sm:$0xff]  ;;  %v21629_v5 = vpack.c.bf16 %v2182_v54, %v2181_v53 }
 0x117   : > { %17311 = vmatprep.subr.bf16.mxu0 %v2262_v11  ;;  %v1010_v56 = vld [vmem:[#allocation4 + $0x70] sm:$0xff]  ;;  %v631_v59 = vld [vmem:[#allocation2 + $0x4c7] sm:$0xff]  ;;  %v2184_v3 = vld [vmem:[#allocation2 + $0x379] sm:$0xff]  ;;  %v21627_v4 = vpack.c.bf16 %v629_v30, %v628_v29 }
 0x118   : > { %17088 = vmatmul.mubr.bf16.gmra.mrb[4].mxu1 %v21569_v14  ;;  %v2575_v62 = vld [vmem:[#allocation4 + $0x180] sm:$0xff]  ;;  %v2183_v63 = vld [vmem:[#allocation2 + $0x371] sm:$0xff]  ;;  %v21631_v6 = vpack.c.bf16 %v631_v59, %v630_v58  ;;  %v2576_v10 = vld [vmem:[#allocation4 + $0x188] sm:$0xff] }
 0x119   : > { %17280 = vmatmul.mubr.bf16.gmra.mrb[4].mxu0 %v21573_v15  ;;  %17091 = vmatprep.mubr.bf16.mxu1 %v21575_v16  ;;  %v21633_v7 = vpack.c.bf16 %v2184_v3, %v2183_v63  ;;  %v2185_v9 = vld [vmem:[#allocation2 + $0x3a1] sm:$0xff]  ;;  %v632_v19 = vld [vmem:[#allocation2 + $0x4ef] sm:$0xff]  ;;  %v633_v20 = vld [vmem:[#allocation2 + $0x4f7] sm:$0xff] }
 0x11a   : > { %17312 = vmatpush3.bf16.msra.mxu0 %v2262_v11  ;;  %17283 = vmatprep.mubr.bf16.mxu0 %v21579_v17  ;;  %v2186_v11 = vld [vmem:[#allocation2 + $0x3a9] sm:$0xff]  ;;  %v634_v21 = vld [vmem:[#allocation2 + $0x51f] sm:$0xff]  ;;  %v637_v46 = vld [vmem:[#allocation2 + $0x557] sm:$0xff] }
 0x11b   : > { %17313 = vmatprep.subr.bf16.mxu0 %v2263_v18  ;;  %17120 = vmatpush3.bf16.msra.mxu1 %v1006_v12  ;;  %v2187_v12 = vld [vmem:[#allocation2 + $0x3d1] sm:$0xff]  ;;  %v635_v22 = vld [vmem:[#allocation2 + $0x527] sm:$0xff]  ;;  %v21643_v39 = vpack.c.bf16 %v2186_v11, %v2185_v9  ;;  %v638_v53 = vld [vmem:[#allocation2 + $0x57f] sm:$0xff] }
 0x11c   : > { %17121 = vmatprep.subr.bf16.mxu1 %v1007_v24  ;;  %v21645_v40 = vpack.c.bf16 %v635_v22, %v634_v21  ;;  %v2189_v28 = vld [vmem:[#allocation2 + $0x401] sm:$0xff]  ;;  %v636_v45 = vld [vmem:[#allocation2 + $0x54f] sm:$0xff]  ;;  %v2192_v29 = vld [vmem:[#allocation2 + $0x439] sm:$0xff] }
 0x11d   : > { %v639_v54 = vld [vmem:[#allocation2 + $0x587] sm:$0xff]  ;;  %v21654_v30 = vpack.c.bf16 %v637_v46, %v636_v45  ;;  %v641_v11 = vld [vmem:[#allocation2 + $0x5b7] sm:$0xff] }
 0x11e   : > { %17314 = vmatpush3.bf16.msra.mxu0 %v2263_v18  ;;  %v1011_v18 = vld [vmem:[#allocation4 + $0x78] sm:$0xff]  ;;  %v2579_v58 = vld [vmem:[#allocation4 + $0x1a0] sm:$0xff]  ;;  %v21658_v59 = vpack.c.bf16 %v639_v54, %v638_v53  ;;  %v2194_v3 = vld [vmem:[#allocation2 + $0x469] sm:$0xff] }
 0x11f   : > { %17315 = vmatprep.subr.bf16.mxu0 %v2264_v25  ;;  %17122 = vmatpush3.bf16.msra.mxu1 %v1007_v24  ;;  %v2188_v24 = vld [vmem:[#allocation2 + $0x3d9] sm:$0xff]  ;;  %v2193_v63 = vld [vmem:[#allocation2 + $0x461] sm:$0xff]  ;;  %v2581_v22 = vld [vmem:[#allocation4 + $0x1b0] sm:$0xff] }
 0x120   : > { %17092 = vmatmul.mubr.bf16.gmra.mrb[8].mxu1 %v21585_v31  ;;  %17123 = vmatprep.subr.bf16.mxu1 %v1008_v26  ;;  %v21647_v27 = vpack.c.bf16 %v2188_v24, %v2187_v12  ;;  %v2580_v9 = vld [vmem:[#allocation4 + $0x1a8] sm:$0xff]  ;;  %v923_v12 = vld [vmem:[#allocation2 + $0x2e0] sm:$0xff]  ;;  %v21668_v21 = vpack.c.bf16 %v2194_v3, %v2193_v63  ;;  %v2199_v46 = vld [vmem:[#allocation2 + $0x4f1] sm:$0xff] }
 0x121   : > { %17284 = vmatmul.mubr.bf16.gmra.mrb[8].mxu0 %v21589_v32  ;;  %17095 = vmatprep.mubr.bf16.mxu1 %v21594_v34  ;;  %v2198_v45 = vld [vmem:[#allocation2 + $0x4c9] sm:$0xff]  ;;  %v2889_v54 = vld [vmem:[#allocation4 + $0x1c0] sm:$0xff] }
 0x122   : > { %17316 = vmatpush3.bf16.msra.mxu0 %v2264_v25  ;;  %17287 = vmatprep.mubr.bf16.mxu0 %v21604_v38  ;;  %v21639_v25 = vld [vmem:[#allocation4 + $0x80] sm:$0xff]  ;;  %v2202_v3 = vld [vmem:[#allocation2 + $0x529] sm:$0xff] }
 0x123   : > { %17317 = vmatprep.subr.bf16.mxu0 %v2265_v23  ;;  %17124 = vmatpush3.bf16.msra.mxu1 %v1008_v26  ;;  %v21641_v26 = vpack.c.bf16 %v633_v20, %v632_v19  ;;  %v2195_v19 = vld [vmem:[#allocation2 + $0x491] sm:$0xff]  ;;  %v2196_v20 = vld [vmem:[#allocation2 + $0x499] sm:$0xff]  ;;  %v2201_v63 = vld [vmem:[#allocation2 + $0x521] sm:$0xff] }
 0x124   : > { %17125 = vmatprep.subr.bf16.mxu1 %v1009_v42 }
 0x126   : > { %17318 = vmatpush3.bf16.msra.mxu0 %v2265_v23  ;;  %v2577_v23 = vld [vmem:[#allocation4 + $0x190] sm:$0xff] }
 0x127   : > { %17319 = vmatprep.subr.bf16.mxu0 %v2266_v44  ;;  %17126 = vmatpush3.bf16.msra.mxu1 %v1009_v42  ;;  %v2190_v42 = vld [vmem:[#allocation2 + $0x409] sm:$0xff] }
 0x128   : > { %17096 = vmatmul.mubr.bf16.gmra.mrb[12].mxu1 %v21613_v47  ;;  %17127 = vmatprep.subr.bf16.mxu1 %v1010_v56 }
 0x129   : > { %17288 = vmatmul.mubr.bf16.gmra.mrb[12].mxu0 %v21617_v49  ;;  %17099 = vmatprep.mubr.bf16.mxu1 %v21619_v50 }
 0x12a   : > { %17320 = vmatpush3.bf16.msra.mxu0 %v2266_v44  ;;  %17323 = vmatprep.mubr.bf16.mxu0 %v21621_v51  ;;  %v2578_v44 = vld [vmem:[#allocation4 + $0x198] sm:$0xff] }
 0x12b   : > { %17321 = vmatprep.subr.bf16.mxu0 %v2267_v52  ;;  %17128 = vmatpush3.bf16.msra.mxu1 %v1010_v56  ;;  %v21656_v56 = vpack.c.bf16 %v2190_v42, %v2189_v28  ;;  %v21670_v28 = vpack.c.bf16 %v2196_v20, %v2195_v19  ;;  %v2582_v42 = vld [vmem:[#allocation4 + $0x1b8] sm:$0xff] }
 0x12c   : > { %17129 = vmatprep.subr.bf16.mxu1 %v1011_v18  ;;  %v2207_v19 = vld [vmem:[#allocation2 + $0x5b1] sm:$0xff]  ;;  %v2208_v20 = vld [vmem:[#allocation2 + $0x5b9] sm:$0xff] }
 0x12e   : > { %17322 = vmatpush3.bf16.msra.mxu0 %v2267_v52  ;;  %v2191_v52 = vld [vmem:[#allocation2 + $0x431] sm:$0xff] }
 0x12f   : > { %17355 = vmatprep.subr.bf16.mxu0 %v2575_v62  ;;  %17130 = vmatpush3.bf16.msra.mxu1 %v1011_v18  ;;  %v924_v18 = vld [vmem:[#allocation2 + $0x2e8] sm:$0xff] }
 0x130   : > { %17100 = vmatmul.mubr.bf16.gmra.mrb[16].mxu1 %v21627_v4  ;;  %17163 = vmatprep.subr.bf16.mxu1 %v21639_v25 }
 0x131   : > { %17324 = vmatmul.mubr.bf16.vlgmr.msra.gmra.mrb[0].mxu0 %v21629_v5  ;;  %17103 = vmatprep.mubr.bf16.mxu1 %v21631_v6 }
 0x132   : > { %17356 = vmatpush3.bf16.msra.mxu0 %v2575_v62  ;;  %17327 = vmatprep.mubr.bf16.mxu0 %v21633_v7  ;;  %v21660_v62 = vpack.c.bf16 %v2192_v29, %v2191_v52  ;;  %v2200_v52 = vld [vmem:[#allocation2 + $0x4f9] sm:$0xff] }
 0x133   : > { %17357 = vmatprep.subr.bf16.mxu0 %v2576_v10  ;;  %v21677_v29 = vpack.c.bf16 %v2200_v52, %v2199_v46  ;;  %v1324_v46 = vld [vmem:[#allocation4 + $0xb0] sm:$0xff]  ;;  %v1325_v52 = vld [vmem:[#allocation4 + $0xb8] sm:$0xff] }
 0x136   : > { %17358 = vmatpush3.bf16.msra.mxu0 %v2576_v10  ;;  %v640_v10 = vld [vmem:[#allocation2 + $0x5af] sm:$0xff] }
 0x137   : > { %17359 = vmatprep.subr.bf16.mxu0 %v2577_v23  ;;  %v21666_v24 = vpack.c.bf16 %v641_v11, %v640_v10  ;;  %v2204_v10 = vld [vmem:[#allocation2 + $0x559] sm:$0xff]  ;;  %v1320_v11 = vld [vmem:[#allocation4 + $0x90] sm:$0xff] }
 0x138   : > { %17104 = vmatmul.mubr.bf16.gmra.mrb[20].mxu1 %v21641_v26 }
 0x139   : > { %17328 = vmatmul.mubr.bf16.gmra.mrb[4].mxu0 %v21643_v39  ;;  %17107 = vmatprep.mubr.bf16.mxu1 %v21645_v40 }
 0x13a   : > { %17331 = vmatprep.mubr.bf16.mxu0 %v21647_v27  ;;  %17360 = vmatpush3.bf16.msra.mxu0 %v2577_v23  ;;  %v987_v23 = vpack.c.bf16 %v924_v18, %v923_v12  ;;  %v21684_v12 = vpack.c.bf16 %v2202_v3, %v2201_v63  ;;  %v2890_v63 = vld [vmem:[#allocation4 + $0x1c8] sm:$0xff]  ;;  %v2891_v3 = vld [vmem:[#allocation4 + $0x1d0] sm:$0xff] }
 0x13b   : > { %17361 = vmatprep.subr.bf16.mxu0 %v2578_v44 }
 0x13e   : > { %17362 = vmatpush3.bf16.msra.mxu0 %v2578_v44  ;;  %v2197_v44 = vld [vmem:[#allocation2 + $0x4c1] sm:$0xff] }
 0x13f   : > { %17363 = vmatprep.subr.bf16.mxu0 %v2579_v58  ;;  %v21675_v53 = vpack.c.bf16 %v2198_v45, %v2197_v44  ;;  %v2210_v44 = vld [vmem:[#allocation2 + $0x5e9] sm:$0xff] }
 0x140   : > { %17108 = vmatmul.mubr.bf16.gmra.mrb[24].mxu1 %v21654_v30 }
 0x141   : > { %17332 = vmatmul.mubr.bf16.gmra.mrb[8].mxu0 %v21656_v56  ;;  %17111 = vmatprep.mubr.bf16.mxu1 %v21658_v59 }
 0x142   : > { %17335 = vmatprep.mubr.bf16.mxu0 %v21660_v62  ;;  %17364 = vmatpush3.bf16.msra.mxu0 %v2579_v58  ;;  %v1319_v58 = vld [vmem:[#allocation4 + $0x88] sm:$0xff] }
 0x143   : > { %17365 = vmatprep.subr.bf16.mxu0 %v2580_v9 }
 0x146   : > { %17366 = vmatpush3.bf16.msra.mxu0 %v2580_v9  ;;  %v2203_v9 = vld [vmem:[#allocation2 + $0x551] sm:$0xff] }
 0x147   : > { %17367 = vmatprep.subr.bf16.mxu0 %v2581_v22  ;;  %v21686_v18 = vpack.c.bf16 %v2204_v10, %v2203_v9  ;;  %v2895_v9 = vld [vmem:[#allocation4 + $0x1f0] sm:$0xff]  ;;  %v2896_v10 = vld [vmem:[#allocation4 + $0x1f8] sm:$0xff] }
 0x148   : > { %17112 = vmatmul.mubr.bf16.gmra.mrb[28].mxu1 %v21666_v24 }
 0x149   : > { %17336 = vmatmul.mubr.bf16.gmra.mrb[12].mxu0 %v21668_v21  ;;  %17131 = vmatprep.mubr.bf16.mxu1 %v987_v23  ;;  %v1322_v23 = vld [vmem:[#allocation4 + $0xa0] sm:$0xff] }
 0x14a   : > { %17339 = vmatprep.mubr.bf16.mxu0 %v21670_v28  ;;  %17368 = vmatpush3.bf16.msra.mxu0 %v2581_v22 }
 0x14b   : > { %17369 = vmatprep.subr.bf16.mxu0 %v2582_v42 }
 0x14e   : > { %17370 = vmatpush3.bf16.msra.mxu0 %v2582_v42  ;;  %v21694_v42 = vpack.c.bf16 %v2208_v20, %v2207_v19  ;;  %v2811_v19 = vld [vmem:[#allocation2 + $0x378] sm:$0xff]  ;;  %v2812_v20 = vld [vmem:[#allocation2 + $0x3a0] sm:$0xff] }
 0x14f   : > { %17403 = vmatprep.subr.bf16.mxu0 %v2889_v54 }
 0x150   : > { %17132 = vmatmul.mubr.bf16.vlgmr.msra.gmra.mrb[0].mxu1 %v21417_v13  ;;  %v1321_v13 = vld [vmem:[#allocation4 + $0x98] sm:$0xff] }
 0x151   : > { %17340 = vmatmul.mubr.bf16.gmra.mrb[16].mxu0 %v21675_v53  ;;  %17164 = vmatpush3.bf16.msra.mxu1 %v21639_v25  ;;  %v2206_v25 = vld [vmem:[#allocation2 + $0x589] sm:$0xff] }
 0x152   : > { %17135 = vmatprep.mubr.bf16.mxu1 %v21540_v57  ;;  %17343 = vmatprep.mubr.bf16.mxu0 %v21677_v29  ;;  %v2205_v57 = vld [vmem:[#allocation2 + $0x581] sm:$0xff] }
 0x153   : > { %17165 = vmatprep.subr.bf16.mxu1 %v1319_v58  ;;  %v21692_v22 = vpack.c.bf16 %v2206_v25, %v2205_v57  ;;  %v1638_v57 = vld [vmem:[#allocation4 + $0xf0] sm:$0xff] }
 0x155   : > { %17166 = vmatpush3.bf16.msra.mxu1 %v1319_v58  ;;  %v1632_v58 = vld [vmem:[#allocation4 + $0xc0] sm:$0xff] }
 0x156   : > { %17167 = vmatprep.subr.bf16.mxu1 %v1320_v11 }
 0x158   : > { %17136 = vmatmul.mubr.bf16.gmra.mrb[4].mxu1 %v21555_v0  ;;  %v1323_v0 = vld [vmem:[#allocation4 + $0xa8] sm:$0xff] }
 0x159   : > { %17344 = vmatmul.mubr.bf16.gmra.mrb[20].mxu0 %v21684_v12  ;;  %17139 = vmatprep.mubr.bf16.mxu1 %v21573_v15  ;;  %v2209_v15 = vld [vmem:[#allocation2 + $0x5e1] sm:$0xff] }
 0x15a   : > { %17347 = vmatprep.mubr.bf16.mxu0 %v21686_v18  ;;  %17168 = vmatpush3.bf16.msra.mxu1 %v1320_v11  ;;  %v21700_v45 = vpack.c.bf16 %v2210_v44, %v2209_v15  ;;  %v3204_v44 = vld [vmem:[#allocation4 + $0x208] sm:$0xff] }
 0x15b   : > { %17169 = vmatprep.subr.bf16.mxu1 %v1321_v13 }
 0x15e   : > { %17170 = vmatpush3.bf16.msra.mxu1 %v1321_v13 }
 0x15f   : > { %17171 = vmatprep.subr.bf16.mxu1 %v1322_v23 }
 0x160   : > { %17140 = vmatmul.mubr.bf16.gmra.mrb[8].mxu1 %v21579_v17 }
 0x161   : > { %17348 = vmatmul.mubr.bf16.gmra.mrb[24].mxu0 %v21692_v22  ;;  %17143 = vmatprep.mubr.bf16.mxu1 %v21589_v32 }
 0x162   : > { %17351 = vmatprep.mubr.bf16.mxu0 %v21694_v42  ;;  %17172 = vmatpush3.bf16.msra.mxu1 %v1322_v23  ;;  %v2813_v23 = vld [vmem:[#allocation2 + $0x3a8] sm:$0xff] }
 0x163   : > { %17173 = vmatprep.subr.bf16.mxu1 %v1323_v0  ;;  %v2874_v15 = vpack.c.bf16 %v2813_v23, %v2812_v20  ;;  %v1570_v23 = vld [vmem:[#allocation2 + $0x4c7] sm:$0xff] }
 0x166   : > { %17174 = vmatpush3.bf16.msra.mxu1 %v1323_v0 }
 0x167   : > { %17175 = vmatprep.subr.bf16.mxu1 %v1324_v46 }
 0x168   : > { %17144 = vmatmul.mubr.bf16.gmra.mrb[12].mxu1 %v21604_v38 }
 0x169   : > { %17352 = vmatmul.mubr.bf16.gmra.mrb[28].mxu0 %v21700_v45  ;;  %17147 = vmatprep.mubr.bf16.mxu1 %v21617_v49 }
 0x16a   : > { %17371 = vmatprep.mubr.bf16.mxu0 %v21549_v61  ;;  %17176 = vmatpush3.bf16.msra.mxu1 %v1324_v46  ;;  %v2892_v61 = vld [vmem:[#allocation4 + $0x1d8] sm:$0xff] }
 0x16b   : > { %17177 = vmatprep.subr.bf16.mxu1 %v1325_v52  ;;  %v3206_v46 = vld [vmem:[#allocation4 + $0x218] sm:$0xff] }
 0x16e   : > { %17178 = vmatpush3.bf16.msra.mxu1 %v1325_v52  ;;  %v3208_v52 = vld [vmem:[#allocation4 + $0x228] sm:$0xff] }
 0x16f   : > { %17211 = vmatprep.subr.bf16.mxu1 %v1632_v58 }
 0x170   : > { %17148 = vmatmul.mubr.bf16.gmra.mrb[16].mxu1 %v21512_v37 }
 0x171   : > { %17372 = vmatmul.mubr.bf16.vlgmr.msra.gmra.mrb[0].mxu0 %v21569_v14  ;;  %17151 = vmatprep.mubr.bf16.mxu1 %v21522_v43  ;;  %v2893_v14 = vld [vmem:[#allocation4 + $0x1e0] sm:$0xff] }
 0x172   : > { %17404 = vmatpush3.bf16.msra.mxu0 %v2889_v54  ;;  %17375 = vmatprep.mubr.bf16.mxu0 %v21575_v16  ;;  %v2894_v16 = vld [vmem:[#allocation4 + $0x1e8] sm:$0xff] }
 0x173   : > { %17405 = vmatprep.subr.bf16.mxu0 %v2890_v63  ;;  %v1238_v54 = vld [vmem:[#allocation2 + $0x2e9] sm:$0xff] }
 0x176   : > { %17406 = vmatpush3.bf16.msra.mxu0 %v2890_v63  ;;  %v3209_v63 = vld [vmem:[#allocation4 + $0x230] sm:$0xff] }
 0x177   : > { %17407 = vmatprep.subr.bf16.mxu0 %v2891_v3 }
 0x178   : > { %17152 = vmatmul.mubr.bf16.gmra.mrb[20].mxu1 %v21529_v48 }
 0x179   : > { %17376 = vmatmul.mubr.bf16.gmra.mrb[4].mxu0 %v21585_v31  ;;  %17155 = vmatprep.mubr.bf16.mxu1 %v21536_v55  ;;  %v1237_v31 = vld [vmem:[#allocation2 + $0x2e1] sm:$0xff] }
 0x17a   : > { %17379 = vmatprep.mubr.bf16.mxu0 %v21594_v34  ;;  %17408 = vmatpush3.bf16.msra.mxu0 %v2891_v3  ;;  %v1301_v34 = vpack.c.bf16 %v1238_v54, %v1237_v31  ;;  %v3210_v3 = vld [vmem:[#allocation4 + $0x238] sm:$0xff]  ;;  %v20762_v54 = vld [vmem:[#allocation4 + $0x100] sm:$0xff] }
 0x17b   : > { %17409 = vmatprep.subr.bf16.mxu0 %v2892_v61 }
 0x17e   : > { %17410 = vmatpush3.bf16.msra.mxu0 %v2892_v61  ;;  %v1554_v61 = vld [vmem:[#allocation2 + $0x347] sm:$0xff] }
 0x17f   : > { %17411 = vmatprep.subr.bf16.mxu0 %v2893_v14 }
 0x180   : > { %17156 = vmatmul.mubr.bf16.gmra.mrb[24].mxu1 %v21547_v60 }
 0x181   : > { %17380 = vmatmul.mubr.bf16.gmra.mrb[8].mxu0 %v21613_v47  ;;  %17159 = vmatprep.mubr.bf16.mxu1 %v21558_v1  ;;  %v3203_v47 = vld [vmem:[#allocation4 + $0x200] sm:$0xff] }
 0x182   : > { %17383 = vmatprep.mubr.bf16.mxu0 %v21619_v50  ;;  %17412 = vmatpush3.bf16.msra.mxu0 %v2893_v14  ;;  %v1633_v50 = vld [vmem:[#allocation4 + $0xc8] sm:$0xff] }
 0x183   : > { %17413 = vmatprep.subr.bf16.mxu0 %v2894_v16  ;;  %v1555_v14 = vld [vmem:[#allocation2 + $0x36f] sm:$0xff] }
 0x186   : > { %17414 = vmatpush3.bf16.msra.mxu0 %v2894_v16 }
 0x187   : > { %17415 = vmatprep.subr.bf16.mxu0 %v2895_v9 }
 0x188   : > { %17160 = vmatmul.mubr.bf16.gmra.mrb[28].mxu1 %v21565_v8 }
 0x189   : > { %17384 = vmatmul.mubr.bf16.gmra.mrb[12].mxu0 %v21627_v4  ;;  %17179 = vmatprep.mubr.bf16.mxu1 %v1301_v34  ;;  %v1634_v4 = vld [vmem:[#allocation4 + $0xd0] sm:$0xff] }
 0x18a   : > { %17387 = vmatprep.mubr.bf16.mxu0 %v21631_v6  ;;  %17416 = vmatpush3.bf16.msra.mxu0 %v2895_v9  ;;  %v1635_v6 = vld [vmem:[#allocation4 + $0xd8] sm:$0xff]  ;;  %v1558_v9 = vld [vmem:[#allocation2 + $0x3a7] sm:$0xff]  ;;  %v1559_v34 = vld [vmem:[#allocation2 + $0x3cf] sm:$0xff] }
 0x18b   : > { %17417 = vmatprep.subr.bf16.mxu0 %v2896_v10 }
 0x18e   : > { %17418 = vmatpush3.bf16.msra.mxu0 %v2896_v10  ;;  %v1560_v10 = vld [vmem:[#allocation2 + $0x3d7] sm:$0xff] }
 0x18f   : > { %17451 = vmatprep.subr.bf16.mxu0 %v3203_v47 }
 0x190   : > { %17180 = vmatmul.mubr.bf16.vlgmr.msra.gmra.mrb[0].mxu1 %v21621_v51  ;;  %v2522_v51 = vld [vmem:[#allocation2 + $0x5df] sm:$0xff] }
 0x191   : > { %17388 = vmatmul.mubr.bf16.gmra.mrb[16].mxu0 %v21641_v26  ;;  %17212 = vmatpush3.bf16.msra.mxu1 %v1632_v58  ;;  %v2523_v26 = vld [vmem:[#allocation2 + $0x5e7] sm:$0xff]  ;;  %v1552_v58 = vld [vmem:[#allocation2 + $0x317] sm:$0xff] }
 0x192   : > { %17183 = vmatprep.mubr.bf16.mxu1 %v21629_v5  ;;  %17391 = vmatprep.mubr.bf16.mxu0 %v21645_v40  ;;  %v1636_v5 = vld [vmem:[#allocation4 + $0xe0] sm:$0xff]  ;;  %v21729_v11 = vpack.c.bf16 %v2523_v26, %v2522_v51  ;;  %v2525_v40 = vld [vmem:[#allocation2 + $0x617] sm:$0xff]  ;;  %v1563_v51 = vld [vmem:[#allocation2 + $0x42f] sm:$0xff] }
 0x193   : > { %17213 = vmatprep.subr.bf16.mxu1 %v1633_v50  ;;  %v20765_v26 = vld [vmem:[#allocation4 + $0x118] sm:$0xff] }
 0x195   : > { %17214 = vmatpush3.bf16.msra.mxu1 %v1633_v50  ;;  %v1619_v50 = vpack.c.bf16 %v1560_v10, %v1559_v34  ;;  %v1577_v34 = vld [vmem:[#allocation2 + $0x57f] sm:$0xff]  ;;  %v1578_v10 = vld [vmem:[#allocation2 + $0x587] sm:$0xff] }
 0x196   : > { %17215 = vmatprep.subr.bf16.mxu1 %v1634_v4 }
 0x198   : > { %17184 = vmatmul.mubr.bf16.gmra.mrb[4].mxu1 %v21633_v7  ;;  %v1637_v7 = vld [vmem:[#allocation4 + $0xe8] sm:$0xff] }
 0x199   : > { %17392 = vmatmul.mubr.bf16.gmra.mrb[20].mxu0 %v21654_v30  ;;  %17187 = vmatprep.mubr.bf16.mxu1 %v21643_v39  ;;  %v2524_v39 = vld [vmem:[#allocation2 + $0x60f] sm:$0xff]  ;;  %v2808_v30 = vld [vmem:[#allocation2 + $0x340] sm:$0xff] }
 0x19a   : > { %17395 = vmatprep.mubr.bf16.mxu0 %v21658_v59  ;;  %17216 = vmatpush3.bf16.msra.mxu1 %v1634_v4  ;;  %v2809_v59 = vld [vmem:[#allocation2 + $0x348] sm:$0xff]  ;;  %v2573_v13 = vpack.c.bf16 %v2525_v40, %v2524_v39  ;;  %v20764_v4 = vld [vmem:[#allocation4 + $0x110] sm:$0xff]  ;;  %v21757_v39 = vpack.c.bf16 %v21597_v36, %v21592_v33  ;;  %v20766_v40 = vld [vmem:[#allocation4 + $0x120] sm:$0xff] }
 0x19b   : > { %17217 = vmatprep.subr.bf16.mxu1 %v1635_v6  ;;  %v2872_v25 = vpack.c.bf16 %v2809_v59, %v2808_v30  ;;  %v2838_v30 = vld [vmem:[#allocation2 + $0x610] sm:$0xff]  ;;  %v2839_v59 = vld [vmem:[#allocation2 + $0x618] sm:$0xff]  ;;  %v20767_v33 = vld [vmem:[#allocation4 + $0x128] sm:$0xff] }
 0x19e   : > { %17218 = vmatpush3.bf16.msra.mxu1 %v1635_v6  ;;  %v1562_v6 = vld [vmem:[#allocation2 + $0x407] sm:$0xff] }
 0x19f   : > { %17219 = vmatprep.subr.bf16.mxu1 %v1636_v5 }
 0x1a0   : > { %17188 = vmatmul.mubr.bf16.gmra.mrb[8].mxu1 %v21647_v27  ;;  %v1639_v27 = vld [vmem:[#allocation4 + $0xf8] sm:$0xff] }
 0x1a1   : > { %17396 = vmatmul.mubr.bf16.gmra.mrb[24].mxu0 %v21666_v24  ;;  %17191 = vmatprep.mubr.bf16.mxu1 %v21656_v56  ;;  %v2810_v56 = vld [vmem:[#allocation2 + $0x370] sm:$0xff] }
 0x1a2   : > { %17399 = vmatprep.mubr.bf16.mxu0 %v21729_v11  ;;  %17220 = vmatpush3.bf16.msra.mxu1 %v1636_v5  ;;  %v2873_v0 = vpack.c.bf16 %v2811_v19, %v2810_v56  ;;  %v2887_v56 = vpack.c.bf16 %v2839_v59, %v2838_v30  ;;  %v1890_v30 = vld [vmem:[#allocation2 + $0x558] sm:$0xff] }
 0x1a3   : > { %17221 = vmatprep.subr.bf16.mxu1 %v1637_v7 }
 0x1a6   : > { %17222 = vmatpush3.bf16.msra.mxu1 %v1637_v7 }
 0x1a7   : > { %17223 = vmatprep.subr.bf16.mxu1 %v1638_v57 }
 0x1a8   : > { %17192 = vmatmul.mubr.bf16.gmra.mrb[12].mxu1 %v21660_v62  ;;  %v3205_v62 = vld [vmem:[#allocation4 + $0x210] sm:$0xff] }
 0x1a9   : > { %17400 = vmatmul.mubr.bf16.gmra.mrb[28].mxu0 %v2573_v13  ;;  %17195 = vmatprep.mubr.bf16.mxu1 %v21668_v21  ;;  %v1567_v13 = vld [vmem:[#allocation2 + $0x48f] sm:$0xff] }
 0x1aa   : > { %17419 = vmatprep.mubr.bf16.mxu0 %v2872_v25  ;;  %17224 = vmatpush3.bf16.msra.mxu1 %v1638_v57  ;;  %v1568_v57 = vld [vmem:[#allocation2 + $0x497] sm:$0xff]  ;;  %v3122_v25 = vld [vmem:[#allocation2 + $0x341] sm:$0xff] }
 0x1ab   : > { %17225 = vmatprep.subr.bf16.mxu1 %v1639_v27  ;;  %v1623_v19 = vpack.c.bf16 %v1568_v57, %v1567_v13  ;;  %v1892_v13 = vld [vmem:[#allocation2 + $0x588] sm:$0xff]  ;;  %v1893_v57 = vld [vmem:[#allocation2 + $0x5b0] sm:$0xff] }
 0x1ae   : > { %17226 = vmatpush3.bf16.msra.mxu1 %v1639_v27  ;;  %v3123_v27 = vld [vmem:[#allocation2 + $0x349] sm:$0xff] }
 0x1af   : > { %19227 = vmatprep.subr.bf16.mxu1 %v21411_v2  ;;  %v3207_v2 = vld [vmem:[#allocation4 + $0x220] sm:$0xff]  ;;  %v3186_v20 = vpack.c.bf16 %v3123_v27, %v3122_v25  ;;  %v1894_v25 = vld [vmem:[#allocation2 + $0x5b8] sm:$0xff] }
 0x1b0   : > { %17196 = vmatmul.mubr.bf16.gmra.mrb[16].mxu1 %v21670_v28  ;;  %v1943_v27 = vpack.c.bf16 %v1894_v25, %v1893_v57 }
 0x1b1   : > { %17420 = vmatmul.mubr.bf16.vlgmr.msra.gmra.mrb[0].mxu0 %v2873_v0  ;;  %17199 = vmatprep.mubr.bf16.mxu1 %v21675_v53  ;;  %v3124_v0 = vld [vmem:[#allocation2 + $0x371] sm:$0xff] }
 0x1b2   : > { %17452 = vmatpush3.bf16.msra.mxu0 %v3203_v47  ;;  %17423 = vmatprep.mubr.bf16.mxu0 %v2874_v15  ;;  %v3125_v15 = vld [vmem:[#allocation2 + $0x379] sm:$0xff] }
 0x1b3   : > { %17453 = vmatprep.subr.bf16.mxu0 %v3204_v44 }
 0x1b6   : > { %17454 = vmatpush3.bf16.msra.mxu0 %v3204_v44  ;;  %v1571_v44 = vld [vmem:[#allocation2 + $0x4ef] sm:$0xff] }
 0x1b7   : > { %17455 = vmatprep.subr.bf16.mxu0 %v3205_v62 }
 0x1b8   : > { %17200 = vmatmul.mubr.bf16.gmra.mrb[20].mxu1 %v21677_v29 }
 0x1b9   : > { %17424 = vmatmul.mubr.bf16.gmra.mrb[4].mxu0 %v21579_v17  ;;  %17203 = vmatprep.mubr.bf16.mxu1 %v21684_v12  ;;  %v1551_v17 = vld [vmem:[#allocation2 + $0x30f] sm:$0xff] }
 0x1ba   : > { %17427 = vmatprep.mubr.bf16.mxu0 %v21589_v32  ;;  %17456 = vmatpush3.bf16.msra.mxu0 %v3205_v62  ;;  %v1615_v32 = vpack.c.bf16 %v1552_v58, %v1551_v17  ;;  %v1572_v62 = vld [vmem:[#allocation2 + $0x4f7] sm:$0xff]  ;;  %v3187_v58 = vpack.c.bf16 %v3125_v15, %v3124_v0 }
 0x1bb   : > { %17457 = vmatprep.subr.bf16.mxu0 %v3206_v46  ;;  %v3668_v15 = vld [vmem:[#allocation2 + $0x2de] sm:$0xff] }
 0x1be   : > { %17458 = vmatpush3.bf16.msra.mxu0 %v3206_v46  ;;  %v3126_v46 = vld [vmem:[#allocation2 + $0x3a1] sm:$0xff] }
 0x1bf   : > { %17459 = vmatprep.subr.bf16.mxu0 %v3207_v2 }
 0x1c0   : > { %17204 = vmatmul.mubr.bf16.gmra.mrb[24].mxu1 %v21686_v18 }
 0x1c1   : > { %17428 = vmatmul.mubr.bf16.gmra.mrb[8].mxu0 %v21604_v38  ;;  %17207 = vmatprep.mubr.bf16.mxu1 %v21692_v22  ;;  %v1553_v38 = vld [vmem:[#allocation2 + $0x33f] sm:$0xff] }
 0x1c2   : > { %17431 = vmatprep.mubr.bf16.mxu0 %v21617_v49  ;;  %17460 = vmatpush3.bf16.msra.mxu0 %v3207_v2  ;;  %v1556_v49 = vld [vmem:[#allocation2 + $0x377] sm:$0xff]  ;;  %v1616_v16 = vpack.c.bf16 %v1554_v61, %v1553_v38  ;;  %v3127_v2 = vld [vmem:[#allocation2 + $0x3a9] sm:$0xff] }
 0x1c3   : > { %17461 = vmatprep.subr.bf16.mxu0 %v3208_v52  ;;  %v1617_v31 = vpack.c.bf16 %v1556_v49, %v1555_v14  ;;  %v1574_v38 = vld [vmem:[#allocation2 + $0x527] sm:$0xff]  ;;  %v3128_v61 = vld [vmem:[#allocation2 + $0x3d1] sm:$0xff]  ;;  %v3129_v14 = vld [vmem:[#allocation2 + $0x3d9] sm:$0xff] }
 0x1c4   : > { %v1575_v49 = vld [vmem:[#allocation2 + $0x54f] sm:$0xff] }
 0x1c6   : > { %17462 = vmatpush3.bf16.msra.mxu0 %v3208_v52  ;;  %v20768_v52 = vld [vmem:[#allocation4 + $0x130] sm:$0xff] }
 0x1c7   : > { %17463 = vmatprep.subr.bf16.mxu0 %v3209_v63 }
 0x1c8   : > { %17208 = vmatmul.mubr.bf16.gmra.mrb[28].mxu1 %v21694_v42 }
 0x1c9   : > { %17432 = vmatmul.mubr.bf16.gmra.mrb[12].mxu0 %v21512_v37  ;;  %17227 = vmatprep.mubr.bf16.mxu1 %v1615_v32  ;;  %v1557_v37 = vld [vmem:[#allocation2 + $0x39f] sm:$0xff] }
 0x1ca   : > { %17435 = vmatprep.mubr.bf16.mxu0 %v21522_v43  ;;  %17464 = vmatpush3.bf16.msra.mxu0 %v3209_v63  ;;  %v20763_v43 = vld [vmem:[#allocation4 + $0x108] sm:$0xff]  ;;  %v1618_v47 = vpack.c.bf16 %v1558_v9, %v1557_v37  ;;  %v1625_v63 = vpack.c.bf16 %v1572_v62, %v1571_v44  ;;  %v20769_v32 = vld [vmem:[#allocation4 + $0x138] sm:$0xff] }
 0x1cb   : > { %17465 = vmatprep.subr.bf16.mxu0 %v3210_v3  ;;  %v3669_v44 = vld [vmem:[#allocation2 + $0x2e6] sm:$0xff] }
 0x1cc   : > { %v3731_v62 = vpack.c.bf16 %v3669_v44, %v3668_v15 }
 0x1ce   : > { %17466 = vmatpush3.bf16.msra.mxu0 %v3210_v3  ;;  %v1573_v3 = vld [vmem:[#allocation2 + $0x51f] sm:$0xff] }
 0x1cf   : > { %v1626_v37 = vpack.c.bf16 %v1574_v38, %v1573_v3  ;;  %v21775_v3 = vld [vmem:[#allocation4 + $0x2c0] sm:$0xff] }
 0x1d0   : > { %17228 = vmatmul.mubr.bf16.vlgmr.msra.gmra.mrb[0].mxu1 %v1616_v16  ;;  %v1576_v16 = vld [vmem:[#allocation2 + $0x557] sm:$0xff] }
 0x1d1   : > { %17436 = vmatmul.mubr.bf16.gmra.mrb[16].mxu0 %v21529_v48  ;;  %19235 = vmatpush3.bf16.msra.mxu1 %v20762_v54  ;;  %v1561_v48 = vld [vmem:[#allocation2 + $0x3ff] sm:$0xff]  ;;  %v3131_v54 = vld [vmem:[#allocation2 + $0x409] sm:$0xff]  ;;  %v1627_v9 = vpack.c.bf16 %v1576_v16, %v1575_v49 }
 0x1d2   : > { %17231 = vmatprep.mubr.bf16.mxu1 %v1617_v31  ;;  %17439 = vmatprep.mubr.bf16.mxu0 %v21536_v55  ;;  %v1564_v55 = vld [vmem:[#allocation2 + $0x437] sm:$0xff]  ;;  %v1620_v5 = vpack.c.bf16 %v1562_v6, %v1561_v48  ;;  %v3130_v31 = vld [vmem:[#allocation2 + $0x401] sm:$0xff] }
 0x1d3   : > { %19228 = vmatprep.subr.bf16.mxu1 %v20763_v43  ;;  %v1621_v7 = vpack.c.bf16 %v1564_v55, %v1563_v51  ;;  %v1881_v6 = vld [vmem:[#allocation2 + $0x490] sm:$0xff]  ;;  %v1882_v51 = vld [vmem:[#allocation2 + $0x498] sm:$0xff] }
 0x1d4   : > { %v1937_v55 = vpack.c.bf16 %v1882_v51, %v1881_v6 }
 0x1d5   : > { %19236 = vmatpush3.bf16.msra.mxu1 %v20763_v43  ;;  %v3190_v43 = vpack.c.bf16 %v3131_v54, %v3130_v31 }
 0x1d6   : > { %19229 = vmatprep.subr.bf16.mxu1 %v20764_v4 }
 0x1d8   : > { %17232 = vmatmul.mubr.bf16.gmra.mrb[4].mxu1 %v1618_v47  ;;  %v3132_v47 = vld [vmem:[#allocation2 + $0x431] sm:$0xff] }
 0x1d9   : > { %17440 = vmatmul.mubr.bf16.gmra.mrb[20].mxu0 %v21547_v60  ;;  %17235 = vmatprep.mubr.bf16.mxu1 %v1619_v50  ;;  %v1565_v60 = vld [vmem:[#allocation2 + $0x45f] sm:$0xff] }
 0x1da   : > { %17443 = vmatprep.mubr.bf16.mxu0 %v21558_v1  ;;  %19237 = vmatpush3.bf16.msra.mxu1 %v20764_v4  ;;  %v1566_v1 = vld [vmem:[#allocation2 + $0x467] sm:$0xff]  ;;  %v3133_v50 = vld [vmem:[#allocation2 + $0x439] sm:$0xff]  ;;  %v1628_v4 = vpack.c.bf16 %v1578_v10, %v1577_v34 }
 0x1db   : > { %19230 = vmatprep.subr.bf16.mxu1 %v20765_v26  ;;  %v1622_v36 = vpack.c.bf16 %v1566_v1, %v1565_v60  ;;  %v3191_v48 = vpack.c.bf16 %v3133_v50, %v3132_v47 }
 0x1de   : > { %19238 = vmatpush3.bf16.msra.mxu1 %v20765_v26  ;;  %v1883_v26 = vld [vmem:[#allocation2 + $0x4c0] sm:$0xff] }
 0x1df   : > { %19231 = vmatprep.subr.bf16.mxu1 %v20766_v40 }
 0x1e0   : > { %17236 = vmatmul.mubr.bf16.gmra.mrb[8].mxu1 %v1620_v5  ;;  %v1884_v5 = vld [vmem:[#allocation2 + $0x4c8] sm:$0xff] }
 0x1e1   : > { %17444 = vmatmul.mubr.bf16.gmra.mrb[24].mxu0 %v21565_v8  ;;  %17239 = vmatprep.mubr.bf16.mxu1 %v1621_v7  ;;  %v1569_v8 = vld [vmem:[#allocation2 + $0x4bf] sm:$0xff]  ;;  %v1885_v7 = vld [vmem:[#allocation2 + $0x4f0] sm:$0xff]  ;;  %v1938_v60 = vpack.c.bf16 %v1884_v5, %v1883_v26 }
 0x1e2   : > { %17447 = vmatprep.mubr.bf16.mxu0 %v21757_v39  ;;  %19239 = vmatpush3.bf16.msra.mxu1 %v20766_v40  ;;  %v1624_v17 = vpack.c.bf16 %v1570_v23, %v1569_v8  ;;  %v1886_v40 = vld [vmem:[#allocation2 + $0x4f8] sm:$0xff]  ;;  %v3666_v8 = vld [vmem:[#allocation2 + $0x2ae] sm:$0xff] }
 0x1e3   : > { %19232 = vmatprep.subr.bf16.mxu1 %v20767_v33  ;;  %v1939_v1 = vpack.c.bf16 %v1886_v40, %v1885_v7  ;;  %v3667_v23 = vld [vmem:[#allocation2 + $0x2b6] sm:$0xff] }
 0x1e4   : > { %v3730_v0 = vpack.c.bf16 %v3667_v23, %v3666_v8  ;;  %v3506_v23 = vld [vmem:[%s21397_s21 + $0x30] sm:$0xff] }
 0x1e6   : > { %19240 = vmatpush3.bf16.msra.mxu1 %v20767_v33  ;;  %v3153_v33 = vld [vmem:[#allocation2 + $0x619] sm:$0xff] }
 0x1e7   : > { %19233 = vmatprep.subr.bf16.mxu1 %v21507_v35  ;;  %v3188_v35 = vpack.c.bf16 %v3127_v2, %v3126_v46  ;;  %v4061_v46 = vld [vmem:[#allocation4 + $0x280] sm:$0xff]  ;;  %v4062_v2 = vld [vmem:[#allocation4 + $0x288] sm:$0xff] }
 0x1e8   : > { %17240 = vmatmul.mubr.bf16.gmra.mrb[12].mxu1 %v1622_v36 }
 0x1e9   : > { %17448 = vmatmul.mubr.bf16.gmra.mrb[28].mxu0 %v2887_v56  ;;  %17243 = vmatprep.mubr.bf16.mxu1 %v1623_v19  ;;  %v3749_v56 = vld [vmem:[#allocation4 + $0x250] sm:$0xff]  ;;  %v3750_v19 = vld [vmem:[#allocation4 + $0x258] sm:$0xff] }
 0x1ea   : > { %17467 = vmatprep.mubr.bf16.mxu0 %v3186_v20  ;;  %19241 = vmatpush3.bf16.msra.mxu1 %v20768_v52  ;;  %v3754_v20 = vld [vmem:[#allocation4 + $0x278] sm:$0xff]  ;;  %v4063_v52 = vld [vmem:[#allocation4 + $0x290] sm:$0xff] }
 0x1eb   : > { %19234 = vmatprep.subr.bf16.mxu1 %v21517_v41  ;;  %v3189_v41 = vpack.c.bf16 %v3129_v14, %v3128_v61 }
 0x1ee   : > { %19242 = vmatpush3.bf16.msra.mxu1 %v20769_v32  ;;  %v4068_v32 = vld [vmem:[#allocation4 + $0x2b8] sm:$0xff] }
 0x1f0   : > { %17244 = vmatmul.mubr.bf16.gmra.mrb[16].mxu1 %v1624_v17  ;;  %v4064_v17 = vld [vmem:[#allocation4 + $0x298] sm:$0xff] }
 0x1f1   : > { %17468 = vmatmul.mubr.bf16.vlgmr.msra.gmra.mrb[0].mxu0 %v3187_v58  ;;  %17247 = vmatprep.mubr.bf16.mxu1 %v1625_v63  ;;  %v4065_v58 = vld [vmem:[#allocation4 + $0x2a0] sm:$0xff]  ;;  %v4066_v63 = vld [vmem:[#allocation4 + $0x2a8] sm:$0xff] }
 0x1f2   : > { %17471 = vmatprep.mubr.bf16.mxu0 %v3188_v35  ;;  %v4067_v35 = vld [vmem:[#allocation4 + $0x2b0] sm:$0xff] }
 0x1f8   : > { %17248 = vmatmul.mubr.bf16.gmra.mrb[20].mxu1 %v1626_v37 }
 0x1f9   : > { %17472 = vmatmul.mubr.bf16.gmra.mrb[4].mxu0 %v3189_v41  ;;  %17251 = vmatprep.mubr.bf16.mxu1 %v1627_v9 }
 0x1fa   : > { %17475 = vmatprep.mubr.bf16.mxu0 %v3190_v43 }
 0x200   : > { %17252 = vmatmul.mubr.bf16.gmra.mrb[24].mxu1 %v1628_v4 }
 0x201   : > { %17476 = vmatmul.mubr.bf16.gmra.mrb[8].mxu0 %v3191_v48  ;;  %17255 = vmatprep.mubr.bf16.mxu1 %v21666_v24  ;;  %v1887_v24 = vld [vmem:[#allocation2 + $0x520] sm:$0xff] }
 0x202   : > { %17479 = vmatprep.mubr.bf16.mxu0 %v21668_v21  ;;  %v1888_v21 = vld [vmem:[#allocation2 + $0x528] sm:$0xff]  ;;  %v21794_v48 = vld [vmem:[#allocation8] ss:$0 sm:$0xff] }
 0x208   : > { %17256 = vmatmul.mubr.bf16.gmra.mrb[28].mxu1 %v21729_v11  ;;  %v1889_v11 = vld [vmem:[#allocation2 + $0x550] sm:$0xff] }
 0x209   : > { %17480 = vmatmul.mubr.bf16.gmra.mrb[12].mxu0 %v21670_v28  ;;  %17291 = vmatprep.mubr.bf16.mxu1 %v1937_v55  ;;  %v1940_v28 = vpack.c.bf16 %v1888_v21, %v1887_v24  ;;  %v1941_v59 = vpack.c.bf16 %v1890_v30, %v1889_v11  ;;  %v3500_v11 = vld [vmem:[%s21397_s21] sm:$0xff] }
 0x20a   : > { %17483 = vmatprep.mubr.bf16.mxu0 %v21675_v53  ;;  %v1891_v53 = vld [vmem:[#allocation2 + $0x580] sm:$0xff] }
 0x210   : > { %17292 = vmatmul.mubr.bf16.vlgmr.msra.gmra.mrb[16].mxu1 %v1938_v60  ;;  %v3502_v60 = vld [vmem:[%s21397_s21 + $0x10] sm:$0xff] }
 0x211   : > { %17484 = vmatmul.mubr.bf16.gmra.mrb[16].mxu0 %v21677_v29  ;;  %17295 = vmatprep.mubr.bf16.mxu1 %v1939_v1  ;;  %v1942_v29 = vpack.c.bf16 %v1892_v13, %v1891_v53  ;;  %v3503_v53 = vld [vmem:[%s21397_s21 + $0x18] sm:$0xff] }
 0x212   : > { %17487 = vmatprep.mubr.bf16.mxu0 %v21684_v12  ;;  %v3152_v12 = vld [vmem:[#allocation2 + $0x611] sm:$0xff] }
 0x213   : > { %v3201_v36 = vpack.c.bf16 %v3153_v33, %v3152_v12 }
 0x218   : > { %17296 = vmatmul.mubr.bf16.gmra.mrb[20].mxu1 %v1940_v28 }
 0x219   : > { %17488 = vmatmul.mubr.bf16.gmra.mrb[20].mxu0 %v21686_v18  ;;  %17299 = vmatprep.mubr.bf16.mxu1 %v1941_v59  ;;  %v3747_v18 = vld [vmem:[#allocation4 + $0x240] sm:$0xff] }
 0x21a   : > { %17491 = vmatprep.mubr.bf16.mxu0 %v21692_v22  ;;  %17499 = vmatprep.subr.bf16.mxu1 %v3747_v18  ;;  %v3748_v22 = vld [vmem:[#allocation4 + $0x248] sm:$0xff] }
 0x21b   : > { %17500 = vmatpush3.bf16.msra.mxu1 %v3747_v18 }
 0x21c   : > { %17501 = vmatprep.subr.bf16.mxu1 %v3748_v22 }
 0x21f   : > { %17502 = vmatpush3.bf16.msra.mxu1 %v3748_v22 }
 0x220   : > { %17300 = vmatmul.mubr.bf16.gmra.mrb[24].mxu1 %v1942_v29  ;;  %17503 = vmatprep.subr.bf16.mxu1 %v3749_v56  ;;  %v3501_v29 = vld [vmem:[%s21397_s21 + $0x8] sm:$0xff] }
 0x221   : > { %17492 = vmatmul.mubr.bf16.gmra.mrb[24].mxu0 %v21694_v42  ;;  %17303 = vmatprep.mubr.bf16.mxu1 %v1943_v27  ;;  %v3751_v42 = vld [vmem:[#allocation4 + $0x260] sm:$0xff] }
 0x222   : > { %17495 = vmatprep.mubr.bf16.mxu0 %v21700_v45  ;;  %v3752_v45 = vld [vmem:[#allocation4 + $0x268] sm:$0xff] }
 0x223   : > { %17504 = vmatpush3.bf16.msra.mxu1 %v3749_v56 }
 0x224   : > { %17505 = vmatprep.subr.bf16.mxu1 %v3750_v19 }
 0x227   : > { %17506 = vmatpush3.bf16.msra.mxu1 %v3750_v19 }
 0x228   : > { %17304 = vmatmul.mubr.bf16.gmra.mrb[28].mxu1 %v21757_v39  ;;  %17507 = vmatprep.subr.bf16.mxu1 %v3751_v42  ;;  %v3753_v39 = vld [vmem:[#allocation4 + $0x270] sm:$0xff] }
 0x229   : > { %17496 = vmatmul.mubr.bf16.gmra.mrb[28].mxu0 %v3201_v36  ;;  %17515 = vmatprep.mubr.bf16.mxu1 %v3730_v0 }
 0x22b   : > { %17508 = vmatpush3.bf16.msra.mxu1 %v3751_v42 }
 0x22c   : > { %17509 = vmatprep.subr.bf16.mxu1 %v3752_v45 }
 0x22f   : > { %17510 = vmatpush3.bf16.msra.mxu1 %v3752_v45 }
 0x230   : > { %17511 = vmatprep.subr.bf16.mxu1 %v3753_v39 }
 0x233   : > { %17512 = vmatpush3.bf16.msra.mxu1 %v3753_v39 }
 0x234   : > { %17513 = vmatprep.subr.bf16.mxu1 %v3754_v20 }
 0x237   : > { %17514 = vmatpush3.bf16.msra.mxu1 %v3754_v20 }
 0x238   : > { %17547 = vmatprep.subr.bf16.mxu1 %v4061_v46 }
 0x23a   : > { %17516 = vmatmul.mubr.bf16.vlgmr.msra.gmra.mrb[32].mxu1 %v3731_v62  ;;  %v3504_v62 = vld [vmem:[%s21397_s21 + $0x20] sm:$0xff] }
 0x23b   : > { %17548 = vmatpush3.bf16.msra.mxu1 %v4061_v46 }
 0x23c   : > { %17549 = vmatprep.subr.bf16.mxu1 %v4062_v2 }
 0x23f   : > { %17550 = vmatpush3.bf16.msra.mxu1 %v4062_v2 }
 0x240   : > { %17551 = vmatprep.subr.bf16.mxu1 %v4063_v52 }
 0x243   : > { %17552 = vmatpush3.bf16.msra.mxu1 %v4063_v52 }
 0x244   : > { %17553 = vmatprep.subr.bf16.mxu1 %v4064_v17 }
 0x247   : > { %17554 = vmatpush3.bf16.msra.mxu1 %v4064_v17  ;;  %v3507_v17 = vld [vmem:[%s21397_s21 + $0x38] sm:$0xff] }
 0x248   : > { %17555 = vmatprep.subr.bf16.mxu1 %v4065_v58 }
 0x24b   : > { %17556 = vmatpush3.bf16.msra.mxu1 %v4065_v58 }
 0x24c   : > { %17557 = vmatprep.subr.bf16.mxu1 %v4066_v63 }
 0x24f   : > { %17558 = vmatpush3.bf16.msra.mxu1 %v4066_v63 }
 0x250   : > { %17559 = vmatprep.subr.bf16.mxu1 %v4067_v35 }
 0x253   : > { %17560 = vmatpush3.bf16.msra.mxu1 %v4067_v35 }
 0x254   : > { %17561 = vmatprep.subr.bf16.mxu1 %v4068_v32 }
 0x257   : > { %17562 = vmatpush3.bf16.msra.mxu1 %v4068_v32  ;;  %v3505_v32 = vld [vmem:[%s21397_s21 + $0x28] sm:$0xff] }
 0x258   : > { %17595 = vmatprep.subr.bf16.mxu1 %v21775_v3 }
 0x2a3   : > { %v17229_v38 = vpop.f32.mrb[0].mxu1 }
 0x2a4   : > { %v1674_v61 = vpop.f32.mrb[1].mxu1  ;;  %v19243_v6 = vadd.f32 %v17229_v38, %v21794_v48 }
 0x2a5   : > { %v17230_v14 = vpop.f32.mrb[2].mxu1  ;;  %v19245_v51 = vadd.f32 %v21794_v48, %v1674_v61 }
 0x2a6   : > { %v1677_v49 = vpop.f32.mrb[3].mxu1  ;;  %v19247_v26 = vadd.f32 %v17230_v14, %v21794_v48 }
 0x2a7   : > { %v19249_v40 = vadd.f32 %v21794_v48, %v1677_v49 }
 0x2ab   : > { %v17233_v16 = vpop.f32.mrb[4].mxu1 }
 0x2ac   : > { %v1690_v31 = vpop.f32.mrb[5].mxu1  ;;  %v19251_v33 = vadd.f32 %v17233_v16, %v21794_v48 }
 0x2ad   : > { %v17234_v54 = vpop.f32.mrb[6].mxu1  ;;  %v19253_v22 = vadd.f32 %v21794_v48, %v1690_v31 }
 0x2ae   : > { %v1693_v37 = vpop.f32.mrb[7].mxu1  ;;  %v19255_v45 = vadd.f32 %v17234_v54, %v21794_v48 }
 0x2af   : > { %v19257_v8 = vadd.f32 %v21794_v48, %v1693_v37 }
 0x2b3   : > { %v21778_v41 = vpop.f32.mrb[8].mxu1 }
 0x2b4   : > { %v21780_v9 = vpop.f32.mrb[9].mxu1  ;;  %v19259_v49 = vadd.f32 %v21778_v41, %v21794_v48 }
 0x2b5   : > { %v21782_v43 = vpop.f32.mrb[10].mxu1 }
 0x2b6   : > { %v21784_v34 = vpop.f32.mrb[11].mxu1 }
 0x2bb   : > { %v21786_v10 = vpop.f32.mrb[12].mxu1 }
 0x2bc   : > { %v21788_v47 = vpop.f32.mrb[13].mxu1 }
 0x2bd   : > { %v21790_v50 = vpop.f32.mrb[14].mxu1 }
 0x2be   : > { %v21792_v4 = vpop.f32.mrb[15].mxu1 }
 0x2c4   : > { %v17469_v55 = vpop.f32.mrb[0].mxu0 }
 0x2c5   : > { %v19244_v5 = vadd.f32 %v19243_v6, %v17469_v55  ;;  %v3245_v7 = vpop.f32.mrb[1].mxu0  ;;  %v19261_v6 = vadd.f32 %v21794_v48, %v21780_v9 }
 0x2c6   : > { %v19246_v1 = vadd.f32 %v19245_v51, %v3245_v7  ;;  %v17470_v24 = vpop.f32.mrb[2].mxu0  ;;  %v19263_v7 = vadd.f32 %v21782_v43, %v21794_v48 }
 0x2c7   : > { %v21801_v21 = vmax.f32 %v19244_v5, 0.0  ;;  %v19248_v30 = vadd.f32 %v19247_v26, %v17470_v24  ;;  %v3248_v28 = vpop.f32.mrb[3].mxu0  ;;  %v3510_v24 = vld [vmem:[%s21397_s21 + $0x50] sm:$0xff] }
 0x2c8   : > { %v21804_v59 = vmax.f32 %v19246_v1, 0.0  ;;  %v19250_v13 = vadd.f32 %v19249_v40, %v3248_v28  ;;  %v19265_v1 = vadd.f32 %v21794_v48, %v21784_v34 }
 0x2c9   : > { %v3534_v57 = vadd.f32 %v3502_v60, %v21801_v21  ;;  %3598 = vst [vmem:[#allocation2 + $0x340] sm:$0xff] %v21801_v21  ;;  %v21809_v25 = vmax.f32 %v19248_v30, 0.0 }
 0x2ca   : > { %v3532_v27 = vadd.f32 %v3500_v11, %v21804_v59  ;;  %3596 = vst [vmem:[#allocation2 + $0x310] sm:$0xff] %v21804_v59  ;;  %v21814_v12 = vmax.f32 %v19250_v13, 0.0 }
 0x2cb   : > { %3566 = vst [vmem:[%s21397_s21 + $0x10] sm:$0xff] %v3534_v57  ;;  %v3535_v36 = vadd.f32 %v3503_v53, %v21809_v25  ;;  %3599 = vst [vmem:[#allocation2 + $0x348] sm:$0xff] %v21809_v25  ;;  %v4047_v18 = vpack.c.bf16 %v21809_v25, %v21801_v21  ;;  %v3508_v53 = vld [vmem:[%s21397_s21 + $0x40] sm:$0xff]  ;;  %v4382_v21 = vld [vmem:[#allocation4 + $0x2f8] sm:$0xff] }
 0x2cc   : > { %3564 = vst [vmem:[%s21397_s21] sm:$0xff] %v3532_v27  ;;  %v3533_v56 = vadd.f32 %v3501_v29, %v21814_v12  ;;  %3597 = vst [vmem:[#allocation2 + $0x318] sm:$0xff] %v21814_v12  ;;  %v17473_v19 = vpop.f32.mrb[4].mxu0  ;;  %v4046_v42 = vpack.c.bf16 %v21814_v12, %v21804_v59  ;;  %v3511_v29 = vld [vmem:[%s21397_s21 + $0x58] sm:$0xff]  ;;  %v4380_v59 = vld [vmem:[#allocation4 + $0x2e8] sm:$0xff] }
 0x2cd   : > { %3567 = vst [vmem:[%s21397_s21 + $0x18] sm:$0xff] %v3535_v36  ;;  %v19252_v39 = vadd.f32 %v19251_v33, %v17473_v19  ;;  %v3261_v20 = vpop.f32.mrb[5].mxu0  ;;  %v3509_v36 = vld [vmem:[%s21397_s21 + $0x48] sm:$0xff]  ;;  %v4689_v25 = vld [vmem:[#allocation4 + $0x300] sm:$0xff] }
 0x2ce   : > { %3565 = vst [vmem:[%s21397_s21 + $0x8] sm:$0xff] %v3533_v56  ;;  %v19254_v0 = vadd.f32 %v19253_v22, %v3261_v20  ;;  %v17474_v15 = vpop.f32.mrb[6].mxu0 }
 0x2cf   : > { %v21833_v44 = vmax.f32 %v19252_v39, 0.0  ;;  %v19256_v46 = vadd.f32 %v19255_v45, %v17474_v15  ;;  %v3264_v2 = vpop.f32.mrb[7].mxu0  ;;  %v19267_v45 = vadd.f32 %v21786_v10, %v21794_v48 }
 0x2d0   : > { %v21836_v52 = vmax.f32 %v19254_v0, 0.0  ;;  %v19258_v58 = vadd.f32 %v19257_v8, %v3264_v2  ;;  %v3672_v26 = vld [vmem:[#allocation2 + $0x33e] sm:$0xff]  ;;  %v19269_v0 = vadd.f32 %v21794_v48, %v21788_v47 }
 0x2d1   : > { %v3538_v63 = vadd.f32 %v3506_v23, %v21833_v44  ;;  %3602 = vst [vmem:[#allocation2 + $0x3a0] sm:$0xff] %v21833_v44  ;;  %v21841_v35 = vmax.f32 %v19256_v46, 0.0  ;;  %v3670_v31 = vld [vmem:[#allocation2 + $0x30e] sm:$0xff] }
 0x2d2   : > { %v3536_v38 = vadd.f32 %v3504_v62, %v21836_v52  ;;  %3600 = vst [vmem:[#allocation2 + $0x370] sm:$0xff] %v21836_v52  ;;  %v21846_v61 = vmax.f32 %v19258_v58, 0.0  ;;  %v3673_v14 = vld [vmem:[#allocation2 + $0x346] sm:$0xff] }
 0x2d3   : > { %3570 = vst [vmem:[%s21397_s21 + $0x30] sm:$0xff] %v3538_v63  ;;  %v3539_v16 = vadd.f32 %v3507_v17, %v21841_v35  ;;  %3603 = vst [vmem:[#allocation2 + $0x3a8] sm:$0xff] %v21841_v35  ;;  %v3671_v54 = vld [vmem:[#allocation2 + $0x316] sm:$0xff]  ;;  %v4049_v37 = vpack.c.bf16 %v21841_v35, %v21833_v44  ;;  %v21867_v60 = vpack.c.bf16 %v3673_v14, %v3672_v26  ;;  %v4297_v35 = vld [vmem:[#allocation2 + $0x2ea] sm:$0xff] }
 0x2d4   : > { %3568 = vst [vmem:[%s21397_s21 + $0x20] sm:$0xff] %v3536_v38  ;;  %v3537_v51 = vadd.f32 %v3505_v32, %v21846_v61  ;;  %3601 = vst [vmem:[#allocation2 + $0x378] sm:$0xff] %v21846_v61  ;;  %v17477_v41 = vpop.f32.mrb[8].mxu0  ;;  %v21860_v55 = vpack.c.bf16 %v3671_v54, %v3670_v31  ;;  %v4048_v5 = vpack.c.bf16 %v21846_v61, %v21836_v52  ;;  %v3514_v38 = vld [vmem:[%s21397_s21 + $0x70] sm:$0xff]  ;;  %v4296_v52 = vld [vmem:[#allocation2 + $0x2e2] sm:$0xff] }
 0x2d5   : > { %3571 = vst [vmem:[%s21397_s21 + $0x38] sm:$0xff] %v3539_v16  ;;  %v19260_v40 = vadd.f32 %v19259_v49, %v17477_v41  ;;  %v3277_v9 = vpop.f32.mrb[9].mxu0  ;;  %v19271_v17 = vadd.f32 %v21790_v50, %v21794_v48  ;;  %v19273_v32 = vadd.f32 %v21794_v48, %v21792_v4  ;;  %v3512_v50 = vld [vmem:[%s21397_s21 + $0x60] sm:$0xff]  ;;  %v4359_v61 = vpack.c.bf16 %v4297_v35, %v4296_v52 }
 0x2d6   : > { %3569 = vst [vmem:[%s21397_s21 + $0x28] sm:$0xff] %v3537_v51  ;;  %v19262_v11 = vadd.f32 %v19261_v6, %v3277_v9  ;;  %v17478_v30 = vpop.f32.mrb[10].mxu0  ;;  %17519 = vmatprep.mubr.bf16.mxu1 %v21860_v55  ;;  %v3515_v51 = vld [vmem:[%s21397_s21 + $0x78] sm:$0xff] }
 0x2d7   : > { %v21874_v28 = vmax.f32 %v19260_v40, 0.0  ;;  %v19264_v43 = vadd.f32 %v19263_v7, %v17478_v30  ;;  %v3280_v13 = vpop.f32.mrb[11].mxu0  ;;  %17520 = vmatmul.mubr.bf16.gmra.mrb[36].mxu1 %v21867_v60  ;;  %v3513_v7 = vld [vmem:[%s21397_s21 + $0x68] sm:$0xff] }
 0x2d8   : > { %v21878_v57 = vmax.f32 %v19262_v11, 0.0  ;;  %v19266_v27 = vadd.f32 %v19265_v1, %v3280_v13  ;;  %v3676_v46 = vld [vmem:[#allocation2 + $0x39e] sm:$0xff] }
 0x2d9   : > { %v3542_v34 = vadd.f32 %v3510_v24, %v21874_v28  ;;  %3606 = vst [vmem:[#allocation2 + $0x400] sm:$0xff] %v21874_v28  ;;  %v21883_v33 = vmax.f32 %v19264_v43, 0.0  ;;  %v3674_v20 = vld [vmem:[#allocation2 + $0x36e] sm:$0xff] }
 0x2da   : > { %v3540_v22 = vadd.f32 %v3508_v53, %v21878_v57  ;;  %3604 = vst [vmem:[#allocation2 + $0x3d0] sm:$0xff] %v21878_v57  ;;  %v21888_v56 = vmax.f32 %v19266_v27, 0.0  ;;  %v3677_v19 = vld [vmem:[#allocation2 + $0x3a6] sm:$0xff] }
 0x2db   : > { %3574 = vst [vmem:[%s21397_s21 + $0x50] sm:$0xff] %v3542_v34  ;;  %v3543_v39 = vadd.f32 %v3511_v29, %v21883_v33  ;;  %3607 = vst [vmem:[#allocation2 + $0x408] sm:$0xff] %v21883_v33  ;;  %v3675_v8 = vld [vmem:[#allocation2 + $0x376] sm:$0xff]  ;;  %v4051_v23 = vpack.c.bf16 %v21883_v33, %v21874_v28  ;;  %v21909_v63 = vpack.c.bf16 %v3677_v19, %v3676_v46  ;;  %v4300_v33 = vld [vmem:[#allocation2 + $0x342] sm:$0xff] }
 0x2dc   : > { %3572 = vst [vmem:[%s21397_s21 + $0x40] sm:$0xff] %v3540_v22  ;;  %v3541_v15 = vadd.f32 %v3509_v36, %v21888_v56  ;;  %3605 = vst [vmem:[#allocation2 + $0x3d8] sm:$0xff] %v21888_v56  ;;  %v17481_v10 = vpop.f32.mrb[12].mxu0  ;;  %v21902_v62 = vpack.c.bf16 %v3675_v8, %v3674_v20  ;;  %v4050_v2 = vpack.c.bf16 %v21888_v56, %v21878_v57  ;;  %v4690_v57 = vld [vmem:[#allocation4 + $0x308] sm:$0xff] }
 0x2dd   : > { %3575 = vst [vmem:[%s21397_s21 + $0x58] sm:$0xff] %v3543_v39  ;;  %v19268_v58 = vadd.f32 %v19267_v45, %v17481_v10  ;;  %v3293_v47 = vpop.f32.mrb[13].mxu0  ;;  %v4301_v56 = vld [vmem:[#allocation2 + $0x34a] sm:$0xff] }
 0x2de   : > { %3573 = vst [vmem:[%s21397_s21 + $0x48] sm:$0xff] %v3541_v15  ;;  %v19270_v14 = vadd.f32 %v19269_v0, %v3293_v47  ;;  %v17482_v49 = vpop.f32.mrb[14].mxu0  ;;  %17523 = vmatprep.mubr.bf16.mxu1 %v21902_v62 }
 0x2df   : > { %v21916_v16 = vmax.f32 %v19268_v58, 0.0  ;;  %v19272_v31 = vadd.f32 %v19271_v17, %v17482_v49  ;;  %v3296_v54 = vpop.f32.mrb[15].mxu0  ;;  %17524 = vmatmul.mubr.bf16.gmra.mrb[40].mxu1 %v21909_v63  ;;  %v3518_v58 = vld [vmem:[%s21397_s21 + $0x90] sm:$0xff] }
 0x2e0   : > { %v21920_v6 = vmax.f32 %v19270_v14, 0.0  ;;  %v19274_v4 = vadd.f32 %v19273_v32, %v3296_v54  ;;  %v3680_v34 = vld [vmem:[#allocation2 + $0x3fe] sm:$0xff]  ;;  %v3516_v14 = vld [vmem:[%s21397_s21 + $0x80] sm:$0xff] }
 0x2e1   : > { %v3546_v41 = vadd.f32 %v3514_v38, %v21916_v16  ;;  %3610 = vst [vmem:[#allocation2 + $0x460] sm:$0xff] %v21916_v16  ;;  %v21925_v26 = vmax.f32 %v19272_v31, 0.0  ;;  %v3678_v11 = vld [vmem:[#allocation2 + $0x3ce] sm:$0xff]  ;;  %v3519_v31 = vld [vmem:[%s21397_s21 + $0x98] sm:$0xff] }
 0x2e2   : > { %v3544_v40 = vadd.f32 %v3512_v50, %v21920_v6  ;;  %3608 = vst [vmem:[#allocation2 + $0x430] sm:$0xff] %v21920_v6  ;;  %v21930_v9 = vmax.f32 %v19274_v4, 0.0  ;;  %v3681_v1 = vld [vmem:[#allocation2 + $0x406] sm:$0xff] }
 0x2e3   : > { %3578 = vst [vmem:[%s21397_s21 + $0x70] sm:$0xff] %v3546_v41  ;;  %v3547_v24 = vadd.f32 %v3515_v51, %v21925_v26  ;;  %3611 = vst [vmem:[#allocation2 + $0x468] sm:$0xff] %v21925_v26  ;;  %v3679_v30 = vld [vmem:[#allocation2 + $0x3d6] sm:$0xff]  ;;  %v17293_v13 = vpop.f32.mrb[16].mxu1  ;;  %v21946_v39 = vpack.c.bf16 %v3681_v1, %v3680_v34  ;;  %v23681_v12 = vpack.c.bf16 %v21925_v26, %v21916_v16 }
 0x2e4   : > { %3576 = vst [vmem:[%s21397_s21 + $0x60] sm:$0xff] %v3544_v40  ;;  %v3545_v43 = vadd.f32 %v3513_v7, %v21930_v9  ;;  %3609 = vst [vmem:[#allocation2 + $0x438] sm:$0xff] %v21930_v9  ;;  %v17485_v29 = vpop.f32.mrb[16].mxu0  ;;  %v21940_v27 = vpack.c.bf16 %v3679_v30, %v3678_v11  ;;  %v4052_v36 = vpack.c.bf16 %v21930_v9, %v21920_v6  ;;  %v2052_v19 = vpop.f32.mrb[17].mxu1  ;;  %v3517_v7 = vld [vmem:[%s21397_s21 + $0x88] sm:$0xff]  ;;  %v4303_v16 = vld [vmem:[#allocation2 + $0x37a] sm:$0xff] }
 0x2e5   : > { %3579 = vst [vmem:[%s21397_s21 + $0x78] sm:$0xff] %v3547_v24  ;;  %v19275_v22 = vadd.f32 %v17293_v13, %v21794_v48  ;;  %v3309_v45 = vpop.f32.mrb[17].mxu0  ;;  %v19277_v20 = vadd.f32 %v21794_v48, %v2052_v19  ;;  %v17294_v8 = vpop.f32.mrb[18].mxu1  ;;  %v22088_v6 = vpack.c.bf16 %v4301_v56, %v4300_v33 }
 0x2e6   : > { %3577 = vst [vmem:[%s21397_s21 + $0x68] sm:$0xff] %v3545_v43  ;;  %v17486_v0 = vpop.f32.mrb[18].mxu0  ;;  %17527 = vmatprep.mubr.bf16.mxu1 %v21940_v27  ;;  %v19279_v10 = vadd.f32 %v17294_v8, %v21794_v48  ;;  %v2055_v46 = vpop.f32.mrb[19].mxu1 }
 0x2e7   : > { %v19276_v15 = vadd.f32 %v19275_v22, %v17485_v29  ;;  %v3312_v17 = vpop.f32.mrb[19].mxu0  ;;  %17528 = vmatmul.mubr.bf16.gmra.mrb[44].mxu1 %v21946_v39  ;;  %v19278_v47 = vadd.f32 %v19277_v20, %v3309_v45  ;;  %v19281_v32 = vadd.f32 %v21794_v48, %v2055_v46 }
 0x2e8   : > { %v19280_v49 = vadd.f32 %v19279_v10, %v17486_v0  ;;  %v3684_v29 = vld [vmem:[#allocation2 + $0x45e] sm:$0xff] }
 0x2e9   : > { %v3486_v38 = vmax.f32 %v19276_v15, 0.0  ;;  %v3484_v50 = vmax.f32 %v19278_v47, 0.0  ;;  %v19282_v54 = vadd.f32 %v19281_v32, %v3312_v17  ;;  %v3682_v40 = vld [vmem:[#allocation2 + $0x42e] sm:$0xff] }
 0x2ea   : > { %v3685_v51 = vld [vmem:[#allocation2 + $0x466] sm:$0xff]  ;;  %v3487_v41 = vmax.f32 %v19280_v49, 0.0 }
 0x2eb   : > { %v3550_v4 = vadd.f32 %v3518_v58, %v3486_v38  ;;  %3614 = vst [vmem:[#allocation2 + $0x4c0] sm:$0xff] %v3486_v38  ;;  %v3683_v1 = vld [vmem:[#allocation2 + $0x436] sm:$0xff]  ;;  %v3548_v24 = vadd.f32 %v3516_v14, %v3484_v50  ;;  %3612 = vst [vmem:[#allocation2 + $0x490] sm:$0xff] %v3484_v50  ;;  %v3485_v11 = vmax.f32 %v19282_v54, 0.0  ;;  %v17297_v30 = vpop.f32.mrb[20].mxu1  ;;  %v21962_v20 = vpack.c.bf16 %v3685_v51, %v3684_v29  ;;  %v3520_v51 = vld [vmem:[%s21397_s21 + $0xa0] sm:$0xff] }
 0x2ec   : > { %v17489_v43 = vpop.f32.mrb[20].mxu0  ;;  %v21958_v13 = vpack.c.bf16 %v3683_v1, %v3682_v40  ;;  %v3551_v34 = vadd.f32 %v3519_v31, %v3487_v41  ;;  %3615 = vst [vmem:[#allocation2 + $0x4c8] sm:$0xff] %v3487_v41  ;;  %v19283_v22 = vadd.f32 %v17297_v30, %v21794_v48  ;;  %v2068_v19 = vpop.f32.mrb[21].mxu1  ;;  %v21964_v8 = vpack.c.bf16 %v3487_v41, %v3486_v38  ;;  %v3522_v14 = vld [vmem:[%s21397_s21 + $0xb0] sm:$0xff]  ;;  %v3523_v41 = vld [vmem:[%s21397_s21 + $0xb8] sm:$0xff] }
 0x2ed   : > { %3582 = vst [vmem:[%s21397_s21 + $0x90] sm:$0xff] %v3550_v4  ;;  %v3325_v45 = vpop.f32.mrb[21].mxu0  ;;  %3580 = vst [vmem:[%s21397_s21 + $0x80] sm:$0xff] %v3548_v24  ;;  %v3549_v0 = vadd.f32 %v3517_v7, %v3485_v11  ;;  %v19285_v15 = vadd.f32 %v21794_v48, %v2068_v19  ;;  %v17298_v10 = vpop.f32.mrb[22].mxu1  ;;  %v21969_v17 = vpack.c.bf16 %v3485_v11, %v3484_v50  ;;  %v3521_v24 = vld [vmem:[%s21397_s21 + $0xa8] sm:$0xff] }
 0x2ee   : > { %3613 = vst [vmem:[#allocation2 + $0x498] sm:$0xff] %v3485_v11  ;;  %v17490_v46 = vpop.f32.mrb[22].mxu0  ;;  %17531 = vmatprep.mubr.bf16.mxu1 %v21958_v13  ;;  %3583 = vst [vmem:[%s21397_s21 + $0x98] sm:$0xff] %v3551_v34  ;;  %v19284_v58 = vadd.f32 %v19283_v22, %v17489_v43  ;;  %v19287_v47 = vadd.f32 %v17298_v10, %v21794_v48  ;;  %v2071_v32 = vpop.f32.mrb[23].mxu1 }
 0x2ef   : > { %v3328_v38 = vpop.f32.mrb[23].mxu0  ;;  %17532 = vmatmul.mubr.bf16.gmra.mrb[48].mxu1 %v21962_v20  ;;  %3581 = vst [vmem:[%s21397_s21 + $0x88] sm:$0xff] %v3549_v0  ;;  %v19286_v49 = vadd.f32 %v19285_v15, %v3325_v45  ;;  %v19289_v31 = vadd.f32 %v21794_v48, %v2071_v32 }
 0x2f0   : > { %v3490_v54 = vmax.f32 %v19284_v58, 0.0  ;;  %v19288_v4 = vadd.f32 %v19287_v47, %v17490_v46 }
 0x2f1   : > { %v3488_v50 = vmax.f32 %v19286_v49, 0.0  ;;  %v19290_v7 = vadd.f32 %v19289_v31, %v3328_v38 }
 0x2f2   : > { %v3554_v40 = vadd.f32 %v3522_v14, %v3490_v54  ;;  %3618 = vst [vmem:[#allocation2 + $0x520] sm:$0xff] %v3490_v54  ;;  %v3491_v1 = vmax.f32 %v19288_v4, 0.0  ;;  %v3686_v15 = vld [vmem:[#allocation2 + $0x48e] sm:$0xff]  ;;  %v3688_v49 = vld [vmem:[#allocation2 + $0x4be] sm:$0xff] }
 0x2f3   : > { %v3552_v11 = vadd.f32 %v3520_v51, %v3488_v50  ;;  %3616 = vst [vmem:[#allocation2 + $0x4f0] sm:$0xff] %v3488_v50  ;;  %v3489_v30 = vmax.f32 %v19290_v7, 0.0  ;;  %v17301_v43 = vpop.f32.mrb[24].mxu1  ;;  %v3689_v34 = vld [vmem:[#allocation2 + $0x4c6] sm:$0xff] }
 0x2f4   : > { %v17493_v29 = vpop.f32.mrb[24].mxu0  ;;  %3586 = vst [vmem:[%s21397_s21 + $0xb0] sm:$0xff] %v3554_v40  ;;  %v3555_v22 = vadd.f32 %v3523_v41, %v3491_v1  ;;  %3619 = vst [vmem:[#allocation2 + $0x528] sm:$0xff] %v3491_v1  ;;  %v19291_v19 = vadd.f32 %v17301_v43, %v21794_v48  ;;  %v2084_v45 = vpop.f32.mrb[25].mxu1  ;;  %v21982_v46 = vpack.c.bf16 %v3491_v1, %v3490_v54  ;;  %v3526_v40 = vld [vmem:[%s21397_s21 + $0xd0] sm:$0xff]  ;;  %v4316_v35 = vld [vmem:[#allocation2 + $0x4c2] sm:$0xff] }
 0x2f5   : > { %v3341_v0 = vpop.f32.mrb[25].mxu0  ;;  %v3687_v10 = vld [vmem:[#allocation2 + $0x496] sm:$0xff]  ;;  %3584 = vst [vmem:[%s21397_s21 + $0xa0] sm:$0xff] %v3552_v11  ;;  %v3553_v58 = vadd.f32 %v3521_v24, %v3489_v30  ;;  %3617 = vst [vmem:[#allocation2 + $0x4f8] sm:$0xff] %v3489_v30  ;;  %v19293_v47 = vadd.f32 %v21794_v48, %v2084_v45  ;;  %v17302_v32 = vpop.f32.mrb[26].mxu1  ;;  %v21988_v31 = vpack.c.bf16 %v3489_v30, %v3488_v50  ;;  %v3524_v50 = vld [vmem:[%s21397_s21 + $0xc0] sm:$0xff] }
 0x2f6   : > { %v17494_v38 = vpop.f32.mrb[26].mxu0  ;;  %v21986_v14 = vpack.c.bf16 %v3687_v10, %v3686_v15  ;;  %3587 = vst [vmem:[%s21397_s21 + $0xb8] sm:$0xff] %v3555_v22  ;;  %v19292_v51 = vadd.f32 %v19291_v19, %v17493_v29  ;;  %v19295_v54 = vadd.f32 %v17302_v32, %v21794_v48  ;;  %v2087_v4 = vpop.f32.mrb[27].mxu1  ;;  %v21992_v7 = vpack.c.bf16 %v3689_v34, %v3688_v49  ;;  %v3527_v29 = vld [vmem:[%s21397_s21 + $0xd8] sm:$0xff]  ;;  %v3525_v45 = vld [vmem:[%s21397_s21 + $0xc8] sm:$0xff] }
 0x2f7   : > { %v3344_v41 = vpop.f32.mrb[27].mxu0  ;;  %3585 = vst [vmem:[%s21397_s21 + $0xa8] sm:$0xff] %v3553_v58  ;;  %v19294_v1 = vadd.f32 %v19293_v47, %v3341_v0  ;;  %v19297_v24 = vadd.f32 %v21794_v48, %v2087_v4 }
 0x2f8   : > { %17535 = vmatprep.mubr.bf16.mxu1 %v21986_v14  ;;  %v3494_v11 = vmax.f32 %v19292_v51, 0.0  ;;  %v19296_v30 = vadd.f32 %v19295_v54, %v17494_v38 }
 0x2f9   : > { %17536 = vmatmul.mubr.bf16.gmra.mrb[52].mxu1 %v21992_v7  ;;  %v3492_v43 = vmax.f32 %v19294_v1, 0.0  ;;  %v19298_v22 = vadd.f32 %v19297_v24, %v3344_v41 }
 0x2fa   : > { %v3558_v19 = vadd.f32 %v3526_v40, %v3494_v11  ;;  %3622 = vst [vmem:[#allocation2 + $0x580] sm:$0xff] %v3494_v11  ;;  %v3495_v34 = vmax.f32 %v19296_v30, 0.0  ;;  %v3690_v54 = vld [vmem:[#allocation2 + $0x4ee] sm:$0xff] }
 0x2fb   : > { %v3556_v15 = vadd.f32 %v3524_v50, %v3492_v43  ;;  %3620 = vst [vmem:[#allocation2 + $0x550] sm:$0xff] %v3492_v43  ;;  %v3493_v0 = vmax.f32 %v19298_v22, 0.0  ;;  %v17305_v10 = vpop.f32.mrb[28].mxu1  ;;  %v3693_v47 = vld [vmem:[#allocation2 + $0x526] sm:$0xff] }
 0x2fc   : > { %v17497_v58 = vpop.f32.mrb[28].mxu0  ;;  %3590 = vst [vmem:[%s21397_s21 + $0xd0] sm:$0xff] %v3558_v19  ;;  %v3559_v32 = vadd.f32 %v3527_v29, %v3495_v34  ;;  %3623 = vst [vmem:[#allocation2 + $0x588] sm:$0xff] %v3495_v34  ;;  %v19299_v38 = vadd.f32 %v17305_v10, %v21794_v48  ;;  %v2100_v49 = vpop.f32.mrb[29].mxu1  ;;  %v3691_v4 = vld [vmem:[#allocation2 + $0x4f6] sm:$0xff]  ;;  %v22004_v41 = vpack.c.bf16 %v3495_v34, %v3494_v11  ;;  %v3692_v29 = vld [vmem:[#allocation2 + $0x51e] sm:$0xff] }
 0x2fd   : > { %v3357_v51 = vpop.f32.mrb[29].mxu0  ;;  %3588 = vst [vmem:[%s21397_s21 + $0xc0] sm:$0xff] %v3556_v15  ;;  %v3557_v40 = vadd.f32 %v3525_v45, %v3493_v0  ;;  %3621 = vst [vmem:[#allocation2 + $0x558] sm:$0xff] %v3493_v0  ;;  %v19301_v1 = vadd.f32 %v21794_v48, %v2100_v49  ;;  %v17306_v24 = vpop.f32.mrb[30].mxu1  ;;  %v22008_v30 = vpack.c.bf16 %v3691_v4, %v3690_v54  ;;  %v3530_v45 = vld [vmem:[%s21397_s21 + $0xf0] sm:$0xff]  ;;  %v3980_v4 = vld [vmem:[#allocation2 + $0x2b0] sm:$0xff] }
 0x2fe   : > { %v17498_v50 = vpop.f32.mrb[30].mxu0  ;;  %v22010_v22 = vpack.c.bf16 %v3493_v0, %v3492_v43  ;;  %3591 = vst [vmem:[%s21397_s21 + $0xd8] sm:$0xff] %v3559_v32  ;;  %v19300_v19 = vadd.f32 %v19299_v38, %v17497_v58  ;;  %v19303_v11 = vadd.f32 %v17306_v24, %v21794_v48  ;;  %v2103_v34 = vpop.f32.mrb[31].mxu1  ;;  %v22014_v10 = vpack.c.bf16 %v3693_v47, %v3692_v29  ;;  %v3528_v43 = vld [vmem:[%s21397_s21 + $0xe0] sm:$0xff]  ;;  %v3531_v32 = vld [vmem:[%s21397_s21 + $0xf8] sm:$0xff] }
 0x2ff   : > { %v3360_v15 = vpop.f32.mrb[31].mxu0  ;;  %3589 = vst [vmem:[%s21397_s21 + $0xc8] sm:$0xff] %v3557_v40  ;;  %v19302_v49 = vadd.f32 %v19301_v1, %v3357_v51  ;;  %v19305_v53 = vadd.f32 %v21794_v48, %v2103_v34  ;;  %17539 = vmatprep.mubr.bf16.mxu1 %v22008_v30  ;;  %v3529_v48 = vld [vmem:[%s21397_s21 + $0xe8] sm:$0xff]  ;;  %v3981_v40 = vld [vmem:[#allocation2 + $0x2b8] sm:$0xff]  ;;  %v4320_v56 = vld [vmem:[#allocation2 + $0x522] sm:$0xff] }
 0x300   : > { %v22020_v54 = vmax.f32 %v19300_v19, 0.0  ;;  %v19304_v0 = vadd.f32 %v19303_v11, %v17498_v50 }
 0x301   : > { %17540 = vmatmul.mubr.bf16.gmra.mrb[56].mxu1 %v22014_v10  ;;  %v22024_v58 = vmax.f32 %v19302_v49, 0.0  ;;  %v19306_v47 = vadd.f32 %v19305_v53, %v3360_v15  ;;  %v4044_v49 = vpack.c.bf16 %v3981_v40, %v3980_v4  ;;  %v4377_v4 = vld [vmem:[#allocation4 + $0x2d0] sm:$0xff]  ;;  %v4378_v40 = vld [vmem:[#allocation4 + $0x2d8] sm:$0xff] }
 0x302   : > { %v3562_v38 = vadd.f32 %v3530_v45, %v22020_v54  ;;  %3626 = vst [vmem:[#allocation2 + $0x5e0] sm:$0xff] %v22020_v54  ;;  %v22029_v51 = vmax.f32 %v19304_v0, 0.0  ;;  %v3694_v29 = vld [vmem:[#allocation2 + $0x54e] sm:$0xff]  ;;  %v3696_v45 = vld [vmem:[#allocation2 + $0x57e] sm:$0xff] }
 0x303   : > { %v3560_v1 = vadd.f32 %v3528_v43, %v22024_v58  ;;  %3624 = vst [vmem:[#allocation2 + $0x5b0] sm:$0xff] %v22024_v58  ;;  %v22034_v24 = vmax.f32 %v19306_v47, 0.0  ;;  %v3697_v50 = vld [vmem:[#allocation2 + $0x586] sm:$0xff] }
 0x304   : > { %3594 = vst [vmem:[%s21397_s21 + $0xf0] sm:$0xff] %v3562_v38  ;;  %v3563_v53 = vadd.f32 %v3531_v32, %v22029_v51  ;;  %3627 = vst [vmem:[#allocation2 + $0x5e8] sm:$0xff] %v22029_v51  ;;  %v3695_v19 = vld [vmem:[#allocation2 + $0x556] sm:$0xff]  ;;  %v5001_v11 = vpack.c.bf16 %v22029_v51, %v22020_v54  ;;  %v22049_v0 = vpack.c.bf16 %v3697_v50, %v3696_v45  ;;  %v3982_v32 = vld [vmem:[#allocation2 + $0x2e0] sm:$0xff] }
 0x305   : > { %3592 = vst [vmem:[%s21397_s21 + $0xe0] sm:$0xff] %v3560_v1  ;;  %v3561_v34 = vadd.f32 %v3529_v48, %v22034_v24  ;;  %3625 = vst [vmem:[#allocation2 + $0x5b8] sm:$0xff] %v22034_v24  ;;  %v22044_v15 = vpack.c.bf16 %v3695_v19, %v3694_v29  ;;  %v5000_v43 = vpack.c.bf16 %v22034_v24, %v22024_v58  ;;  %v3983_v47 = vld [vmem:[#allocation2 + $0x2e8] sm:$0xff]  ;;  %v4379_v1 = vld [vmem:[#allocation4 + $0x2e0] sm:$0xff] }
 0x306   : > { %3595 = vst [vmem:[%s21397_s21 + $0xf8] sm:$0xff] %v3563_v53  ;;  %v4045_v38 = vpack.c.bf16 %v3983_v47, %v3982_v32  ;;  %v4376_v48 = vld [vmem:[#allocation4 + $0x2c8] sm:$0xff]  ;;  %v4693_v29 = vld [vmem:[#allocation4 + $0x320] sm:$0xff]  ;;  %v4306_v19 = vld [vmem:[#allocation2 + $0x3d2] sm:$0xff] }
 0x307   : > { %3593 = vst [vmem:[%s21397_s21 + $0xe8] sm:$0xff] %v3561_v34  ;;  %17543 = vmatprep.mubr.bf16.mxu1 %v22044_v15  ;;  %v4304_v50 = vld [vmem:[#allocation2 + $0x3a2] sm:$0xff]  ;;  %v4305_v53 = vld [vmem:[#allocation2 + $0x3aa] sm:$0xff]  ;;  %v4307_v34 = vld [vmem:[#allocation2 + $0x3da] sm:$0xff] }
 0x308   : > { %v22094_v45 = vpack.c.bf16 %v4305_v53, %v4304_v50  ;;  %v4694_v32 = vld [vmem:[#allocation4 + $0x328] sm:$0xff]  ;;  %v5639_v54 = vld [vmem:[#allocation4 + $0x3f8] sm:$0xff]  ;;  %v5946_v58 = vld [vmem:[#allocation4 + $0x400] sm:$0xff] }
 0x309   : > { %17544 = vmatmul.mubr.bf16.gmra.mrb[60].mxu1 %v22049_v0  ;;  %v4308_v47 = vld [vmem:[#allocation2 + $0x402] sm:$0xff] }
 0x30a   : > { %17563 = vmatprep.mubr.bf16.mxu1 %v4044_v49  ;;  %v22096_v49 = vpack.c.bf16 %v4307_v34, %v4306_v19  ;;  %v4324_v53 = vld [vmem:[#allocation2 + $0x582] sm:$0xff] }
 0x30b   : > { %v5004_v34 = vld [vmem:[#allocation4 + $0x348] sm:$0xff] }
 0x30c   : > { %v5264_v51 = vld [vmem:[#allocation2 + $0x5b2] sm:$0xff]  ;;  %v5265_v24 = vld [vmem:[#allocation2 + $0x5ba] sm:$0xff] }
 0x311   : > { %17564 = vmatmul.mubr.bf16.vlgmr.msra.gmra.mrb[32].mxu1 %v4045_v38  ;;  %v4309_v38 = vld [vmem:[#allocation2 + $0x40a] sm:$0xff] }
 0x312   : > { %17567 = vmatprep.mubr.bf16.mxu1 %v4046_v42  ;;  %17596 = vmatpush3.bf16.msra.mxu1 %v21775_v3  ;;  %v4381_v3 = vld [vmem:[#allocation4 + $0x2f0] sm:$0xff]  ;;  %v4295_v42 = vld [vmem:[#allocation2 + $0x2ba] sm:$0xff] }
 0x313   : > { %17597 = vmatprep.subr.bf16.mxu1 %v4376_v48 }
 0x316   : > { %17598 = vmatpush3.bf16.msra.mxu1 %v4376_v48  ;;  %v4695_v48 = vld [vmem:[#allocation4 + $0x330] sm:$0xff] }
 0x317   : > { %17599 = vmatprep.subr.bf16.mxu1 %v4377_v4 }
 0x319   : > { %17568 = vmatmul.mubr.bf16.gmra.mrb[36].mxu1 %v4047_v18  ;;  %v4294_v18 = vld [vmem:[#allocation2 + $0x2b2] sm:$0xff] }
 0x31a   : > { %17571 = vmatprep.mubr.bf16.mxu1 %v4048_v5  ;;  %17600 = vmatpush3.bf16.msra.mxu1 %v4377_v4  ;;  %v4358_v44 = vpack.c.bf16 %v4295_v42, %v4294_v18  ;;  %v4299_v5 = vld [vmem:[#allocation2 + $0x31a] sm:$0xff]  ;;  %v4310_v4 = vld [vmem:[#allocation2 + $0x432] sm:$0xff] }
 0x31b   : > { %17601 = vmatprep.subr.bf16.mxu1 %v4378_v40  ;;  %v4314_v18 = vld [vmem:[#allocation2 + $0x492] sm:$0xff]  ;;  %v4315_v42 = vld [vmem:[#allocation2 + $0x49a] sm:$0xff] }
 0x31c   : > { %v22108_v52 = vpack.c.bf16 %v4315_v42, %v4314_v18  ;;  %v4926_v18 = vld [vmem:[#allocation2 + $0x370] sm:$0xff] }
 0x31e   : > { %17602 = vmatpush3.bf16.msra.mxu1 %v4378_v40  ;;  %v4311_v40 = vld [vmem:[#allocation2 + $0x43a] sm:$0xff] }
 0x31f   : > { %17603 = vmatprep.subr.bf16.mxu1 %v4379_v1 }
 0x321   : > { %17572 = vmatmul.mubr.bf16.gmra.mrb[40].mxu1 %v4049_v37  ;;  %v4298_v37 = vld [vmem:[#allocation2 + $0x312] sm:$0xff] }
 0x322   : > { %17575 = vmatprep.mubr.bf16.mxu1 %v4050_v2  ;;  %17604 = vmatpush3.bf16.msra.mxu1 %v4379_v1  ;;  %v22085_v28 = vpack.c.bf16 %v4299_v5, %v4298_v37  ;;  %v4302_v2 = vld [vmem:[#allocation2 + $0x372] sm:$0xff]  ;;  %v22100_v1 = vpack.c.bf16 %v4309_v38, %v4308_v47  ;;  %v4319_v5 = vld [vmem:[#allocation2 + $0x4fa] sm:$0xff] }
 0x323   : > { %17605 = vmatprep.subr.bf16.mxu1 %v4380_v59  ;;  %v22090_v26 = vpack.c.bf16 %v4303_v16, %v4302_v2  ;;  %v4318_v37 = vld [vmem:[#allocation2 + $0x4f2] sm:$0xff]  ;;  %v4323_v16 = vld [vmem:[#allocation2 + $0x55a] sm:$0xff] }
 0x324   : > { %v22114_v33 = vpack.c.bf16 %v4319_v5, %v4318_v37  ;;  %v4322_v2 = vld [vmem:[#allocation2 + $0x552] sm:$0xff]  ;;  %v5007_v38 = vld [vmem:[#allocation4 + $0x360] sm:$0xff] }
 0x325   : > { %v22120_v50 = vpack.c.bf16 %v4323_v16, %v4322_v2  ;;  %v5006_v47 = vld [vmem:[#allocation4 + $0x358] sm:$0xff]  ;;  %v5319_v37 = vld [vmem:[#allocation4 + $0x390] sm:$0xff] }
 0x326   : > { %17606 = vmatpush3.bf16.msra.mxu1 %v4380_v59  ;;  %v22102_v59 = vpack.c.bf16 %v4311_v40, %v4310_v4  ;;  %v4931_v5 = vld [vmem:[#allocation2 + $0x3d8] sm:$0xff]  ;;  %v4930_v2 = vld [vmem:[#allocation2 + $0x3d0] sm:$0xff] }
 0x327   : > { %17607 = vmatprep.subr.bf16.mxu1 %v4381_v3  ;;  %v22152_v16 = vpack.c.bf16 %v4931_v5, %v4930_v2  ;;  %v5560_v5 = vld [vmem:[#allocation2 + $0x436] sm:$0xff] }
 0x329   : > { %17576 = vmatmul.mubr.bf16.gmra.mrb[44].mxu1 %v4051_v23  ;;  %v4691_v23 = vld [vmem:[#allocation4 + $0x310] sm:$0xff] }
 0x32a   : > { %17579 = vmatprep.mubr.bf16.mxu1 %v4052_v36  ;;  %17608 = vmatpush3.bf16.msra.mxu1 %v4381_v3  ;;  %v4692_v36 = vld [vmem:[#allocation4 + $0x318] sm:$0xff] }
 0x32b   : > { %17609 = vmatprep.subr.bf16.mxu1 %v4382_v21  ;;  %v4696_v3 = vld [vmem:[#allocation4 + $0x338] sm:$0xff] }
 0x32e   : > { %17610 = vmatpush3.bf16.msra.mxu1 %v4382_v21  ;;  %v4312_v21 = vld [vmem:[#allocation2 + $0x462] sm:$0xff] }
 0x32f   : > { %17643 = vmatprep.subr.bf16.mxu1 %v4689_v25 }
 0x331   : > { %17580 = vmatmul.mubr.bf16.gmra.mrb[48].mxu1 %v23681_v12  ;;  %v5003_v12 = vld [vmem:[#allocation4 + $0x340] sm:$0xff] }
 0x332   : > { %17583 = vmatprep.mubr.bf16.mxu1 %v21969_v17 }
 0x339   : > { %17584 = vmatmul.mubr.bf16.gmra.mrb[52].mxu1 %v21964_v8 }
 0x33a   : > { %17587 = vmatprep.mubr.bf16.mxu1 %v21988_v31 }
 0x341   : > { %17588 = vmatmul.mubr.bf16.gmra.mrb[56].mxu1 %v21982_v46 }
 0x342   : > { %17591 = vmatprep.mubr.bf16.mxu1 %v22010_v22 }
 0x349   : > { %17592 = vmatmul.mubr.bf16.gmra.mrb[60].mxu1 %v22004_v41 }
 0x34a   : > { %17611 = vmatprep.mubr.bf16.mxu1 %v4358_v44 }
 0x351   : > { %17612 = vmatmul.mubr.bf16.vlgmr.msra.gmra.mrb[32].mxu1 %v4359_v61  ;;  %v4317_v61 = vld [vmem:[#allocation2 + $0x4ca] sm:$0xff] }
 0x352   : > { %17615 = vmatprep.mubr.bf16.mxu1 %v22085_v28  ;;  %17644 = vmatpush3.bf16.msra.mxu1 %v4689_v25  ;;  %v4313_v25 = vld [vmem:[#allocation2 + $0x46a] sm:$0xff] }
 0x353   : > { %17645 = vmatprep.subr.bf16.mxu1 %v4690_v57  ;;  %v22106_v44 = vpack.c.bf16 %v4313_v25, %v4312_v21  ;;  %v4927_v21 = vld [vmem:[#allocation2 + $0x378] sm:$0xff]  ;;  %v4924_v25 = vld [vmem:[#allocation2 + $0x340] sm:$0xff] }
 0x354   : > { %v22147_v42 = vpack.c.bf16 %v4927_v21, %v4926_v18  ;;  %v5553_v21 = vld [vmem:[#allocation2 + $0x39e] sm:$0xff] }
 0x356   : > { %17646 = vmatpush3.bf16.msra.mxu1 %v4690_v57  ;;  %v22112_v57 = vpack.c.bf16 %v4317_v61, %v4316_v35  ;;  %v5318_v35 = vld [vmem:[#allocation4 + $0x388] sm:$0xff] }
 0x357   : > { %17647 = vmatprep.subr.bf16.mxu1 %v4691_v23  ;;  %v4929_v61 = vld [vmem:[#allocation2 + $0x3a8] sm:$0xff] }
 0x359   : > { %17616 = vmatmul.mubr.bf16.gmra.mrb[36].mxu1 %v22088_v6 }
 0x35a   : > { %17619 = vmatprep.mubr.bf16.mxu1 %v22090_v26  ;;  %17648 = vmatpush3.bf16.msra.mxu1 %v4691_v23  ;;  %v4321_v23 = vld [vmem:[#allocation2 + $0x52a] sm:$0xff] }
 0x35b   : > { %17649 = vmatprep.subr.bf16.mxu1 %v4692_v36 }
 0x35e   : > { %17650 = vmatpush3.bf16.msra.mxu1 %v4692_v36  ;;  %v22118_v36 = vpack.c.bf16 %v4321_v23, %v4320_v56  ;;  %v4928_v56 = vld [vmem:[#allocation2 + $0x3a0] sm:$0xff] }
 0x35f   : > { %17651 = vmatprep.subr.bf16.mxu1 %v4693_v29  ;;  %v22150_v23 = vpack.c.bf16 %v4929_v61, %v4928_v56  ;;  %v5558_v61 = vld [vmem:[#allocation2 + $0x406] sm:$0xff]  ;;  %v5557_v56 = vld [vmem:[#allocation2 + $0x3fe] sm:$0xff] }
 0x360   : > { %v5618_v2 = vpack.c.bf16 %v5558_v61, %v5557_v56  ;;  %v5879_v61 = vld [vmem:[#allocation2 + $0x4c0] sm:$0xff] }
 0x361   : > { %17620 = vmatmul.mubr.bf16.gmra.mrb[40].mxu1 %v22094_v45 }
 0x362   : > { %17623 = vmatprep.mubr.bf16.mxu1 %v22096_v49  ;;  %17652 = vmatpush3.bf16.msra.mxu1 %v4693_v29  ;;  %v4325_v29 = vld [vmem:[#allocation2 + $0x58a] sm:$0xff] }
 0x363   : > { %17653 = vmatprep.subr.bf16.mxu1 %v4694_v32  ;;  %v22124_v19 = vpack.c.bf16 %v4325_v29, %v4324_v53  ;;  %v5320_v53 = vld [vmem:[#allocation4 + $0x398] sm:$0xff]  ;;  %v4933_v29 = vld [vmem:[#allocation2 + $0x408] sm:$0xff] }
 0x366   : > { %17654 = vmatpush3.bf16.msra.mxu1 %v4694_v32  ;;  %v5005_v32 = vld [vmem:[#allocation4 + $0x350] sm:$0xff] }
 0x367   : > { %17655 = vmatprep.subr.bf16.mxu1 %v4695_v48 }
 0x369   : > { %17624 = vmatmul.mubr.bf16.gmra.mrb[44].mxu1 %v22100_v1 }
 0x36a   : > { %17627 = vmatprep.mubr.bf16.mxu1 %v22102_v59  ;;  %17656 = vmatpush3.bf16.msra.mxu1 %v4695_v48  ;;  %v4638_v48 = vld [vmem:[#allocation2 + $0x5de] sm:$0xff] }
 0x36b   : > { %17657 = vmatprep.subr.bf16.mxu1 %v4696_v3 }
 0x36e   : > { %17658 = vmatpush3.bf16.msra.mxu1 %v4696_v3  ;;  %v4925_v3 = vld [vmem:[#allocation2 + $0x348] sm:$0xff] }
 0x36f   : > { %17691 = vmatprep.subr.bf16.mxu1 %v5003_v12 }
 0x371   : > { %17628 = vmatmul.mubr.bf16.gmra.mrb[48].mxu1 %v22106_v44 }
 0x372   : > { %17631 = vmatprep.mubr.bf16.mxu1 %v22108_v52 }
 0x379   : > { %17632 = vmatmul.mubr.bf16.gmra.mrb[52].mxu1 %v22112_v57 }
 0x37a   : > { %17635 = vmatprep.mubr.bf16.mxu1 %v22114_v33 }
 0x381   : > { %17636 = vmatmul.mubr.bf16.gmra.mrb[56].mxu1 %v22118_v36 }
 0x382   : > { %17639 = vmatprep.mubr.bf16.mxu1 %v22120_v50 }
 0x389   : > { %17640 = vmatmul.mubr.bf16.gmra.mrb[60].mxu1 %v22124_v19 }
 0x38a   : > { %17659 = vmatprep.mubr.bf16.mxu1 %v21860_v55  ;;  %v5008_v55 = vld [vmem:[#allocation4 + $0x368] sm:$0xff] }
 0x391   : > { %17660 = vmatmul.mubr.bf16.vlgmr.msra.gmra.mrb[32].mxu1 %v21867_v60  ;;  %v5009_v60 = vld [vmem:[#allocation4 + $0x370] sm:$0xff] }
 0x392   : > { %17663 = vmatprep.mubr.bf16.mxu1 %v21902_v62  ;;  %17692 = vmatpush3.bf16.msra.mxu1 %v5003_v12  ;;  %v5010_v62 = vld [vmem:[#allocation4 + $0x378] sm:$0xff]  ;;  %v4987_v12 = vpack.c.bf16 %v4925_v3, %v4924_v25 }
 0x393   : > { %17693 = vmatprep.subr.bf16.mxu1 %v5004_v34  ;;  %v5556_v3 = vld [vmem:[#allocation2 + $0x3d6] sm:$0xff] }
 0x396   : > { %17694 = vmatpush3.bf16.msra.mxu1 %v5004_v34  ;;  %v5321_v34 = vld [vmem:[#allocation4 + $0x3a0] sm:$0xff] }
 0x397   : > { %17695 = vmatprep.subr.bf16.mxu1 %v5005_v32 }
 0x399   : > { %17664 = vmatmul.mubr.bf16.gmra.mrb[36].mxu1 %v21909_v63  ;;  %v5317_v63 = vld [vmem:[#allocation4 + $0x380] sm:$0xff] }
 0x39a   : > { %17667 = vmatprep.mubr.bf16.mxu1 %v21940_v27  ;;  %17696 = vmatpush3.bf16.msra.mxu1 %v5005_v32  ;;  %v4637_v27 = vld [vmem:[#allocation2 + $0x5b6] sm:$0xff] }
 0x39b   : > { %17697 = vmatprep.subr.bf16.mxu1 %v5006_v47  ;;  %v22156_v32 = vld [vmem:[#allocation2 + $0x430] sm:$0xff] }
 0x39e   : > { %17698 = vmatpush3.bf16.msra.mxu1 %v5006_v47  ;;  %v4932_v47 = vld [vmem:[#allocation2 + $0x400] sm:$0xff] }
 0x39f   : > { %17699 = vmatprep.subr.bf16.mxu1 %v5007_v38 }
 0x3a1   : > { %17668 = vmatmul.mubr.bf16.gmra.mrb[40].mxu1 %v21946_v39  ;;  %v4636_v39 = vld [vmem:[#allocation2 + $0x5ae] sm:$0xff] }
 0x3a2   : > { %17671 = vmatprep.mubr.bf16.mxu1 %v21958_v13  ;;  %17700 = vmatpush3.bf16.msra.mxu1 %v5007_v38  ;;  %v22140_v13 = vpack.c.bf16 %v4637_v27, %v4636_v39  ;;  %v22158_v38 = vpack.c.bf16 %v4933_v29, %v4932_v47  ;;  %v4936_v27 = vld [vmem:[#allocation2 + $0x460] sm:$0xff] }
 0x3a3   : > { %17701 = vmatprep.subr.bf16.mxu1 %v5008_v55  ;;  %v5562_v47 = vld [vmem:[#allocation2 + $0x466] sm:$0xff] }
 0x3a6   : > { %17702 = vmatpush3.bf16.msra.mxu1 %v5008_v55  ;;  %v4992_v55 = vpack.c.bf16 %v21930_v9, %v22156_v32  ;;  %v5632_v9 = vld [vmem:[#allocation4 + $0x3c0] sm:$0xff] }
 0x3a7   : > { %17703 = vmatprep.subr.bf16.mxu1 %v5009_v60 }
 0x3a9   : > { %17672 = vmatmul.mubr.bf16.gmra.mrb[44].mxu1 %v21962_v20  ;;  %v4639_v20 = vld [vmem:[#allocation2 + $0x5e6] sm:$0xff] }
 0x3aa   : > { %17675 = vmatprep.mubr.bf16.mxu1 %v21986_v14  ;;  %17704 = vmatpush3.bf16.msra.mxu1 %v5009_v60  ;;  %v4923_v14 = vld [vmem:[#allocation2 + $0x318] sm:$0xff]  ;;  %v22144_v4 = vpack.c.bf16 %v4639_v20, %v4638_v48  ;;  %v5322_v60 = vld [vmem:[#allocation4 + $0x3a8] sm:$0xff] }
 0x3ab   : > { %17705 = vmatprep.subr.bf16.mxu1 %v5010_v62  ;;  %v5324_v20 = vld [vmem:[#allocation4 + $0x3b8] sm:$0xff]  ;;  %v5551_v48 = vld [vmem:[#allocation2 + $0x36e] sm:$0xff] }
 0x3ae   : > { %17706 = vmatpush3.bf16.msra.mxu1 %v5010_v62  ;;  %v4937_v62 = vld [vmem:[#allocation2 + $0x468] sm:$0xff] }
 0x3af   : > { %17739 = vmatprep.subr.bf16.mxu1 %v5317_v63  ;;  %v22163_v39 = vpack.c.bf16 %v4937_v62, %v4936_v27  ;;  %v5561_v62 = vld [vmem:[#allocation2 + $0x45e] sm:$0xff]  ;;  %v5563_v27 = vld [vmem:[#allocation2 + $0x48e] sm:$0xff] }
 0x3b1   : > { %17676 = vmatmul.mubr.bf16.gmra.mrb[48].mxu1 %v21992_v7  ;;  %v4922_v7 = vld [vmem:[#allocation2 + $0x310] sm:$0xff] }
 0x3b2   : > { %17679 = vmatprep.mubr.bf16.mxu1 %v22008_v30  ;;  %v4986_v40 = vpack.c.bf16 %v4923_v14, %v4922_v7 }
 0x3b9   : > { %17680 = vmatmul.mubr.bf16.gmra.mrb[52].mxu1 %v22014_v10 }
 0x3ba   : > { %17683 = vmatprep.mubr.bf16.mxu1 %v22044_v15 }
 0x3c1   : > { %17684 = vmatmul.mubr.bf16.gmra.mrb[56].mxu1 %v22049_v0 }
 0x3c2   : > { %17687 = vmatprep.mubr.bf16.mxu1 %v22140_v13 }
 0x3c9   : > { %17688 = vmatmul.mubr.bf16.gmra.mrb[60].mxu1 %v22144_v4 }
 0x3ca   : > { %17707 = vmatprep.mubr.bf16.mxu1 %v4986_v40  ;;  %v5554_v40 = vld [vmem:[#allocation2 + $0x3a6] sm:$0xff] }
 0x3cb   : > { %v5616_v25 = vpack.c.bf16 %v5554_v40, %v5553_v21  ;;  %v5878_v40 = vld [vmem:[#allocation2 + $0x498] sm:$0xff]  ;;  %v5877_v21 = vld [vmem:[#allocation2 + $0x490] sm:$0xff] }
 0x3d1   : > { %17708 = vmatmul.mubr.bf16.vlgmr.msra.gmra.mrb[32].mxu1 %v4987_v12  ;;  %v5555_v12 = vld [vmem:[#allocation2 + $0x3ce] sm:$0xff] }
 0x3d2   : > { %17711 = vmatprep.mubr.bf16.mxu1 %v22147_v42  ;;  %17740 = vmatpush3.bf16.msra.mxu1 %v5317_v63  ;;  %v5323_v63 = vld [vmem:[#allocation4 + $0x3b0] sm:$0xff]  ;;  %v5617_v18 = vpack.c.bf16 %v5556_v3, %v5555_v12  ;;  %v6265_v12 = vld [vmem:[#allocation4 + $0x468] sm:$0xff] }
 0x3d3   : > { %17741 = vmatprep.subr.bf16.mxu1 %v5318_v35  ;;  %v6810_v3 = vld [vmem:[#allocation4 + $0x4b0] sm:$0xff] }
 0x3d6   : > { %17742 = vmatpush3.bf16.msra.mxu1 %v5318_v35  ;;  %v5947_v35 = vld [vmem:[#allocation4 + $0x408] sm:$0xff] }
 0x3d7   : > { %17743 = vmatprep.subr.bf16.mxu1 %v5319_v37 }
 0x3d9   : > { %17712 = vmatmul.mubr.bf16.gmra.mrb[36].mxu1 %v22150_v23 }
 0x3da   : > { %17715 = vmatprep.mubr.bf16.mxu1 %v22152_v16  ;;  %17744 = vmatpush3.bf16.msra.mxu1 %v5319_v37  ;;  %v5948_v37 = vld [vmem:[#allocation4 + $0x410] sm:$0xff] }
 0x3db   : > { %17745 = vmatprep.subr.bf16.mxu1 %v5320_v53 }
 0x3de   : > { %17746 = vmatpush3.bf16.msra.mxu1 %v5320_v53  ;;  %v5559_v53 = vld [vmem:[#allocation2 + $0x42e] sm:$0xff] }
 0x3df   : > { %17747 = vmatprep.subr.bf16.mxu1 %v5321_v34  ;;  %v5619_v29 = vpack.c.bf16 %v5560_v5, %v5559_v53  ;;  %v5881_v5 = vld [vmem:[#allocation2 + $0x4f0] sm:$0xff]  ;;  %v5886_v53 = vld [vmem:[#allocation2 + $0x558] sm:$0xff] }
 0x3e1   : > { %17716 = vmatmul.mubr.bf16.gmra.mrb[40].mxu1 %v22158_v38 }
 0x3e2   : > { %17719 = vmatprep.mubr.bf16.mxu1 %v4992_v55  ;;  %17748 = vmatpush3.bf16.msra.mxu1 %v5321_v34  ;;  %v5949_v34 = vld [vmem:[#allocation4 + $0x418] sm:$0xff]  ;;  %v5950_v55 = vld [vmem:[#allocation4 + $0x420] sm:$0xff] }
 0x3e3   : > { %17749 = vmatprep.subr.bf16.mxu1 %v5322_v60 }
 0x3e6   : > { %17750 = vmatpush3.bf16.msra.mxu1 %v5322_v60  ;;  %v5564_v60 = vld [vmem:[#allocation2 + $0x496] sm:$0xff] }
 0x3e7   : > { %17751 = vmatprep.subr.bf16.mxu1 %v5323_v63 }
 0x3e9   : > { %17720 = vmatmul.mubr.bf16.gmra.mrb[44].mxu1 %v22163_v39 }
 0x3ea   : > { %17723 = vmatprep.mubr.bf16.mxu1 %v21969_v17  ;;  %17752 = vmatpush3.bf16.msra.mxu1 %v5323_v63  ;;  %v5633_v17 = vld [vmem:[#allocation4 + $0x3c8] sm:$0xff]  ;;  %v5620_v63 = vpack.c.bf16 %v5562_v47, %v5561_v62  ;;  %v5885_v47 = vld [vmem:[#allocation2 + $0x550] sm:$0xff]  ;;  %v5890_v62 = vld [vmem:[#allocation2 + $0x5b8] sm:$0xff] }
 0x3eb   : > { %17753 = vmatprep.subr.bf16.mxu1 %v5324_v20 }
 0x3ee   : > { %17754 = vmatpush3.bf16.msra.mxu1 %v5324_v20  ;;  %v5621_v20 = vpack.c.bf16 %v5564_v60, %v5563_v27  ;;  %v5888_v60 = vld [vmem:[#allocation2 + $0x588] sm:$0xff] }
 0x3ef   : > { %17787 = vmatprep.subr.bf16.mxu1 %v5632_v9 }
 0x3f1   : > { %17724 = vmatmul.mubr.bf16.gmra.mrb[48].mxu1 %v21964_v8  ;;  %v5634_v8 = vld [vmem:[#allocation4 + $0x3d0] sm:$0xff] }
 0x3f2   : > { %17727 = vmatprep.mubr.bf16.mxu1 %v21988_v31  ;;  %v5636_v31 = vld [vmem:[#allocation4 + $0x3e0] sm:$0xff] }
 0x3f9   : > { %17728 = vmatmul.mubr.bf16.gmra.mrb[52].mxu1 %v21982_v46  ;;  %v5635_v46 = vld [vmem:[#allocation4 + $0x3d8] sm:$0xff] }
 0x3fa   : > { %17731 = vmatprep.mubr.bf16.mxu1 %v22010_v22  ;;  %v5638_v22 = vld [vmem:[#allocation4 + $0x3f0] sm:$0xff] }
 0x401   : > { %17732 = vmatmul.mubr.bf16.gmra.mrb[56].mxu1 %v22004_v41  ;;  %v5637_v41 = vld [vmem:[#allocation4 + $0x3e8] sm:$0xff] }
 0x402   : > { %17735 = vmatprep.mubr.bf16.mxu1 %v5000_v43  ;;  %v5266_v43 = vld [vmem:[#allocation2 + $0x5e2] sm:$0xff] }
 0x409   : > { %17736 = vmatmul.mubr.bf16.gmra.mrb[60].mxu1 %v5001_v11  ;;  %v22191_v11 = vpack.c.bf16 %v5265_v24, %v5264_v51  ;;  %v5582_v24 = vld [vmem:[#allocation2 + $0x646] sm:$0xff] }
 0x40a   : > { %17755 = vmatprep.mubr.bf16.mxu1 %v22085_v28  ;;  %v5267_v28 = vld [vmem:[#allocation2 + $0x5ea] sm:$0xff] }
 0x40b   : > { %v22195_v14 = vpack.c.bf16 %v5267_v28, %v5266_v43  ;;  %v6804_v28 = vld [vmem:[#allocation4 + $0x480] sm:$0xff] }
 0x40c   : > { %17931 = vmatprep.subr.bf16.mxu0 %v6804_v28 }
 0x40d   : > { %17932 = vmatpush3.bf16.msra.mxu0 %v6804_v28  ;;  %v22233_v28 = vld [vmem:[#allocation2 + $0x2e4] sm:$0xff] }
 0x411   : > { %17756 = vmatmul.mubr.bf16.vlgmr.msra.gmra.mrb[32].mxu1 %v22088_v6  ;;  %v5552_v6 = vld [vmem:[#allocation2 + $0x376] sm:$0xff] }
 0x412   : > { %17759 = vmatprep.mubr.bf16.mxu1 %v22090_v26  ;;  %17788 = vmatpush3.bf16.msra.mxu1 %v5632_v9  ;;  %v5615_v7 = vpack.c.bf16 %v5552_v6, %v5551_v48  ;;  %v5951_v9 = vld [vmem:[#allocation4 + $0x428] sm:$0xff]  ;;  %v6808_v48 = vld [vmem:[#allocation4 + $0x4a0] sm:$0xff] }
 0x413   : > { %17789 = vmatprep.subr.bf16.mxu1 %v5633_v17  ;;  %v6805_v6 = vld [vmem:[#allocation4 + $0x488] sm:$0xff] }
 0x414   : > { %17933 = vmatprep.subr.bf16.mxu0 %v6805_v6 }
 0x415   : > { %17934 = vmatpush3.bf16.msra.mxu0 %v6805_v6 }
 0x416   : > { %17790 = vmatpush3.bf16.msra.mxu1 %v5633_v17  ;;  %v5566_v17 = vld [vmem:[#allocation2 + $0x4c6] sm:$0xff] }
 0x417   : > { %17791 = vmatprep.subr.bf16.mxu1 %v5634_v8 }
 0x419   : > { %17760 = vmatmul.mubr.bf16.gmra.mrb[36].mxu1 %v22094_v45 }
 0x41a   : > { %17763 = vmatprep.mubr.bf16.mxu1 %v22096_v49  ;;  %17792 = vmatpush3.bf16.msra.mxu1 %v5634_v8  ;;  %v5952_v8 = vld [vmem:[#allocation4 + $0x430] sm:$0xff] }
 0x41b   : > { %17793 = vmatprep.subr.bf16.mxu1 %v5635_v46 }
 0x41e   : > { %17794 = vmatpush3.bf16.msra.mxu1 %v5635_v46  ;;  %v5565_v46 = vld [vmem:[#allocation2 + $0x4be] sm:$0xff] }
 0x41f   : > { %17795 = vmatprep.subr.bf16.mxu1 %v5636_v31 }
 0x421   : > { %17764 = vmatmul.mubr.bf16.gmra.mrb[40].mxu1 %v22100_v1 }
 0x422   : > { %17767 = vmatprep.mubr.bf16.mxu1 %v22102_v59  ;;  %17796 = vmatpush3.bf16.msra.mxu1 %v5636_v31  ;;  %v5622_v31 = vpack.c.bf16 %v5566_v17, %v5565_v46  ;;  %v5893_v17 = vld [vmem:[#allocation2 + $0x610] sm:$0xff]  ;;  %v5892_v46 = vld [vmem:[#allocation2 + $0x5e8] sm:$0xff] }
 0x423   : > { %17797 = vmatprep.subr.bf16.mxu1 %v5637_v41 }
 0x426   : > { %17798 = vmatpush3.bf16.msra.mxu1 %v5637_v41  ;;  %v5953_v41 = vld [vmem:[#allocation4 + $0x438] sm:$0xff] }
 0x427   : > { %17799 = vmatprep.subr.bf16.mxu1 %v5638_v22 }
 0x429   : > { %17768 = vmatmul.mubr.bf16.gmra.mrb[44].mxu1 %v22106_v44 }
 0x42a   : > { %17771 = vmatprep.mubr.bf16.mxu1 %v22108_v52  ;;  %17800 = vmatpush3.bf16.msra.mxu1 %v5638_v22  ;;  %v6260_v22 = vld [vmem:[#allocation4 + $0x440] sm:$0xff] }
 0x42b   : > { %17801 = vmatprep.subr.bf16.mxu1 %v5639_v54 }
 0x42e   : > { %17802 = vmatpush3.bf16.msra.mxu1 %v5639_v54  ;;  %v5579_v54 = vld [vmem:[#allocation2 + $0x60e] sm:$0xff] }
 0x42f   : > { %17835 = vmatprep.subr.bf16.mxu1 %v5946_v58 }
 0x431   : > { %17772 = vmatmul.mubr.bf16.gmra.mrb[48].mxu1 %v22112_v57 }
 0x432   : > { %17775 = vmatprep.mubr.bf16.mxu1 %v22114_v33 }
 0x439   : > { %17776 = vmatmul.mubr.bf16.gmra.mrb[52].mxu1 %v22118_v36 }
 0x43a   : > { %17779 = vmatprep.mubr.bf16.mxu1 %v22120_v50 }
 0x441   : > { %17780 = vmatmul.mubr.bf16.gmra.mrb[56].mxu1 %v22124_v19 }
 0x442   : > { %17783 = vmatprep.mubr.bf16.mxu1 %v22191_v11 }
 0x449   : > { %17784 = vmatmul.mubr.bf16.gmra.mrb[60].mxu1 %v22195_v14 }
 0x44a   : > { %17803 = vmatprep.mubr.bf16.mxu1 %v5615_v7  ;;  %v6263_v7 = vld [vmem:[#allocation4 + $0x458] sm:$0xff] }
 0x451   : > { %17804 = vmatmul.mubr.bf16.vlgmr.msra.gmra.mrb[32].mxu1 %v5616_v25  ;;  %v5935_v25 = vpack.c.bf16 %v5878_v40, %v5877_v21 }
 0x452   : > { %17807 = vmatprep.mubr.bf16.mxu1 %v5617_v18  ;;  %17836 = vmatpush3.bf16.msra.mxu1 %v5946_v58  ;;  %v5580_v58 = vld [vmem:[#allocation2 + $0x616] sm:$0xff] }
 0x453   : > { %17837 = vmatprep.subr.bf16.mxu1 %v5947_v35  ;;  %v5629_v51 = vpack.c.bf16 %v5580_v58, %v5579_v54  ;;  %v6266_v18 = vld [vmem:[#allocation4 + $0x470] sm:$0xff]  ;;  %v5895_v54 = vld [vmem:[#allocation2 + $0x640] sm:$0xff]  ;;  %v5896_v58 = vld [vmem:[#allocation2 + $0x648] sm:$0xff] }
 0x456   : > { %17838 = vmatpush3.bf16.msra.mxu1 %v5947_v35  ;;  %v5882_v35 = vld [vmem:[#allocation2 + $0x4f8] sm:$0xff] }
 0x457   : > { %17839 = vmatprep.subr.bf16.mxu1 %v5948_v37  ;;  %v5937_v56 = vpack.c.bf16 %v5882_v35, %v5881_v5  ;;  %v6557_v5 = vld [vmem:[%s21397_s21] sm:$0xff] }
 0x459   : > { %17808 = vmatmul.mubr.bf16.gmra.mrb[36].mxu1 %v5618_v2  ;;  %v6267_v2 = vld [vmem:[#allocation4 + $0x478] sm:$0xff] }
 0x45a   : > { %17811 = vmatprep.mubr.bf16.mxu1 %v5619_v29  ;;  %17840 = vmatpush3.bf16.msra.mxu1 %v5948_v37  ;;  %v5883_v29 = vld [vmem:[#allocation2 + $0x520] sm:$0xff] }
 0x45b   : > { %17841 = vmatprep.subr.bf16.mxu1 %v5949_v34 }
 0x45e   : > { %17842 = vmatpush3.bf16.msra.mxu1 %v5949_v34 }
 0x45f   : > { %17843 = vmatprep.subr.bf16.mxu1 %v5950_v55 }
 0x461   : > { %17812 = vmatmul.mubr.bf16.gmra.mrb[40].mxu1 %v5620_v63  ;;  %v5887_v63 = vld [vmem:[#allocation2 + $0x580] sm:$0xff] }
 0x462   : > { %17815 = vmatprep.mubr.bf16.mxu1 %v5621_v20  ;;  %17844 = vmatpush3.bf16.msra.mxu1 %v5950_v55  ;;  %v5939_v55 = vpack.c.bf16 %v5886_v53, %v5885_v47  ;;  %v5940_v27 = vpack.c.bf16 %v5888_v60, %v5887_v63  ;;  %v5889_v20 = vld [vmem:[#allocation2 + $0x5b0] sm:$0xff] }
 0x463   : > { %17845 = vmatprep.subr.bf16.mxu1 %v5951_v9 }
 0x466   : > { %17846 = vmatpush3.bf16.msra.mxu1 %v5951_v9  ;;  %v5941_v9 = vpack.c.bf16 %v5890_v62, %v5889_v20 }
 0x467   : > { %17847 = vmatprep.subr.bf16.mxu1 %v5952_v8 }
 0x469   : > { %17816 = vmatmul.mubr.bf16.gmra.mrb[44].mxu1 %v5622_v31  ;;  %v5891_v31 = vld [vmem:[#allocation2 + $0x5e0] sm:$0xff] }
 0x46a   : > { %17819 = vmatprep.mubr.bf16.mxu1 %v22008_v30  ;;  %17848 = vmatpush3.bf16.msra.mxu1 %v5952_v8  ;;  %v5581_v30 = vld [vmem:[#allocation2 + $0x63e] sm:$0xff] }
 0x46b   : > { %17849 = vmatprep.subr.bf16.mxu1 %v5953_v41  ;;  %v5630_v43 = vpack.c.bf16 %v5582_v24, %v5581_v30  ;;  %v5894_v8 = vld [vmem:[#allocation2 + $0x618] sm:$0xff] }
 0x46c   : > { %v22230_v30 = vld [vmem:[#allocation2 + $0x2b4] sm:$0xff] }
 0x46e   : > { %17850 = vmatpush3.bf16.msra.mxu1 %v5953_v41  ;;  %v5943_v41 = vpack.c.bf16 %v5894_v8, %v5893_v17 }
 0x46f   : > { %17883 = vmatprep.subr.bf16.mxu1 %v6260_v22 }
 0x471   : > { %17820 = vmatmul.mubr.bf16.gmra.mrb[48].mxu1 %v22014_v10  ;;  %v6806_v10 = vld [vmem:[#allocation4 + $0x490] sm:$0xff] }
 0x472   : > { %17823 = vmatprep.mubr.bf16.mxu1 %v22044_v15  ;;  %v6261_v15 = vld [vmem:[#allocation4 + $0x448] sm:$0xff]  ;;  %17935 = vmatprep.subr.bf16.mxu0 %v6806_v10 }
 0x473   : > { %17936 = vmatpush3.bf16.msra.mxu0 %v6806_v10  ;;  %v7119_v10 = vld [vmem:[#allocation4 + $0x4c8] sm:$0xff] }
 0x479   : > { %17824 = vmatmul.mubr.bf16.gmra.mrb[52].mxu1 %v22049_v0  ;;  %v6807_v0 = vld [vmem:[#allocation4 + $0x498] sm:$0xff] }
 0x47a   : > { %17827 = vmatprep.mubr.bf16.mxu1 %v22140_v13  ;;  %v6262_v13 = vld [vmem:[#allocation4 + $0x450] sm:$0xff]  ;;  %17937 = vmatprep.subr.bf16.mxu0 %v6807_v0 }
 0x47b   : > { %17938 = vmatpush3.bf16.msra.mxu0 %v6807_v0  ;;  %v7121_v0 = vld [vmem:[#allocation4 + $0x4d8] sm:$0xff] }
 0x47c   : > { %17939 = vmatprep.subr.bf16.mxu0 %v6808_v48 }
 0x47f   : > { %17940 = vmatpush3.bf16.msra.mxu0 %v6808_v48  ;;  %v7124_v48 = vld [vmem:[#allocation4 + $0x4f0] sm:$0xff] }
 0x481   : > { %17828 = vmatmul.mubr.bf16.gmra.mrb[56].mxu1 %v22144_v4  ;;  %v5874_v4 = vld [vmem:[#allocation2 + $0x438] sm:$0xff] }
 0x482   : > { %17831 = vmatprep.mubr.bf16.mxu1 %v5629_v51  ;;  %v5944_v51 = vpack.c.bf16 %v5896_v58, %v5895_v54  ;;  %v6561_v58 = vld [vmem:[%s21397_s21 + $0x20] sm:$0xff] }
 0x489   : > { %17832 = vmatmul.mubr.bf16.gmra.mrb[60].mxu1 %v5630_v43  ;;  %v6729_v43 = vld [vmem:[#allocation2 + $0x2dc] sm:$0xff] }
 0x48a   : > { %17851 = vmatprep.mubr.bf16.mxu1 %v22147_v42  ;;  %v5933_v42 = vpack.c.bf16 %v5874_v4, %v22156_v32  ;;  %v6811_v32 = vld [vmem:[#allocation4 + $0x4b8] sm:$0xff]  ;;  %v6790_v6 = vpack.c.bf16 %v22233_v28, %v6729_v43  ;;  %v7123_v4 = vld [vmem:[#allocation4 + $0x4e8] sm:$0xff] }
 0x491   : > { %17852 = vmatmul.mubr.bf16.vlgmr.msra.gmra.mrb[32].mxu1 %v22150_v23  ;;  %v6809_v23 = vld [vmem:[#allocation4 + $0x4a8] sm:$0xff] }
 0x492   : > { %17855 = vmatprep.mubr.bf16.mxu1 %v22152_v16  ;;  %17884 = vmatpush3.bf16.msra.mxu1 %v6260_v22  ;;  %v6264_v16 = vld [vmem:[#allocation4 + $0x460] sm:$0xff]  ;;  %v5942_v22 = vpack.c.bf16 %v5892_v46, %v5891_v31  ;;  %v6563_v31 = vld [vmem:[%s21397_s21 + $0x30] sm:$0xff] }
 0x493   : > { %17885 = vmatprep.subr.bf16.mxu1 %v6261_v15  ;;  %17941 = vmatprep.subr.bf16.mxu0 %v6809_v23 }
 0x494   : > { %17942 = vmatpush3.bf16.msra.mxu0 %v6809_v23  ;;  %v22239_v23 = vld [vmem:[#allocation8 + $0x1] ss:$0 sm:$0xff] }
 0x495   : > { %17943 = vmatprep.subr.bf16.mxu0 %v6810_v3 }
 0x496   : > { %17886 = vmatpush3.bf16.msra.mxu1 %v6261_v15  ;;  %v7120_v15 = vld [vmem:[#allocation4 + $0x4d0] sm:$0xff] }
 0x497   : > { %17887 = vmatprep.subr.bf16.mxu1 %v6262_v13 }
 0x498   : > { %17944 = vmatpush3.bf16.msra.mxu0 %v6810_v3 }
 0x499   : > { %17856 = vmatmul.mubr.bf16.gmra.mrb[36].mxu1 %v22158_v38  ;;  %v5880_v38 = vld [vmem:[#allocation2 + $0x4c8] sm:$0xff]  ;;  %17945 = vmatprep.subr.bf16.mxu0 %v6811_v32 }
 0x49a   : > { %17859 = vmatprep.mubr.bf16.mxu1 %v5933_v42  ;;  %17888 = vmatpush3.bf16.msra.mxu1 %v6262_v13  ;;  %v5936_v37 = vpack.c.bf16 %v5880_v38, %v5879_v61  ;;  %v7122_v13 = vld [vmem:[#allocation4 + $0x4e0] sm:$0xff]  ;;  %v7125_v42 = vld [vmem:[#allocation4 + $0x4f8] sm:$0xff] }
 0x49b   : > { %17889 = vmatprep.subr.bf16.mxu1 %v6263_v7 }
 0x49c   : > { %17946 = vmatpush3.bf16.msra.mxu0 %v6811_v32 }
 0x49e   : > { %17890 = vmatpush3.bf16.msra.mxu1 %v6263_v7  ;;  %v22236_v7 = vld [vmem:[#allocation4 + $0x500] sm:$0xff] }
 0x49f   : > { %17891 = vmatprep.subr.bf16.mxu1 %v6264_v16 }
 0x4a1   : > { %17860 = vmatmul.mubr.bf16.gmra.mrb[40].mxu1 %v22163_v39  ;;  %v5884_v39 = vld [vmem:[#allocation2 + $0x528] sm:$0xff] }
 0x4a2   : > { %17863 = vmatprep.mubr.bf16.mxu1 %v5935_v25  ;;  %17892 = vmatpush3.bf16.msra.mxu1 %v6264_v16  ;;  %v5938_v34 = vpack.c.bf16 %v5884_v39, %v5883_v29  ;;  %v6560_v39 = vld [vmem:[%s21397_s21 + $0x18] sm:$0xff] }
 0x4a3   : > { %17893 = vmatprep.subr.bf16.mxu1 %v6265_v12 }
 0x4a6   : > { %17894 = vmatpush3.bf16.msra.mxu1 %v6265_v12 }
 0x4a7   : > { %17895 = vmatprep.subr.bf16.mxu1 %v6266_v18 }
 0x4a9   : > { %17864 = vmatmul.mubr.bf16.gmra.mrb[44].mxu1 %v5936_v37 }
 0x4aa   : > { %17867 = vmatprep.mubr.bf16.mxu1 %v5937_v56  ;;  %17896 = vmatpush3.bf16.msra.mxu1 %v6266_v18  ;;  %v6559_v18 = vld [vmem:[%s21397_s21 + $0x10] sm:$0xff] }
 0x4ab   : > { %17897 = vmatprep.subr.bf16.mxu1 %v6267_v2 }
 0x4ae   : > { %17898 = vmatpush3.bf16.msra.mxu1 %v6267_v2 }
 0x4b1   : > { %17868 = vmatmul.mubr.bf16.gmra.mrb[48].mxu1 %v5938_v34  ;;  %v6558_v34 = vld [vmem:[%s21397_s21 + $0x8] sm:$0xff] }
 0x4b2   : > { %17871 = vmatprep.mubr.bf16.mxu1 %v5939_v55 }
 0x4b9   : > { %17872 = vmatmul.mubr.bf16.gmra.mrb[52].mxu1 %v5940_v27 }
 0x4ba   : > { %17875 = vmatprep.mubr.bf16.mxu1 %v5941_v9 }
 0x4c1   : > { %17876 = vmatmul.mubr.bf16.gmra.mrb[56].mxu1 %v5942_v22 }
 0x4c2   : > { %17879 = vmatprep.mubr.bf16.mxu1 %v5943_v41 }
 0x4c9   : > { %17880 = vmatmul.mubr.bf16.gmra.mrb[60].mxu1 %v5944_v51 }
 0x4ca   : > { %17899 = vmatprep.mubr.bf16.mxu1 %v22090_v26  ;;  %v6207_v26 = vld [vmem:[#allocation2 + $0x612] sm:$0xff] }
 0x4d1   : > { %17900 = vmatmul.mubr.bf16.vlgmr.msra.gmra.mrb[32].mxu1 %v22094_v45  ;;  %v6208_v45 = vld [vmem:[#allocation2 + $0x61a] sm:$0xff] }
 0x4d2   : > { %17903 = vmatprep.mubr.bf16.mxu1 %v22096_v49  ;;  %v6257_v49 = vpack.c.bf16 %v6208_v45, %v6207_v26  ;;  %v6564_v45 = vld [vmem:[%s21397_s21 + $0x38] sm:$0xff] }
 0x4d9   : > { %17904 = vmatmul.mubr.bf16.gmra.mrb[36].mxu1 %v22100_v1  ;;  %v6209_v1 = vld [vmem:[#allocation2 + $0x642] sm:$0xff] }
 0x4da   : > { %17907 = vmatprep.mubr.bf16.mxu1 %v22102_v59  ;;  %v6210_v59 = vld [vmem:[#allocation2 + $0x64a] sm:$0xff] }
 0x4e1   : > { %17908 = vmatmul.mubr.bf16.gmra.mrb[40].mxu1 %v22106_v44  ;;  %v6258_v44 = vpack.c.bf16 %v6210_v59, %v6209_v1 }
 0x4e2   : > { %17911 = vmatprep.mubr.bf16.mxu1 %v22108_v52  ;;  %v6723_v52 = vld [vmem:[#allocation2 + $0x24c] sm:$0xff] }
 0x4e9   : > { %17912 = vmatmul.mubr.bf16.gmra.mrb[44].mxu1 %v22112_v57  ;;  %v22224_v57 = vld [vmem:[#allocation2 + $0x254] sm:$0xff] }
 0x4ea   : > { %17915 = vmatprep.mubr.bf16.mxu1 %v22114_v33  ;;  %v6787_v33 = vpack.c.bf16 %v22224_v57, %v6723_v52 }
 0x4ec   : > { %17947 = vmatprep.mubr.bf16.mxu0 %v6787_v33 }
 0x4f1   : > { %17916 = vmatmul.mubr.bf16.gmra.mrb[48].mxu1 %v22118_v36  ;;  %v6725_v36 = vld [vmem:[#allocation2 + $0x27c] sm:$0xff] }
 0x4f2   : > { %17919 = vmatprep.mubr.bf16.mxu1 %v22120_v50  ;;  %v22227_v50 = vld [vmem:[#allocation2 + $0x284] sm:$0xff] }
 0x4f9   : > { %17920 = vmatmul.mubr.bf16.gmra.mrb[52].mxu1 %v22124_v19  ;;  %v6788_v19 = vpack.c.bf16 %v22227_v50, %v6725_v36 }
 0x4fa   : > { %17923 = vmatprep.mubr.bf16.mxu1 %v22191_v11  ;;  %v7118_v11 = vld [vmem:[#allocation4 + $0x4c0] sm:$0xff] }
 0x4fb   : > { %17948 = vmatmul.mubr.bf16.vlgmr.msra.gmra.mrb[32].mxu0 %v6788_v19  ;;  %17979 = vmatprep.subr.bf16.mxu0 %v7118_v11 }
 0x4fc   : > { %17980 = vmatpush3.bf16.msra.mxu0 %v7118_v11 }
 0x4fd   : > { %17981 = vmatprep.subr.bf16.mxu0 %v7119_v10 }
 0x500   : > { %17982 = vmatpush3.bf16.msra.mxu0 %v7119_v10 }
 0x501   : > { %17924 = vmatmul.mubr.bf16.gmra.mrb[56].mxu1 %v22195_v14  ;;  %v6727_v14 = vld [vmem:[#allocation2 + $0x2ac] sm:$0xff]  ;;  %17983 = vmatprep.subr.bf16.mxu0 %v7120_v15 }
 0x502   : > { %17927 = vmatprep.mubr.bf16.mxu1 %v6257_v49  ;;  %v6789_v24 = vpack.c.bf16 %v22230_v30, %v6727_v14 }
 0x504   : > { %17951 = vmatprep.mubr.bf16.mxu0 %v6789_v24  ;;  %17984 = vmatpush3.bf16.msra.mxu0 %v7120_v15 }
 0x505   : > { %17952 = vmatmul.mubr.bf16.gmra.mrb[36].mxu0 %v6790_v6  ;;  %17985 = vmatprep.subr.bf16.mxu0 %v7121_v0 }
 0x508   : > { %17986 = vmatpush3.bf16.msra.mxu0 %v7121_v0 }
 0x509   : > { %17928 = vmatmul.mubr.bf16.gmra.mrb[60].mxu1 %v6258_v44  ;;  %17987 = vmatprep.subr.bf16.mxu0 %v7122_v13  ;;  %v6562_v44 = vld [vmem:[%s21397_s21 + $0x28] sm:$0xff] }
 0x50c   : > { %17988 = vmatpush3.bf16.msra.mxu0 %v7122_v13 }
 0x50d   : > { %17989 = vmatprep.subr.bf16.mxu0 %v7123_v4 }
 0x510   : > { %17990 = vmatpush3.bf16.msra.mxu0 %v7123_v4 }
 0x511   : > { %17991 = vmatprep.subr.bf16.mxu0 %v7124_v48 }
 0x514   : > { %17992 = vmatpush3.bf16.msra.mxu0 %v7124_v48 }
 0x515   : > { %17993 = vmatprep.subr.bf16.mxu0 %v7125_v42 }
 0x518   : > { %17994 = vmatpush3.bf16.msra.mxu0 %v7125_v42 }
 0x519   : > { %18027 = vmatprep.subr.bf16.mxu0 %v22236_v7 }
 0x5a4   : > { %v17901_v16 = vpop.f32.mrb[32].mxu1 }
 0x5a5   : > { %v19307_v40 = vadd.f32 %v17901_v16, %v22239_v23  ;;  %v6302_v3 = vpop.f32.mrb[33].mxu1  ;;  %v6567_v16 = vld [vmem:[%s21397_s21 + $0x50] sm:$0xff] }
 0x5a6   : > { %v19308_v21 = vadd.f32 %v22239_v23, %v6302_v3  ;;  %v17902_v25 = vpop.f32.mrb[34].mxu1 }
 0x5a7   : > { %v22243_v12 = vmax.f32 %v19307_v40, 0.0  ;;  %v19309_v32 = vadd.f32 %v17902_v25, %v22239_v23  ;;  %v6305_v38 = vpop.f32.mrb[35].mxu1  ;;  %v6565_v25 = vld [vmem:[%s21397_s21 + $0x40] sm:$0xff] }
 0x5a8   : > { %v22247_v35 = vmax.f32 %v19308_v21, 0.0  ;;  %v19310_v61 = vadd.f32 %v22239_v23, %v6305_v38 }
 0x5a9   : > { %v6591_v37 = vadd.f32 %v6559_v18, %v22243_v12  ;;  %6655 = vst [vmem:[#allocation2 + $0x340] sm:$0xff] %v22243_v12  ;;  %v22253_v56 = vmax.f32 %v19309_v32, 0.0  ;;  %v6568_v18 = vld [vmem:[%s21397_s21 + $0x58] sm:$0xff] }
 0x5aa   : > { %v6589_v2 = vadd.f32 %v6557_v5, %v22247_v35  ;;  %6653 = vst [vmem:[#allocation2 + $0x310] sm:$0xff] %v22247_v35  ;;  %v22258_v53 = vmax.f32 %v19310_v61, 0.0 }
 0x5ab   : > { %6623 = vst [vmem:[%s21397_s21 + $0x10] sm:$0xff] %v6591_v37  ;;  %v6592_v29 = vadd.f32 %v6560_v39, %v22253_v56  ;;  %6656 = vst [vmem:[#allocation2 + $0x348] sm:$0xff] %v22253_v56 }
 0x5ac   : > { %6621 = vst [vmem:[%s21397_s21] sm:$0xff] %v6589_v2  ;;  %v6590_v55 = vadd.f32 %v6558_v34, %v22258_v53  ;;  %6654 = vst [vmem:[#allocation2 + $0x318] sm:$0xff] %v22258_v53  ;;  %v17905_v60 = vpop.f32.mrb[36].mxu1  ;;  %v6566_v2 = vld [vmem:[%s21397_s21 + $0x48] sm:$0xff] }
 0x5ad   : > { %6624 = vst [vmem:[%s21397_s21 + $0x18] sm:$0xff] %v6592_v29  ;;  %v19311_v63 = vadd.f32 %v17905_v60, %v22239_v23  ;;  %v6318_v27 = vpop.f32.mrb[37].mxu1 }
 0x5ae   : > { %6622 = vst [vmem:[%s21397_s21 + $0x8] sm:$0xff] %v6590_v55  ;;  %v19312_v20 = vadd.f32 %v22239_v23, %v6318_v27  ;;  %v17906_v9 = vpop.f32.mrb[38].mxu1 }
 0x5af   : > { %v22275_v17 = vmax.f32 %v19311_v63, 0.0  ;;  %v19313_v8 = vadd.f32 %v17906_v9, %v22239_v23  ;;  %v6321_v46 = vpop.f32.mrb[39].mxu1 }
 0x5b0   : > { %v22279_v41 = vmax.f32 %v19312_v20, 0.0  ;;  %v19314_v22 = vadd.f32 %v22239_v23, %v6321_v46  ;;  %v6733_v24 = vld [vmem:[#allocation2 + $0x33c] sm:$0xff] }
 0x5b1   : > { %v6595_v54 = vadd.f32 %v6563_v31, %v22275_v17  ;;  %6659 = vst [vmem:[#allocation2 + $0x3a0] sm:$0xff] %v22275_v17  ;;  %v22285_v51 = vmax.f32 %v19313_v8, 0.0  ;;  %v6731_v52 = vld [vmem:[#allocation2 + $0x30c] sm:$0xff] }
 0x5b2   : > { %v6593_v26 = vadd.f32 %v6561_v58, %v22279_v41  ;;  %6657 = vst [vmem:[#allocation2 + $0x370] sm:$0xff] %v22279_v41  ;;  %v22290_v49 = vmax.f32 %v19314_v22, 0.0  ;;  %v22292_v1 = vld [vmem:[#allocation2 + $0x344] sm:$0xff] }
 0x5b3   : > { %6627 = vst [vmem:[%s21397_s21 + $0x30] sm:$0xff] %v6595_v54  ;;  %v6596_v59 = vadd.f32 %v6564_v45, %v22285_v51  ;;  %6660 = vst [vmem:[#allocation2 + $0x3a8] sm:$0xff] %v22285_v51  ;;  %v22298_v33 = vld [vmem:[#allocation2 + $0x314] sm:$0xff]  ;;  %v22313_v15 = vpack.c.bf16 %v22292_v1, %v6733_v24 }
 0x5b4   : > { %6625 = vst [vmem:[%s21397_s21 + $0x20] sm:$0xff] %v6593_v26  ;;  %v6594_v19 = vadd.f32 %v6562_v44, %v22290_v49  ;;  %6658 = vst [vmem:[#allocation2 + $0x378] sm:$0xff] %v22290_v49  ;;  %v17909_v11 = vpop.f32.mrb[40].mxu1  ;;  %v22306_v14 = vpack.c.bf16 %v22298_v33, %v6731_v52  ;;  %v6571_v45 = vld [vmem:[%s21397_s21 + $0x70] sm:$0xff] }
 0x5b5   : > { %6628 = vst [vmem:[%s21397_s21 + $0x38] sm:$0xff] %v6596_v59  ;;  %v19315_v6 = vadd.f32 %v17909_v11, %v22239_v23  ;;  %v6334_v10 = vpop.f32.mrb[41].mxu1 }
 0x5b6   : > { %6626 = vst [vmem:[%s21397_s21 + $0x28] sm:$0xff] %v6594_v19  ;;  %v19316_v0 = vadd.f32 %v22239_v23, %v6334_v10  ;;  %v17910_v13 = vpop.f32.mrb[42].mxu1  ;;  %17955 = vmatprep.mubr.bf16.mxu0 %v22306_v14  ;;  %v6569_v19 = vld [vmem:[%s21397_s21 + $0x60] sm:$0xff] }
 0x5b7   : > { %v22318_v4 = vmax.f32 %v19315_v6, 0.0  ;;  %v19317_v48 = vadd.f32 %v17910_v13, %v22239_v23  ;;  %v6337_v42 = vpop.f32.mrb[43].mxu1  ;;  %17956 = vmatmul.mubr.bf16.gmra.mrb[40].mxu0 %v22313_v15  ;;  %v6572_v6 = vld [vmem:[%s21397_s21 + $0x78] sm:$0xff] }
 0x5b8   : > { %v6533_v40 = vmax.f32 %v19316_v0, 0.0  ;;  %v19318_v3 = vadd.f32 %v22239_v23, %v6337_v42  ;;  %v6737_v27 = vld [vmem:[#allocation2 + $0x39c] sm:$0xff] }
 0x5b9   : > { %v6599_v21 = vadd.f32 %v6567_v16, %v22318_v4  ;;  %6663 = vst [vmem:[#allocation2 + $0x400] sm:$0xff] %v22318_v4  ;;  %v22327_v32 = vmax.f32 %v19317_v48, 0.0  ;;  %v6735_v39 = vld [vmem:[#allocation2 + $0x36c] sm:$0xff] }
 0x5ba   : > { %v6597_v38 = vadd.f32 %v6565_v25, %v6533_v40  ;;  %6661 = vst [vmem:[#allocation2 + $0x3d0] sm:$0xff] %v6533_v40  ;;  %v6534_v61 = vmax.f32 %v19318_v3, 0.0  ;;  %v22330_v37 = vld [vmem:[#allocation2 + $0x3a4] sm:$0xff]  ;;  %v6570_v48 = vld [vmem:[%s21397_s21 + $0x68] sm:$0xff] }
 0x5bb   : > { %6631 = vst [vmem:[%s21397_s21 + $0x50] sm:$0xff] %v6599_v21  ;;  %v6600_v5 = vadd.f32 %v6568_v18, %v22327_v32  ;;  %6664 = vst [vmem:[#allocation2 + $0x408] sm:$0xff] %v22327_v32  ;;  %v22336_v29 = vld [vmem:[#allocation2 + $0x374] sm:$0xff]  ;;  %v22349_v46 = vpack.c.bf16 %v22330_v37, %v6737_v27 }
 0x5bc   : > { %6629 = vst [vmem:[%s21397_s21 + $0x40] sm:$0xff] %v6597_v38  ;;  %v6598_v55 = vadd.f32 %v6566_v2, %v6534_v61  ;;  %6662 = vst [vmem:[#allocation2 + $0x3d8] sm:$0xff] %v6534_v61  ;;  %v17913_v60 = vpop.f32.mrb[44].mxu1  ;;  %v22342_v63 = vpack.c.bf16 %v22336_v29, %v6735_v39  ;;  %v22344_v20 = vpack.c.bf16 %v6534_v61, %v6533_v40 }
 0x5bd   : > { %6632 = vst [vmem:[%s21397_s21 + $0x58] sm:$0xff] %v6600_v5  ;;  %v19319_v9 = vadd.f32 %v17913_v60, %v22239_v23  ;;  %v6350_v8 = vpop.f32.mrb[45].mxu1 }
 0x5be   : > { %6630 = vst [vmem:[%s21397_s21 + $0x48] sm:$0xff] %v6598_v55  ;;  %v19320_v31 = vadd.f32 %v22239_v23, %v6350_v8  ;;  %v17914_v22 = vpop.f32.mrb[46].mxu1  ;;  %17959 = vmatprep.mubr.bf16.mxu0 %v22342_v63  ;;  %v6575_v8 = vld [vmem:[%s21397_s21 + $0x90] sm:$0xff] }
 0x5bf   : > { %v6539_v54 = vmax.f32 %v19319_v9, 0.0  ;;  %v19321_v58 = vadd.f32 %v17914_v22, %v22239_v23  ;;  %v6353_v26 = vpop.f32.mrb[47].mxu1  ;;  %17960 = vmatmul.mubr.bf16.gmra.mrb[44].mxu0 %v22349_v46 }
 0x5c0   : > { %v6537_v59 = vmax.f32 %v19320_v31, 0.0  ;;  %v19322_v44 = vadd.f32 %v22239_v23, %v6353_v26  ;;  %v6741_v38 = vld [vmem:[#allocation2 + $0x3fc] sm:$0xff] }
 0x5c1   : > { %v6603_v52 = vadd.f32 %v6571_v45, %v6539_v54  ;;  %6667 = vst [vmem:[#allocation2 + $0x460] sm:$0xff] %v6539_v54  ;;  %v6540_v11 = vmax.f32 %v19321_v58, 0.0  ;;  %v6739_v42 = vld [vmem:[#allocation2 + $0x3cc] sm:$0xff] }
 0x5c2   : > { %v6601_v24 = vadd.f32 %v6569_v19, %v6537_v59  ;;  %6665 = vst [vmem:[#allocation2 + $0x430] sm:$0xff] %v6537_v59  ;;  %v6538_v10 = vmax.f32 %v19322_v44, 0.0  ;;  %v22360_v0 = vld [vmem:[#allocation2 + $0x404] sm:$0xff] }
 0x5c3   : > { %6635 = vst [vmem:[%s21397_s21 + $0x70] sm:$0xff] %v6603_v52  ;;  %v6604_v13 = vadd.f32 %v6572_v6, %v6540_v11  ;;  %6668 = vst [vmem:[#allocation2 + $0x468] sm:$0xff] %v6540_v11  ;;  %v22364_v16 = vld [vmem:[#allocation2 + $0x3d4] sm:$0xff]  ;;  %v22366_v40 = vpack.c.bf16 %v6540_v11, %v6539_v54  ;;  %v22377_v2 = vpack.c.bf16 %v22360_v0, %v6741_v38  ;;  %v6573_v58 = vld [vmem:[%s21397_s21 + $0x80] sm:$0xff] }
 0x5c4   : > { %6633 = vst [vmem:[%s21397_s21 + $0x60] sm:$0xff] %v6601_v24  ;;  %v6602_v3 = vadd.f32 %v6570_v48, %v6538_v10  ;;  %6666 = vst [vmem:[#allocation2 + $0x438] sm:$0xff] %v6538_v10  ;;  %v17917_v21 = vpop.f32.mrb[48].mxu1  ;;  %v22370_v25 = vpack.c.bf16 %v22364_v16, %v6739_v42  ;;  %v22372_v18 = vpack.c.bf16 %v6538_v10, %v6537_v59  ;;  %v6576_v59 = vld [vmem:[%s21397_s21 + $0x98] sm:$0xff]  ;;  %v6574_v11 = vld [vmem:[%s21397_s21 + $0x88] sm:$0xff] }
 0x5c5   : > { %6636 = vst [vmem:[%s21397_s21 + $0x78] sm:$0xff] %v6604_v13  ;;  %v19323_v61 = vadd.f32 %v17917_v21, %v22239_v23  ;;  %v6366_v5 = vpop.f32.mrb[49].mxu1 }
 0x5c6   : > { %6634 = vst [vmem:[%s21397_s21 + $0x68] sm:$0xff] %v6602_v3  ;;  %v19324_v39 = vadd.f32 %v22239_v23, %v6366_v5  ;;  %v17918_v55 = vpop.f32.mrb[50].mxu1  ;;  %17963 = vmatprep.mubr.bf16.mxu0 %v22370_v25 }
 0x5c7   : > { %v6543_v60 = vmax.f32 %v19323_v61, 0.0  ;;  %v19325_v27 = vadd.f32 %v17918_v55, %v22239_v23  ;;  %v6369_v9 = vpop.f32.mrb[51].mxu1  ;;  %17964 = vmatmul.mubr.bf16.gmra.mrb[48].mxu0 %v22377_v2 }
 0x5c8   : > { %v6541_v31 = vmax.f32 %v19324_v39, 0.0  ;;  %v19326_v22 = vadd.f32 %v22239_v23, %v6369_v9  ;;  %v6745_v3 = vld [vmem:[#allocation2 + $0x45c] sm:$0xff] }
 0x5c9   : > { %v6607_v54 = vadd.f32 %v6575_v8, %v6543_v60  ;;  %6671 = vst [vmem:[#allocation2 + $0x4c0] sm:$0xff] %v6543_v60  ;;  %v6544_v26 = vmax.f32 %v19325_v27, 0.0  ;;  %v6743_v24 = vld [vmem:[#allocation2 + $0x42c] sm:$0xff]  ;;  %v6579_v8 = vld [vmem:[%s21397_s21 + $0xb0] sm:$0xff] }
 0x5ca   : > { %v6605_v45 = vadd.f32 %v6573_v58, %v6541_v31  ;;  %6669 = vst [vmem:[#allocation2 + $0x490] sm:$0xff] %v6541_v31  ;;  %v6542_v44 = vmax.f32 %v19326_v22, 0.0  ;;  %v22388_v52 = vld [vmem:[#allocation2 + $0x464] sm:$0xff] }
 0x5cb   : > { %6639 = vst [vmem:[%s21397_s21 + $0x90] sm:$0xff] %v6607_v54  ;;  %v6608_v19 = vadd.f32 %v6576_v59, %v6544_v26  ;;  %6672 = vst [vmem:[#allocation2 + $0x4c8] sm:$0xff] %v6544_v26  ;;  %v22392_v6 = vld [vmem:[#allocation2 + $0x434] sm:$0xff]  ;;  %v22394_v10 = vpack.c.bf16 %v6544_v26, %v6543_v60  ;;  %v22405_v5 = vpack.c.bf16 %v22388_v52, %v6745_v3  ;;  %v6577_v58 = vld [vmem:[%s21397_s21 + $0xa0] sm:$0xff] }
 0x5cc   : > { %6637 = vst [vmem:[%s21397_s21 + $0x80] sm:$0xff] %v6605_v45  ;;  %v6606_v13 = vadd.f32 %v6574_v11, %v6542_v44  ;;  %6670 = vst [vmem:[#allocation2 + $0x498] sm:$0xff] %v6542_v44  ;;  %v17921_v48 = vpop.f32.mrb[52].mxu1  ;;  %v22398_v42 = vpack.c.bf16 %v22392_v6, %v6743_v24  ;;  %v22400_v21 = vpack.c.bf16 %v6542_v44, %v6541_v31  ;;  %v6580_v59 = vld [vmem:[%s21397_s21 + $0xb8] sm:$0xff]  ;;  %v6578_v24 = vld [vmem:[%s21397_s21 + $0xa8] sm:$0xff] }
 0x5cd   : > { %6640 = vst [vmem:[%s21397_s21 + $0x98] sm:$0xff] %v6608_v19  ;;  %v19327_v38 = vadd.f32 %v17921_v48, %v22239_v23  ;;  %v6382_v61 = vpop.f32.mrb[53].mxu1 }
 0x5ce   : > { %6638 = vst [vmem:[%s21397_s21 + $0x88] sm:$0xff] %v6606_v13  ;;  %v19328_v39 = vadd.f32 %v22239_v23, %v6382_v61  ;;  %v17922_v55 = vpop.f32.mrb[54].mxu1  ;;  %17967 = vmatprep.mubr.bf16.mxu0 %v22398_v42 }
 0x5cf   : > { %v6547_v60 = vmax.f32 %v19327_v38, 0.0  ;;  %v19329_v27 = vadd.f32 %v17922_v55, %v22239_v23  ;;  %v6385_v9 = vpop.f32.mrb[55].mxu1  ;;  %17968 = vmatmul.mubr.bf16.gmra.mrb[52].mxu0 %v22405_v5 }
 0x5d0   : > { %v6545_v31 = vmax.f32 %v19328_v39, 0.0  ;;  %v19330_v22 = vadd.f32 %v22239_v23, %v6385_v9  ;;  %v6749_v55 = vld [vmem:[#allocation2 + $0x4bc] sm:$0xff] }
 0x5d1   : > { %v6611_v54 = vadd.f32 %v6579_v8, %v6547_v60  ;;  %6675 = vst [vmem:[#allocation2 + $0x520] sm:$0xff] %v6547_v60  ;;  %v6548_v26 = vmax.f32 %v19329_v27, 0.0  ;;  %v6747_v13 = vld [vmem:[#allocation2 + $0x48c] sm:$0xff] }
 0x5d2   : > { %v6609_v45 = vadd.f32 %v6577_v58, %v6545_v31  ;;  %6673 = vst [vmem:[#allocation2 + $0x4f0] sm:$0xff] %v6545_v31  ;;  %v6546_v44 = vmax.f32 %v19330_v22, 0.0  ;;  %v22416_v19 = vld [vmem:[#allocation2 + $0x4c4] sm:$0xff] }
 0x5d3   : > { %6643 = vst [vmem:[%s21397_s21 + $0xb0] sm:$0xff] %v6611_v54  ;;  %v6612_v11 = vadd.f32 %v6580_v59, %v6548_v26  ;;  %6676 = vst [vmem:[#allocation2 + $0x528] sm:$0xff] %v6548_v26  ;;  %v22420_v48 = vld [vmem:[#allocation2 + $0x494] sm:$0xff]  ;;  %v22422_v3 = vpack.c.bf16 %v6548_v26, %v6547_v60  ;;  %v22433_v22 = vpack.c.bf16 %v22416_v19, %v6749_v55 }
 0x5d4   : > { %6641 = vst [vmem:[%s21397_s21 + $0xa0] sm:$0xff] %v6609_v45  ;;  %v6610_v38 = vadd.f32 %v6578_v24, %v6546_v44  ;;  %6674 = vst [vmem:[#allocation2 + $0x4f8] sm:$0xff] %v6546_v44  ;;  %v17925_v61 = vpop.f32.mrb[56].mxu1  ;;  %v22426_v39 = vpack.c.bf16 %v22420_v48, %v6747_v13  ;;  %v22428_v27 = vpack.c.bf16 %v6546_v44, %v6545_v31  ;;  %v6583_v45 = vld [vmem:[%s21397_s21 + $0xd0] sm:$0xff]  ;;  %v6581_v24 = vld [vmem:[%s21397_s21 + $0xc0] sm:$0xff] }
 0x5d5   : > { %6644 = vst [vmem:[%s21397_s21 + $0xb8] sm:$0xff] %v6612_v11  ;;  %v19331_v9 = vadd.f32 %v17925_v61, %v22239_v23  ;;  %v6398_v8 = vpop.f32.mrb[57].mxu1  ;;  %v7038_v61 = vld [vmem:[#allocation2 + $0x258] sm:$0xff] }
 0x5d6   : > { %6642 = vst [vmem:[%s21397_s21 + $0xa8] sm:$0xff] %v6610_v38  ;;  %v19332_v60 = vadd.f32 %v22239_v23, %v6398_v8  ;;  %v17926_v54 = vpop.f32.mrb[58].mxu1  ;;  %17971 = vmatprep.mubr.bf16.mxu0 %v22426_v39  ;;  %v7037_v38 = vld [vmem:[#allocation2 + $0x250] sm:$0xff] }
 0x5d7   : > { %v22438_v58 = vmax.f32 %v19331_v9, 0.0  ;;  %v19333_v31 = vadd.f32 %v17926_v54, %v22239_v23  ;;  %v6401_v26 = vpop.f32.mrb[59].mxu1  ;;  %17972 = vmatmul.mubr.bf16.gmra.mrb[56].mxu0 %v22433_v22  ;;  %v6584_v9 = vld [vmem:[%s21397_s21 + $0xd8] sm:$0xff]  ;;  %v7101_v36 = vpack.c.bf16 %v7038_v61, %v7037_v38 }
 0x5d8   : > { %v22443_v59 = vmax.f32 %v19332_v60, 0.0  ;;  %v19334_v44 = vadd.f32 %v22239_v23, %v6401_v26  ;;  %v6582_v26 = vld [vmem:[%s21397_s21 + $0xc8] sm:$0xff] }
 0x5d9   : > { %23682 = vst [vmem:[#allocation20_spill] sm:$0xff] %v22438_v58  ;;  %v6615_v11 = vadd.f32 %v6583_v45, %v22438_v58  ;;  %6679 = vst [vmem:[#allocation2 + $0x580] sm:$0xff] %v22438_v58  ;;  %v22449_v13 = vmax.f32 %v19333_v31, 0.0  ;;  %v6751_v31 = vld [vmem:[#allocation2 + $0x4ec] sm:$0xff] }
 0x5da   : > { %23683 = vst [vmem:[#allocation21_spill] sm:$0xff] %v22443_v59  ;;  %v6613_v55 = vadd.f32 %v6581_v24, %v22443_v59  ;;  %6677 = vst [vmem:[#allocation2 + $0x550] sm:$0xff] %v22443_v59  ;;  %v22454_v8 = vmax.f32 %v19334_v44, 0.0  ;;  %v22456_v60 = vld [vmem:[#allocation2 + $0x524] sm:$0xff]  ;;  %v7041_v58 = vld [vmem:[#allocation2 + $0x2b0] sm:$0xff] }
 0x5db   : > { %23684 = vst [vmem:[#allocation22_spill] sm:$0xff] %v22449_v13  ;;  %6647 = vst [vmem:[%s21397_s21 + $0xd0] sm:$0xff] %v6615_v11  ;;  %v6616_v54 = vadd.f32 %v6584_v9, %v22449_v13  ;;  %v22462_v45 = vld [vmem:[#allocation2 + $0x4f4] sm:$0xff]  ;;  %v6753_v9 = vld [vmem:[#allocation2 + $0x51c] sm:$0xff] }
 0x5dc   : > { %23685 = vst [vmem:[#allocation23_spill] sm:$0xff] %v22454_v8  ;;  %6680 = vst [vmem:[#allocation2 + $0x588] sm:$0xff] %v22449_v13  ;;  %v6614_v44 = vadd.f32 %v6582_v26, %v22454_v8  ;;  %v17929_v34 = vpop.f32.mrb[60].mxu1  ;;  %v22470_v11 = vpack.c.bf16 %v22462_v45, %v6751_v31  ;;  %v7042_v13 = vld [vmem:[#allocation2 + $0x2b8] sm:$0xff] }
 0x5dd   : > { %6645 = vst [vmem:[%s21397_s21 + $0xc0] sm:$0xff] %v6613_v55  ;;  %6678 = vst [vmem:[#allocation2 + $0x558] sm:$0xff] %v22454_v8  ;;  %v19335_v47 = vadd.f32 %v17929_v34, %v22239_v23  ;;  %v6414_v62 = vpop.f32.mrb[61].mxu1  ;;  %v22477_v55 = vpack.c.bf16 %v22456_v60, %v6753_v9  ;;  %v6587_v34 = vld [vmem:[%s21397_s21 + $0xf0] sm:$0xff]  ;;  %v7040_v9 = vld [vmem:[#allocation2 + $0x288] sm:$0xff] }
 0x5de   : > { %6648 = vst [vmem:[%s21397_s21 + $0xd8] sm:$0xff] %v6616_v54  ;;  %6646 = vst [vmem:[%s21397_s21 + $0xc8] sm:$0xff] %v6614_v44  ;;  %v19336_v26 = vadd.f32 %v22239_v23, %v6414_v62  ;;  %v17930_v24 = vpop.f32.mrb[62].mxu1  ;;  %17975 = vmatprep.mubr.bf16.mxu0 %v22470_v11  ;;  %v7039_v62 = vld [vmem:[#allocation2 + $0x280] sm:$0xff] }
 0x5df   : > { %v22482_v31 = vmax.f32 %v19335_v47, 0.0  ;;  %v19337_v38 = vadd.f32 %v17930_v24, %v22239_v23  ;;  %v6417_v61 = vpop.f32.mrb[63].mxu1  ;;  %17976 = vmatmul.mubr.bf16.gmra.mrb[60].mxu0 %v22477_v55  ;;  %v6585_v47 = vld [vmem:[%s21397_s21 + $0xe0] sm:$0xff]  ;;  %v7102_v59 = vpack.c.bf16 %v7040_v9, %v7039_v62  ;;  %v7043_v62 = vld [vmem:[#allocation2 + $0x2e0] sm:$0xff] }
 0x5e0   : > { %v22487_v54 = vmax.f32 %v19336_v26, 0.0  ;;  %v19338_v44 = vadd.f32 %v22239_v23, %v6417_v61  ;;  %17995 = vmatprep.mubr.bf16.mxu0 %v7101_v36  ;;  %v6588_v23 = vld [vmem:[%s21397_s21 + $0xf8] sm:$0xff]  ;;  %v7044_v9 = vld [vmem:[#allocation2 + $0x2e8] sm:$0xff] }
 0x5e1   : > { %v6619_v43 = vadd.f32 %v6587_v34, %v22482_v31  ;;  %6683 = vst [vmem:[#allocation2 + $0x5e0] sm:$0xff] %v22482_v31  ;;  %v22493_v24 = vmax.f32 %v19337_v38, 0.0  ;;  %v6586_v34 = vld [vmem:[%s21397_s21 + $0xe8] sm:$0xff] }
 0x5e2   : > { %v6617_v26 = vadd.f32 %v6585_v47, %v22487_v54  ;;  %6681 = vst [vmem:[#allocation2 + $0x5b0] sm:$0xff] %v22487_v54  ;;  %v22498_v36 = vmax.f32 %v19338_v44, 0.0  ;;  %v7103_v47 = vpack.c.bf16 %v7042_v13, %v7041_v58  ;;  %v23686_v58 = vpack.c.bf16 %v22258_v53, %v22247_v35  ;;  %v7436_v13 = vld [vmem:[#allocation4 + $0x520] sm:$0xff]  ;;  %v7439_v35 = vld [vmem:[#allocation4 + $0x538] sm:$0xff] }
 0x5e3   : > { %6651 = vst [vmem:[%s21397_s21 + $0xf0] sm:$0xff] %v6619_v43  ;;  %v6620_v61 = vadd.f32 %v6588_v23, %v22493_v24  ;;  %6684 = vst [vmem:[#allocation2 + $0x5e8] sm:$0xff] %v22493_v24  ;;  %v8058_v38 = vpack.c.bf16 %v22493_v24, %v22482_v31  ;;  %v7433_v43 = vld [vmem:[#allocation4 + $0x508] sm:$0xff]  ;;  %v7434_v23 = vld [vmem:[#allocation4 + $0x510] sm:$0xff]  ;;  %v23689_v53 = vpack.c.bf16 %v22285_v51, %v22275_v17 }
 0x5e4   : > { %6649 = vst [vmem:[%s21397_s21 + $0xe0] sm:$0xff] %v6617_v26  ;;  %v6618_v8 = vadd.f32 %v6586_v34, %v22498_v36  ;;  %6682 = vst [vmem:[#allocation2 + $0x5b8] sm:$0xff] %v22498_v36  ;;  %v8057_v44 = vpack.c.bf16 %v22498_v36, %v22487_v54  ;;  %v7104_v26 = vpack.c.bf16 %v7044_v9, %v7043_v62  ;;  %v7435_v34 = vld [vmem:[#allocation4 + $0x518] sm:$0xff]  ;;  %v7354_v51 = vld [vmem:[#allocation2 + $0x28c] sm:$0xff] }
 0x5e5   : > { %6652 = vst [vmem:[%s21397_s21 + $0xf8] sm:$0xff] %v6620_v61  ;;  %v7438_v61 = vld [vmem:[#allocation4 + $0x530] sm:$0xff]  ;;  %v7352_v17 = vld [vmem:[#allocation2 + $0x25c] sm:$0xff]  ;;  %v8299_v54 = vld [vmem:[#allocation2 + $0x3a4] sm:$0xff] }
 0x5e6   : > { %6650 = vst [vmem:[%s21397_s21 + $0xe8] sm:$0xff] %v6618_v8  ;;  %v23688_v8 = vpack.c.bf16 %v22290_v49, %v22279_v41  ;;  %v7415_v41 = vpack.c.bf16 %v7352_v17, %v22224_v57  ;;  %v7356_v49 = vld [vmem:[#allocation2 + $0x2bc] sm:$0xff]  ;;  %v7358_v62 = vld [vmem:[#allocation2 + $0x2ec] sm:$0xff] }
 0x5e7   : > { %17996 = vmatmul.mubr.bf16.vlgmr.msra.gmra.mrb[32].mxu0 %v7102_v59  ;;  %v23687_v59 = vpack.c.bf16 %v22253_v56, %v22243_v12  ;;  %v7746_v12 = vld [vmem:[#allocation4 + $0x540] sm:$0xff]  ;;  %v23690_v56 = vpack.c.bf16 %v22327_v32, %v22318_v4  ;;  %v7416_v4 = vpack.c.bf16 %v7354_v51, %v22227_v50  ;;  %v7748_v9 = vld [vmem:[#allocation4 + $0x550] sm:$0xff]  ;;  %v8692_v31 = vld [vmem:[#allocation4 + $0x618] sm:$0xff] }
 0x5e8   : > { %18028 = vmatpush3.bf16.msra.mxu0 %v22236_v7  ;;  %17999 = vmatprep.mubr.bf16.mxu0 %v7103_v47  ;;  %v7437_v7 = vld [vmem:[#allocation4 + $0x528] sm:$0xff]  ;;  %v7417_v47 = vpack.c.bf16 %v7356_v49, %v22230_v30  ;;  %v7750_v30 = vld [vmem:[#allocation4 + $0x560] sm:$0xff]  ;;  %v8691_v36 = vld [vmem:[#allocation4 + $0x610] sm:$0xff] }
 0x5e9   : > { %18029 = vmatprep.subr.bf16.mxu0 %v7433_v43  ;;  %v22544_v50 = vld [vmem:[#allocation2 + $0x34c] sm:$0xff]  ;;  %v22579_v17 = vld [vmem:[#allocation2 + $0x49c] sm:$0xff] }
 0x5ea   : > { %v22593_v51 = vld [vmem:[#allocation2 + $0x4fc] sm:$0xff] }
 0x5eb   : > { %v8693_v24 = vld [vmem:[#allocation4 + $0x620] sm:$0xff] }
 0x5ec   : > { %18030 = vmatpush3.bf16.msra.mxu0 %v7433_v43  ;;  %v7747_v43 = vld [vmem:[#allocation4 + $0x548] sm:$0xff] }
 0x5ed   : > { %18031 = vmatprep.subr.bf16.mxu0 %v7434_v23 }
 0x5ef   : > { %18000 = vmatmul.mubr.bf16.gmra.mrb[36].mxu0 %v7104_v26  ;;  %v22540_v26 = vld [vmem:[#allocation2 + $0x31c] sm:$0xff] }
 0x5f0   : > { %18003 = vmatprep.mubr.bf16.mxu0 %v23686_v58  ;;  %18032 = vmatpush3.bf16.msra.mxu0 %v7434_v23  ;;  %v7418_v23 = vpack.c.bf16 %v7358_v62, %v22233_v28  ;;  %v7419_v57 = vpack.c.bf16 %v22540_v26, %v22298_v33  ;;  %v22546_v58 = vld [vmem:[#allocation2 + $0x37c] sm:$0xff]  ;;  %v7420_v28 = vpack.c.bf16 %v22544_v50, %v22292_v1  ;;  %v22552_v33 = vld [vmem:[#allocation2 + $0x3ac] sm:$0xff] }
 0x5f1   : > { %18033 = vmatprep.subr.bf16.mxu0 %v7435_v34 }
 0x5f4   : > { %18034 = vmatpush3.bf16.msra.mxu0 %v7435_v34  ;;  %v7749_v34 = vld [vmem:[#allocation4 + $0x558] sm:$0xff] }
 0x5f5   : > { %18035 = vmatprep.subr.bf16.mxu0 %v7436_v13 }
 0x5f7   : > { %18004 = vmatmul.mubr.bf16.gmra.mrb[40].mxu0 %v23687_v59  ;;  %v7752_v59 = vld [vmem:[#allocation4 + $0x570] sm:$0xff] }
 0x5f8   : > { %18007 = vmatprep.mubr.bf16.mxu0 %v23688_v8  ;;  %18036 = vmatpush3.bf16.msra.mxu0 %v7436_v13  ;;  %v7421_v13 = vpack.c.bf16 %v22546_v58, %v22336_v29  ;;  %v22554_v8 = vld [vmem:[#allocation2 + $0x3dc] sm:$0xff] }
 0x5f9   : > { %18037 = vmatprep.subr.bf16.mxu0 %v7437_v7  ;;  %v22560_v1 = vpack.c.bf16 %v22554_v8, %v22364_v16  ;;  %v7753_v29 = vld [vmem:[#allocation4 + $0x578] sm:$0xff] }
 0x5fc   : > { %18038 = vmatpush3.bf16.msra.mxu0 %v7437_v7  ;;  %v7751_v7 = vld [vmem:[#allocation4 + $0x568] sm:$0xff] }
 0x5fd   : > { %18039 = vmatprep.subr.bf16.mxu0 %v7438_v61 }
 0x5ff   : > { %18008 = vmatmul.mubr.bf16.gmra.mrb[44].mxu0 %v23689_v53  ;;  %v8060_v53 = vld [vmem:[#allocation4 + $0x580] sm:$0xff] }
 0x600   : > { %18011 = vmatprep.mubr.bf16.mxu0 %v22344_v20  ;;  %18040 = vmatpush3.bf16.msra.mxu0 %v7438_v61  ;;  %v7422_v61 = vpack.c.bf16 %v22552_v33, %v22330_v37 }
 0x601   : > { %18041 = vmatprep.subr.bf16.mxu0 %v7439_v35 }
 0x604   : > { %18042 = vmatpush3.bf16.msra.mxu0 %v7439_v35  ;;  %v22563_v35 = vld [vmem:[#allocation2 + $0x40c] sm:$0xff] }
 0x605   : > { %18075 = vmatprep.subr.bf16.mxu0 %v7746_v12  ;;  %v22569_v37 = vpack.c.bf16 %v22563_v35, %v22360_v0  ;;  %v22587_v0 = vpack.c.bf16 %v22579_v17, %v22420_v48  ;;  %v22605_v48 = vld [vmem:[#allocation2 + $0x52c] sm:$0xff] }
 0x607   : > { %18012 = vmatmul.mubr.bf16.gmra.mrb[48].mxu0 %v23690_v56  ;;  %v22577_v56 = vld [vmem:[#allocation2 + $0x46c] sm:$0xff] }
 0x608   : > { %18015 = vmatprep.mubr.bf16.mxu0 %v22372_v18 }
 0x60f   : > { %18016 = vmatmul.mubr.bf16.gmra.mrb[52].mxu0 %v22366_v40 }
 0x610   : > { %18019 = vmatprep.mubr.bf16.mxu0 %v22400_v21 }
 0x617   : > { %18020 = vmatmul.mubr.bf16.gmra.mrb[56].mxu0 %v22394_v10 }
 0x618   : > { %18023 = vmatprep.mubr.bf16.mxu0 %v22428_v27 }
 0x61f   : > { %18024 = vmatmul.mubr.bf16.gmra.mrb[60].mxu0 %v22422_v3 }
 0x620   : > { %18043 = vmatprep.mubr.bf16.mxu0 %v7415_v41  ;;  %v22583_v41 = vpack.c.bf16 %v22577_v56, %v22388_v52  ;;  %v22601_v52 = vpack.c.bf16 %v22593_v51, %v22462_v45  ;;  %v8062_v45 = vld [vmem:[#allocation4 + $0x590] sm:$0xff] }
 0x627   : > { %18044 = vmatmul.mubr.bf16.vlgmr.msra.gmra.mrb[32].mxu0 %v7416_v4  ;;  %v22609_v4 = vpack.c.bf16 %v22605_v48, %v22456_v60  ;;  %v8064_v60 = vld [vmem:[#allocation4 + $0x5a0] sm:$0xff] }
 0x628   : > { %18076 = vmatpush3.bf16.msra.mxu0 %v7746_v12  ;;  %18047 = vmatprep.mubr.bf16.mxu0 %v7417_v47  ;;  %v22565_v12 = vld [vmem:[#allocation2 + $0x43c] sm:$0xff] }
 0x629   : > { %18077 = vmatprep.subr.bf16.mxu0 %v7747_v43  ;;  %v22573_v16 = vpack.c.bf16 %v22565_v12, %v22392_v6  ;;  %v22591_v6 = vld [vmem:[#allocation2 + $0x4cc] sm:$0xff]  ;;  %v8063_v47 = vld [vmem:[#allocation4 + $0x598] sm:$0xff] }
 0x62a   : > { %v22597_v49 = vpack.c.bf16 %v22591_v6, %v22416_v19  ;;  %v8061_v19 = vld [vmem:[#allocation4 + $0x588] sm:$0xff] }
 0x62c   : > { %18078 = vmatpush3.bf16.msra.mxu0 %v7747_v43  ;;  %v7691_v43 = vld [vmem:[#allocation2 + $0x57c] sm:$0xff] }
 0x62d   : > { %18079 = vmatprep.subr.bf16.mxu0 %v7748_v9 }
 0x62f   : > { %18048 = vmatmul.mubr.bf16.gmra.mrb[36].mxu0 %v7418_v23 }
 0x630   : > { %18051 = vmatprep.mubr.bf16.mxu0 %v7419_v57  ;;  %18080 = vmatpush3.bf16.msra.mxu0 %v7748_v9  ;;  %v7693_v9 = vld [vmem:[#allocation2 + $0x5ac] sm:$0xff]  ;;  %v22642_v57 = vld [vmem:[#allocation2 + $0x5e4] sm:$0xff] }
 0x631   : > { %18081 = vmatprep.subr.bf16.mxu0 %v7749_v34 }
 0x634   : > { %18082 = vmatpush3.bf16.msra.mxu0 %v7749_v34  ;;  %v7980_v34 = vld [vmem:[#allocation2 + $0x318] sm:$0xff] }
 0x635   : > { %18083 = vmatprep.subr.bf16.mxu0 %v7750_v30 }
 0x637   : > { %18052 = vmatmul.mubr.bf16.gmra.mrb[40].mxu0 %v7420_v28 }
 0x638   : > { %18055 = vmatprep.mubr.bf16.mxu0 %v7421_v13  ;;  %18084 = vmatpush3.bf16.msra.mxu0 %v7750_v30  ;;  %v7695_v30 = vld [vmem:[#allocation2 + $0x5dc] sm:$0xff]  ;;  %v7979_v13 = vld [vmem:[#allocation2 + $0x310] sm:$0xff] }
 0x639   : > { %18085 = vmatprep.subr.bf16.mxu0 %v7751_v7  ;;  %v22645_v28 = vpack.c.bf16 %v22642_v57, %v7695_v30  ;;  %v8380_v30 = vld [vmem:[#allocation4 + $0x5f0] sm:$0xff] }
 0x63c   : > { %18086 = vmatpush3.bf16.msra.mxu0 %v7751_v7  ;;  %v8043_v7 = vpack.c.bf16 %v7980_v34, %v7979_v13  ;;  %v8379_v34 = vld [vmem:[#allocation4 + $0x5e8] sm:$0xff]  ;;  %v8689_v13 = vld [vmem:[#allocation4 + $0x600] sm:$0xff] }
 0x63d   : > { %18087 = vmatprep.subr.bf16.mxu0 %v7752_v59 }
 0x63f   : > { %18056 = vmatmul.mubr.bf16.gmra.mrb[44].mxu0 %v7422_v61  ;;  %v7984_v61 = vld [vmem:[#allocation2 + $0x378] sm:$0xff] }
 0x640   : > { %18059 = vmatprep.mubr.bf16.mxu0 %v22560_v1  ;;  %18088 = vmatpush3.bf16.msra.mxu0 %v7752_v59  ;;  %v7982_v59 = vld [vmem:[#allocation2 + $0x348] sm:$0xff] }
 0x641   : > { %18089 = vmatprep.subr.bf16.mxu0 %v7753_v29 }
 0x644   : > { %18090 = vmatpush3.bf16.msra.mxu0 %v7753_v29  ;;  %v7981_v29 = vld [vmem:[#allocation2 + $0x340] sm:$0xff] }
 0x645   : > { %18123 = vmatprep.subr.bf16.mxu0 %v8060_v53 }
 0x647   : > { %18060 = vmatmul.mubr.bf16.gmra.mrb[48].mxu0 %v22569_v37 }
 0x648   : > { %18063 = vmatprep.mubr.bf16.mxu0 %v22573_v16 }
 0x64f   : > { %18064 = vmatmul.mubr.bf16.gmra.mrb[52].mxu0 %v22583_v41 }
 0x650   : > { %18067 = vmatprep.mubr.bf16.mxu0 %v22587_v0 }
 0x657   : > { %18068 = vmatmul.mubr.bf16.gmra.mrb[56].mxu0 %v22597_v49 }
 0x658   : > { %18071 = vmatprep.mubr.bf16.mxu0 %v22601_v52 }
 0x65f   : > { %18072 = vmatmul.mubr.bf16.gmra.mrb[60].mxu0 %v22609_v4 }
 0x660   : > { %18091 = vmatprep.mubr.bf16.mxu0 %v22306_v14  ;;  %v8065_v14 = vld [vmem:[#allocation4 + $0x5a8] sm:$0xff] }
 0x667   : > { %18092 = vmatmul.mubr.bf16.vlgmr.msra.gmra.mrb[32].mxu0 %v22313_v15  ;;  %v8066_v15 = vld [vmem:[#allocation4 + $0x5b0] sm:$0xff] }
 0x668   : > { %18095 = vmatprep.mubr.bf16.mxu0 %v22342_v63  ;;  %18124 = vmatpush3.bf16.msra.mxu0 %v8060_v53  ;;  %v8067_v63 = vld [vmem:[#allocation4 + $0x5b8] sm:$0xff]  ;;  %v8044_v53 = vpack.c.bf16 %v7982_v59, %v7981_v29 }
 0x669   : > { %18125 = vmatprep.subr.bf16.mxu0 %v8061_v19  ;;  %v23694_v59 = vld [vmem:[#allocation22_spill] sm:$0xff] }
 0x66c   : > { %18126 = vmatpush3.bf16.msra.mxu0 %v8061_v19  ;;  %v7983_v19 = vld [vmem:[#allocation2 + $0x370] sm:$0xff] }
 0x66d   : > { %18127 = vmatprep.subr.bf16.mxu0 %v8062_v45 }
 0x66f   : > { %18096 = vmatmul.mubr.bf16.gmra.mrb[36].mxu0 %v22349_v46  ;;  %v8374_v46 = vld [vmem:[#allocation4 + $0x5c0] sm:$0xff] }
 0x670   : > { %18099 = vmatprep.mubr.bf16.mxu0 %v22370_v25  ;;  %18128 = vmatpush3.bf16.msra.mxu0 %v8062_v45  ;;  %v22623_v25 = vld [vmem:[#allocation2 + $0x554] sm:$0xff]  ;;  %v8045_v45 = vpack.c.bf16 %v7984_v61, %v7983_v19  ;;  %v23695_v61 = vld [vmem:[#allocation20_spill] sm:$0xff] }
 0x671   : > { %18129 = vmatprep.subr.bf16.mxu0 %v8063_v47  ;;  %v8690_v19 = vld [vmem:[#allocation4 + $0x608] sm:$0xff] }
 0x674   : > { %18130 = vmatpush3.bf16.msra.mxu0 %v8063_v47  ;;  %v8375_v47 = vld [vmem:[#allocation4 + $0x5c8] sm:$0xff] }
 0x675   : > { %18131 = vmatprep.subr.bf16.mxu0 %v8064_v60 }
 0x677   : > { %18100 = vmatmul.mubr.bf16.gmra.mrb[40].mxu0 %v22377_v2  ;;  %v7689_v2 = vld [vmem:[#allocation2 + $0x54c] sm:$0xff] }
 0x678   : > { %18103 = vmatprep.mubr.bf16.mxu0 %v22398_v42  ;;  %18132 = vmatpush3.bf16.msra.mxu0 %v8064_v60  ;;  %v22626_v42 = vpack.c.bf16 %v22623_v25, %v7689_v2  ;;  %v7986_v60 = vld [vmem:[#allocation2 + $0x3a8] sm:$0xff]  ;;  %v8377_v2 = vld [vmem:[#allocation4 + $0x5d8] sm:$0xff] }
 0x679   : > { %18133 = vmatprep.subr.bf16.mxu0 %v8065_v14 }
 0x67c   : > { %18134 = vmatpush3.bf16.msra.mxu0 %v8065_v14  ;;  %v8376_v14 = vld [vmem:[#allocation4 + $0x5d0] sm:$0xff] }
 0x67d   : > { %18135 = vmatprep.subr.bf16.mxu0 %v8066_v15 }
 0x67f   : > { %18104 = vmatmul.mubr.bf16.gmra.mrb[44].mxu0 %v22405_v5  ;;  %v22630_v5 = vld [vmem:[#allocation2 + $0x584] sm:$0xff] }
 0x680   : > { %18107 = vmatprep.mubr.bf16.mxu0 %v22426_v39  ;;  %18136 = vmatpush3.bf16.msra.mxu0 %v8066_v15  ;;  %v22632_v39 = vld [vmem:[#allocation2 + $0x5b4] sm:$0xff]  ;;  %v22635_v62 = vpack.c.bf16 %v22630_v5, %v7691_v43  ;;  %v7985_v15 = vld [vmem:[#allocation2 + $0x3a0] sm:$0xff] }
 0x681   : > { %18137 = vmatprep.subr.bf16.mxu0 %v8067_v63  ;;  %v22638_v23 = vpack.c.bf16 %v22632_v39, %v7693_v9  ;;  %v22649_v43 = vld [vmem:[#allocation2 + $0x400] sm:$0xff] }
 0x682   : > { %v8378_v9 = vld [vmem:[#allocation4 + $0x5e0] sm:$0xff] }
 0x684   : > { %18138 = vmatpush3.bf16.msra.mxu0 %v8067_v63  ;;  %v8046_v63 = vpack.c.bf16 %v7986_v60, %v7985_v15 }
 0x685   : > { %18171 = vmatprep.subr.bf16.mxu0 %v8374_v46 }
 0x687   : > { %18108 = vmatmul.mubr.bf16.gmra.mrb[48].mxu0 %v22433_v22 }
 0x688   : > { %18111 = vmatprep.mubr.bf16.mxu0 %v22470_v11 }
 0x68f   : > { %18112 = vmatmul.mubr.bf16.gmra.mrb[52].mxu0 %v22477_v55 }
 0x690   : > { %18115 = vmatprep.mubr.bf16.mxu0 %v22626_v42 }
 0x697   : > { %18116 = vmatmul.mubr.bf16.gmra.mrb[56].mxu0 %v22635_v62 }
 0x698   : > { %18119 = vmatprep.mubr.bf16.mxu0 %v22638_v23 }
 0x69f   : > { %18120 = vmatmul.mubr.bf16.gmra.mrb[60].mxu0 %v22645_v28 }
 0x6a0   : > { %18139 = vmatprep.mubr.bf16.mxu0 %v8043_v7 }
 0x6a7   : > { %18140 = vmatmul.mubr.bf16.vlgmr.msra.gmra.mrb[32].mxu0 %v8044_v53 }
 0x6a8   : > { %18143 = vmatprep.mubr.bf16.mxu0 %v8045_v45  ;;  %18172 = vmatpush3.bf16.msra.mxu0 %v8374_v46  ;;  %v8048_v46 = vpack.c.bf16 %v22327_v32, %v22649_v43  ;;  %v23691_v32 = vld [vmem:[#allocation23_spill] sm:$0xff] }
 0x6a9   : > { %18173 = vmatprep.subr.bf16.mxu0 %v8375_v47 }
 0x6ac   : > { %18174 = vmatpush3.bf16.msra.mxu0 %v8375_v47  ;;  %v8610_v47 = vld [vmem:[#allocation2 + $0x3fc] sm:$0xff] }
 0x6ad   : > { %18175 = vmatprep.subr.bf16.mxu0 %v8376_v14 }
 0x6af   : > { %18144 = vmatmul.mubr.bf16.gmra.mrb[36].mxu0 %v8046_v63  ;;  %v9004_v63 = vld [vmem:[#allocation4 + $0x648] sm:$0xff] }
 0x6b0   : > { %18147 = vmatprep.mubr.bf16.mxu0 %v22344_v20  ;;  %18176 = vmatpush3.bf16.msra.mxu0 %v8376_v14  ;;  %v8381_v20 = vld [vmem:[#allocation4 + $0x5f8] sm:$0xff]  ;;  %v8612_v14 = vld [vmem:[#allocation2 + $0x42c] sm:$0xff] }
 0x6b1   : > { %18177 = vmatprep.subr.bf16.mxu0 %v8377_v2 }
 0x6b4   : > { %18178 = vmatpush3.bf16.msra.mxu0 %v8377_v2  ;;  %v9005_v2 = vld [vmem:[#allocation4 + $0x650] sm:$0xff] }
 0x6b5   : > { %18179 = vmatprep.subr.bf16.mxu0 %v8378_v9 }
 0x6b7   : > { %18148 = vmatmul.mubr.bf16.gmra.mrb[40].mxu0 %v8048_v46  ;;  %v8614_v46 = vld [vmem:[#allocation2 + $0x45c] sm:$0xff] }
 0x6b8   : > { %18151 = vmatprep.mubr.bf16.mxu0 %v22372_v18  ;;  %18180 = vmatpush3.bf16.msra.mxu0 %v8378_v9  ;;  %v23692_v18 = vld [vmem:[#allocation21_spill] sm:$0xff] }
 0x6b9   : > { %18181 = vmatprep.subr.bf16.mxu0 %v8379_v34  ;;  %v23693_v7 = vpack.c.bf16 %v23691_v32, %v23692_v18  ;;  %v22710_v9 = vld [vmem:[#allocation2 + $0x494] sm:$0xff]  ;;  %v9007_v32 = vld [vmem:[#allocation4 + $0x660] sm:$0xff]  ;;  %v9008_v18 = vld [vmem:[#allocation4 + $0x668] sm:$0xff] }
 0x6bc   : > { %18182 = vmatpush3.bf16.msra.mxu0 %v8379_v34 }
 0x6bd   : > { %18183 = vmatprep.subr.bf16.mxu0 %v8380_v30 }
 0x6bf   : > { %18152 = vmatmul.mubr.bf16.gmra.mrb[44].mxu0 %v22366_v40  ;;  %v23696_v40 = vpack.c.bf16 %v23694_v59, %v23695_v61  ;;  %v9010_v59 = vld [vmem:[#allocation4 + $0x678] sm:$0xff]  ;;  %v9317_v61 = vld [vmem:[#allocation4 + $0x680] sm:$0xff] }
 0x6c0   : > { %18155 = vmatprep.mubr.bf16.mxu0 %v22400_v21  ;;  %18184 = vmatpush3.bf16.msra.mxu0 %v8380_v30  ;;  %v8293_v21 = vld [vmem:[#allocation2 + $0x314] sm:$0xff]  ;;  %v8616_v30 = vld [vmem:[#allocation2 + $0x48c] sm:$0xff] }
 0x6c1   : > { %18185 = vmatprep.subr.bf16.mxu0 %v8381_v20  ;;  %v8357_v29 = vpack.c.bf16 %v22540_v26, %v8293_v21  ;;  %v8695_v26 = vld [vmem:[#allocation4 + $0x630] sm:$0xff]  ;;  %v22724_v21 = vld [vmem:[#allocation2 + $0x644] sm:$0xff] }
 0x6c4   : > { %18186 = vmatpush3.bf16.msra.mxu0 %v8381_v20  ;;  %v8676_v20 = vpack.c.bf16 %v22710_v9, %v8616_v30  ;;  %v9321_v30 = vld [vmem:[#allocation4 + $0x6a0] sm:$0xff] }
 0x6c5   : > { %18219 = vmatprep.subr.bf16.mxu0 %v8689_v13 }
 0x6c7   : > { %18156 = vmatmul.mubr.bf16.gmra.mrb[48].mxu0 %v22394_v10  ;;  %v8295_v10 = vld [vmem:[#allocation2 + $0x344] sm:$0xff] }
 0x6c8   : > { %18159 = vmatprep.mubr.bf16.mxu0 %v22428_v27  ;;  %v8358_v27 = vpack.c.bf16 %v22544_v50, %v8295_v10  ;;  %v8696_v50 = vld [vmem:[#allocation4 + $0x638] sm:$0xff] }
 0x6cf   : > { %18160 = vmatmul.mubr.bf16.gmra.mrb[52].mxu0 %v22422_v3  ;;  %v8297_v3 = vld [vmem:[#allocation2 + $0x374] sm:$0xff] }
 0x6d0   : > { %18163 = vmatprep.mubr.bf16.mxu0 %v23693_v7  ;;  %v8359_v53 = vpack.c.bf16 %v22546_v58, %v8297_v3  ;;  %v9003_v58 = vld [vmem:[#allocation4 + $0x640] sm:$0xff]  ;;  %v9009_v7 = vld [vmem:[#allocation4 + $0x670] sm:$0xff] }
 0x6d1   : > { %v22730_v3 = vld [vmem:[#allocation2 + $0x6a4] sm:$0xff] }
 0x6d7   : > { %18164 = vmatmul.mubr.bf16.gmra.mrb[56].mxu0 %v23696_v40 }
 0x6d8   : > { %18167 = vmatprep.mubr.bf16.mxu0 %v8057_v44  ;;  %v8360_v44 = vpack.c.bf16 %v22552_v33, %v8299_v54  ;;  %v8318_v33 = vld [vmem:[#allocation2 + $0x55c] sm:$0xff] }
 0x6d9   : > { %v9861_v54 = vld [vmem:[#allocation4 + $0x6c0] sm:$0xff] }
 0x6da   : > { %18363 = vmatprep.subr.bf16.mxu1 %v9861_v54 }
 0x6db   : > { %18364 = vmatpush3.bf16.msra.mxu1 %v9861_v54  ;;  %v8938_v54 = vld [vmem:[#allocation2 + $0x550] sm:$0xff] }
 0x6df   : > { %18168 = vmatmul.mubr.bf16.gmra.mrb[60].mxu0 %v8058_v38  ;;  %v8694_v38 = vld [vmem:[#allocation4 + $0x628] sm:$0xff] }
 0x6e0   : > { %18187 = vmatprep.mubr.bf16.mxu0 %v8357_v29  ;;  %v22726_v29 = vld [vmem:[#allocation2 + $0x674] sm:$0xff] }
 0x6e7   : > { %18188 = vmatmul.mubr.bf16.vlgmr.msra.gmra.mrb[32].mxu0 %v8358_v27 }
 0x6e8   : > { %18191 = vmatprep.mubr.bf16.mxu0 %v8359_v53  ;;  %18220 = vmatpush3.bf16.msra.mxu0 %v8689_v13  ;;  %v9006_v13 = vld [vmem:[#allocation4 + $0x658] sm:$0xff] }
 0x6e9   : > { %18221 = vmatprep.subr.bf16.mxu0 %v8690_v19  ;;  %v8923_v53 = vld [vmem:[#allocation2 + $0x3d8] sm:$0xff] }
 0x6ec   : > { %18222 = vmatpush3.bf16.msra.mxu0 %v8690_v19 }
 0x6ed   : > { %18223 = vmatprep.subr.bf16.mxu0 %v8691_v36 }
 0x6ef   : > { %18192 = vmatmul.mubr.bf16.gmra.mrb[36].mxu0 %v8360_v44  ;;  %v9780_v44 = vld [vmem:[#allocation2 + $0x188] sm:$0xff] }
 0x6f0   : > { %18195 = vmatprep.mubr.bf16.mxu0 %v22560_v1  ;;  %18224 = vmatpush3.bf16.msra.mxu0 %v8691_v36  ;;  %v22683_v1 = vpack.c.bf16 %v8318_v33, %v22623_v25  ;;  %v9862_v36 = vld [vmem:[#allocation4 + $0x6c8] sm:$0xff]  ;;  %v8926_v33 = vld [vmem:[#allocation2 + $0x430] sm:$0xff] }
 0x6f1   : > { %18225 = vmatprep.subr.bf16.mxu0 %v8692_v31  ;;  %18365 = vmatprep.subr.bf16.mxu1 %v9862_v36 }
 0x6f2   : > { %18366 = vmatpush3.bf16.msra.mxu1 %v9862_v36 }
 0x6f4   : > { %18226 = vmatpush3.bf16.msra.mxu0 %v8692_v31  ;;  %v8925_v31 = vld [vmem:[#allocation2 + $0x408] sm:$0xff] }
 0x6f5   : > { %18227 = vmatprep.subr.bf16.mxu0 %v8693_v24 }
 0x6f7   : > { %18196 = vmatmul.mubr.bf16.gmra.mrb[40].mxu0 %v22569_v37  ;;  %v8320_v37 = vld [vmem:[#allocation2 + $0x58c] sm:$0xff] }
 0x6f8   : > { %18199 = vmatprep.mubr.bf16.mxu0 %v22573_v16  ;;  %18228 = vmatpush3.bf16.msra.mxu0 %v8693_v24  ;;  %v8322_v16 = vld [vmem:[#allocation2 + $0x5bc] sm:$0xff]  ;;  %v22733_v24 = vld [vmem:[#allocation2 + $0x190] sm:$0xff] }
 0x6f9   : > { %18229 = vmatprep.subr.bf16.mxu0 %v8694_v38 }
 0x6fc   : > { %18230 = vmatpush3.bf16.msra.mxu0 %v8694_v38  ;;  %v8927_v38 = vld [vmem:[#allocation2 + $0x438] sm:$0xff] }
 0x6fd   : > { %18231 = vmatprep.subr.bf16.mxu0 %v8695_v26 }
 0x6ff   : > { %18200 = vmatmul.mubr.bf16.gmra.mrb[44].mxu0 %v22583_v41  ;;  %v22688_v41 = vpack.c.bf16 %v8320_v37, %v22630_v5  ;;  %v22702_v5 = vld [vmem:[#allocation2 + $0x404] sm:$0xff]  ;;  %v8988_v37 = vpack.c.bf16 %v8927_v38, %v8926_v33 }
 0x700   : > { %18203 = vmatprep.mubr.bf16.mxu0 %v22587_v0  ;;  %18232 = vmatpush3.bf16.msra.mxu0 %v8695_v26  ;;  %v22691_v0 = vpack.c.bf16 %v8322_v16, %v22632_v39  ;;  %v22704_v39 = vld [vmem:[#allocation2 + $0x434] sm:$0xff]  ;;  %v8673_v60 = vpack.c.bf16 %v22702_v5, %v8610_v47  ;;  %v9318_v16 = vld [vmem:[#allocation4 + $0x688] sm:$0xff]  ;;  %v22743_v33 = vld [vmem:[#allocation2 + $0x220] sm:$0xff] }
 0x701   : > { %18233 = vmatprep.subr.bf16.mxu0 %v8696_v50  ;;  %v8674_v15 = vpack.c.bf16 %v22704_v39, %v8612_v14  ;;  %v9863_v26 = vld [vmem:[#allocation4 + $0x6d0] sm:$0xff]  ;;  %v8931_v47 = vld [vmem:[#allocation2 + $0x498] sm:$0xff]  ;;  %v8928_v14 = vld [vmem:[#allocation2 + $0x460] sm:$0xff] }
 0x702   : > { %18367 = vmatprep.subr.bf16.mxu1 %v9863_v26 }
 0x703   : > { %18368 = vmatpush3.bf16.msra.mxu1 %v9863_v26  ;;  %v10176_v26 = vld [vmem:[#allocation4 + $0x708] sm:$0xff] }
 0x704   : > { %18234 = vmatpush3.bf16.msra.mxu0 %v8696_v50  ;;  %v9844_v50 = vpack.c.bf16 %v22733_v24, %v9780_v44 }
 0x705   : > { %18267 = vmatprep.subr.bf16.mxu0 %v9003_v58 }
 0x706   : > { %18379 = vmatprep.mubr.bf16.mxu1 %v9844_v50  ;;  %v8941_v50 = vld [vmem:[#allocation2 + $0x588] sm:$0xff] }
 0x707   : > { %18204 = vmatmul.mubr.bf16.gmra.mrb[48].mxu0 %v22597_v49  ;;  %v8324_v49 = vld [vmem:[#allocation2 + $0x5ec] sm:$0xff] }
 0x708   : > { %18207 = vmatprep.mubr.bf16.mxu0 %v22601_v52  ;;  %v22695_v52 = vld [vmem:[#allocation2 + $0x3d4] sm:$0xff]  ;;  %v22698_v25 = vpack.c.bf16 %v8324_v49, %v22642_v57  ;;  %v22708_v57 = vld [vmem:[#allocation2 + $0x464] sm:$0xff] }
 0x709   : > { %v8675_v34 = vpack.c.bf16 %v22708_v57, %v8614_v46  ;;  %v9864_v49 = vld [vmem:[#allocation4 + $0x6d8] sm:$0xff]  ;;  %v9866_v46 = vld [vmem:[#allocation4 + $0x6e8] sm:$0xff] }
 0x70a   : > { %18369 = vmatprep.subr.bf16.mxu1 %v9864_v49 }
 0x70b   : > { %18370 = vmatpush3.bf16.msra.mxu1 %v9864_v49 }
 0x70f   : > { %18208 = vmatmul.mubr.bf16.gmra.mrb[52].mxu0 %v22609_v4  ;;  %v8608_v4 = vld [vmem:[#allocation2 + $0x3cc] sm:$0xff] }
 0x710   : > { %18211 = vmatprep.mubr.bf16.mxu0 %v22683_v1  ;;  %v8672_v45 = vpack.c.bf16 %v22695_v52, %v8608_v4  ;;  %v8929_v4 = vld [vmem:[#allocation2 + $0x468] sm:$0xff] }
 0x717   : > { %18212 = vmatmul.mubr.bf16.gmra.mrb[56].mxu0 %v22688_v41 }
 0x718   : > { %18215 = vmatprep.mubr.bf16.mxu0 %v22691_v0 }
 0x71f   : > { %18216 = vmatmul.mubr.bf16.gmra.mrb[60].mxu0 %v22698_v25 }
 0x720   : > { %18235 = vmatprep.mubr.bf16.mxu0 %v8672_v45  ;;  %v9319_v45 = vld [vmem:[#allocation4 + $0x690] sm:$0xff] }
 0x727   : > { %18236 = vmatmul.mubr.bf16.vlgmr.msra.gmra.mrb[32].mxu0 %v8673_v60  ;;  %v9865_v60 = vld [vmem:[#allocation4 + $0x6e0] sm:$0xff] }
 0x728   : > { %18239 = vmatprep.mubr.bf16.mxu0 %v8674_v15  ;;  %18268 = vmatpush3.bf16.msra.mxu0 %v9003_v58  ;;  %v8987_v58 = vpack.c.bf16 %v8925_v31, %v22649_v43  ;;  %v8989_v43 = vpack.c.bf16 %v8929_v4, %v8928_v14  ;;  %v8930_v15 = vld [vmem:[#allocation2 + $0x490] sm:$0xff]  ;;  %v9324_v31 = vld [vmem:[#allocation4 + $0x6b8] sm:$0xff] }
 0x729   : > { %18269 = vmatprep.subr.bf16.mxu0 %v9004_v63  ;;  %18371 = vmatprep.subr.bf16.mxu1 %v9865_v60  ;;  %v8942_v4 = vld [vmem:[#allocation2 + $0x5b0] sm:$0xff]  ;;  %v8947_v14 = vld [vmem:[#allocation2 + $0x618] sm:$0xff] }
 0x72a   : > { %18372 = vmatpush3.bf16.msra.mxu1 %v9865_v60  ;;  %v8946_v60 = vld [vmem:[#allocation2 + $0x610] sm:$0xff] }
 0x72b   : > { %18373 = vmatprep.subr.bf16.mxu1 %v9866_v46 }
 0x72c   : > { %18270 = vmatpush3.bf16.msra.mxu0 %v9004_v63  ;;  %v8990_v63 = vpack.c.bf16 %v8931_v47, %v8930_v15  ;;  %v8944_v15 = vld [vmem:[#allocation2 + $0x5e0] sm:$0xff] }
 0x72d   : > { %18271 = vmatprep.subr.bf16.mxu0 %v9005_v2 }
 0x72e   : > { %18374 = vmatpush3.bf16.msra.mxu1 %v9866_v46  ;;  %v8948_v46 = vld [vmem:[#allocation2 + $0x640] sm:$0xff] }
 0x72f   : > { %18240 = vmatmul.mubr.bf16.gmra.mrb[36].mxu0 %v8675_v34  ;;  %v8933_v34 = vld [vmem:[#allocation2 + $0x4c8] sm:$0xff] }
 0x730   : > { %18243 = vmatprep.mubr.bf16.mxu0 %v8676_v20  ;;  %18272 = vmatpush3.bf16.msra.mxu0 %v9005_v2  ;;  %v9320_v2 = vld [vmem:[#allocation4 + $0x698] sm:$0xff] }
 0x731   : > { %18273 = vmatprep.subr.bf16.mxu0 %v9006_v13  ;;  %v8935_v20 = vld [vmem:[#allocation2 + $0x4f8] sm:$0xff] }
 0x734   : > { %18274 = vmatpush3.bf16.msra.mxu0 %v9006_v13  ;;  %v9867_v13 = vld [vmem:[#allocation4 + $0x6f0] sm:$0xff] }
 0x735   : > { %18275 = vmatprep.subr.bf16.mxu0 %v9007_v32  ;;  %18375 = vmatprep.subr.bf16.mxu1 %v9867_v13 }
 0x736   : > { %18376 = vmatpush3.bf16.msra.mxu1 %v9867_v13 }
 0x737   : > { %18244 = vmatmul.mubr.bf16.gmra.mrb[40].mxu0 %v22433_v22  ;;  %v8632_v22 = vld [vmem:[#allocation2 + $0x60c] sm:$0xff] }
 0x738   : > { %18247 = vmatprep.mubr.bf16.mxu0 %v22470_v11  ;;  %18276 = vmatpush3.bf16.msra.mxu0 %v9007_v32  ;;  %v22720_v11 = vld [vmem:[#allocation2 + $0x614] sm:$0xff]  ;;  %v8932_v32 = vld [vmem:[#allocation2 + $0x4c0] sm:$0xff] }
 0x739   : > { %18277 = vmatprep.subr.bf16.mxu0 %v9008_v18  ;;  %v8684_v40 = vpack.c.bf16 %v22720_v11, %v8632_v22  ;;  %v9868_v22 = vld [vmem:[#allocation4 + $0x6f8] sm:$0xff] }
 0x73a   : > { %18377 = vmatprep.subr.bf16.mxu1 %v9868_v22 }
 0x73b   : > { %18378 = vmatpush3.bf16.msra.mxu1 %v9868_v22  ;;  %v9301_v22 = vpack.c.bf16 %v22563_v35, %v22702_v5  ;;  %v9250_v35 = vld [vmem:[#allocation2 + $0x524] sm:$0xff] }
 0x73c   : > { %18278 = vmatpush3.bf16.msra.mxu0 %v9008_v18  ;;  %v8991_v18 = vpack.c.bf16 %v8933_v34, %v8932_v32  ;;  %v8949_v34 = vld [vmem:[#allocation2 + $0x648] sm:$0xff] }
 0x73d   : > { %18279 = vmatprep.subr.bf16.mxu0 %v9009_v7  ;;  %v8999_v13 = vpack.c.bf16 %v8949_v34, %v8948_v46  ;;  %v9798_v46 = vld [vmem:[#allocation2 + $0x338] sm:$0xff] }
 0x73f   : > { %18248 = vmatmul.mubr.bf16.gmra.mrb[44].mxu0 %v22477_v55  ;;  %v8634_v55 = vld [vmem:[#allocation2 + $0x63c] sm:$0xff] }
 0x740   : > { %18251 = vmatprep.mubr.bf16.mxu0 %v22626_v42  ;;  %18280 = vmatpush3.bf16.msra.mxu0 %v9009_v7  ;;  %v8636_v42 = vld [vmem:[#allocation2 + $0x66c] sm:$0xff]  ;;  %v8685_v10 = vpack.c.bf16 %v22724_v21, %v8634_v55  ;;  %v8939_v55 = vld [vmem:[#allocation2 + $0x558] sm:$0xff] }
 0x741   : > { %18281 = vmatprep.subr.bf16.mxu0 %v9010_v59  ;;  %v8934_v7 = vld [vmem:[#allocation2 + $0x4f0] sm:$0xff]  ;;  %v8994_v44 = vpack.c.bf16 %v8939_v55, %v8938_v54  ;;  %v9303_v55 = vpack.c.bf16 %v22577_v56, %v22708_v57  ;;  %v9261_v56 = vld [vmem:[#allocation2 + $0x61c] sm:$0xff] }
 0x742   : > { %v10177_v54 = vld [vmem:[#allocation4 + $0x710] sm:$0xff] }
 0x744   : > { %18282 = vmatpush3.bf16.msra.mxu0 %v9010_v59  ;;  %v8992_v59 = vpack.c.bf16 %v8935_v20, %v8934_v7  ;;  %v8951_v20 = vld [vmem:[#allocation2 + $0x678] sm:$0xff]  ;;  %v8953_v7 = vld [vmem:[#allocation2 + $0x6a8] sm:$0xff] }
 0x745   : > { %18315 = vmatprep.subr.bf16.mxu0 %v9317_v61 }
 0x747   : > { %18252 = vmatmul.mubr.bf16.gmra.mrb[48].mxu0 %v22635_v62  ;;  %v8686_v62 = vpack.c.bf16 %v22726_v29, %v8636_v42  ;;  %v9323_v42 = vld [vmem:[#allocation4 + $0x6b0] sm:$0xff] }
 0x748   : > { %18255 = vmatprep.mubr.bf16.mxu0 %v22638_v23  ;;  %v8638_v23 = vld [vmem:[#allocation2 + $0x69c] sm:$0xff] }
 0x749   : > { %v8687_v27 = vpack.c.bf16 %v22730_v3, %v8638_v23  ;;  %v10175_v23 = vld [vmem:[#allocation4 + $0x700] sm:$0xff] }
 0x74a   : > { %18411 = vmatprep.subr.bf16.mxu1 %v10175_v23 }
 0x74f   : > { %18256 = vmatmul.mubr.bf16.gmra.mrb[52].mxu0 %v22645_v28  ;;  %v8922_v28 = vld [vmem:[#allocation2 + $0x3d0] sm:$0xff] }
 0x750   : > { %18259 = vmatprep.mubr.bf16.mxu0 %v8684_v40  ;;  %v8986_v19 = vpack.c.bf16 %v8923_v53, %v8922_v28  ;;  %v8937_v40 = vld [vmem:[#allocation2 + $0x528] sm:$0xff]  ;;  %v22739_v53 = vld [vmem:[#allocation2 + $0x1f0] sm:$0xff]  ;;  %v8936_v28 = vld [vmem:[#allocation2 + $0x520] sm:$0xff] }
 0x757   : > { %18260 = vmatmul.mubr.bf16.gmra.mrb[56].mxu0 %v8685_v10  ;;  %v9782_v10 = vld [vmem:[#allocation2 + $0x1b8] sm:$0xff] }
 0x758   : > { %18263 = vmatprep.mubr.bf16.mxu0 %v8686_v62  ;;  %v22737_v62 = vld [vmem:[#allocation2 + $0x1c0] sm:$0xff] }
 0x759   : > { %v9845_v36 = vpack.c.bf16 %v22737_v62, %v9782_v10  ;;  %v9246_v10 = vld [vmem:[#allocation2 + $0x4c4] sm:$0xff] }
 0x75b   : > { %18380 = vmatmul.mubr.bf16.vlgmr.msra.gmra.mrb[64].mxu1 %v9845_v36  ;;  %v10178_v36 = vld [vmem:[#allocation4 + $0x718] sm:$0xff] }
 0x75c   : > { %18412 = vmatpush3.bf16.msra.mxu1 %v10175_v23 }
 0x75d   : > { %18413 = vmatprep.subr.bf16.mxu1 %v10176_v26 }
 0x75f   : > { %18264 = vmatmul.mubr.bf16.gmra.mrb[60].mxu0 %v8687_v27  ;;  %v9784_v27 = vld [vmem:[#allocation2 + $0x1e8] sm:$0xff] }
 0x760   : > { %18283 = vmatprep.mubr.bf16.mxu0 %v8986_v19  ;;  %v8993_v19 = vpack.c.bf16 %v8937_v40, %v8936_v28  ;;  %v9846_v38 = vpack.c.bf16 %v22739_v53, %v9784_v27  ;;  %18414 = vmatpush3.bf16.msra.mxu1 %v10176_v26  ;;  %v9302_v40 = vpack.c.bf16 %v22565_v12, %v22704_v39  ;;  %v9794_v28 = vld [vmem:[#allocation2 + $0x2d8] sm:$0xff] }
 0x761   : > { %v9307_v12 = vpack.c.bf16 %v22605_v48, %v9250_v35  ;;  %v9267_v48 = vld [vmem:[#allocation2 + $0x6ac] sm:$0xff]  ;;  %18415 = vmatprep.subr.bf16.mxu1 %v10177_v54  ;;  %v10182_v26 = vld [vmem:[#allocation4 + $0x738] sm:$0xff] }
 0x762   : > { %18383 = vmatprep.mubr.bf16.mxu1 %v9846_v38  ;;  %v10181_v38 = vld [vmem:[#allocation4 + $0x730] sm:$0xff] }
 0x764   : > { %18416 = vmatpush3.bf16.msra.mxu1 %v10177_v54 }
 0x765   : > { %18417 = vmatprep.subr.bf16.mxu1 %v10178_v36 }
 0x767   : > { %18284 = vmatmul.mubr.bf16.vlgmr.msra.gmra.mrb[32].mxu0 %v8987_v58  ;;  %v9786_v58 = vld [vmem:[#allocation2 + $0x218] sm:$0xff] }
 0x768   : > { %18287 = vmatprep.mubr.bf16.mxu0 %v8988_v37  ;;  %18316 = vmatpush3.bf16.msra.mxu0 %v9317_v61  ;;  %v9322_v61 = vld [vmem:[#allocation4 + $0x6a8] sm:$0xff]  ;;  %v8943_v37 = vld [vmem:[#allocation2 + $0x5b8] sm:$0xff] }
 0x769   : > { %18317 = vmatprep.subr.bf16.mxu0 %v9318_v16  ;;  %v8996_v47 = vpack.c.bf16 %v8943_v37, %v8942_v4  ;;  %18418 = vmatpush3.bf16.msra.mxu1 %v10178_v36 }
 0x76c   : > { %18318 = vmatpush3.bf16.msra.mxu0 %v9318_v16  ;;  %v8940_v16 = vld [vmem:[#allocation2 + $0x580] sm:$0xff] }
 0x76d   : > { %18319 = vmatprep.subr.bf16.mxu0 %v9319_v45  ;;  %v8995_v49 = vpack.c.bf16 %v8941_v50, %v8940_v16  ;;  %v22779_v50 = vld [vmem:[#allocation4 + $0x740] sm:$0xff] }
 0x76f   : > { %18288 = vmatmul.mubr.bf16.gmra.mrb[36].mxu0 %v8989_v43  ;;  %v8945_v43 = vld [vmem:[#allocation2 + $0x5e8] sm:$0xff] }
 0x770   : > { %18291 = vmatprep.mubr.bf16.mxu0 %v8990_v63  ;;  %18320 = vmatpush3.bf16.msra.mxu0 %v9319_v45  ;;  %v9847_v45 = vpack.c.bf16 %v22743_v33, %v9786_v58  ;;  %v8998_v63 = vpack.c.bf16 %v8947_v14, %v8946_v60  ;;  %v22782_v58 = vld [vmem:[#allocation8 + $0x2] ss:$0 sm:$0xff] }
 0x771   : > { %18321 = vmatprep.subr.bf16.mxu0 %v9320_v2 }
 0x772   : > { %18384 = vmatmul.mubr.bf16.gmra.mrb[68].mxu1 %v9847_v45 }
 0x774   : > { %18322 = vmatpush3.bf16.msra.mxu0 %v9320_v2  ;;  %v8997_v2 = vpack.c.bf16 %v8945_v43, %v8944_v15  ;;  %v9796_v43 = vld [vmem:[#allocation2 + $0x308] sm:$0xff]  ;;  %v9616_v15 = vld [vmem:[%s21397_s21 + $0x10] sm:$0xff] }
 0x775   : > { %18323 = vmatprep.subr.bf16.mxu0 %v9321_v30 }
 0x777   : > { %18292 = vmatmul.mubr.bf16.gmra.mrb[40].mxu0 %v8991_v18  ;;  %v8952_v18 = vld [vmem:[#allocation2 + $0x6a0] sm:$0xff] }
 0x778   : > { %18295 = vmatprep.mubr.bf16.mxu0 %v8992_v59  ;;  %18324 = vmatpush3.bf16.msra.mxu0 %v9321_v30  ;;  %v8950_v30 = vld [vmem:[#allocation2 + $0x670] sm:$0xff]  ;;  %v9001_v59 = vpack.c.bf16 %v8953_v7, %v8952_v18 }
 0x779   : > { %18325 = vmatprep.subr.bf16.mxu0 %v9322_v61  ;;  %v9000_v32 = vpack.c.bf16 %v8951_v20, %v8950_v30  ;;  %v9614_v30 = vld [vmem:[%s21397_s21] sm:$0xff] }
 0x77c   : > { %18326 = vmatpush3.bf16.msra.mxu0 %v9322_v61  ;;  %v9300_v61 = vpack.c.bf16 %v22554_v8, %v22695_v52  ;;  %v9248_v8 = vld [vmem:[#allocation2 + $0x4f4] sm:$0xff]  ;;  %v9305_v52 = vpack.c.bf16 %v22591_v6, %v9246_v10  ;;  %v9263_v6 = vld [vmem:[#allocation2 + $0x64c] sm:$0xff] }
 0x77d   : > { %18327 = vmatprep.subr.bf16.mxu0 %v9323_v42  ;;  %v9306_v23 = vpack.c.bf16 %v22593_v51, %v9248_v8  ;;  %v9265_v51 = vld [vmem:[#allocation2 + $0x67c] sm:$0xff]  ;;  %v9313_v5 = vpack.c.bf16 %v9263_v6, %v22724_v21  ;;  %v9792_v21 = vld [vmem:[#allocation2 + $0x2a8] sm:$0xff] }
 0x77e   : > { %v9314_v39 = vpack.c.bf16 %v9265_v51, %v22726_v29  ;;  %v22773_v29 = vld [vmem:[#allocation2 + $0x2b0] sm:$0xff]  ;;  %v9800_v6 = vld [vmem:[#allocation2 + $0x368] sm:$0xff]  ;;  %v9620_v51 = vld [vmem:[%s21397_s21 + $0x30] sm:$0xff] }
 0x77f   : > { %18296 = vmatmul.mubr.bf16.gmra.mrb[44].mxu0 %v8993_v19  ;;  %v9850_v27 = vpack.c.bf16 %v22773_v29, %v9792_v21 }
 0x780   : > { %18299 = vmatprep.mubr.bf16.mxu0 %v8994_v44  ;;  %18328 = vmatpush3.bf16.msra.mxu0 %v9323_v42  ;;  %v9304_v42 = vpack.c.bf16 %v22579_v17, %v22710_v9  ;;  %v9312_v17 = vpack.c.bf16 %v9261_v56, %v22720_v11  ;;  %v9790_v9 = vld [vmem:[#allocation2 + $0x278] sm:$0xff]  ;;  %v10179_v44 = vld [vmem:[#allocation4 + $0x720] sm:$0xff] }
 0x781   : > { %18329 = vmatprep.subr.bf16.mxu0 %v9324_v31  ;;  %18419 = vmatprep.subr.bf16.mxu1 %v10179_v44 }
 0x782   : > { %18420 = vmatpush3.bf16.msra.mxu1 %v10179_v44 }
 0x784   : > { %18330 = vmatpush3.bf16.msra.mxu0 %v9324_v31  ;;  %v10180_v31 = vld [vmem:[#allocation4 + $0x728] sm:$0xff] }
 0x785   : > { %18421 = vmatprep.subr.bf16.mxu1 %v10180_v31 }
 0x786   : > { %18422 = vmatpush3.bf16.msra.mxu1 %v10180_v31 }
 0x787   : > { %18300 = vmatmul.mubr.bf16.gmra.mrb[48].mxu0 %v8995_v49  ;;  %18423 = vmatprep.subr.bf16.mxu1 %v10181_v38 }
 0x788   : > { %18303 = vmatprep.mubr.bf16.mxu0 %v8996_v47 }
 0x78a   : > { %18424 = vmatpush3.bf16.msra.mxu1 %v10181_v38 }
 0x78b   : > { %18425 = vmatprep.subr.bf16.mxu1 %v10182_v26 }
 0x78e   : > { %18426 = vmatpush3.bf16.msra.mxu1 %v10182_v26 }
 0x78f   : > { %18304 = vmatmul.mubr.bf16.gmra.mrb[52].mxu0 %v8997_v2  ;;  %18459 = vmatprep.subr.bf16.mxu1 %v22779_v50 }
 0x790   : > { %18307 = vmatprep.mubr.bf16.mxu0 %v8998_v63 }
 0x797   : > { %18308 = vmatmul.mubr.bf16.gmra.mrb[56].mxu0 %v8999_v13 }
 0x798   : > { %18311 = vmatprep.mubr.bf16.mxu0 %v9000_v32  ;;  %v9617_v32 = vld [vmem:[%s21397_s21 + $0x18] sm:$0xff] }
 0x79f   : > { %18312 = vmatmul.mubr.bf16.gmra.mrb[60].mxu0 %v9001_v59 }
 0x7a0   : > { %18331 = vmatprep.mubr.bf16.mxu0 %v9300_v61  ;;  %v9615_v61 = vld [vmem:[%s21397_s21 + $0x8] sm:$0xff] }
 0x7a7   : > { %18332 = vmatmul.mubr.bf16.vlgmr.msra.gmra.mrb[32].mxu0 %v9301_v22 }
 0x7a8   : > { %18335 = vmatprep.mubr.bf16.mxu0 %v9302_v40 }
 0x7af   : > { %18336 = vmatmul.mubr.bf16.gmra.mrb[36].mxu0 %v9303_v55 }
 0x7b0   : > { %18339 = vmatprep.mubr.bf16.mxu0 %v9304_v42 }
 0x7b7   : > { %18340 = vmatmul.mubr.bf16.gmra.mrb[40].mxu0 %v9305_v52 }
 0x7b8   : > { %18343 = vmatprep.mubr.bf16.mxu0 %v9306_v23 }
 0x7bf   : > { %18344 = vmatmul.mubr.bf16.gmra.mrb[44].mxu0 %v9307_v12 }
 0x7c0   : > { %18347 = vmatprep.mubr.bf16.mxu0 %v22683_v1  ;;  %v9315_v1 = vpack.c.bf16 %v9267_v48, %v22730_v3  ;;  %v22776_v3 = vld [vmem:[#allocation2 + $0x2e0] sm:$0xff]  ;;  %v9802_v48 = vld [vmem:[#allocation2 + $0x398] sm:$0xff] }
 0x7c1   : > { %v9851_v19 = vpack.c.bf16 %v22776_v3, %v9794_v28 }
 0x7c7   : > { %18348 = vmatmul.mubr.bf16.gmra.mrb[48].mxu0 %v22688_v41  ;;  %v9788_v41 = vld [vmem:[#allocation2 + $0x248] sm:$0xff] }
 0x7c8   : > { %18351 = vmatprep.mubr.bf16.mxu0 %v22691_v0  ;;  %v22767_v0 = vld [vmem:[#allocation2 + $0x250] sm:$0xff] }
 0x7c9   : > { %v9848_v57 = vpack.c.bf16 %v22767_v0, %v9788_v41  ;;  %v9618_v41 = vld [vmem:[%s21397_s21 + $0x20] sm:$0xff] }
 0x7cb   : > { %18387 = vmatprep.mubr.bf16.mxu1 %v9848_v57 }
 0x7cf   : > { %18352 = vmatmul.mubr.bf16.gmra.mrb[52].mxu0 %v22698_v25  ;;  %v22770_v25 = vld [vmem:[#allocation2 + $0x280] sm:$0xff] }
 0x7d0   : > { %18355 = vmatprep.mubr.bf16.mxu0 %v9312_v17  ;;  %v9849_v11 = vpack.c.bf16 %v22770_v25, %v9790_v9 }
 0x7d2   : > { %18388 = vmatmul.mubr.bf16.gmra.mrb[72].mxu1 %v9849_v11  ;;  %v9621_v11 = vld [vmem:[%s21397_s21 + $0x38] sm:$0xff] }
 0x7d3   : > { %18391 = vmatprep.mubr.bf16.mxu1 %v9850_v27 }
 0x7d7   : > { %18356 = vmatmul.mubr.bf16.gmra.mrb[56].mxu0 %v9313_v5 }
 0x7d8   : > { %18359 = vmatprep.mubr.bf16.mxu0 %v9314_v39 }
 0x7da   : > { %18392 = vmatmul.mubr.bf16.gmra.mrb[76].mxu1 %v9851_v19  ;;  %v9619_v19 = vld [vmem:[%s21397_s21 + $0x28] sm:$0xff] }
 0x7df   : > { %18360 = vmatmul.mubr.bf16.gmra.mrb[60].mxu0 %v9315_v1 }
 0x87a   : > { %v18333_v37 = vpop.f32.mrb[32].mxu0 }
 0x87b   : > { %v19339_v16 = vadd.f32 %v18333_v37, %v22782_v58  ;;  %v9359_v49 = vpop.f32.mrb[33].mxu0 }
 0x87c   : > { %v19340_v4 = vadd.f32 %v22782_v58, %v9359_v49  ;;  %v18334_v45 = vpop.f32.mrb[34].mxu0 }
 0x87d   : > { %v22786_v47 = vmax.f32 %v19339_v16, 0.0  ;;  %v19341_v60 = vadd.f32 %v18334_v45, %v22782_v58  ;;  %v9362_v14 = vpop.f32.mrb[35].mxu0 }
 0x87e   : > { %v22790_v63 = vmax.f32 %v19340_v4, 0.0  ;;  %v19342_v2 = vadd.f32 %v22782_v58, %v9362_v14  ;;  %v9804_v14 = vld [vmem:[#allocation2 + $0x3c8] sm:$0xff] }
 0x87f   : > { %v9648_v34 = vadd.f32 %v9616_v15, %v22786_v47  ;;  %9712 = vst [vmem:[#allocation2 + $0x340] sm:$0xff] %v22786_v47  ;;  %v22796_v20 = vmax.f32 %v19341_v60, 0.0  ;;  %v22811_v22 = vpack.c.bf16 %v22786_v47, %v9798_v46  ;;  %v9806_v46 = vld [vmem:[#allocation2 + $0x3f8] sm:$0xff] }
 0x880   : > { %v9646_v13 = vadd.f32 %v9614_v30, %v22790_v63  ;;  %9710 = vst [vmem:[#allocation2 + $0x310] sm:$0xff] %v22790_v63  ;;  %v22801_v18 = vmax.f32 %v19342_v2, 0.0  ;;  %v22804_v7 = vpack.c.bf16 %v22790_v63, %v9796_v43  ;;  %v9624_v43 = vld [vmem:[%s21397_s21 + $0x50] sm:$0xff]  ;;  %v9622_v30 = vld [vmem:[%s21397_s21 + $0x40] sm:$0xff] }
 0x881   : > { %9680 = vst [vmem:[%s21397_s21 + $0x10] sm:$0xff] %v9648_v34  ;;  %v9649_v59 = vadd.f32 %v9617_v32, %v22796_v20  ;;  %9713 = vst [vmem:[#allocation2 + $0x348] sm:$0xff] %v22796_v20  ;;  %v10167_v40 = vpack.c.bf16 %v22796_v20, %v22786_v47  ;;  %v10411_v47 = vld [vmem:[#allocation2 + $0x1d0] sm:$0xff] }
 0x882   : > { %9678 = vst [vmem:[%s21397_s21] sm:$0xff] %v9646_v13  ;;  %v9647_v55 = vadd.f32 %v9615_v61, %v22801_v18  ;;  %9711 = vst [vmem:[#allocation2 + $0x318] sm:$0xff] %v22801_v18  ;;  %v18337_v42 = vpop.f32.mrb[36].mxu0  ;;  %18395 = vmatprep.mubr.bf16.mxu1 %v22804_v7  ;;  %v10166_v10 = vpack.c.bf16 %v22801_v18, %v22790_v63  ;;  %v10409_v63 = vld [vmem:[#allocation2 + $0x1a0] sm:$0xff] }
 0x883   : > { %9681 = vst [vmem:[%s21397_s21 + $0x18] sm:$0xff] %v9649_v59  ;;  %v19343_v8 = vadd.f32 %v18337_v42, %v22782_v58  ;;  %v9375_v52 = vpop.f32.mrb[37].mxu0  ;;  %18396 = vmatmul.mubr.bf16.gmra.mrb[80].mxu1 %v22811_v22  ;;  %v9625_v59 = vld [vmem:[%s21397_s21 + $0x58] sm:$0xff] }
 0x884   : > { %9679 = vst [vmem:[%s21397_s21 + $0x8] sm:$0xff] %v9647_v55  ;;  %v19344_v23 = vadd.f32 %v22782_v58, %v9375_v52  ;;  %v18338_v35 = vpop.f32.mrb[38].mxu0 }
 0x885   : > { %v22826_v12 = vmax.f32 %v19343_v8, 0.0  ;;  %v19345_v56 = vadd.f32 %v18338_v35, %v22782_v58  ;;  %v9378_v17 = vpop.f32.mrb[39].mxu0  ;;  %v9623_v8 = vld [vmem:[%s21397_s21 + $0x48] sm:$0xff] }
 0x886   : > { %v9586_v5 = vmax.f32 %v19344_v23, 0.0  ;;  %v19346_v39 = vadd.f32 %v22782_v58, %v9378_v17 }
 0x887   : > { %v9652_v1 = vadd.f32 %v9620_v51, %v22826_v12  ;;  %9716 = vst [vmem:[#allocation2 + $0x3a0] sm:$0xff] %v22826_v12  ;;  %v22834_v57 = vmax.f32 %v19345_v56, 0.0  ;;  %v22846_v54 = vpack.c.bf16 %v22826_v12, %v9802_v48 }
 0x888   : > { %v9650_v9 = vadd.f32 %v9618_v41, %v9586_v5  ;;  %v22837_v21 = vmax.f32 %v19346_v39, 0.0  ;;  %v22839_v27 = vpack.c.bf16 %v9586_v5, %v9800_v6 }
 0x889   : > { %9684 = vst [vmem:[%s21397_s21 + $0x30] sm:$0xff] %v9652_v1  ;;  %v9653_v28 = vadd.f32 %v9621_v11, %v22834_v57  ;;  %9717 = vst [vmem:[#allocation2 + $0x3a8] sm:$0xff] %v22834_v57  ;;  %v10169_v36 = vpack.c.bf16 %v22834_v57, %v22826_v12  ;;  %v22895_v11 = vld [vmem:[#allocation2 + $0x198] sm:$0xff]  ;;  %v10804_v12 = vld [vmem:[#allocation4 + $0x788] sm:$0xff] }
 0x88a   : > { %9682 = vst [vmem:[%s21397_s21 + $0x20] sm:$0xff] %v9650_v9  ;;  %v9651_v44 = vadd.f32 %v9619_v19, %v22837_v21  ;;  %9715 = vst [vmem:[#allocation2 + $0x378] sm:$0xff] %v22837_v21  ;;  %v18341_v31 = vpop.f32.mrb[40].mxu0  ;;  %18399 = vmatprep.mubr.bf16.mxu1 %v22839_v27  ;;  %v22855_v38 = vpack.c.bf16 %v22837_v21, %v9586_v5  ;;  %v9808_v9 = vld [vmem:[#allocation2 + $0x428] sm:$0xff] }
 0x88b   : > { %9685 = vst [vmem:[%s21397_s21 + $0x38] sm:$0xff] %v9653_v28  ;;  %v19347_v26 = vadd.f32 %v18341_v31, %v22782_v58  ;;  %v9391_v37 = vpop.f32.mrb[41].mxu0  ;;  %18400 = vmatmul.mubr.bf16.gmra.mrb[84].mxu1 %v22846_v54  ;;  %v9628_v28 = vld [vmem:[%s21397_s21 + $0x70] sm:$0xff] }
 0x88c   : > { %9683 = vst [vmem:[%s21397_s21 + $0x28] sm:$0xff] %v9651_v44  ;;  %v19348_v16 = vadd.f32 %v22782_v58, %v9391_v37  ;;  %v18342_v49 = vpop.f32.mrb[42].mxu0  ;;  %v9810_v31 = vld [vmem:[#allocation2 + $0x458] sm:$0xff]  ;;  %v9626_v37 = vld [vmem:[%s21397_s21 + $0x60] sm:$0xff] }
 0x88d   : > { %v9592_v4 = vmax.f32 %v19347_v26, 0.0  ;;  %v19349_v45 = vadd.f32 %v18342_v49, %v22782_v58  ;;  %v9394_v60 = vpop.f32.mrb[43].mxu0 }
 0x88e   : > { %v9590_v15 = vmax.f32 %v19348_v16, 0.0  ;;  %v19350_v2 = vadd.f32 %v22782_v58, %v9394_v60 }
 0x88f   : > { %v9656_v34 = vadd.f32 %v9624_v43, %v9592_v4  ;;  %v22866_v13 = vmax.f32 %v19349_v45, 0.0  ;;  %v22877_v52 = vpack.c.bf16 %v9592_v4, %v9806_v46 }
 0x890   : > { %v9654_v32 = vadd.f32 %v9622_v30, %v9590_v15  ;;  %v22869_v61 = vmax.f32 %v19350_v2, 0.0  ;;  %v22871_v55 = vpack.c.bf16 %v9590_v15, %v9804_v14  ;;  %v10158_v14 = vpack.c.bf16 %v22895_v11, %v22733_v24 }
 0x891   : > { %9688 = vst [vmem:[%s21397_s21 + $0x50] sm:$0xff] %v9656_v34  ;;  %v9657_v42 = vadd.f32 %v9625_v59, %v22866_v13  ;;  %9721 = vst [vmem:[#allocation2 + $0x408] sm:$0xff] %v22866_v13  ;;  %v22880_v23 = vpack.c.bf16 %v22866_v13, %v9592_v4  ;;  %v9629_v4 = vld [vmem:[%s21397_s21 + $0x78] sm:$0xff] }
 0x892   : > { %9686 = vst [vmem:[%s21397_s21 + $0x40] sm:$0xff] %v9654_v32  ;;  %v9655_v35 = vadd.f32 %v9623_v8, %v22869_v61  ;;  %9719 = vst [vmem:[#allocation2 + $0x3d8] sm:$0xff] %v22869_v61  ;;  %v18345_v56 = vpop.f32.mrb[44].mxu0  ;;  %18403 = vmatprep.mubr.bf16.mxu1 %v22871_v55  ;;  %v22887_v17 = vpack.c.bf16 %v22869_v61, %v9590_v15  ;;  %v9627_v15 = vld [vmem:[%s21397_s21 + $0x68] sm:$0xff] }
 0x893   : > { %9689 = vst [vmem:[%s21397_s21 + $0x58] sm:$0xff] %v9657_v42  ;;  %v19351_v6 = vadd.f32 %v18345_v56, %v22782_v58  ;;  %v9407_v51 = vpop.f32.mrb[45].mxu0  ;;  %18404 = vmatmul.mubr.bf16.gmra.mrb[88].mxu1 %v22877_v52 }
 0x894   : > { %9687 = vst [vmem:[%s21397_s21 + $0x48] sm:$0xff] %v9655_v35  ;;  %v19352_v5 = vadd.f32 %v22782_v58, %v9407_v51  ;;  %v18346_v39 = vpop.f32.mrb[46].mxu0  ;;  %v22930_v35 = vld [vmem:[#allocation2 + $0x1c8] sm:$0xff] }
 0x895   : > { %v9596_v48 = vmax.f32 %v19351_v6, 0.0  ;;  %v19353_v1 = vadd.f32 %v18346_v39, %v22782_v58  ;;  %v9410_v41 = vpop.f32.mrb[47].mxu0  ;;  %v9632_v39 = vld [vmem:[%s21397_s21 + $0x90] sm:$0xff] }
 0x896   : > { %v9594_v19 = vmax.f32 %v19352_v5, 0.0  ;;  %v19354_v44 = vadd.f32 %v22782_v58, %v9410_v41  ;;  %v22935_v5 = vld [vmem:[#allocation2 + $0x1f8] sm:$0xff] }
 0x897   : > { %v9660_v26 = vadd.f32 %v9628_v28, %v9596_v48  ;;  %v22900_v16 = vmax.f32 %v19353_v1, 0.0  ;;  %v22913_v2 = vpack.c.bf16 %v9596_v48, %v9810_v31  ;;  %v9633_v31 = vld [vmem:[%s21397_s21 + $0x98] sm:$0xff] }
 0x898   : > { %v9658_v49 = vadd.f32 %v9626_v37, %v9594_v19  ;;  %v22903_v45 = vmax.f32 %v19354_v44, 0.0  ;;  %v22905_v60 = vpack.c.bf16 %v9594_v19, %v9808_v9  ;;  %v9630_v9 = vld [vmem:[%s21397_s21 + $0x80] sm:$0xff]  ;;  %v10160_v37 = vpack.c.bf16 %v22935_v5, %v22739_v53 }
 0x899   : > { %9692 = vst [vmem:[%s21397_s21 + $0x70] sm:$0xff] %v9660_v26  ;;  %v9661_v43 = vadd.f32 %v9629_v4, %v22900_v16  ;;  %9725 = vst [vmem:[#allocation2 + $0x468] sm:$0xff] %v22900_v16  ;;  %v22916_v46 = vpack.c.bf16 %v22900_v16, %v9596_v48  ;;  %v9631_v4 = vld [vmem:[%s21397_s21 + $0x88] sm:$0xff] }
 0x89a   : > { %9690 = vst [vmem:[%s21397_s21 + $0x60] sm:$0xff] %v9658_v49  ;;  %v9659_v34 = vadd.f32 %v9627_v15, %v22903_v45  ;;  %9723 = vst [vmem:[#allocation2 + $0x438] sm:$0xff] %v22903_v45  ;;  %v18349_v30 = vpop.f32.mrb[48].mxu0  ;;  %18407 = vmatprep.mubr.bf16.mxu1 %v22905_v60  ;;  %v22923_v24 = vpack.c.bf16 %v22903_v45, %v9594_v19  ;;  %v10159_v19 = vpack.c.bf16 %v22930_v35, %v22737_v62  ;;  %v10490_v15 = vld [vmem:[#allocation4 + $0x748] sm:$0xff] }
 0x89b   : > { %9693 = vst [vmem:[%s21397_s21 + $0x78] sm:$0xff] %v9661_v43  ;;  %v19355_v32 = vadd.f32 %v18349_v30, %v22782_v58  ;;  %v9423_v59 = vpop.f32.mrb[49].mxu0  ;;  %18408 = vmatmul.mubr.bf16.gmra.mrb[92].mxu1 %v22913_v2 }
 0x89c   : > { %9691 = vst [vmem:[%s21397_s21 + $0x68] sm:$0xff] %v9659_v34  ;;  %v19356_v42 = vadd.f32 %v22782_v58, %v9423_v59  ;;  %v18350_v8 = vpop.f32.mrb[50].mxu0  ;;  %18427 = vmatprep.mubr.bf16.mxu1 %v10158_v14 }
 0x89d   : > { %v22932_v56 = vmax.f32 %v19355_v32, 0.0  ;;  %v19357_v6 = vadd.f32 %v18350_v8, %v22782_v58  ;;  %v9426_v51 = vpop.f32.mrb[51].mxu0 }
 0x89e   : > { %v22938_v48 = vmax.f32 %v19356_v42, 0.0  ;;  %v19358_v1 = vadd.f32 %v22782_v58, %v9426_v51  ;;  %v22971_v42 = vld [vmem:[#allocation2 + $0x228] sm:$0xff] }
 0x89f   : > { %v9664_v41 = vadd.f32 %v9632_v39, %v22932_v56  ;;  %9728 = vst [vmem:[#allocation2 + $0x4c0] sm:$0xff] %v22932_v56  ;;  %v22944_v28 = vmax.f32 %v19357_v6, 0.0  ;;  %v22976_v39 = vld [vmem:[#allocation2 + $0x258] sm:$0xff] }
 0x8a0   : > { %v9662_v44 = vadd.f32 %v9630_v9, %v22938_v48  ;;  %9726 = vst [vmem:[#allocation2 + $0x490] sm:$0xff] %v22938_v48  ;;  %v22951_v26 = vmax.f32 %v19358_v1, 0.0  ;;  %v9636_v1 = vld [vmem:[%s21397_s21 + $0xb0] sm:$0xff] }
 0x8a1   : > { %9696 = vst [vmem:[%s21397_s21 + $0x90] sm:$0xff] %v9664_v41  ;;  %v9665_v49 = vadd.f32 %v9633_v31, %v22944_v28  ;;  %9729 = vst [vmem:[#allocation2 + $0x4c8] sm:$0xff] %v22944_v28 }
 0x8a2   : > { %9694 = vst [vmem:[%s21397_s21 + $0x80] sm:$0xff] %v9662_v44  ;;  %v9663_v14 = vadd.f32 %v9631_v4, %v22951_v26  ;;  %9727 = vst [vmem:[#allocation2 + $0x498] sm:$0xff] %v22951_v26  ;;  %v18353_v43 = vpop.f32.mrb[52].mxu0  ;;  %v11108_v53 = vpack.c.bf16 %v22951_v26, %v22938_v48  ;;  %v9634_v44 = vld [vmem:[%s21397_s21 + $0xa0] sm:$0xff]  ;;  %v9637_v4 = vld [vmem:[%s21397_s21 + $0xb8] sm:$0xff] }
 0x8a3   : > { %9697 = vst [vmem:[%s21397_s21 + $0x98] sm:$0xff] %v9665_v49  ;;  %v19359_v34 = vadd.f32 %v18353_v43, %v22782_v58  ;;  %v9439_v30 = vpop.f32.mrb[53].mxu0  ;;  %18428 = vmatmul.mubr.bf16.vlgmr.msra.gmra.mrb[64].mxu1 %v10159_v19  ;;  %v10162_v43 = vpack.c.bf16 %v22976_v39, %v22767_v0  ;;  %v10494_v0 = vld [vmem:[#allocation4 + $0x768] sm:$0xff] }
 0x8a4   : > { %9695 = vst [vmem:[%s21397_s21 + $0x88] sm:$0xff] %v9663_v14  ;;  %v19360_v32 = vadd.f32 %v22782_v58, %v9439_v30  ;;  %v18354_v59 = vpop.f32.mrb[54].mxu0  ;;  %18460 = vmatpush3.bf16.msra.mxu1 %v22779_v50  ;;  %18431 = vmatprep.mubr.bf16.mxu1 %v10160_v37  ;;  %v10491_v50 = vld [vmem:[#allocation4 + $0x750] sm:$0xff]  ;;  %v10161_v37 = vpack.c.bf16 %v22971_v42, %v22743_v33 }
 0x8a5   : > { %v22973_v8 = vmax.f32 %v19359_v34, 0.0  ;;  %v19361_v6 = vadd.f32 %v18354_v59, %v22782_v58  ;;  %v9442_v51 = vpop.f32.mrb[55].mxu0  ;;  %18461 = vmatprep.subr.bf16.mxu1 %v10490_v15  ;;  %v9635_v30 = vld [vmem:[%s21397_s21 + $0xa8] sm:$0xff]  ;;  %v10492_v59 = vld [vmem:[#allocation4 + $0x758] sm:$0xff] }
 0x8a6   : > { %v22979_v41 = vmax.f32 %v19360_v32, 0.0  ;;  %v19362_v9 = vadd.f32 %v22782_v58, %v9442_v51  ;;  %v9639_v33 = vld [vmem:[%s21397_s21 + $0xc8] sm:$0xff] }
 0x8a7   : > { %v9668_v19 = vadd.f32 %v9636_v1, %v22973_v8  ;;  %9732 = vst [vmem:[#allocation2 + $0x520] sm:$0xff] %v22973_v8  ;;  %v22985_v31 = vmax.f32 %v19361_v6, 0.0 }
 0x8a8   : > { %v9666_v49 = vadd.f32 %v9634_v44, %v22979_v41  ;;  %9730 = vst [vmem:[#allocation2 + $0x4f0] sm:$0xff] %v22979_v41  ;;  %v22992_v14 = vmax.f32 %v19362_v9, 0.0  ;;  %18462 = vmatpush3.bf16.msra.mxu1 %v10490_v15 }
 0x8a9   : > { %9700 = vst [vmem:[%s21397_s21 + $0xb0] sm:$0xff] %v9668_v19  ;;  %v9669_v34 = vadd.f32 %v9637_v4, %v22985_v31  ;;  %9733 = vst [vmem:[#allocation2 + $0x528] sm:$0xff] %v22985_v31  ;;  %18463 = vmatprep.subr.bf16.mxu1 %v10491_v50  ;;  %v23011_v19 = vld [vmem:[#allocation2 + $0x288] sm:$0xff] }
 0x8aa   : > { %9698 = vst [vmem:[%s21397_s21 + $0xa0] sm:$0xff] %v9666_v49  ;;  %v9667_v32 = vadd.f32 %v9635_v30, %v22992_v14  ;;  %9731 = vst [vmem:[#allocation2 + $0x4f8] sm:$0xff] %v22992_v14  ;;  %v18357_v15 = vpop.f32.mrb[56].mxu0 }
 0x8ab   : > { %9701 = vst [vmem:[%s21397_s21 + $0xb8] sm:$0xff] %v9669_v34  ;;  %v19363_v6 = vadd.f32 %v18357_v15, %v22782_v58  ;;  %v9455_v51 = vpop.f32.mrb[57].mxu0  ;;  %18432 = vmatmul.mubr.bf16.gmra.mrb[68].mxu1 %v10161_v37  ;;  %v23016_v34 = vld [vmem:[#allocation2 + $0x2b8] sm:$0xff] }
 0x8ac   : > { %9699 = vst [vmem:[%s21397_s21 + $0xa8] sm:$0xff] %v9667_v32  ;;  %v19364_v1 = vadd.f32 %v22782_v58, %v9455_v51  ;;  %v18358_v9 = vpop.f32.mrb[58].mxu0  ;;  %18435 = vmatprep.mubr.bf16.mxu1 %v10162_v43  ;;  %18464 = vmatpush3.bf16.msra.mxu1 %v10491_v50  ;;  %v9640_v37 = vld [vmem:[%s21397_s21 + $0xd0] sm:$0xff]  ;;  %v10493_v43 = vld [vmem:[#allocation4 + $0x760] sm:$0xff]  ;;  %v9638_v50 = vld [vmem:[%s21397_s21 + $0xc0] sm:$0xff]  ;;  %v10163_v51 = vpack.c.bf16 %v23011_v19, %v22770_v25 }
 0x8ad   : > { %v23013_v44 = vmax.f32 %v19363_v6, 0.0  ;;  %v19365_v49 = vadd.f32 %v18358_v9, %v22782_v58  ;;  %v9458_v4 = vpop.f32.mrb[59].mxu0  ;;  %18465 = vmatprep.subr.bf16.mxu1 %v10492_v59 }
 0x8ae   : > { %v23019_v30 = vmax.f32 %v19364_v1, 0.0  ;;  %v19366_v32 = vadd.f32 %v22782_v58, %v9458_v4  ;;  %v9641_v1 = vld [vmem:[%s21397_s21 + $0xd8] sm:$0xff] }
 0x8af   : > { %v9672_v15 = vadd.f32 %v9640_v37, %v23013_v44  ;;  %9736 = vst [vmem:[#allocation2 + $0x580] sm:$0xff] %v23013_v44  ;;  %v23025_v6 = vmax.f32 %v19365_v49, 0.0  ;;  %v10164_v37 = vpack.c.bf16 %v23016_v34, %v22773_v29 }
 0x8b0   : > { %v9670_v9 = vadd.f32 %v9638_v50, %v23019_v30  ;;  %9734 = vst [vmem:[#allocation2 + $0x550] sm:$0xff] %v23019_v30  ;;  %v23032_v4 = vmax.f32 %v19366_v32, 0.0  ;;  %18466 = vmatpush3.bf16.msra.mxu1 %v10492_v59 }
 0x8b1   : > { %9704 = vst [vmem:[%s21397_s21 + $0xd0] sm:$0xff] %v9672_v15  ;;  %v9673_v49 = vadd.f32 %v9641_v1, %v23025_v6  ;;  %9737 = vst [vmem:[#allocation2 + $0x588] sm:$0xff] %v23025_v6  ;;  %18467 = vmatprep.subr.bf16.mxu1 %v10493_v43 }
 0x8b2   : > { %9702 = vst [vmem:[%s21397_s21 + $0xc0] sm:$0xff] %v9670_v9  ;;  %v9671_v50 = vadd.f32 %v9639_v33, %v23032_v4  ;;  %9735 = vst [vmem:[#allocation2 + $0x558] sm:$0xff] %v23032_v4  ;;  %v18361_v32 = vpop.f32.mrb[60].mxu0  ;;  %v23051_v33 = vld [vmem:[#allocation2 + $0x2e8] sm:$0xff] }
 0x8b3   : > { %9705 = vst [vmem:[%s21397_s21 + $0xd8] sm:$0xff] %v9673_v49  ;;  %v19367_v59 = vadd.f32 %v18361_v32, %v22782_v58  ;;  %v9471_v15 = vpop.f32.mrb[61].mxu0  ;;  %18436 = vmatmul.mubr.bf16.gmra.mrb[72].mxu1 %v10163_v51  ;;  %v9644_v49 = vld [vmem:[%s21397_s21 + $0xf0] sm:$0xff] }
 0x8b4   : > { %9703 = vst [vmem:[%s21397_s21 + $0xc8] sm:$0xff] %v9671_v50  ;;  %v19368_v1 = vadd.f32 %v22782_v58, %v9471_v15  ;;  %v18362_v9 = vpop.f32.mrb[62].mxu0  ;;  %18439 = vmatprep.mubr.bf16.mxu1 %v10164_v37  ;;  %18468 = vmatpush3.bf16.msra.mxu1 %v10493_v43  ;;  %v10495_v50 = vld [vmem:[#allocation4 + $0x770] sm:$0xff]  ;;  %v9642_v43 = vld [vmem:[%s21397_s21 + $0xe0] sm:$0xff]  ;;  %v10165_v15 = vpack.c.bf16 %v23051_v33, %v22776_v3 }
 0x8b5   : > { %v23053_v25 = vmax.f32 %v19367_v59, 0.0  ;;  %v19369_v62 = vadd.f32 %v18362_v9, %v22782_v58  ;;  %v9474_v29 = vpop.f32.mrb[63].mxu0  ;;  %18469 = vmatprep.subr.bf16.mxu1 %v10494_v0 }
 0x8b6   : > { %v23057_v32 = vmax.f32 %v19368_v1, 0.0  ;;  %v19370_v51 = vadd.f32 %v22782_v58, %v9474_v29  ;;  %v9645_v1 = vld [vmem:[%s21397_s21 + $0xf8] sm:$0xff] }
 0x8b7   : > { %v9676_v37 = vadd.f32 %v9644_v49, %v23053_v25  ;;  %9740 = vst [vmem:[#allocation2 + $0x5e0] sm:$0xff] %v23053_v25  ;;  %v23063_v59 = vmax.f32 %v19369_v62, 0.0  ;;  %v9643_v62 = vld [vmem:[%s21397_s21 + $0xe8] sm:$0xff] }
 0x8b8   : > { %v9674_v9 = vadd.f32 %v9642_v43, %v23057_v32  ;;  %9738 = vst [vmem:[#allocation2 + $0x5b0] sm:$0xff] %v23057_v32  ;;  %v23070_v58 = vmax.f32 %v19370_v51, 0.0  ;;  %18470 = vmatpush3.bf16.msra.mxu1 %v10494_v0  ;;  %v10496_v43 = vld [vmem:[#allocation4 + $0x778] sm:$0xff]  ;;  %v10803_v0 = vld [vmem:[#allocation4 + $0x780] sm:$0xff] }
 0x8b9   : > { %9708 = vst [vmem:[%s21397_s21 + $0xf0] sm:$0xff] %v9676_v37  ;;  %v9677_v29 = vadd.f32 %v9645_v1, %v23063_v59  ;;  %9741 = vst [vmem:[#allocation2 + $0x5e8] sm:$0xff] %v23063_v59  ;;  %18471 = vmatprep.subr.bf16.mxu1 %v10495_v50  ;;  %v11115_v3 = vpack.c.bf16 %v23063_v59, %v23053_v25 }
 0x8ba   : > { %9706 = vst [vmem:[%s21397_s21 + $0xe0] sm:$0xff] %v9674_v9  ;;  %v9675_v49 = vadd.f32 %v9643_v62, %v23070_v58  ;;  %9739 = vst [vmem:[#allocation2 + $0x5b8] sm:$0xff] %v23070_v58  ;;  %v11114_v51 = vpack.c.bf16 %v23070_v58, %v23057_v32  ;;  %v10805_v9 = vld [vmem:[#allocation4 + $0x790] sm:$0xff]  ;;  %v10807_v62 = vld [vmem:[#allocation4 + $0x7a0] sm:$0xff] }
 0x8bb   : > { %9709 = vst [vmem:[%s21397_s21 + $0xf8] sm:$0xff] %v9677_v29  ;;  %18440 = vmatmul.mubr.bf16.gmra.mrb[76].mxu1 %v10165_v15  ;;  %v10417_v15 = vld [vmem:[#allocation2 + $0x260] sm:$0xff]  ;;  %v10806_v29 = vld [vmem:[#allocation4 + $0x798] sm:$0xff] }
 0x8bc   : > { %9707 = vst [vmem:[%s21397_s21 + $0xe8] sm:$0xff] %v9675_v49  ;;  %18443 = vmatprep.mubr.bf16.mxu1 %v10166_v10  ;;  %18472 = vmatpush3.bf16.msra.mxu1 %v10495_v50  ;;  %v10472_v10 = vpack.c.bf16 %v10409_v63, %v22895_v11  ;;  %v10473_v50 = vpack.c.bf16 %v10411_v47, %v22930_v35  ;;  %v10419_v35 = vld [vmem:[#allocation2 + $0x290] sm:$0xff]  ;;  %v10810_v47 = vld [vmem:[#allocation4 + $0x7b8] sm:$0xff] }
 0x8bd   : > { %18473 = vmatprep.subr.bf16.mxu1 %v10496_v43  ;;  %v10476_v11 = vpack.c.bf16 %v10417_v15, %v22976_v39  ;;  %v10477_v49 = vpack.c.bf16 %v10419_v35, %v23011_v19  ;;  %v10809_v39 = vld [vmem:[#allocation4 + $0x7b0] sm:$0xff]  ;;  %v23151_v35 = vld [vmem:[#allocation2 + $0x4b8] sm:$0xff] }
 0x8c0   : > { %18474 = vmatpush3.bf16.msra.mxu1 %v10496_v43 }
 0x8c1   : > { %18507 = vmatprep.subr.bf16.mxu1 %v10803_v0 }
 0x8c3   : > { %18444 = vmatmul.mubr.bf16.gmra.mrb[80].mxu1 %v10167_v40  ;;  %v10413_v40 = vld [vmem:[#allocation2 + $0x200] sm:$0xff] }
 0x8c4   : > { %18447 = vmatprep.mubr.bf16.mxu1 %v22855_v38  ;;  %v10474_v37 = vpack.c.bf16 %v10413_v40, %v22935_v5  ;;  %v10421_v5 = vld [vmem:[#allocation2 + $0x2c0] sm:$0xff] }
 0x8c5   : > { %v10478_v43 = vpack.c.bf16 %v10421_v5, %v23016_v34  ;;  %v23111_v34 = vld [vmem:[#allocation2 + $0x350] sm:$0xff]  ;;  %v11117_v40 = vld [vmem:[#allocation4 + $0x7c0] sm:$0xff]  ;;  %v10795_v5 = vpack.c.bf16 %v22932_v56, %v23151_v35 }
 0x8cb   : > { %18448 = vmatmul.mubr.bf16.gmra.mrb[84].mxu1 %v10169_v36  ;;  %v10415_v36 = vld [vmem:[#allocation2 + $0x230] sm:$0xff] }
 0x8cc   : > { %18451 = vmatprep.mubr.bf16.mxu1 %v22887_v17  ;;  %v10475_v1 = vpack.c.bf16 %v10415_v36, %v22971_v42  ;;  %v10423_v42 = vld [vmem:[#allocation2 + $0x2f0] sm:$0xff] }
 0x8cd   : > { %v10479_v63 = vpack.c.bf16 %v10423_v42, %v23051_v33  ;;  %v10481_v33 = vpack.c.bf16 %v23111_v34, %v22796_v20  ;;  %v23129_v20 = vld [vmem:[#allocation2 + $0x440] sm:$0xff]  ;;  %v23167_v42 = vld [vmem:[#allocation2 + $0x578] sm:$0xff] }
 0x8d3   : > { %18452 = vmatmul.mubr.bf16.gmra.mrb[88].mxu1 %v22880_v23 }
 0x8d4   : > { %18455 = vmatprep.mubr.bf16.mxu1 %v22923_v24 }
 0x8db   : > { %18456 = vmatmul.mubr.bf16.gmra.mrb[92].mxu1 %v22916_v46 }
 0x8dc   : > { %18475 = vmatprep.mubr.bf16.mxu1 %v10472_v10  ;;  %v23107_v10 = vld [vmem:[#allocation2 + $0x320] sm:$0xff] }
 0x8dd   : > { %v10480_v19 = vpack.c.bf16 %v23107_v10, %v22801_v18  ;;  %v23119_v18 = vld [vmem:[#allocation2 + $0x3b0] sm:$0xff] }
 0x8de   : > { %v10483_v36 = vpack.c.bf16 %v23119_v18, %v22834_v57 }
 0x8e3   : > { %18476 = vmatmul.mubr.bf16.vlgmr.msra.gmra.mrb[64].mxu1 %v10473_v50  ;;  %v23113_v50 = vld [vmem:[#allocation2 + $0x380] sm:$0xff] }
 0x8e4   : > { %18508 = vmatpush3.bf16.msra.mxu1 %v10803_v0  ;;  %18479 = vmatprep.mubr.bf16.mxu1 %v10474_v37  ;;  %v10808_v0 = vld [vmem:[#allocation4 + $0x7a8] sm:$0xff]  ;;  %v10482_v37 = vpack.c.bf16 %v23113_v50, %v22837_v21 }
 0x8e5   : > { %18509 = vmatprep.subr.bf16.mxu1 %v10804_v12 }
 0x8e8   : > { %18510 = vmatpush3.bf16.msra.mxu1 %v10804_v12  ;;  %v23121_v12 = vld [vmem:[#allocation2 + $0x3e0] sm:$0xff] }
 0x8e9   : > { %18511 = vmatprep.subr.bf16.mxu1 %v10805_v9  ;;  %v10484_v15 = vpack.c.bf16 %v23121_v12, %v22869_v61  ;;  %v11118_v61 = vld [vmem:[#allocation4 + $0x7c8] sm:$0xff] }
 0x8eb   : > { %18480 = vmatmul.mubr.bf16.gmra.mrb[68].mxu1 %v10475_v1  ;;  %v10486_v1 = vpack.c.bf16 %v23129_v20, %v22903_v45  ;;  %v11120_v45 = vld [vmem:[#allocation4 + $0x7d8] sm:$0xff] }
 0x8ec   : > { %18483 = vmatprep.mubr.bf16.mxu1 %v10476_v11  ;;  %18512 = vmatpush3.bf16.msra.mxu1 %v10805_v9  ;;  %v23127_v9 = vld [vmem:[#allocation2 + $0x410] sm:$0xff] }
 0x8ed   : > { %18513 = vmatprep.subr.bf16.mxu1 %v10806_v29  ;;  %v10485_v21 = vpack.c.bf16 %v23127_v9, %v22866_v13  ;;  %v23135_v11 = vld [vmem:[#allocation2 + $0x470] sm:$0xff] }
 0x8ee   : > { %v11119_v13 = vld [vmem:[#allocation4 + $0x7d0] sm:$0xff] }
 0x8f0   : > { %18514 = vmatpush3.bf16.msra.mxu1 %v10806_v29  ;;  %v10487_v29 = vpack.c.bf16 %v23135_v11, %v22900_v16  ;;  %v11121_v16 = vld [vmem:[#allocation4 + $0x7e0] sm:$0xff] }
 0x8f1   : > { %18515 = vmatprep.subr.bf16.mxu1 %v10807_v62 }
 0x8f3   : > { %18484 = vmatmul.mubr.bf16.gmra.mrb[72].mxu1 %v10477_v49  ;;  %v23159_v49 = vld [vmem:[#allocation2 + $0x518] sm:$0xff] }
 0x8f4   : > { %18487 = vmatprep.mubr.bf16.mxu1 %v10478_v43  ;;  %18516 = vmatpush3.bf16.msra.mxu1 %v10807_v62  ;;  %v10797_v43 = vpack.c.bf16 %v22973_v8, %v23159_v49 }
 0x8f5   : > { %18517 = vmatprep.subr.bf16.mxu1 %v10808_v0 }
 0x8f8   : > { %18518 = vmatpush3.bf16.msra.mxu1 %v10808_v0 }
 0x8f9   : > { %18519 = vmatprep.subr.bf16.mxu1 %v10809_v39 }
 0x8fb   : > { %18488 = vmatmul.mubr.bf16.gmra.mrb[76].mxu1 %v10479_v63  ;;  %v10799_v63 = vpack.c.bf16 %v23013_v44, %v23167_v42 }
 0x8fc   : > { %18491 = vmatprep.mubr.bf16.mxu1 %v10480_v19  ;;  %18520 = vmatpush3.bf16.msra.mxu1 %v10809_v39  ;;  %v10750_v39 = vld [vmem:[#allocation2 + $0x5a8] sm:$0xff] }
 0x8fd   : > { %18521 = vmatprep.subr.bf16.mxu1 %v10810_v47  ;;  %v23172_v19 = vpack.c.bf16 %v23057_v32, %v10750_v39  ;;  %v12921_v32 = vld [vmem:[#allocation4 + $0x920] sm:$0xff]  ;;  %v11362_v39 = vld [vmem:[#allocation2 + $0x438] sm:$0xff] }
 0x900   : > { %18522 = vmatpush3.bf16.msra.mxu1 %v10810_v47  ;;  %v10752_v47 = vld [vmem:[#allocation2 + $0x5d8] sm:$0xff] }
 0x901   : > { %18555 = vmatprep.subr.bf16.mxu1 %v11117_v40 }
 0x903   : > { %18492 = vmatmul.mubr.bf16.gmra.mrb[80].mxu1 %v10481_v33  ;;  %v23176_v33 = vpack.c.bf16 %v23053_v25, %v10752_v47  ;;  %v11358_v25 = vld [vmem:[#allocation2 + $0x3d8] sm:$0xff]  ;;  %v11751_v47 = vld [vmem:[#allocation4 + $0x868] sm:$0xff] }
 0x904   : > { %18495 = vmatprep.mubr.bf16.mxu1 %v10482_v37  ;;  %v11036_v37 = vld [vmem:[#allocation2 + $0x310] sm:$0xff] }
 0x90b   : > { %18496 = vmatmul.mubr.bf16.gmra.mrb[84].mxu1 %v10483_v36 }
 0x90c   : > { %18499 = vmatprep.mubr.bf16.mxu1 %v10484_v15  ;;  %v11039_v15 = vld [vmem:[#allocation2 + $0x348] sm:$0xff] }
 0x913   : > { %18500 = vmatmul.mubr.bf16.gmra.mrb[88].mxu1 %v10485_v21  ;;  %v11038_v21 = vld [vmem:[#allocation2 + $0x340] sm:$0xff] }
 0x914   : > { %18503 = vmatprep.mubr.bf16.mxu1 %v10486_v1  ;;  %v11101_v1 = vpack.c.bf16 %v11039_v15, %v11038_v21  ;;  %v12924_v21 = vld [vmem:[#allocation4 + $0x938] sm:$0xff] }
 0x91b   : > { %18504 = vmatmul.mubr.bf16.gmra.mrb[92].mxu1 %v10487_v29  ;;  %v11432_v29 = vld [vmem:[#allocation4 + $0x808] sm:$0xff] }
 0x91c   : > { %18523 = vmatprep.mubr.bf16.mxu1 %v22804_v7  ;;  %v11122_v7 = vld [vmem:[#allocation4 + $0x7e8] sm:$0xff] }
 0x923   : > { %18524 = vmatmul.mubr.bf16.vlgmr.msra.gmra.mrb[64].mxu1 %v22811_v22  ;;  %v11123_v22 = vld [vmem:[#allocation4 + $0x7f0] sm:$0xff] }
 0x924   : > { %18527 = vmatprep.mubr.bf16.mxu1 %v22839_v27  ;;  %18556 = vmatpush3.bf16.msra.mxu1 %v11117_v40  ;;  %v23146_v27 = vld [vmem:[#allocation2 + $0x488] sm:$0xff]  ;;  %v11037_v40 = vld [vmem:[#allocation2 + $0x318] sm:$0xff] }
 0x925   : > { %18557 = vmatprep.subr.bf16.mxu1 %v11118_v61  ;;  %v11100_v36 = vpack.c.bf16 %v11037_v40, %v11036_v37  ;;  %v11752_v37 = vld [vmem:[#allocation4 + $0x870] sm:$0xff] }
 0x928   : > { %18558 = vmatpush3.bf16.msra.mxu1 %v11118_v61  ;;  %v11042_v61 = vld [vmem:[#allocation2 + $0x3a0] sm:$0xff] }
 0x929   : > { %18559 = vmatprep.subr.bf16.mxu1 %v11119_v13 }
 0x92b   : > { %18528 = vmatmul.mubr.bf16.gmra.mrb[68].mxu1 %v22846_v54  ;;  %v10794_v54 = vpack.c.bf16 %v22938_v48, %v23146_v27  ;;  %v12918_v48 = vld [vmem:[#allocation4 + $0x908] sm:$0xff] }
 0x92c   : > { %18531 = vmatprep.mubr.bf16.mxu1 %v22871_v55  ;;  %18560 = vmatpush3.bf16.msra.mxu1 %v11119_v13  ;;  %v11124_v55 = vld [vmem:[#allocation4 + $0x7f8] sm:$0xff]  ;;  %v11433_v13 = vld [vmem:[#allocation4 + $0x810] sm:$0xff] }
 0x92d   : > { %18561 = vmatprep.subr.bf16.mxu1 %v11120_v45 }
 0x930   : > { %18562 = vmatpush3.bf16.msra.mxu1 %v11120_v45  ;;  %v11103_v45 = vpack.c.bf16 %v22834_v57, %v11042_v61  ;;  %v11438_v57 = vld [vmem:[#allocation4 + $0x838] sm:$0xff]  ;;  %v23225_v61 = vld [vmem:[#allocation2 + $0x500] sm:$0xff] }
 0x931   : > { %18563 = vmatprep.subr.bf16.mxu1 %v11121_v16 }
 0x933   : > { %18532 = vmatmul.mubr.bf16.gmra.mrb[72].mxu1 %v22877_v52  ;;  %v11431_v52 = vld [vmem:[#allocation4 + $0x800] sm:$0xff] }
 0x934   : > { %18535 = vmatprep.mubr.bf16.mxu1 %v22905_v60  ;;  %18564 = vmatpush3.bf16.msra.mxu1 %v11121_v16  ;;  %v23153_v60 = vld [vmem:[#allocation2 + $0x4e8] sm:$0xff]  ;;  %v11434_v16 = vld [vmem:[#allocation4 + $0x818] sm:$0xff] }
 0x935   : > { %18565 = vmatprep.subr.bf16.mxu1 %v11122_v7  ;;  %v10796_v62 = vpack.c.bf16 %v22979_v41, %v23153_v60 }
 0x938   : > { %18566 = vmatpush3.bf16.msra.mxu1 %v11122_v7  ;;  %v11435_v7 = vld [vmem:[#allocation4 + $0x820] sm:$0xff] }
 0x939   : > { %18567 = vmatprep.subr.bf16.mxu1 %v11123_v22 }
 0x93b   : > { %18536 = vmatmul.mubr.bf16.gmra.mrb[76].mxu1 %v22913_v2  ;;  %v10746_v2 = vld [vmem:[#allocation2 + $0x548] sm:$0xff] }
 0x93c   : > { %18539 = vmatprep.mubr.bf16.mxu1 %v10794_v54  ;;  %18568 = vmatpush3.bf16.msra.mxu1 %v11123_v22  ;;  %v23164_v0 = vpack.c.bf16 %v23019_v30, %v10746_v2  ;;  %v11436_v22 = vld [vmem:[#allocation4 + $0x828] sm:$0xff]  ;;  %v23698_v54 = vpack.c.bf16 %v22992_v14, %v22979_v41  ;;  %v12920_v41 = vld [vmem:[#allocation4 + $0x918] sm:$0xff] }
 0x93d   : > { %18569 = vmatprep.subr.bf16.mxu1 %v11124_v55  ;;  %v11360_v2 = vld [vmem:[#allocation2 + $0x408] sm:$0xff] }
 0x940   : > { %18570 = vmatpush3.bf16.msra.mxu1 %v11124_v55  ;;  %v12919_v55 = vld [vmem:[#allocation4 + $0x910] sm:$0xff] }
 0x941   : > { %18603 = vmatprep.subr.bf16.mxu1 %v11431_v52 }
 0x943   : > { %18540 = vmatmul.mubr.bf16.gmra.mrb[80].mxu1 %v10795_v5  ;;  %v11747_v5 = vld [vmem:[#allocation4 + $0x848] sm:$0xff] }
 0x944   : > { %18543 = vmatprep.mubr.bf16.mxu1 %v10796_v62  ;;  %v11418_v62 = vpack.c.bf16 %v23121_v12, %v11358_v25  ;;  %v12923_v12 = vld [vmem:[#allocation4 + $0x930] sm:$0xff] }
 0x945   : > { %v23248_v25 = vld [vmem:[#allocation2 + $0x5f0] sm:$0xff] }
 0x94b   : > { %18544 = vmatmul.mubr.bf16.gmra.mrb[84].mxu1 %v10797_v43  ;;  %v11750_v43 = vld [vmem:[#allocation4 + $0x860] sm:$0xff] }
 0x94c   : > { %18547 = vmatprep.mubr.bf16.mxu1 %v23164_v0 }
 0x953   : > { %18548 = vmatmul.mubr.bf16.gmra.mrb[88].mxu1 %v10799_v63  ;;  %v11419_v63 = vpack.c.bf16 %v23127_v9, %v11360_v2  ;;  %v12850_v2 = vld [vmem:[#allocation2 + $0x150] sm:$0xff] }
 0x954   : > { %18551 = vmatprep.mubr.bf16.mxu1 %v23172_v19 }
 0x95b   : > { %18552 = vmatmul.mubr.bf16.gmra.mrb[92].mxu1 %v23176_v33 }
 0x95c   : > { %18571 = vmatprep.mubr.bf16.mxu1 %v11100_v36  ;;  %v23216_v36 = vld [vmem:[#allocation2 + $0x4a0] sm:$0xff] }
 0x95d   : > { %v11422_v9 = vpack.c.bf16 %v23216_v36, %v22951_v26  ;;  %v12836_v26 = vld [vmem:[#allocation2] sm:$0xff] }
 0x963   : > { %18572 = vmatmul.mubr.bf16.vlgmr.msra.gmra.mrb[64].mxu1 %v11101_v1  ;;  %v23221_v1 = vld [vmem:[#allocation2 + $0x4d0] sm:$0xff] }
 0x964   : > { %18575 = vmatprep.mubr.bf16.mxu1 %v22855_v38  ;;  %18604 = vmatpush3.bf16.msra.mxu1 %v11431_v52  ;;  %v11437_v38 = vld [vmem:[#allocation4 + $0x830] sm:$0xff] }
 0x965   : > { %18605 = vmatprep.subr.bf16.mxu1 %v11432_v29 }
 0x968   : > { %18606 = vmatpush3.bf16.msra.mxu1 %v11432_v29  ;;  %v23223_v29 = vld [vmem:[#allocation4 + $0x880] sm:$0xff] }
 0x969   : > { %18607 = vmatprep.subr.bf16.mxu1 %v11433_v13 }
 0x96b   : > { %18576 = vmatmul.mubr.bf16.gmra.mrb[68].mxu1 %v11103_v45  ;;  %v11424_v45 = vpack.c.bf16 %v23225_v61, %v22992_v14  ;;  %v12841_v14 = vld [vmem:[#allocation2 + $0x68] sm:$0xff] }
 0x96c   : > { %18579 = vmatprep.mubr.bf16.mxu1 %v22887_v17  ;;  %18608 = vmatpush3.bf16.msra.mxu1 %v11433_v13  ;;  %v11746_v17 = vld [vmem:[#allocation4 + $0x840] sm:$0xff]  ;;  %v12837_v13 = vld [vmem:[#allocation2 + $0x8] sm:$0xff] }
 0x96d   : > { %18609 = vmatprep.subr.bf16.mxu1 %v11434_v16 }
 0x970   : > { %18610 = vmatpush3.bf16.msra.mxu1 %v11434_v16  ;;  %v12900_v16 = vpack.c.bf16 %v12837_v13, %v12836_v26  ;;  %v23265_v26 = vld [vmem:[#allocation2 + $0x520] sm:$0xff] }
 0x971   : > { %18611 = vmatprep.subr.bf16.mxu1 %v11435_v7  ;;  %v12856_v13 = vld [vmem:[#allocation2 + $0x1e0] sm:$0xff] }
 0x972   : > { %18811 = vmatprep.mubr.bf16.mxu0 %v12900_v16  ;;  %v12063_v16 = vld [vmem:[#allocation4 + $0x898] sm:$0xff] }
 0x973   : > { %18580 = vmatmul.mubr.bf16.gmra.mrb[72].mxu1 %v22880_v23  ;;  %v23697_v23 = vpack.c.bf16 %v22944_v28, %v22932_v56  ;;  %v23701_v56 = vpack.c.bf16 %v23025_v6, %v23013_v44  ;;  %v11415_v44 = vpack.c.bf16 %v23111_v34, %v11039_v15  ;;  %v11749_v34 = vld [vmem:[#allocation4 + $0x858] sm:$0xff] }
 0x974   : > { %18583 = vmatprep.mubr.bf16.mxu1 %v22923_v24  ;;  %18612 = vmatpush3.bf16.msra.mxu1 %v11435_v7  ;;  %v12917_v24 = vld [vmem:[#allocation4 + $0x900] sm:$0xff]  ;;  %v12838_v7 = vld [vmem:[#allocation2 + $0x30] sm:$0xff] }
 0x975   : > { %18613 = vmatprep.subr.bf16.mxu1 %v11436_v22  ;;  %18795 = vmatprep.subr.bf16.mxu0 %v12917_v24 }
 0x976   : > { %18796 = vmatpush3.bf16.msra.mxu0 %v12917_v24  ;;  %v12840_v24 = vld [vmem:[#allocation2 + $0x60] sm:$0xff] }
 0x977   : > { %18797 = vmatprep.subr.bf16.mxu0 %v12918_v48 }
 0x978   : > { %18614 = vmatpush3.bf16.msra.mxu1 %v11436_v22  ;;  %v12839_v22 = vld [vmem:[#allocation2 + $0x38] sm:$0xff] }
 0x979   : > { %18615 = vmatprep.subr.bf16.mxu1 %v11437_v38 }
 0x97a   : > { %18798 = vmatpush3.bf16.msra.mxu0 %v12918_v48  ;;  %v12842_v48 = vld [vmem:[#allocation2 + $0x90] sm:$0xff] }
 0x97b   : > { %18584 = vmatmul.mubr.bf16.gmra.mrb[76].mxu1 %v22916_v46  ;;  %v23699_v46 = vpack.c.bf16 %v22985_v31, %v22973_v8  ;;  %18799 = vmatprep.subr.bf16.mxu0 %v12919_v55  ;;  %v11414_v8 = vpack.c.bf16 %v23107_v10, %v11037_v40  ;;  %v11748_v10 = vld [vmem:[#allocation4 + $0x850] sm:$0xff]  ;;  %v11364_v40 = vld [vmem:[#allocation2 + $0x468] sm:$0xff] }
 0x97c   : > { %18587 = vmatprep.mubr.bf16.mxu1 %v11108_v53  ;;  %18616 = vmatpush3.bf16.msra.mxu1 %v11437_v38  ;;  %v23700_v53 = vpack.c.bf16 %v23032_v4, %v23019_v30  ;;  %v11354_v30 = vld [vmem:[#allocation2 + $0x378] sm:$0xff]  ;;  %v11421_v15 = vpack.c.bf16 %v23135_v11, %v11364_v40  ;;  %v11423_v11 = vpack.c.bf16 %v23221_v1, %v22944_v28  ;;  %v23234_v28 = vld [vmem:[#allocation2 + $0x560] sm:$0xff] }
 0x97d   : > { %18617 = vmatprep.subr.bf16.mxu1 %v11438_v57  ;;  %v11416_v52 = vpack.c.bf16 %v23113_v50, %v11354_v30  ;;  %v12922_v50 = vld [vmem:[#allocation4 + $0x928] sm:$0xff]  ;;  %v12901_v38 = vpack.c.bf16 %v12839_v22, %v12838_v7  ;;  %v12844_v30 = vld [vmem:[#allocation2 + $0xc0] sm:$0xff]  ;;  %v12858_v22 = vld [vmem:[#allocation2 + $0x210] sm:$0xff] }
 0x97e   : > { %18800 = vmatpush3.bf16.msra.mxu0 %v12919_v55  ;;  %v13232_v55 = vld [vmem:[#allocation4 + $0x948] sm:$0xff] }
 0x97f   : > { %18801 = vmatprep.subr.bf16.mxu0 %v12920_v41 }
 0x980   : > { %18618 = vmatpush3.bf16.msra.mxu1 %v11438_v57  ;;  %v13231_v57 = vld [vmem:[#allocation4 + $0x940] sm:$0xff] }
 0x981   : > { %18651 = vmatprep.subr.bf16.mxu1 %v11746_v17 }
 0x982   : > { %18802 = vmatpush3.bf16.msra.mxu0 %v12920_v41  ;;  %v23242_v41 = vld [vmem:[#allocation2 + $0x5c0] sm:$0xff] }
 0x983   : > { %18588 = vmatmul.mubr.bf16.gmra.mrb[80].mxu1 %v23697_v23  ;;  %18803 = vmatprep.subr.bf16.mxu0 %v12921_v32 }
 0x984   : > { %18591 = vmatprep.mubr.bf16.mxu1 %v23698_v54  ;;  %v11426_v54 = vpack.c.bf16 %v23234_v28, %v23032_v4  ;;  %v12845_v4 = vld [vmem:[#allocation2 + $0xc8] sm:$0xff] }
 0x986   : > { %18804 = vmatpush3.bf16.msra.mxu0 %v12921_v32  ;;  %v12847_v32 = vld [vmem:[#allocation2 + $0xf8] sm:$0xff] }
 0x987   : > { %18805 = vmatprep.subr.bf16.mxu0 %v12922_v50 }
 0x98a   : > { %18806 = vmatpush3.bf16.msra.mxu0 %v12922_v50 }
 0x98b   : > { %18592 = vmatmul.mubr.bf16.gmra.mrb[84].mxu1 %v23699_v46  ;;  %18807 = vmatprep.subr.bf16.mxu0 %v12923_v12  ;;  %v12902_v46 = vpack.c.bf16 %v12841_v14, %v12840_v24  ;;  %v12064_v24 = vld [vmem:[#allocation4 + $0x8a0] sm:$0xff] }
 0x98c   : > { %18595 = vmatprep.mubr.bf16.mxu1 %v23700_v53  ;;  %v12843_v53 = vld [vmem:[#allocation2 + $0x98] sm:$0xff]  ;;  %v12860_v14 = vld [vmem:[#allocation2 + $0x240] sm:$0xff] }
 0x98e   : > { %18808 = vmatpush3.bf16.msra.mxu0 %v12923_v12  ;;  %v12852_v12 = vld [vmem:[#allocation2 + $0x180] sm:$0xff] }
 0x98f   : > { %18809 = vmatprep.subr.bf16.mxu0 %v12924_v21 }
 0x992   : > { %18810 = vmatpush3.bf16.msra.mxu0 %v12924_v21 }
 0x993   : > { %18596 = vmatmul.mubr.bf16.gmra.mrb[88].mxu1 %v23701_v56  ;;  %18843 = vmatprep.subr.bf16.mxu0 %v13231_v57  ;;  %v12903_v56 = vpack.c.bf16 %v12843_v53, %v12842_v48  ;;  %v12863_v53 = vld [vmem:[#allocation2 + $0x278] sm:$0xff] }
 0x994   : > { %18599 = vmatprep.mubr.bf16.mxu1 %v11114_v51  ;;  %v11356_v51 = vld [vmem:[#allocation2 + $0x3a8] sm:$0xff] }
 0x995   : > { %18812 = vmatmul.mubr.bf16.vlgmr.msra.gmra.mrb[64].mxu0 %v12901_v38 }
 0x996   : > { %18844 = vmatpush3.bf16.msra.mxu0 %v13231_v57  ;;  %18815 = vmatprep.mubr.bf16.mxu0 %v12902_v46  ;;  %v13236_v57 = vld [vmem:[#allocation4 + $0x968] sm:$0xff] }
 0x997   : > { %18845 = vmatprep.subr.bf16.mxu0 %v13232_v55  ;;  %v12065_v46 = vld [vmem:[#allocation4 + $0x8a8] sm:$0xff] }
 0x99a   : > { %18846 = vmatpush3.bf16.msra.mxu0 %v13232_v55  ;;  %v13237_v55 = vld [vmem:[#allocation4 + $0x970] sm:$0xff] }
 0x99b   : > { %18600 = vmatmul.mubr.bf16.gmra.mrb[92].mxu1 %v11115_v3  ;;  %v11417_v3 = vpack.c.bf16 %v23119_v18, %v11356_v51  ;;  %v11420_v18 = vpack.c.bf16 %v23129_v20, %v11362_v39  ;;  %v11753_v20 = vld [vmem:[#allocation4 + $0x878] sm:$0xff] }
 0x99c   : > { %18619 = vmatprep.mubr.bf16.mxu1 %v11414_v8  ;;  %v23240_v8 = vld [vmem:[#allocation2 + $0x590] sm:$0xff] }
 0x99d   : > { %18816 = vmatmul.mubr.bf16.gmra.mrb[68].mxu0 %v12903_v56 }
 0x9a3   : > { %18620 = vmatmul.mubr.bf16.vlgmr.msra.gmra.mrb[64].mxu1 %v11415_v44  ;;  %v11428_v44 = vpack.c.bf16 %v23242_v41, %v23070_v58  ;;  %v12849_v58 = vld [vmem:[#allocation2 + $0x128] sm:$0xff] }
 0x9a4   : > { %18623 = vmatprep.mubr.bf16.mxu1 %v11416_v52  ;;  %18652 = vmatpush3.bf16.msra.mxu1 %v11746_v17  ;;  %v23232_v17 = vld [vmem:[#allocation2 + $0x530] sm:$0xff]  ;;  %v12904_v52 = vpack.c.bf16 %v12845_v4, %v12844_v30 }
 0x9a5   : > { %18653 = vmatprep.subr.bf16.mxu1 %v11747_v5  ;;  %v11425_v23 = vpack.c.bf16 %v23232_v17, %v22985_v31  ;;  %v11427_v31 = vpack.c.bf16 %v23240_v8, %v23025_v6  ;;  %v11429_v6 = vpack.c.bf16 %v23248_v25, %v23063_v59  ;;  %v23275_v30 = vld [vmem:[#allocation2 + $0x610] sm:$0xff] }
 0x9a6   : > { %18819 = vmatprep.mubr.bf16.mxu0 %v12904_v52  ;;  %v12066_v4 = vld [vmem:[#allocation4 + $0x8b0] sm:$0xff]  ;;  %v12865_v52 = vld [vmem:[#allocation2 + $0x2a8] sm:$0xff] }
 0x9a8   : > { %18654 = vmatpush3.bf16.msra.mxu1 %v11747_v5  ;;  %v12846_v5 = vld [vmem:[#allocation2 + $0xf0] sm:$0xff] }
 0x9a9   : > { %18655 = vmatprep.subr.bf16.mxu1 %v11748_v10  ;;  %v12905_v51 = vpack.c.bf16 %v12847_v32, %v12846_v5  ;;  %v12067_v5 = vld [vmem:[#allocation4 + $0x8b8] sm:$0xff] }
 0x9ab   : > { %18624 = vmatmul.mubr.bf16.gmra.mrb[68].mxu1 %v11417_v3  ;;  %18820 = vmatmul.mubr.bf16.gmra.mrb[72].mxu0 %v12905_v51  ;;  %v23250_v3 = vld [vmem:[#allocation2 + $0x490] sm:$0xff]  ;;  %v12867_v51 = vld [vmem:[#allocation2 + $0x2d8] sm:$0xff] }
 0x9ac   : > { %18627 = vmatprep.mubr.bf16.mxu1 %v11418_v62  ;;  %18656 = vmatpush3.bf16.msra.mxu1 %v11748_v10  ;;  %v13233_v10 = vld [vmem:[#allocation4 + $0x950] sm:$0xff]  ;;  %v12848_v62 = vld [vmem:[#allocation2 + $0x120] sm:$0xff] }
 0x9ad   : > { %18657 = vmatprep.subr.bf16.mxu1 %v11749_v34  ;;  %18847 = vmatprep.subr.bf16.mxu0 %v13233_v10  ;;  %v12906_v50 = vpack.c.bf16 %v12849_v58, %v12848_v62  ;;  %v11683_v62 = vld [vmem:[#allocation2 + $0x638] sm:$0xff]  ;;  %v23279_v58 = vld [vmem:[#allocation2 + $0x640] sm:$0xff] }
 0x9ae   : > { %18848 = vmatpush3.bf16.msra.mxu0 %v13233_v10 }
 0x9af   : > { %18823 = vmatprep.mubr.bf16.mxu0 %v12906_v50  ;;  %v23281_v50 = vld [vmem:[#allocation2 + $0x670] sm:$0xff] }
 0x9b0   : > { %18658 = vmatpush3.bf16.msra.mxu1 %v11749_v34  ;;  %v11729_v34 = vpack.c.bf16 %v23250_v3, %v23146_v27  ;;  %v12853_v27 = vld [vmem:[#allocation2 + $0x188] sm:$0xff] }
 0x9b1   : > { %18659 = vmatprep.subr.bf16.mxu1 %v11750_v43 }
 0x9b3   : > { %18628 = vmatmul.mubr.bf16.gmra.mrb[72].mxu1 %v11419_v63  ;;  %v13234_v63 = vld [vmem:[#allocation4 + $0x958] sm:$0xff] }
 0x9b4   : > { %18631 = vmatprep.mubr.bf16.mxu1 %v11420_v18  ;;  %18660 = vmatpush3.bf16.msra.mxu1 %v11750_v43  ;;  %v12851_v43 = vld [vmem:[#allocation2 + $0x158] sm:$0xff]  ;;  %v23256_v18 = vld [vmem:[#allocation2 + $0x4c0] sm:$0xff] }
 0x9b5   : > { %18661 = vmatprep.subr.bf16.mxu1 %v11751_v47  ;;  %v12907_v39 = vpack.c.bf16 %v12851_v43, %v12850_v2  ;;  %18849 = vmatprep.subr.bf16.mxu0 %v13234_v63  ;;  %v11730_v59 = vpack.c.bf16 %v23256_v18, %v23151_v35  ;;  %v12062_v35 = vld [vmem:[#allocation4 + $0x890] sm:$0xff]  ;;  %v23283_v2 = vld [vmem:[#allocation4 + $0x8c0] sm:$0xff]  ;;  %v11738_v43 = vpack.c.bf16 %v23279_v58, %v11683_v62 }
 0x9b6   : > { %18850 = vmatpush3.bf16.msra.mxu0 %v13234_v63  ;;  %v13151_v63 = vld [vmem:[#allocation2 + $0x18] sm:$0xff] }
 0x9b7   : > { %18824 = vmatmul.mubr.bf16.gmra.mrb[76].mxu0 %v12907_v39  ;;  %v13150_v39 = vld [vmem:[#allocation2 + $0x10] sm:$0xff] }
 0x9b8   : > { %18662 = vmatpush3.bf16.msra.mxu1 %v11751_v47  ;;  %v23258_v47 = vld [vmem:[#allocation2 + $0x4f0] sm:$0xff] }
 0x9b9   : > { %18663 = vmatprep.subr.bf16.mxu1 %v11752_v37  ;;  %v11731_v40 = vpack.c.bf16 %v23258_v47, %v23153_v60  ;;  %v11732_v60 = vpack.c.bf16 %v23265_v26, %v23159_v49 }
 0x9bb   : > { %18632 = vmatmul.mubr.bf16.gmra.mrb[76].mxu1 %v11421_v15  ;;  %v12908_v15 = vpack.c.bf16 %v12853_v27, %v12852_v12  ;;  %v13152_v12 = vld [vmem:[#allocation2 + $0x40] sm:$0xff]  ;;  %v13153_v27 = vld [vmem:[#allocation2 + $0x48] sm:$0xff] }
 0x9bc   : > { %18635 = vmatprep.mubr.bf16.mxu1 %v11422_v9  ;;  %18664 = vmatpush3.bf16.msra.mxu1 %v11752_v37  ;;  %v12061_v37 = vld [vmem:[#allocation4 + $0x888] sm:$0xff]  ;;  %v12854_v9 = vld [vmem:[#allocation2 + $0x1b0] sm:$0xff] }
 0x9bd   : > { %18665 = vmatprep.subr.bf16.mxu1 %v11753_v20  ;;  %18827 = vmatprep.mubr.bf16.mxu0 %v12908_v15  ;;  %v11687_v15 = vld [vmem:[#allocation2 + $0x698] sm:$0xff] }
 0x9c0   : > { %18666 = vmatpush3.bf16.msra.mxu1 %v11753_v20  ;;  %v12855_v20 = vld [vmem:[#allocation2 + $0x1b8] sm:$0xff] }
 0x9c1   : > { %18699 = vmatprep.subr.bf16.mxu1 %v23223_v29  ;;  %v12909_v21 = vpack.c.bf16 %v12855_v20, %v12854_v9  ;;  %v23288_v9 = vld [vmem:[#allocation2 + $0x6a0] sm:$0xff]  ;;  %v11689_v20 = vld [vmem:[#allocation2 + $0x6c8] sm:$0xff] }
 0x9c3   : > { %18636 = vmatmul.mubr.bf16.gmra.mrb[80].mxu1 %v11423_v11  ;;  %v13235_v11 = vld [vmem:[#allocation4 + $0x960] sm:$0xff]  ;;  %18828 = vmatmul.mubr.bf16.gmra.mrb[80].mxu0 %v12909_v21  ;;  %v23290_v21 = vld [vmem:[#allocation2 + $0x6d0] sm:$0xff] }
 0x9c4   : > { %18639 = vmatprep.mubr.bf16.mxu1 %v11424_v45  ;;  %18851 = vmatprep.subr.bf16.mxu0 %v13235_v11  ;;  %v12857_v45 = vld [vmem:[#allocation2 + $0x1e8] sm:$0xff] }
 0x9c5   : > { %18852 = vmatpush3.bf16.msra.mxu0 %v13235_v11  ;;  %v12910_v7 = vpack.c.bf16 %v12857_v45, %v12856_v13  ;;  %v11740_v11 = vpack.c.bf16 %v23288_v9, %v11687_v15  ;;  %v13155_v13 = vld [vmem:[#allocation2 + $0x78] sm:$0xff] }
 0x9c6   : > { %18853 = vmatprep.subr.bf16.mxu0 %v13236_v57 }
 0x9c7   : > { %18831 = vmatprep.mubr.bf16.mxu0 %v12910_v7  ;;  %v13157_v7 = vld [vmem:[#allocation2 + $0xa8] sm:$0xff] }
 0x9c9   : > { %18854 = vmatpush3.bf16.msra.mxu0 %v13236_v57  ;;  %v23294_v57 = vld [vmem:[#allocation2 + $0x700] sm:$0xff] }
 0x9ca   : > { %18855 = vmatprep.subr.bf16.mxu0 %v13237_v55 }
 0x9cb   : > { %18640 = vmatmul.mubr.bf16.gmra.mrb[84].mxu1 %v11425_v23  ;;  %v23270_v23 = vld [vmem:[#allocation2 + $0x580] sm:$0xff] }
 0x9cc   : > { %18643 = vmatprep.mubr.bf16.mxu1 %v11426_v54  ;;  %v11734_v49 = vpack.c.bf16 %v23270_v23, %v23167_v42  ;;  %v12861_v54 = vld [vmem:[#allocation2 + $0x248] sm:$0xff] }
 0x9cd   : > { %v12912_v48 = vpack.c.bf16 %v12861_v54, %v12860_v14  ;;  %18856 = vmatpush3.bf16.msra.mxu0 %v13237_v55 }
 0x9d3   : > { %18644 = vmatmul.mubr.bf16.gmra.mrb[88].mxu1 %v11427_v31  ;;  %v11681_v31 = vld [vmem:[#allocation2 + $0x608] sm:$0xff] }
 0x9d4   : > { %18647 = vmatprep.mubr.bf16.mxu1 %v11428_v44  ;;  %v11737_v42 = vpack.c.bf16 %v23275_v30, %v11681_v31  ;;  %v12864_v44 = vld [vmem:[#allocation2 + $0x2a0] sm:$0xff]  ;;  %v13547_v31 = vld [vmem:[#allocation4 + $0x990] sm:$0xff] }
 0x9d5   : > { %v12914_v32 = vpack.c.bf16 %v12865_v52, %v12864_v44  ;;  %v23303_v52 = vld [vmem:[#allocation2 + $0x498] sm:$0xff] }
 0x9db   : > { %18648 = vmatmul.mubr.bf16.gmra.mrb[92].mxu1 %v11429_v6  ;;  %v13238_v6 = vld [vmem:[#allocation4 + $0x978] sm:$0xff] }
 0x9dc   : > { %18667 = vmatprep.mubr.bf16.mxu1 %v11729_v34  ;;  %v11685_v34 = vld [vmem:[#allocation2 + $0x668] sm:$0xff]  ;;  %18857 = vmatprep.subr.bf16.mxu0 %v13238_v6 }
 0x9dd   : > { %18858 = vmatpush3.bf16.msra.mxu0 %v13238_v6  ;;  %v13165_v6 = vld [vmem:[#allocation2 + $0x168] sm:$0xff] }
 0x9e3   : > { %18668 = vmatmul.mubr.bf16.vlgmr.msra.gmra.mrb[64].mxu1 %v11730_v59  ;;  %v13214_v59 = vpack.c.bf16 %v13151_v63, %v13150_v39  ;;  %v13549_v63 = vld [vmem:[#allocation4 + $0x9a0] sm:$0xff] }
 0x9e4   : > { %18671 = vmatprep.mubr.bf16.mxu1 %v11731_v40  ;;  %18700 = vmatpush3.bf16.msra.mxu1 %v23223_v29  ;;  %v12859_v29 = vld [vmem:[#allocation2 + $0x218] sm:$0xff]  ;;  %v13215_v40 = vpack.c.bf16 %v13153_v27, %v13152_v12  ;;  %v13169_v27 = vld [vmem:[#allocation2 + $0x1c8] sm:$0xff] }
 0x9e5   : > { %18701 = vmatprep.subr.bf16.mxu1 %v12061_v37  ;;  %v12911_v38 = vpack.c.bf16 %v12859_v29, %v12858_v22  ;;  %v13546_v29 = vld [vmem:[#allocation4 + $0x988] sm:$0xff]  ;;  %v23309_v12 = vld [vmem:[#allocation2 + $0x4f8] sm:$0xff] }
 0x9e7   : > { %18832 = vmatmul.mubr.bf16.gmra.mrb[84].mxu0 %v12911_v38  ;;  %v11691_v38 = vld [vmem:[#allocation2 + $0x6f8] sm:$0xff] }
 0x9e8   : > { %18702 = vmatpush3.bf16.msra.mxu1 %v12061_v37  ;;  %18835 = vmatprep.mubr.bf16.mxu0 %v12912_v48  ;;  %v13545_v37 = vld [vmem:[#allocation4 + $0x980] sm:$0xff]  ;;  %v11742_v14 = vpack.c.bf16 %v23294_v57, %v11691_v38  ;;  %v13159_v48 = vld [vmem:[#allocation2 + $0xd8] sm:$0xff] }
 0x9e9   : > { %18703 = vmatprep.subr.bf16.mxu1 %v12062_v35  ;;  %18891 = vmatprep.subr.bf16.mxu0 %v13545_v37  ;;  %v13175_v38 = vld [vmem:[#allocation2 + $0x258] sm:$0xff] }
 0x9eb   : > { %18672 = vmatmul.mubr.bf16.gmra.mrb[68].mxu1 %v11732_v60  ;;  %v13154_v60 = vld [vmem:[#allocation2 + $0x70] sm:$0xff] }
 0x9ec   : > { %18675 = vmatprep.mubr.bf16.mxu1 %v23164_v0  ;;  %18704 = vmatpush3.bf16.msra.mxu1 %v12062_v35  ;;  %v12862_v0 = vld [vmem:[#allocation2 + $0x270] sm:$0xff]  ;;  %v11741_v35 = vpack.c.bf16 %v23290_v21, %v11689_v20  ;;  %v13216_v45 = vpack.c.bf16 %v13155_v13, %v13154_v60  ;;  %v12045_v20 = vpack.c.bf16 %v23309_v12, %v23258_v47  ;;  %v13550_v60 = vld [vmem:[#allocation4 + $0x9a8] sm:$0xff]  ;;  %v13172_v47 = vld [vmem:[#allocation2 + $0x220] sm:$0xff] }
 0x9ed   : > { %18705 = vmatprep.subr.bf16.mxu1 %v12063_v16  ;;  %v12913_v56 = vpack.c.bf16 %v12863_v53, %v12862_v0  ;;  %v13160_v53 = vld [vmem:[#allocation2 + $0x100] sm:$0xff] }
 0x9ef   : > { %18836 = vmatmul.mubr.bf16.gmra.mrb[88].mxu0 %v12913_v56  ;;  %v13161_v56 = vld [vmem:[#allocation2 + $0x108] sm:$0xff] }
 0x9f0   : > { %18706 = vmatpush3.bf16.msra.mxu1 %v12063_v16  ;;  %18839 = vmatprep.mubr.bf16.mxu0 %v12914_v32  ;;  %v13156_v16 = vld [vmem:[#allocation2 + $0xa0] sm:$0xff]  ;;  %v13219_v55 = vpack.c.bf16 %v13161_v56, %v13160_v53  ;;  %v13163_v32 = vld [vmem:[#allocation2 + $0x138] sm:$0xff]  ;;  %v23325_v56 = vld [vmem:[#allocation2 + $0x588] sm:$0xff] }
 0x9f1   : > { %18707 = vmatprep.subr.bf16.mxu1 %v12064_v24  ;;  %v13217_v22 = vpack.c.bf16 %v13157_v7, %v13156_v16  ;;  %v23316_v16 = vld [vmem:[#allocation2 + $0x528] sm:$0xff]  ;;  %v12376_v7 = vld [vmem:[#allocation4 + $0x8d0] sm:$0xff]  ;;  %v23323_v53 = vld [vmem:[#allocation4 + $0x9c0] sm:$0xff] }
 0x9f3   : > { %18676 = vmatmul.mubr.bf16.gmra.mrb[72].mxu1 %v11734_v49  ;;  %v23296_v49 = vld [vmem:[#allocation2 + $0x730] sm:$0xff] }
 0x9f4   : > { %18679 = vmatprep.mubr.bf16.mxu1 %v23172_v19  ;;  %18708 = vmatpush3.bf16.msra.mxu1 %v12064_v24  ;;  %v12866_v19 = vld [vmem:[#allocation2 + $0x2d0] sm:$0xff]  ;;  %v11693_v24 = vld [vmem:[#allocation2 + $0x728] sm:$0xff] }
 0x9f5   : > { %18709 = vmatprep.subr.bf16.mxu1 %v12065_v46  ;;  %v12915_v10 = vpack.c.bf16 %v12867_v51, %v12866_v19  ;;  %v11743_v54 = vpack.c.bf16 %v23296_v49, %v11693_v24  ;;  %v12043_v19 = vpack.c.bf16 %v23303_v52, %v23250_v3  ;;  %v13168_v3 = vld [vmem:[#allocation2 + $0x1c0] sm:$0xff]  ;;  %v11987_v24 = vld [vmem:[#allocation2 + $0x550] sm:$0xff] }
 0x9f7   : > { %18840 = vmatmul.mubr.bf16.gmra.mrb[92].mxu0 %v12915_v10  ;;  %v13164_v10 = vld [vmem:[#allocation2 + $0x160] sm:$0xff] }
 0x9f8   : > { %18710 = vmatpush3.bf16.msra.mxu1 %v12065_v46  ;;  %18859 = vmatprep.mubr.bf16.mxu0 %v13214_v59  ;;  %v13158_v46 = vld [vmem:[#allocation2 + $0xd0] sm:$0xff]  ;;  %v13221_v62 = vpack.c.bf16 %v13165_v6, %v13164_v10  ;;  %v23307_v59 = vld [vmem:[#allocation2 + $0x4c8] sm:$0xff] }
 0x9f9   : > { %18711 = vmatprep.subr.bf16.mxu1 %v12066_v4  ;;  %v13218_v0 = vpack.c.bf16 %v13159_v48, %v13158_v46  ;;  %v12044_v15 = vpack.c.bf16 %v23307_v59, %v23256_v18  ;;  %v23318_v18 = vld [vmem:[#allocation2 + $0x558] sm:$0xff]  ;;  %v12379_v10 = vld [vmem:[#allocation4 + $0x8e8] sm:$0xff] }
 0x9fa   : > { %v13552_v48 = vld [vmem:[#allocation4 + $0x9b8] sm:$0xff] }
 0x9fb   : > { %18680 = vmatmul.mubr.bf16.gmra.mrb[76].mxu1 %v23176_v33  ;;  %v11739_v33 = vpack.c.bf16 %v23281_v50, %v11685_v34  ;;  %v13548_v34 = vld [vmem:[#allocation4 + $0x998] sm:$0xff] }
 0x9fc   : > { %18683 = vmatprep.mubr.bf16.mxu1 %v11737_v42  ;;  %18712 = vmatpush3.bf16.msra.mxu1 %v12066_v4  ;;  %v11695_v4 = vld [vmem:[#allocation2 + $0x758] sm:$0xff]  ;;  %v23300_v42 = vld [vmem:[#allocation2 + $0x760] sm:$0xff] }
 0x9fd   : > { %18713 = vmatprep.subr.bf16.mxu1 %v12067_v5  ;;  %v11744_v44 = vpack.c.bf16 %v23300_v42, %v11695_v4  ;;  %v13177_v4 = vld [vmem:[#allocation2 + $0x288] sm:$0xff] }
 0x9ff   : > { %18860 = vmatmul.mubr.bf16.vlgmr.msra.gmra.mrb[64].mxu0 %v13215_v40  ;;  %v13170_v40 = vld [vmem:[#allocation2 + $0x1f0] sm:$0xff] }
 0xa00   : > { %18714 = vmatpush3.bf16.msra.mxu1 %v12067_v5  ;;  %18892 = vmatpush3.bf16.msra.mxu0 %v13545_v37  ;;  %v13162_v5 = vld [vmem:[#allocation2 + $0x130] sm:$0xff]  ;;  %v13171_v37 = vld [vmem:[#allocation2 + $0x1f8] sm:$0xff] }
 0xa01   : > { %18747 = vmatprep.subr.bf16.mxu1 %v23283_v2  ;;  %18863 = vmatprep.mubr.bf16.mxu0 %v13216_v45  ;;  %v13220_v51 = vpack.c.bf16 %v13163_v32, %v13162_v5  ;;  %v13224_v13 = vpack.c.bf16 %v13171_v37, %v13170_v40  ;;  %v13551_v45 = vld [vmem:[#allocation4 + $0x9b0] sm:$0xff]  ;;  %v13179_v5 = vld [vmem:[#allocation2 + $0x2b8] sm:$0xff]  ;;  %v12048_v32 = vpack.c.bf16 %v23325_v56, %v23270_v23  ;;  %v13181_v23 = vld [vmem:[#allocation2 + $0x2e8] sm:$0xff] }
 0xa02   : > { %18893 = vmatprep.subr.bf16.mxu0 %v13546_v29  ;;  %v13465_v40 = vld [vmem:[#allocation2 + $0x28] sm:$0xff] }
 0xa03   : > { %18684 = vmatmul.mubr.bf16.gmra.mrb[80].mxu1 %v11738_v43  ;;  %v13166_v43 = vld [vmem:[#allocation2 + $0x190] sm:$0xff] }
 0xa04   : > { %18687 = vmatprep.mubr.bf16.mxu1 %v11739_v33  ;;  %18894 = vmatpush3.bf16.msra.mxu0 %v13546_v29  ;;  %v13167_v33 = vld [vmem:[#allocation2 + $0x198] sm:$0xff]  ;;  %v13174_v29 = vld [vmem:[#allocation2 + $0x250] sm:$0xff] }
 0xa05   : > { %18895 = vmatprep.subr.bf16.mxu0 %v13547_v31  ;;  %v13222_v39 = vpack.c.bf16 %v13167_v33, %v13166_v43  ;;  %v23335_v43 = vld [vmem:[#allocation2 + $0x5e8] sm:$0xff]  ;;  %v12380_v33 = vld [vmem:[#allocation4 + $0x8f0] sm:$0xff] }
 0xa07   : > { %18864 = vmatmul.mubr.bf16.gmra.mrb[68].mxu0 %v13217_v22  ;;  %v13173_v22 = vld [vmem:[#allocation2 + $0x228] sm:$0xff] }
 0xa08   : > { %18867 = vmatprep.mubr.bf16.mxu0 %v13218_v0  ;;  %18896 = vmatpush3.bf16.msra.mxu0 %v13547_v31  ;;  %v13225_v46 = vpack.c.bf16 %v13173_v22, %v13172_v47  ;;  %v13226_v0 = vpack.c.bf16 %v13175_v38, %v13174_v29  ;;  %v13176_v31 = vld [vmem:[#allocation2 + $0x280] sm:$0xff]  ;;  %v13469_v22 = vld [vmem:[#allocation2 + $0x88] sm:$0xff] }
 0xa09   : > { %18897 = vmatprep.subr.bf16.mxu0 %v13548_v34  ;;  %v13227_v6 = vpack.c.bf16 %v13177_v4, %v13176_v31  ;;  %v13468_v47 = vld [vmem:[#allocation2 + $0x80] sm:$0xff] }
 0xa0a   : > { %v13530_v38 = vpack.c.bf16 %v13469_v22, %v13468_v47  ;;  %v23373_v47 = vld [vmem:[#allocation4 + $0xa00] sm:$0xff] }
 0xa0b   : > { %18688 = vmatmul.mubr.bf16.gmra.mrb[84].mxu1 %v11740_v11  ;;  %v12375_v11 = vld [vmem:[#allocation4 + $0x8c8] sm:$0xff] }
 0xa0c   : > { %18691 = vmatprep.mubr.bf16.mxu1 %v11741_v35  ;;  %18898 = vmatpush3.bf16.msra.mxu0 %v13548_v34  ;;  %v13223_v35 = vpack.c.bf16 %v13169_v27, %v13168_v3  ;;  %v23333_v34 = vld [vmem:[#allocation2 + $0x618] sm:$0xff]  ;;  %v13464_v27 = vld [vmem:[#allocation2 + $0x20] sm:$0xff] }
 0xa0d   : > { %18899 = vmatprep.subr.bf16.mxu0 %v13549_v63  ;;  %v12051_v3 = vpack.c.bf16 %v23333_v34, %v23275_v30 }
 0xa0f   : > { %18868 = vmatmul.mubr.bf16.gmra.mrb[72].mxu0 %v13219_v55  ;;  %v12378_v55 = vld [vmem:[#allocation4 + $0x8e0] sm:$0xff] }
 0xa10   : > { %18871 = vmatprep.mubr.bf16.mxu0 %v13220_v51  ;;  %18900 = vmatpush3.bf16.msra.mxu0 %v13549_v63  ;;  %v11993_v63 = vld [vmem:[#allocation2 + $0x5e0] sm:$0xff] }
 0xa11   : > { %18901 = vmatprep.subr.bf16.mxu0 %v13550_v60  ;;  %v12050_v37 = vpack.c.bf16 %v23335_v43, %v11993_v63  ;;  %v13478_v63 = vld [vmem:[#allocation2 + $0x170] sm:$0xff] }
 0xa13   : > { %18692 = vmatmul.mubr.bf16.gmra.mrb[88].mxu1 %v11742_v14  ;;  %v12047_v14 = vpack.c.bf16 %v23318_v18, %v11987_v24  ;;  %v23350_v24 = vld [vmem:[#allocation2 + $0x6d8] sm:$0xff] }
 0xa14   : > { %18695 = vmatprep.mubr.bf16.mxu1 %v11743_v54  ;;  %18902 = vmatpush3.bf16.msra.mxu0 %v13550_v60  ;;  %v12377_v54 = vld [vmem:[#allocation4 + $0x8d8] sm:$0xff] }
 0xa15   : > { %18903 = vmatprep.subr.bf16.mxu0 %v13551_v45  ;;  %v23342_v60 = vld [vmem:[#allocation2 + $0x678] sm:$0xff] }
 0xa17   : > { %18872 = vmatmul.mubr.bf16.gmra.mrb[76].mxu0 %v13221_v62 }
 0xa18   : > { %18875 = vmatprep.mubr.bf16.mxu0 %v13222_v39  ;;  %18904 = vmatpush3.bf16.msra.mxu0 %v13551_v45  ;;  %v13180_v39 = vld [vmem:[#allocation2 + $0x2e0] sm:$0xff]  ;;  %v13467_v45 = vld [vmem:[#allocation2 + $0x58] sm:$0xff] }
 0xa19   : > { %18905 = vmatprep.subr.bf16.mxu0 %v13552_v48 }
 0xa1b   : > { %18696 = vmatmul.mubr.bf16.gmra.mrb[92].mxu1 %v11744_v44  ;;  %v13178_v44 = vld [vmem:[#allocation2 + $0x2b0] sm:$0xff] }
 0xa1c   : > { %18715 = vmatprep.mubr.bf16.mxu1 %v12043_v19  ;;  %18906 = vmatpush3.bf16.msra.mxu0 %v13552_v48  ;;  %v11991_v19 = vld [vmem:[#allocation2 + $0x5b0] sm:$0xff]  ;;  %v13228_v62 = vpack.c.bf16 %v13179_v5, %v13178_v44  ;;  %v13472_v48 = vld [vmem:[#allocation2 + $0xe0] sm:$0xff]  ;;  %v23357_v44 = vld [vmem:[#allocation2 + $0x708] sm:$0xff] }
 0xa1d   : > { %18939 = vmatprep.subr.bf16.mxu0 %v23323_v53  ;;  %v12056_v5 = vpack.c.bf16 %v23357_v44, %v23294_v57  ;;  %v13864_v57 = vld [vmem:[#allocation4 + $0x9e8] sm:$0xff] }
 0xa1f   : > { %18876 = vmatmul.mubr.bf16.gmra.mrb[80].mxu0 %v13223_v35  ;;  %v23340_v35 = vld [vmem:[#allocation2 + $0x648] sm:$0xff] }
 0xa20   : > { %18879 = vmatprep.mubr.bf16.mxu0 %v13224_v13  ;;  %v12052_v30 = vpack.c.bf16 %v23340_v35, %v23279_v58  ;;  %v13466_v13 = vld [vmem:[#allocation2 + $0x50] sm:$0xff] }
 0xa21   : > { %v13529_v29 = vpack.c.bf16 %v13467_v45, %v13466_v13  ;;  %v13484_v13 = vld [vmem:[#allocation2 + $0x200] sm:$0xff]  ;;  %v13485_v45 = vld [vmem:[#allocation2 + $0x208] sm:$0xff] }
 0xa22   : > { %v13538_v22 = vpack.c.bf16 %v13485_v45, %v13484_v13  ;;  %v13790_v13 = vld [vmem:[#allocation2 + $0x420] sm:$0xff]  ;;  %v13791_v45 = vld [vmem:[#allocation2 + $0x428] sm:$0xff] }
 0xa23   : > { %18716 = vmatmul.mubr.bf16.vlgmr.msra.gmra.mrb[64].mxu1 %v12044_v15  ;;  %v12381_v15 = vld [vmem:[#allocation4 + $0x8f8] sm:$0xff] }
 0xa24   : > { %18719 = vmatprep.mubr.bf16.mxu1 %v12045_v20  ;;  %18748 = vmatpush3.bf16.msra.mxu1 %v23283_v2  ;;  %v12046_v2 = vpack.c.bf16 %v23316_v16, %v23265_v26  ;;  %v23327_v26 = vld [vmem:[#allocation2 + $0x5b8] sm:$0xff]  ;;  %v13229_v20 = vpack.c.bf16 %v13181_v23, %v13180_v39  ;;  %v23365_v39 = vld [vmem:[#allocation2 + $0x768] sm:$0xff] }
 0xa25   : > { %18749 = vmatprep.subr.bf16.mxu1 %v12375_v11  ;;  %v12049_v51 = vpack.c.bf16 %v23327_v26, %v11991_v19  ;;  %v12058_v23 = vpack.c.bf16 %v23365_v39, %v23300_v42  ;;  %v13482_v42 = vld [vmem:[#allocation2 + $0x1d0] sm:$0xff] }
 0xa27   : > { %18880 = vmatmul.mubr.bf16.gmra.mrb[84].mxu0 %v13225_v46  ;;  %v12055_v46 = vpack.c.bf16 %v23350_v24, %v23290_v21  ;;  %v13474_v21 = vld [vmem:[#allocation2 + $0x110] sm:$0xff] }
 0xa28   : > { %18750 = vmatpush3.bf16.msra.mxu1 %v12375_v11  ;;  %18883 = vmatprep.mubr.bf16.mxu0 %v13226_v0  ;;  %v13528_v11 = vpack.c.bf16 %v13465_v40, %v13464_v27  ;;  %v13473_v0 = vld [vmem:[#allocation2 + $0xe8] sm:$0xff]  ;;  %v13865_v40 = vld [vmem:[#allocation4 + $0x9f0] sm:$0xff] }
 0xa29   : > { %18751 = vmatprep.subr.bf16.mxu1 %v12376_v7  ;;  %v13532_v4 = vpack.c.bf16 %v13473_v0, %v13472_v48  ;;  %v13481_v27 = vld [vmem:[#allocation2 + $0x1a8] sm:$0xff]  ;;  %v12362_v0 = vpack.c.bf16 %v23240_v8, %v23325_v56 }
 0xa2a   : > { %v13493_v48 = vld [vmem:[#allocation2 + $0x2c8] sm:$0xff] }
 0xa2b   : > { %18720 = vmatmul.mubr.bf16.gmra.mrb[68].mxu1 %v12046_v2  ;;  %v23348_v2 = vld [vmem:[#allocation2 + $0x6a8] sm:$0xff] }
 0xa2c   : > { %18723 = vmatprep.mubr.bf16.mxu1 %v12047_v14  ;;  %18752 = vmatpush3.bf16.msra.mxu1 %v12376_v7  ;;  %v12053_v7 = vpack.c.bf16 %v23342_v60, %v23281_v50  ;;  %v13860_v14 = vld [vmem:[#allocation4 + $0x9c8] sm:$0xff]  ;;  %v12054_v58 = vpack.c.bf16 %v23348_v2, %v23288_v9  ;;  %v13470_v50 = vld [vmem:[#allocation2 + $0xb0] sm:$0xff]  ;;  %v23359_v9 = vld [vmem:[#allocation2 + $0x738] sm:$0xff] }
 0xa2d   : > { %18753 = vmatprep.subr.bf16.mxu1 %v12377_v54  ;;  %v12057_v19 = vpack.c.bf16 %v23359_v9, %v23296_v49  ;;  %v13479_v49 = vld [vmem:[#allocation2 + $0x178] sm:$0xff] }
 0xa2f   : > { %18884 = vmatmul.mubr.bf16.gmra.mrb[88].mxu0 %v13227_v6  ;;  %v13863_v6 = vld [vmem:[#allocation4 + $0x9e0] sm:$0xff] }
 0xa30   : > { %18754 = vmatpush3.bf16.msra.mxu1 %v12377_v54  ;;  %18887 = vmatprep.mubr.bf16.mxu0 %v13228_v62  ;;  %v13471_v54 = vld [vmem:[#allocation2 + $0xb8] sm:$0xff] }
 0xa31   : > { %18755 = vmatprep.subr.bf16.mxu1 %v12378_v55  ;;  %v13531_v31 = vpack.c.bf16 %v13471_v54, %v13470_v50  ;;  %v13490_v50 = vld [vmem:[#allocation2 + $0x290] sm:$0xff]  ;;  %v13491_v54 = vld [vmem:[#allocation2 + $0x298] sm:$0xff] }
 0xa33   : > { %18724 = vmatmul.mubr.bf16.gmra.mrb[72].mxu1 %v12048_v32  ;;  %v13475_v32 = vld [vmem:[#allocation2 + $0x118] sm:$0xff] }
 0xa34   : > { %18727 = vmatprep.mubr.bf16.mxu1 %v12049_v51  ;;  %18756 = vmatpush3.bf16.msra.mxu1 %v12378_v55  ;;  %v13861_v55 = vld [vmem:[#allocation4 + $0x9d0] sm:$0xff]  ;;  %v13476_v51 = vld [vmem:[#allocation2 + $0x140] sm:$0xff]  ;;  %v13533_v62 = vpack.c.bf16 %v13475_v32, %v13474_v21  ;;  %v12364_v21 = vpack.c.bf16 %v23248_v25, %v23335_v43 }
 0xa35   : > { %18757 = vmatprep.subr.bf16.mxu1 %v12379_v10  ;;  %v12316_v25 = vld [vmem:[#allocation2 + $0x6b0] sm:$0xff]  ;;  %v12318_v43 = vld [vmem:[#allocation2 + $0x6e0] sm:$0xff] }
 0xa37   : > { %18888 = vmatmul.mubr.bf16.gmra.mrb[92].mxu0 %v13229_v20 }
 0xa38   : > { %18758 = vmatpush3.bf16.msra.mxu1 %v12379_v10  ;;  %18907 = vmatprep.mubr.bf16.mxu0 %v13528_v11  ;;  %v13477_v10 = vld [vmem:[#allocation2 + $0x148] sm:$0xff]  ;;  %v13866_v11 = vld [vmem:[#allocation4 + $0x9f8] sm:$0xff] }
 0xa39   : > { %18759 = vmatprep.subr.bf16.mxu1 %v12380_v33 }
 0xa3b   : > { %18728 = vmatmul.mubr.bf16.gmra.mrb[76].mxu1 %v12050_v37  ;;  %v12357_v37 = vpack.c.bf16 %v23216_v36, %v23303_v52  ;;  %v12359_v36 = vpack.c.bf16 %v23225_v61, %v23309_v12 }
 0xa3c   : > { %18731 = vmatprep.mubr.bf16.mxu1 %v12051_v3  ;;  %18760 = vmatpush3.bf16.msra.mxu1 %v12380_v33  ;;  %v13534_v33 = vpack.c.bf16 %v13477_v10, %v13476_v51  ;;  %v13480_v3 = vld [vmem:[#allocation2 + $0x1a0] sm:$0xff]  ;;  %v13781_v51 = vld [vmem:[#allocation2 + $0x338] sm:$0xff] }
 0xa3d   : > { %18761 = vmatprep.subr.bf16.mxu1 %v12381_v15  ;;  %v13536_v20 = vpack.c.bf16 %v13481_v27, %v13480_v3  ;;  %v13787_v3 = vld [vmem:[#allocation2 + $0x3c8] sm:$0xff]  ;;  %v14175_v27 = vld [vmem:[#allocation4 + $0xa10] sm:$0xff] }
 0xa3f   : > { %18908 = vmatmul.mubr.bf16.vlgmr.msra.gmra.mrb[64].mxu0 %v13529_v29  ;;  %v13486_v29 = vld [vmem:[#allocation2 + $0x230] sm:$0xff] }
 0xa40   : > { %18762 = vmatpush3.bf16.msra.mxu1 %v12381_v15  ;;  %18940 = vmatpush3.bf16.msra.mxu0 %v23323_v53  ;;  %v13862_v53 = vld [vmem:[#allocation4 + $0x9d8] sm:$0xff]  ;;  %v13535_v15 = vpack.c.bf16 %v13479_v49, %v13478_v63  ;;  %v12369_v49 = vpack.c.bf16 %v12318_v43, %v23350_v24 }
 0xa41   : > { %18911 = vmatprep.mubr.bf16.mxu0 %v13530_v38  ;;  %18941 = vmatprep.subr.bf16.mxu0 %v13860_v14  ;;  %v13487_v38 = vld [vmem:[#allocation2 + $0x238] sm:$0xff] }
 0xa42   : > { %v13539_v61 = vpack.c.bf16 %v13487_v38, %v13486_v29  ;;  %v13785_v63 = vld [vmem:[#allocation2 + $0x398] sm:$0xff]  ;;  %v13792_v29 = vld [vmem:[#allocation2 + $0x450] sm:$0xff] }
 0xa43   : > { %18732 = vmatmul.mubr.bf16.gmra.mrb[80].mxu1 %v12052_v30  ;;  %v13483_v30 = vld [vmem:[#allocation2 + $0x1d8] sm:$0xff] }
 0xa44   : > { %18735 = vmatprep.mubr.bf16.mxu1 %v12053_v7  ;;  %18942 = vmatpush3.bf16.msra.mxu0 %v13860_v14  ;;  %v12358_v7 = vpack.c.bf16 %v23221_v1, %v23307_v59  ;;  %v13537_v52 = vpack.c.bf16 %v13483_v30, %v13482_v42  ;;  %v13488_v14 = vld [vmem:[#allocation2 + $0x260] sm:$0xff]  ;;  %v12360_v1 = vpack.c.bf16 %v23232_v17, %v23316_v16  ;;  %v13788_v42 = vld [vmem:[#allocation2 + $0x3f0] sm:$0xff]  ;;  %v13789_v30 = vld [vmem:[#allocation2 + $0x3f8] sm:$0xff] }
 0xa45   : > { %18943 = vmatprep.subr.bf16.mxu0 %v13861_v55  ;;  %v12361_v59 = vpack.c.bf16 %v23234_v28, %v23318_v18  ;;  %v13541_v17 = vpack.c.bf16 %v13491_v54, %v13490_v50  ;;  %v12310_v28 = vld [vmem:[#allocation2 + $0x620] sm:$0xff]  ;;  %v13494_v18 = vld [vmem:[#allocation2 + $0x2f0] sm:$0xff]  ;;  %v13793_v38 = vld [vmem:[#allocation2 + $0x458] sm:$0xff] }
 0xa46   : > { %v13799_v50 = vld [vmem:[#allocation2 + $0x4e8] sm:$0xff] }
 0xa47   : > { %18912 = vmatmul.mubr.bf16.gmra.mrb[68].mxu0 %v13531_v31  ;;  %v13495_v31 = vld [vmem:[#allocation2 + $0x2f8] sm:$0xff] }
 0xa48   : > { %18915 = vmatprep.mubr.bf16.mxu0 %v13532_v4  ;;  %18944 = vmatpush3.bf16.msra.mxu0 %v13861_v55  ;;  %v12363_v55 = vpack.c.bf16 %v23242_v41, %v23327_v26  ;;  %v12365_v4 = vpack.c.bf16 %v12310_v28, %v23333_v34  ;;  %v13543_v8 = vpack.c.bf16 %v13495_v31, %v13494_v18  ;;  %v12312_v41 = vld [vmem:[#allocation2 + $0x650] sm:$0xff]  ;;  %v12314_v26 = vld [vmem:[#allocation2 + $0x680] sm:$0xff]  ;;  %v13805_v18 = vld [vmem:[#allocation2 + $0x578] sm:$0xff] }
 0xa49   : > { %18945 = vmatprep.subr.bf16.mxu0 %v13862_v53  ;;  %v12366_v32 = vpack.c.bf16 %v12312_v41, %v23340_v35  ;;  %v12367_v10 = vpack.c.bf16 %v12314_v26, %v23342_v60  ;;  %v13782_v34 = vld [vmem:[#allocation2 + $0x360] sm:$0xff]  ;;  %v13784_v35 = vld [vmem:[#allocation2 + $0x390] sm:$0xff]  ;;  %v14180_v26 = vld [vmem:[#allocation4 + $0xa38] sm:$0xff] }
 0xa4a   : > { %v13786_v60 = vld [vmem:[#allocation2 + $0x3c0] sm:$0xff]  ;;  %v13804_v28 = vld [vmem:[#allocation2 + $0x570] sm:$0xff] }
 0xa4b   : > { %18736 = vmatmul.mubr.bf16.gmra.mrb[84].mxu1 %v12054_v58  ;;  %v13489_v58 = vld [vmem:[#allocation2 + $0x268] sm:$0xff]  ;;  %v13855_v31 = vpack.c.bf16 %v13805_v18, %v13804_v28  ;;  %v14179_v41 = vld [vmem:[#allocation4 + $0xa30] sm:$0xff]  ;;  %v14490_v28 = vld [vmem:[#allocation4 + $0xa58] sm:$0xff] }
 0xa4c   : > { %18739 = vmatprep.mubr.bf16.mxu1 %v12055_v46  ;;  %18946 = vmatpush3.bf16.msra.mxu0 %v13862_v53  ;;  %v13540_v12 = vpack.c.bf16 %v13489_v58, %v13488_v14  ;;  %v13492_v46 = vld [vmem:[#allocation2 + $0x2c0] sm:$0xff]  ;;  %v13795_v14 = vld [vmem:[#allocation2 + $0x488] sm:$0xff]  ;;  %v13849_v58 = vpack.c.bf16 %v13793_v38, %v13792_v29 }
 0xa4d   : > { %18947 = vmatprep.subr.bf16.mxu0 %v13863_v6  ;;  %v13542_v16 = vpack.c.bf16 %v13493_v48, %v13492_v46  ;;  %v13778_v53 = vld [vmem:[#allocation2 + $0x300] sm:$0xff]  ;;  %v13801_v48 = vld [vmem:[#allocation2 + $0x518] sm:$0xff] }
 0xa4f   : > { %18916 = vmatmul.mubr.bf16.gmra.mrb[72].mxu0 %v13533_v62 }
 0xa50   : > { %18919 = vmatprep.mubr.bf16.mxu0 %v13534_v33  ;;  %18948 = vmatpush3.bf16.msra.mxu0 %v13863_v6  ;;  %v13783_v6 = vld [vmem:[#allocation2 + $0x368] sm:$0xff] }
 0xa51   : > { %18949 = vmatprep.subr.bf16.mxu0 %v13864_v57  ;;  %v13844_v33 = vpack.c.bf16 %v13783_v6, %v13782_v34 }
 0xa53   : > { %18740 = vmatmul.mubr.bf16.gmra.mrb[88].mxu1 %v12056_v5  ;;  %v13779_v5 = vld [vmem:[#allocation2 + $0x308] sm:$0xff] }
 0xa54   : > { %18743 = vmatprep.mubr.bf16.mxu1 %v12057_v19  ;;  %18950 = vmatpush3.bf16.msra.mxu0 %v13864_v57  ;;  %v13842_v56 = vpack.c.bf16 %v13779_v5, %v13778_v53  ;;  %v13780_v19 = vld [vmem:[#allocation2 + $0x330] sm:$0xff]  ;;  %v14174_v57 = vld [vmem:[#allocation4 + $0xa08] sm:$0xff] }
 0xa55   : > { %18951 = vmatprep.subr.bf16.mxu0 %v13865_v40  ;;  %v13843_v62 = vpack.c.bf16 %v13781_v51, %v13780_v19  ;;  %v13807_v53 = vld [vmem:[#allocation2 + $0x5a8] sm:$0xff]  ;;  %v23397_v19 = vld [vmem:[#allocation8 + $0x3] ss:$0 sm:$0xff] }
 0xa57   : > { %18920 = vmatmul.mubr.bf16.gmra.mrb[76].mxu0 %v13535_v15  ;;  %v12320_v15 = vld [vmem:[#allocation2 + $0x710] sm:$0xff] }
 0xa58   : > { %18923 = vmatprep.mubr.bf16.mxu0 %v13536_v20  ;;  %18952 = vmatpush3.bf16.msra.mxu0 %v13865_v40  ;;  %v13845_v40 = vpack.c.bf16 %v13785_v63, %v13784_v35  ;;  %v12322_v20 = vld [vmem:[#allocation2 + $0x740] sm:$0xff] }
 0xa59   : > { %18953 = vmatprep.subr.bf16.mxu0 %v13866_v11  ;;  %v12371_v24 = vpack.c.bf16 %v12322_v20, %v23359_v9  ;;  %v13794_v9 = vld [vmem:[#allocation2 + $0x480] sm:$0xff] }
 0xa5b   : > { %18744 = vmatmul.mubr.bf16.gmra.mrb[92].mxu1 %v12058_v23  ;;  %v12368_v23 = vpack.c.bf16 %v12316_v25, %v23348_v2  ;;  %v14176_v2 = vld [vmem:[#allocation4 + $0xa18] sm:$0xff] }
 0xa5c   : > { %18763 = vmatprep.mubr.bf16.mxu1 %v12357_v37  ;;  %18954 = vmatpush3.bf16.msra.mxu0 %v13866_v11  ;;  %v13846_v37 = vpack.c.bf16 %v13787_v3, %v13786_v60  ;;  %v12370_v11 = vpack.c.bf16 %v12320_v15, %v23357_v44  ;;  %v12672_v15 = vld [vmem:[%s21397_s21 + $0x8] sm:$0xff] }
 0xa5d   : > { %18987 = vmatprep.subr.bf16.mxu0 %v23373_v47 }
 0xa5f   : > { %18924 = vmatmul.mubr.bf16.gmra.mrb[80].mxu0 %v13537_v52  ;;  %v12324_v52 = vld [vmem:[#allocation2 + $0x770] sm:$0xff] }
 0xa60   : > { %18927 = vmatprep.mubr.bf16.mxu0 %v13538_v22  ;;  %v14178_v22 = vld [vmem:[#allocation4 + $0xa28] sm:$0xff]  ;;  %v12372_v44 = vpack.c.bf16 %v12324_v52, %v23365_v39  ;;  %v13800_v39 = vld [vmem:[#allocation2 + $0x510] sm:$0xff] }
 0xa63   : > { %18764 = vmatmul.mubr.bf16.vlgmr.msra.gmra.mrb[64].mxu1 %v12358_v7  ;;  %v14177_v7 = vld [vmem:[#allocation4 + $0xa20] sm:$0xff] }
 0xa64   : > { %18767 = vmatprep.mubr.bf16.mxu1 %v12359_v36  ;;  %v13848_v36 = vpack.c.bf16 %v13791_v45, %v13790_v13 }
 0xa67   : > { %18928 = vmatmul.mubr.bf16.gmra.mrb[84].mxu0 %v13539_v61  ;;  %v13797_v61 = vld [vmem:[#allocation2 + $0x4b8] sm:$0xff] }
 0xa68   : > { %18931 = vmatprep.mubr.bf16.mxu0 %v13540_v12  ;;  %v13798_v12 = vld [vmem:[#allocation2 + $0x4e0] sm:$0xff] }
 0xa69   : > { %v13852_v46 = vpack.c.bf16 %v13799_v50, %v13798_v12  ;;  %v12676_v50 = vld [vmem:[%s21397_s21 + $0x28] sm:$0xff] }
 0xa6b   : > { %18768 = vmatmul.mubr.bf16.gmra.mrb[68].mxu1 %v12360_v1  ;;  %v13850_v1 = vpack.c.bf16 %v13795_v14, %v13794_v9  ;;  %v12675_v9 = vld [vmem:[%s21397_s21 + $0x20] sm:$0xff] }
 0xa6c   : > { %18771 = vmatprep.mubr.bf16.mxu1 %v12361_v59  ;;  %v13796_v59 = vld [vmem:[#allocation2 + $0x4b0] sm:$0xff] }
 0xa6d   : > { %v13851_v54 = vpack.c.bf16 %v13797_v61, %v13796_v59  ;;  %v14489_v61 = vld [vmem:[#allocation4 + $0xa50] sm:$0xff] }
 0xa6f   : > { %18932 = vmatmul.mubr.bf16.gmra.mrb[88].mxu0 %v13541_v17  ;;  %v13803_v17 = vld [vmem:[#allocation2 + $0x548] sm:$0xff] }
 0xa70   : > { %18935 = vmatprep.mubr.bf16.mxu0 %v13542_v16 }
 0xa73   : > { %18772 = vmatmul.mubr.bf16.gmra.mrb[72].mxu1 %v12362_v0  ;;  %v13853_v0 = vpack.c.bf16 %v13801_v48, %v13800_v39 }
 0xa74   : > { %18775 = vmatprep.mubr.bf16.mxu1 %v12363_v55  ;;  %v13802_v55 = vld [vmem:[#allocation2 + $0x540] sm:$0xff] }
 0xa75   : > { %v13854_v16 = vpack.c.bf16 %v13803_v17, %v13802_v55 }
 0xa77   : > { %18936 = vmatmul.mubr.bf16.gmra.mrb[92].mxu0 %v13543_v8  ;;  %v13809_v8 = vld [vmem:[#allocation2 + $0x5d8] sm:$0xff] }
 0xa78   : > { %18955 = vmatprep.mubr.bf16.mxu0 %v13842_v56 }
 0xa7b   : > { %18776 = vmatmul.mubr.bf16.gmra.mrb[76].mxu1 %v12364_v21  ;;  %v13808_v21 = vld [vmem:[#allocation2 + $0x5d0] sm:$0xff] }
 0xa7c   : > { %18779 = vmatprep.mubr.bf16.mxu1 %v12365_v4  ;;  %v13806_v4 = vld [vmem:[#allocation2 + $0x5a0] sm:$0xff]  ;;  %v13857_v56 = vpack.c.bf16 %v13809_v8, %v13808_v21 }
 0xa7d   : > { %v13856_v5 = vpack.c.bf16 %v13807_v53, %v13806_v4  ;;  %v12681_v53 = vld [vmem:[%s21397_s21 + $0x50] sm:$0xff] }
 0xa7f   : > { %18956 = vmatmul.mubr.bf16.vlgmr.msra.gmra.mrb[64].mxu0 %v13843_v62 }
 0xa80   : > { %18988 = vmatpush3.bf16.msra.mxu0 %v23373_v47  ;;  %18959 = vmatprep.mubr.bf16.mxu0 %v13844_v33  ;;  %v13847_v47 = vpack.c.bf16 %v13789_v30, %v13788_v42 }
 0xa81   : > { %18989 = vmatprep.subr.bf16.mxu0 %v14174_v57 }
 0xa83   : > { %18780 = vmatmul.mubr.bf16.gmra.mrb[80].mxu1 %v12366_v32  ;;  %v14487_v32 = vld [vmem:[#allocation4 + $0xa40] sm:$0xff] }
 0xa84   : > { %18783 = vmatprep.mubr.bf16.mxu1 %v12367_v10  ;;  %18990 = vmatpush3.bf16.msra.mxu0 %v14174_v57  ;;  %v12673_v57 = vld [vmem:[%s21397_s21 + $0x10] sm:$0xff] }
 0xa85   : > { %18991 = vmatprep.subr.bf16.mxu0 %v14175_v27 }
 0xa87   : > { %18960 = vmatmul.mubr.bf16.gmra.mrb[68].mxu0 %v13845_v40 }
 0xa88   : > { %18963 = vmatprep.mubr.bf16.mxu0 %v13846_v37  ;;  %18992 = vmatpush3.bf16.msra.mxu0 %v14175_v27  ;;  %v12674_v27 = vld [vmem:[%s21397_s21 + $0x18] sm:$0xff] }
 0xa89   : > { %18993 = vmatprep.subr.bf16.mxu0 %v14176_v2 }
 0xa8b   : > { %18784 = vmatmul.mubr.bf16.gmra.mrb[84].mxu1 %v12368_v23 }
 0xa8c   : > { %18787 = vmatprep.mubr.bf16.mxu1 %v12369_v49  ;;  %18994 = vmatpush3.bf16.msra.mxu0 %v14176_v2  ;;  %v12671_v49 = vld [vmem:[%s21397_s21] sm:$0xff] }
 0xa8d   : > { %18995 = vmatprep.subr.bf16.mxu0 %v14177_v7 }
 0xa8f   : > { %18964 = vmatmul.mubr.bf16.gmra.mrb[72].mxu0 %v13847_v47 }
 0xa90   : > { %18967 = vmatprep.mubr.bf16.mxu0 %v13848_v36  ;;  %18996 = vmatpush3.bf16.msra.mxu0 %v14177_v7  ;;  %v14488_v7 = vld [vmem:[#allocation4 + $0xa48] sm:$0xff] }
 0xa91   : > { %18997 = vmatprep.subr.bf16.mxu0 %v14178_v22 }
 0xa93   : > { %18788 = vmatmul.mubr.bf16.gmra.mrb[88].mxu1 %v12370_v11 }
 0xa94   : > { %18791 = vmatprep.mubr.bf16.mxu1 %v12371_v24  ;;  %18998 = vmatpush3.bf16.msra.mxu0 %v14178_v22  ;;  %v12677_v22 = vld [vmem:[%s21397_s21 + $0x30] sm:$0xff] }
 0xa95   : > { %18999 = vmatprep.subr.bf16.mxu0 %v14179_v41 }
 0xa97   : > { %18968 = vmatmul.mubr.bf16.gmra.mrb[76].mxu0 %v13849_v58 }
 0xa98   : > { %18971 = vmatprep.mubr.bf16.mxu0 %v13850_v1  ;;  %19000 = vmatpush3.bf16.msra.mxu0 %v14179_v41  ;;  %v12678_v1 = vld [vmem:[%s21397_s21 + $0x38] sm:$0xff] }
 0xa99   : > { %19001 = vmatprep.subr.bf16.mxu0 %v14180_v26 }
 0xa9b   : > { %18792 = vmatmul.mubr.bf16.gmra.mrb[92].mxu1 %v12372_v44 }
 0xa9c   : > { %19002 = vmatpush3.bf16.msra.mxu0 %v14180_v26 }
 0xa9d   : > { %19035 = vmatprep.subr.bf16.mxu0 %v14487_v32 }
 0xa9f   : > { %18972 = vmatmul.mubr.bf16.gmra.mrb[80].mxu0 %v13851_v54 }
 0xaa0   : > { %18975 = vmatprep.mubr.bf16.mxu0 %v13852_v46 }
 0xaa7   : > { %18976 = vmatmul.mubr.bf16.gmra.mrb[84].mxu0 %v13853_v0 }
 0xaa8   : > { %18979 = vmatprep.mubr.bf16.mxu0 %v13854_v16 }
 0xaaf   : > { %18980 = vmatmul.mubr.bf16.gmra.mrb[88].mxu0 %v13855_v31 }
 0xab0   : > { %18983 = vmatprep.mubr.bf16.mxu0 %v13856_v5 }
 0xab7   : > { %18984 = vmatmul.mubr.bf16.gmra.mrb[92].mxu0 %v13857_v56  ;;  %v12679_v56 = vld [vmem:[%s21397_s21 + $0x40] sm:$0xff] }
 0xb36   : > { %v18765_v51 = vpop.f32.mrb[64].mxu1 }
 0xb37   : > { %v19371_v10 = vadd.f32 %v18765_v51, %v23397_v19  ;;  %v12416_v34 = vpop.f32.mrb[65].mxu1 }
 0xb38   : > { %v19372_v6 = vadd.f32 %v23397_v19, %v12416_v34  ;;  %v18766_v62 = vpop.f32.mrb[66].mxu1 }
 0xb39   : > { %v12641_v33 = vmax.f32 %v19371_v10, 0.0  ;;  %v19373_v25 = vadd.f32 %v18766_v62, %v23397_v19  ;;  %v12419_v43 = vpop.f32.mrb[67].mxu1  ;;  %v14491_v10 = vld [vmem:[#allocation4 + $0xa60] sm:$0xff] }
 0xb3a   : > { %v12639_v23 = vmax.f32 %v19372_v6, 0.0  ;;  %v19374_v35 = vadd.f32 %v23397_v19, %v12419_v43  ;;  %v12680_v6 = vld [vmem:[%s21397_s21 + $0x48] sm:$0xff] }
 0xb3b   : > { %v12705_v63 = vadd.f32 %v12673_v57, %v12641_v33  ;;  %v12642_v60 = vmax.f32 %v19373_v25, 0.0 }
 0xb3c   : > { %v12703_v3 = vadd.f32 %v12671_v49, %v12639_v23  ;;  %v12640_v40 = vmax.f32 %v19374_v35, 0.0  ;;  %v14492_v49 = vld [vmem:[#allocation4 + $0xa68] sm:$0xff] }
 0xb3d   : > { %12737 = vst [vmem:[%s21397_s21 + $0x10] sm:$0xff] %v12705_v63  ;;  %v12706_v37 = vadd.f32 %v12674_v27, %v12642_v60  ;;  %v14157_v20 = vpack.c.bf16 %v12642_v60, %v12641_v33 }
 0xb3e   : > { %12735 = vst [vmem:[%s21397_s21] sm:$0xff] %v12703_v3  ;;  %v12704_v2 = vadd.f32 %v12672_v15, %v12640_v40  ;;  %v18769_v11 = vpop.f32.mrb[68].mxu1  ;;  %v14156_v42 = vpack.c.bf16 %v12640_v40, %v12639_v23  ;;  %v12685_v40 = vld [vmem:[%s21397_s21 + $0x70] sm:$0xff] }
 0xb3f   : > { %12738 = vst [vmem:[%s21397_s21 + $0x18] sm:$0xff] %v12706_v37  ;;  %v19375_v30 = vadd.f32 %v18769_v11, %v23397_v19  ;;  %v12432_v24 = vpop.f32.mrb[69].mxu1 }
 0xb40   : > { %12736 = vst [vmem:[%s21397_s21 + $0x8] sm:$0xff] %v12704_v2  ;;  %v19376_v13 = vadd.f32 %v23397_v19, %v12432_v24  ;;  %v18770_v45 = vpop.f32.mrb[70].mxu1  ;;  %19003 = vmatprep.mubr.bf16.mxu0 %v14156_v42  ;;  %v12683_v2 = vld [vmem:[%s21397_s21 + $0x60] sm:$0xff] }
 0xb41   : > { %v12645_v47 = vmax.f32 %v19375_v30, 0.0  ;;  %v19377_v36 = vadd.f32 %v18770_v45, %v23397_v19  ;;  %v12435_v52 = vpop.f32.mrb[71].mxu1  ;;  %19004 = vmatmul.mubr.bf16.vlgmr.msra.gmra.mrb[64].mxu0 %v14157_v20  ;;  %v12686_v30 = vld [vmem:[%s21397_s21 + $0x78] sm:$0xff] }
 0xb42   : > { %v12643_v44 = vmax.f32 %v19376_v13, 0.0  ;;  %v19378_v29 = vadd.f32 %v23397_v19, %v12435_v52  ;;  %19036 = vmatpush3.bf16.msra.mxu0 %v14487_v32  ;;  %v12682_v32 = vld [vmem:[%s21397_s21 + $0x58] sm:$0xff]  ;;  %v14493_v13 = vld [vmem:[#allocation4 + $0xa70] sm:$0xff] }
 0xb43   : > { %v12709_v38 = vadd.f32 %v12677_v22, %v12645_v47  ;;  %v12646_v14 = vmax.f32 %v19377_v36, 0.0  ;;  %19037 = vmatprep.subr.bf16.mxu0 %v14488_v7 }
 0xb44   : > { %v12707_v58 = vadd.f32 %v12675_v9, %v12643_v44  ;;  %v12644_v59 = vmax.f32 %v19378_v29, 0.0 }
 0xb45   : > { %12741 = vst [vmem:[%s21397_s21 + $0x30] sm:$0xff] %v12709_v38  ;;  %v12710_v12 = vadd.f32 %v12678_v1, %v12646_v14  ;;  %v14159_v54 = vpack.c.bf16 %v12646_v14, %v12645_v47  ;;  %v14494_v14 = vld [vmem:[#allocation4 + $0xa78] sm:$0xff] }
 0xb46   : > { %12739 = vst [vmem:[%s21397_s21 + $0x20] sm:$0xff] %v12707_v58  ;;  %v12708_v46 = vadd.f32 %v12676_v50, %v12644_v59  ;;  %v18773_v39 = vpop.f32.mrb[72].mxu1  ;;  %v14158_v48 = vpack.c.bf16 %v12644_v59, %v12643_v44  ;;  %19038 = vmatpush3.bf16.msra.mxu0 %v14488_v7  ;;  %v12684_v7 = vld [vmem:[%s21397_s21 + $0x68] sm:$0xff] }
 0xb47   : > { %12742 = vst [vmem:[%s21397_s21 + $0x38] sm:$0xff] %v12710_v12  ;;  %v19379_v0 = vadd.f32 %v18773_v39, %v23397_v19  ;;  %v12448_v55 = vpop.f32.mrb[73].mxu1  ;;  %19039 = vmatprep.subr.bf16.mxu0 %v14489_v61 }
 0xb48   : > { %12740 = vst [vmem:[%s21397_s21 + $0x28] sm:$0xff] %v12708_v46  ;;  %v19380_v17 = vadd.f32 %v23397_v19, %v12448_v55  ;;  %v18774_v16 = vpop.f32.mrb[74].mxu1  ;;  %19007 = vmatprep.mubr.bf16.mxu0 %v14158_v48  ;;  %v12687_v46 = vld [vmem:[%s21397_s21 + $0x80] sm:$0xff] }
 0xb49   : > { %v12649_v18 = vmax.f32 %v19379_v0, 0.0  ;;  %v19381_v31 = vadd.f32 %v18774_v16, %v23397_v19  ;;  %v12451_v4 = vpop.f32.mrb[75].mxu1  ;;  %19008 = vmatmul.mubr.bf16.gmra.mrb[68].mxu0 %v14159_v54  ;;  %v12690_v0 = vld [vmem:[%s21397_s21 + $0x98] sm:$0xff] }
 0xb4a   : > { %v12647_v5 = vmax.f32 %v19380_v17, 0.0  ;;  %v19382_v21 = vadd.f32 %v23397_v19, %v12451_v4  ;;  %19040 = vmatpush3.bf16.msra.mxu0 %v14489_v61  ;;  %v12689_v61 = vld [vmem:[%s21397_s21 + $0x90] sm:$0xff]  ;;  %v23454_v17 = vld [vmem:[#allocation4 + $0xa80] sm:$0xff] }
 0xb4b   : > { %v12713_v8 = vadd.f32 %v12681_v53, %v12649_v18  ;;  %v12650_v41 = vmax.f32 %v19381_v31, 0.0  ;;  %19041 = vmatprep.subr.bf16.mxu0 %v14490_v28 }
 0xb4c   : > { %v12711_v26 = vadd.f32 %v12679_v56, %v12647_v5  ;;  %v12648_v51 = vmax.f32 %v19382_v21, 0.0 }
 0xb4d   : > { %12745 = vst [vmem:[%s21397_s21 + $0x50] sm:$0xff] %v12713_v8  ;;  %v12714_v34 = vadd.f32 %v12682_v32, %v12650_v41  ;;  %v14161_v62 = vpack.c.bf16 %v12650_v41, %v12649_v18 }
 0xb4e   : > { %12743 = vst [vmem:[%s21397_s21 + $0x40] sm:$0xff] %v12711_v26  ;;  %v12712_v33 = vadd.f32 %v12680_v6, %v12648_v51  ;;  %v18777_v25 = vpop.f32.mrb[76].mxu1  ;;  %v14160_v43 = vpack.c.bf16 %v12648_v51, %v12647_v5  ;;  %19042 = vmatpush3.bf16.msra.mxu0 %v14490_v28  ;;  %v12688_v28 = vld [vmem:[%s21397_s21 + $0x88] sm:$0xff]  ;;  %v12693_v51 = vld [vmem:[%s21397_s21 + $0xb0] sm:$0xff] }
 0xb4f   : > { %12746 = vst [vmem:[%s21397_s21 + $0x58] sm:$0xff] %v12714_v34  ;;  %v19383_v57 = vadd.f32 %v18777_v25, %v23397_v19  ;;  %v12464_v23 = vpop.f32.mrb[77].mxu1  ;;  %19043 = vmatprep.subr.bf16.mxu0 %v14491_v10 }
 0xb50   : > { %12744 = vst [vmem:[%s21397_s21 + $0x48] sm:$0xff] %v12712_v33  ;;  %v19384_v35 = vadd.f32 %v23397_v19, %v12464_v23  ;;  %v18778_v63 = vpop.f32.mrb[78].mxu1  ;;  %19011 = vmatprep.mubr.bf16.mxu0 %v14160_v43  ;;  %v12694_v43 = vld [vmem:[%s21397_s21 + $0xb8] sm:$0xff] }
 0xb51   : > { %v12653_v60 = vmax.f32 %v19383_v57, 0.0  ;;  %v19385_v3 = vadd.f32 %v18778_v63, %v23397_v19  ;;  %v12467_v27 = vpop.f32.mrb[79].mxu1  ;;  %19012 = vmatmul.mubr.bf16.gmra.mrb[72].mxu0 %v14161_v62  ;;  %v12691_v62 = vld [vmem:[%s21397_s21 + $0xa0] sm:$0xff] }
 0xb52   : > { %v12651_v37 = vmax.f32 %v19384_v35, 0.0  ;;  %v19386_v15 = vadd.f32 %v23397_v19, %v12467_v27  ;;  %19044 = vmatpush3.bf16.msra.mxu0 %v14491_v10  ;;  %v12692_v35 = vld [vmem:[%s21397_s21 + $0xa8] sm:$0xff] }
 0xb53   : > { %v12717_v20 = vadd.f32 %v12685_v40, %v12653_v60  ;;  %v12654_v11 = vmax.f32 %v19385_v3, 0.0  ;;  %19045 = vmatprep.subr.bf16.mxu0 %v14492_v49 }
 0xb54   : > { %v12715_v42 = vadd.f32 %v12683_v2, %v12651_v37  ;;  %v12652_v24 = vmax.f32 %v19386_v15, 0.0 }
 0xb55   : > { %12749 = vst [vmem:[%s21397_s21 + $0x70] sm:$0xff] %v12717_v20  ;;  %v12718_v45 = vadd.f32 %v12686_v30, %v12654_v11  ;;  %v14163_v47 = vpack.c.bf16 %v12654_v11, %v12653_v60 }
 0xb56   : > { %12747 = vst [vmem:[%s21397_s21 + $0x60] sm:$0xff] %v12715_v42  ;;  %v12716_v36 = vadd.f32 %v12684_v7, %v12652_v24  ;;  %v18781_v52 = vpop.f32.mrb[80].mxu1  ;;  %v14162_v22 = vpack.c.bf16 %v12652_v24, %v12651_v37  ;;  %19046 = vmatpush3.bf16.msra.mxu0 %v14492_v49  ;;  %v12697_v42 = vld [vmem:[%s21397_s21 + $0xd0] sm:$0xff] }
 0xb57   : > { %12750 = vst [vmem:[%s21397_s21 + $0x78] sm:$0xff] %v12718_v45  ;;  %v19387_v44 = vadd.f32 %v18781_v52, %v23397_v19  ;;  %v12480_v29 = vpop.f32.mrb[81].mxu1  ;;  %19047 = vmatprep.subr.bf16.mxu0 %v14493_v13  ;;  %v12695_v45 = vld [vmem:[%s21397_s21 + $0xc0] sm:$0xff] }
 0xb58   : > { %12748 = vst [vmem:[%s21397_s21 + $0x68] sm:$0xff] %v12716_v36  ;;  %v19388_v38 = vadd.f32 %v23397_v19, %v12480_v29  ;;  %v18782_v9 = vpop.f32.mrb[82].mxu1  ;;  %19015 = vmatprep.mubr.bf16.mxu0 %v14162_v22  ;;  %v12698_v36 = vld [vmem:[%s21397_s21 + $0xd8] sm:$0xff] }
 0xb59   : > { %v12657_v58 = vmax.f32 %v19387_v44, 0.0  ;;  %v19389_v1 = vadd.f32 %v18782_v9, %v23397_v19  ;;  %v12483_v59 = vpop.f32.mrb[83].mxu1  ;;  %19016 = vmatmul.mubr.bf16.gmra.mrb[76].mxu0 %v14163_v47  ;;  %v12696_v44 = vld [vmem:[%s21397_s21 + $0xc8] sm:$0xff] }
 0xb5a   : > { %v12655_v12 = vmax.f32 %v19388_v38, 0.0  ;;  %v19390_v50 = vadd.f32 %v23397_v19, %v12483_v59  ;;  %19048 = vmatpush3.bf16.msra.mxu0 %v14493_v13 }
 0xb5b   : > { %v12721_v54 = vadd.f32 %v12689_v61, %v12657_v58  ;;  %v12658_v39 = vmax.f32 %v19389_v1, 0.0  ;;  %19049 = vmatprep.subr.bf16.mxu0 %v14494_v14 }
 0xb5c   : > { %v12719_v48 = vadd.f32 %v12687_v46, %v12655_v12  ;;  %v12656_v55 = vmax.f32 %v19390_v50, 0.0  ;;  %v12701_v46 = vld [vmem:[%s21397_s21 + $0xf0] sm:$0xff] }
 0xb5d   : > { %12753 = vst [vmem:[%s21397_s21 + $0x90] sm:$0xff] %v12721_v54  ;;  %v12722_v16 = vadd.f32 %v12690_v0, %v12658_v39  ;;  %v14165_v18 = vpack.c.bf16 %v12658_v39, %v12657_v58 }
 0xb5e   : > { %12751 = vst [vmem:[%s21397_s21 + $0x80] sm:$0xff] %v12719_v48  ;;  %v12720_v31 = vadd.f32 %v12688_v28, %v12656_v55  ;;  %v18785_v4 = vpop.f32.mrb[84].mxu1  ;;  %v14164_v53 = vpack.c.bf16 %v12656_v55, %v12655_v12  ;;  %19050 = vmatpush3.bf16.msra.mxu0 %v14494_v14  ;;  %v12699_v55 = vld [vmem:[%s21397_s21 + $0xe0] sm:$0xff]  ;;  %v14406_v28 = vld [vmem:[#allocation2 + $0x320] sm:$0xff] }
 0xb5f   : > { %12754 = vst [vmem:[%s21397_s21 + $0x98] sm:$0xff] %v12722_v16  ;;  %v19391_v5 = vadd.f32 %v18785_v4, %v23397_v19  ;;  %v12496_v21 = vpop.f32.mrb[85].mxu1  ;;  %19083 = vmatprep.subr.bf16.mxu0 %v23454_v17  ;;  %v12702_v4 = vld [vmem:[%s21397_s21 + $0xf8] sm:$0xff] }
 0xb60   : > { %12752 = vst [vmem:[%s21397_s21 + $0x88] sm:$0xff] %v12720_v31  ;;  %v19392_v8 = vadd.f32 %v23397_v19, %v12496_v21  ;;  %v18786_v56 = vpop.f32.mrb[86].mxu1  ;;  %19019 = vmatprep.mubr.bf16.mxu0 %v14164_v53  ;;  %v12700_v21 = vld [vmem:[%s21397_s21 + $0xe8] sm:$0xff] }
 0xb61   : > { %v12661_v41 = vmax.f32 %v19391_v5, 0.0  ;;  %v19393_v26 = vadd.f32 %v18786_v56, %v23397_v19  ;;  %v12499_v32 = vpop.f32.mrb[87].mxu1  ;;  %19020 = vmatmul.mubr.bf16.gmra.mrb[80].mxu0 %v14165_v18  ;;  %v14407_v18 = vld [vmem:[#allocation2 + $0x328] sm:$0xff] }
 0xb62   : > { %v12659_v10 = vmax.f32 %v19392_v8, 0.0  ;;  %v19394_v34 = vadd.f32 %v23397_v19, %v12499_v32  ;;  %v14409_v32 = vld [vmem:[#allocation2 + $0x358] sm:$0xff] }
 0xb63   : > { %v12725_v6 = vadd.f32 %v12693_v51, %v12661_v41  ;;  %v12662_v33 = vmax.f32 %v19393_v26, 0.0  ;;  %v14470_v26 = vpack.c.bf16 %v14407_v18, %v14406_v28  ;;  %v14410_v51 = vld [vmem:[#allocation2 + $0x380] sm:$0xff]  ;;  %v14722_v28 = vld [vmem:[#allocation2 + $0x608] sm:$0xff] }
 0xb64   : > { %v12723_v25 = vadd.f32 %v12691_v62, %v12659_v10  ;;  %v12660_v57 = vmax.f32 %v19394_v34, 0.0  ;;  %v14803_v62 = vld [vmem:[#allocation4 + $0xa88] sm:$0xff] }
 0xb65   : > { %12757 = vst [vmem:[%s21397_s21 + $0xb0] sm:$0xff] %v12725_v6  ;;  %v12726_v23 = vadd.f32 %v12694_v43, %v12662_v33  ;;  %v14167_v63 = vpack.c.bf16 %v12662_v33, %v12661_v41  ;;  %v14412_v33 = vld [vmem:[#allocation2 + $0x3b0] sm:$0xff]  ;;  %v14414_v43 = vld [vmem:[#allocation2 + $0x3e0] sm:$0xff] }
 0xb66   : > { %12755 = vst [vmem:[%s21397_s21 + $0xa0] sm:$0xff] %v12723_v25  ;;  %v12724_v49 = vadd.f32 %v12692_v35, %v12660_v57  ;;  %v18789_v60 = vpop.f32.mrb[88].mxu1  ;;  %v14166_v3 = vpack.c.bf16 %v12660_v57, %v12659_v10  ;;  %v14411_v10 = vld [vmem:[#allocation2 + $0x388] sm:$0xff]  ;;  %v14413_v25 = vld [vmem:[#allocation2 + $0x3b8] sm:$0xff] }
 0xb67   : > { %12758 = vst [vmem:[%s21397_s21 + $0xb8] sm:$0xff] %v12726_v23  ;;  %v19395_v27 = vadd.f32 %v18789_v60, %v23397_v19  ;;  %v12512_v40 = vpop.f32.mrb[89].mxu1  ;;  %v14472_v6 = vpack.c.bf16 %v14411_v10, %v14410_v51  ;;  %v14415_v57 = vld [vmem:[#allocation2 + $0x3e8] sm:$0xff]  ;;  %v14804_v23 = vld [vmem:[#allocation4 + $0xa90] sm:$0xff]  ;;  %v14473_v35 = vpack.c.bf16 %v14413_v25, %v14412_v33  ;;  %v14732_v25 = vld [vmem:[#allocation2 + $0x6f8] sm:$0xff] }
 0xb68   : > { %12756 = vst [vmem:[%s21397_s21 + $0xa8] sm:$0xff] %v12724_v49  ;;  %v19396_v37 = vadd.f32 %v23397_v19, %v12512_v40  ;;  %v18790_v15 = vpop.f32.mrb[90].mxu1  ;;  %19023 = vmatprep.mubr.bf16.mxu0 %v14166_v3  ;;  %v14805_v49 = vld [vmem:[#allocation4 + $0xa98] sm:$0xff]  ;;  %v14416_v60 = vld [vmem:[#allocation2 + $0x410] sm:$0xff]  ;;  %v14419_v40 = vld [vmem:[#allocation2 + $0x448] sm:$0xff] }
 0xb69   : > { %v12665_v20 = vmax.f32 %v19395_v27, 0.0  ;;  %v19397_v2 = vadd.f32 %v18790_v15, %v23397_v19  ;;  %v12515_v11 = vpop.f32.mrb[91].mxu1  ;;  %19024 = vmatmul.mubr.bf16.gmra.mrb[84].mxu0 %v14167_v63  ;;  %v14474_v63 = vpack.c.bf16 %v14415_v57, %v14414_v43  ;;  %v14417_v3 = vld [vmem:[#allocation2 + $0x418] sm:$0xff]  ;;  %v14418_v27 = vld [vmem:[#allocation2 + $0x440] sm:$0xff]  ;;  %v14730_v51 = vld [vmem:[#allocation2 + $0x6c8] sm:$0xff] }
 0xb6a   : > { %v12663_v30 = vmax.f32 %v19396_v37, 0.0  ;;  %v19398_v24 = vadd.f32 %v23397_v19, %v12515_v11  ;;  %v14475_v37 = vpack.c.bf16 %v14417_v3, %v14416_v60  ;;  %v14476_v15 = vpack.c.bf16 %v14419_v40, %v14418_v27  ;;  %v14421_v11 = vld [vmem:[#allocation2 + $0x478] sm:$0xff]  ;;  %v15118_v10 = vld [vmem:[#allocation4 + $0xad0] sm:$0xff]  ;;  %v14733_v43 = vld [vmem:[#allocation2 + $0x720] sm:$0xff] }
 0xb6b   : > { %v12729_v13 = vadd.f32 %v12697_v42, %v12665_v20  ;;  %v12666_v7 = vmax.f32 %v19397_v2, 0.0  ;;  %v14420_v2 = vld [vmem:[#allocation2 + $0x470] sm:$0xff]  ;;  %v14422_v42 = vld [vmem:[#allocation2 + $0x4a0] sm:$0xff]  ;;  %v14734_v57 = vld [vmem:[#allocation2 + $0x728] sm:$0xff] }
 0xb6c   : > { %v12727_v47 = vadd.f32 %v12695_v45, %v12663_v30  ;;  %v12664_v52 = vmax.f32 %v19398_v24, 0.0  ;;  %v14808_v24 = vld [vmem:[#allocation4 + $0xab0] sm:$0xff]  ;;  %v14736_v3 = vld [vmem:[#allocation2 + $0x758] sm:$0xff]  ;;  %v14737_v27 = vld [vmem:[#allocation2 + $0x780] sm:$0xff] }
 0xb6d   : > { %12761 = vst [vmem:[%s21397_s21 + $0xd0] sm:$0xff] %v12729_v13  ;;  %v12730_v22 = vadd.f32 %v12698_v36, %v12666_v7  ;;  %v14169_v29 = vpack.c.bf16 %v12666_v7, %v12665_v20  ;;  %v14807_v20 = vld [vmem:[#allocation4 + $0xaa8] sm:$0xff]  ;;  %v14477_v13 = vpack.c.bf16 %v14421_v11, %v14420_v2  ;;  %v14809_v7 = vld [vmem:[#allocation4 + $0xab8] sm:$0xff]  ;;  %v14731_v33 = vld [vmem:[#allocation2 + $0x6f0] sm:$0xff] }
 0xb6e   : > { %12759 = vst [vmem:[%s21397_s21 + $0xc0] sm:$0xff] %v12727_v47  ;;  %v12728_v38 = vadd.f32 %v12696_v44, %v12664_v52  ;;  %v18793_v9 = vpop.f32.mrb[92].mxu1  ;;  %v14168_v14 = vpack.c.bf16 %v12664_v52, %v12663_v30  ;;  %v14423_v30 = vld [vmem:[#allocation2 + $0x4a8] sm:$0xff]  ;;  %v14424_v47 = vld [vmem:[#allocation2 + $0x4d0] sm:$0xff]  ;;  %v14425_v36 = vld [vmem:[#allocation2 + $0x4d8] sm:$0xff] }
 0xb6f   : > { %12762 = vst [vmem:[%s21397_s21 + $0xd8] sm:$0xff] %v12730_v22  ;;  %v19399_v58 = vadd.f32 %v18793_v9, %v23397_v19  ;;  %v12528_v1 = vpop.f32.mrb[93].mxu1  ;;  %v14478_v45 = vpack.c.bf16 %v14423_v30, %v14422_v42  ;;  %v14426_v52 = vld [vmem:[#allocation2 + $0x500] sm:$0xff]  ;;  %v14427_v22 = vld [vmem:[#allocation2 + $0x508] sm:$0xff]  ;;  %v14428_v9 = vld [vmem:[#allocation2 + $0x530] sm:$0xff] }
 0xb70   : > { %12760 = vst [vmem:[%s21397_s21 + $0xc8] sm:$0xff] %v12728_v38  ;;  %v19400_v59 = vadd.f32 %v23397_v19, %v12528_v1  ;;  %v18794_v61 = vpop.f32.mrb[94].mxu1  ;;  %19027 = vmatprep.mubr.bf16.mxu0 %v14168_v14  ;;  %v15116_v44 = vld [vmem:[#allocation4 + $0xac0] sm:$0xff]  ;;  %v14480_v38 = vpack.c.bf16 %v14427_v22, %v14426_v52  ;;  %v14429_v14 = vld [vmem:[#allocation2 + $0x538] sm:$0xff]  ;;  %v14431_v1 = vld [vmem:[#allocation2 + $0x568] sm:$0xff] }
 0xb71   : > { %v12669_v12 = vmax.f32 %v19399_v58, 0.0  ;;  %v19401_v50 = vadd.f32 %v18794_v61, %v23397_v19  ;;  %v12531_v54 = vpop.f32.mrb[95].mxu1  ;;  %19028 = vmatmul.mubr.bf16.gmra.mrb[88].mxu0 %v14169_v29  ;;  %v14479_v29 = vpack.c.bf16 %v14425_v36, %v14424_v47  ;;  %v14430_v58 = vld [vmem:[#allocation2 + $0x560] sm:$0xff]  ;;  %v14735_v60 = vld [vmem:[#allocation2 + $0x750] sm:$0xff]  ;;  %v14738_v40 = vld [vmem:[#allocation2 + $0x788] sm:$0xff] }
 0xb72   : > { %v12667_v39 = vmax.f32 %v19400_v59, 0.0  ;;  %v19402_v48 = vadd.f32 %v23397_v19, %v12531_v54  ;;  %v14408_v19 = vld [vmem:[#allocation2 + $0x350] sm:$0xff]  ;;  %v14481_v59 = vpack.c.bf16 %v14429_v14, %v14428_v9  ;;  %v14482_v61 = vpack.c.bf16 %v14431_v1, %v14430_v58  ;;  %v14434_v54 = vld [vmem:[#allocation2 + $0x5c0] sm:$0xff]  ;;  %v14740_v11 = vld [vmem:[#allocation2 + $0x7b8] sm:$0xff] }
 0xb73   : > { %v12733_v0 = vadd.f32 %v12701_v46, %v12669_v12  ;;  %v12670_v16 = vmax.f32 %v19401_v50, 0.0  ;;  %v14471_v34 = vpack.c.bf16 %v14409_v32, %v14408_v19  ;;  %v14433_v50 = vld [vmem:[#allocation2 + $0x598] sm:$0xff]  ;;  %v14435_v46 = vld [vmem:[#allocation2 + $0x5c8] sm:$0xff]  ;;  %v14729_v32 = vld [vmem:[#allocation2 + $0x6c0] sm:$0xff] }
 0xb74   : > { %v12731_v31 = vadd.f32 %v12699_v55, %v12667_v39  ;;  %v12668_v53 = vmax.f32 %v19402_v48, 0.0  ;;  %v14484_v48 = vpack.c.bf16 %v14435_v46, %v14434_v54  ;;  %v14437_v55 = vld [vmem:[#allocation2 + $0x5f8] sm:$0xff]  ;;  %v14739_v2 = vld [vmem:[#allocation2 + $0x7b0] sm:$0xff]  ;;  %v14741_v42 = vld [vmem:[#allocation2 + $0x7e0] sm:$0xff] }
 0xb75   : > { %12765 = vst [vmem:[%s21397_s21 + $0xf0] sm:$0xff] %v12733_v0  ;;  %v12734_v5 = vadd.f32 %v12702_v4, %v12670_v16  ;;  %v14171_v8 = vpack.c.bf16 %v12670_v16, %v12669_v12  ;;  %v14432_v12 = vld [vmem:[#allocation2 + $0x590] sm:$0xff]  ;;  %v14721_v16 = vld [vmem:[#allocation2 + $0x600] sm:$0xff]  ;;  %v14728_v19 = vld [vmem:[#allocation2 + $0x698] sm:$0xff] }
 0xb76   : > { %12763 = vst [vmem:[%s21397_s21 + $0xe0] sm:$0xff] %v12731_v31  ;;  %v12732_v56 = vadd.f32 %v12700_v21, %v12668_v53  ;;  %v14170_v41 = vpack.c.bf16 %v12668_v53, %v12667_v39  ;;  %v14483_v39 = vpack.c.bf16 %v14433_v50, %v14432_v12  ;;  %v14436_v0 = vld [vmem:[#allocation2 + $0x5f0] sm:$0xff]  ;;  %v14785_v31 = vpack.c.bf16 %v14722_v28, %v14721_v16  ;;  %v14724_v53 = vld [vmem:[#allocation2 + $0x638] sm:$0xff]  ;;  %v14726_v21 = vld [vmem:[#allocation2 + $0x668] sm:$0xff] }
 0xb77   : > { %12766 = vst [vmem:[%s21397_s21 + $0xf8] sm:$0xff] %v12734_v5  ;;  %v14485_v18 = vpack.c.bf16 %v14437_v55, %v14436_v0  ;;  %v14723_v4 = vld [vmem:[#allocation2 + $0x630] sm:$0xff]  ;;  %v14725_v5 = vld [vmem:[#allocation2 + $0x660] sm:$0xff]  ;;  %v14742_v30 = vld [vmem:[#allocation2 + $0x7e8] sm:$0xff] }
 0xb78   : > { %12764 = vst [vmem:[%s21397_s21 + $0xe8] sm:$0xff] %v12732_v56  ;;  %19031 = vmatprep.mubr.bf16.mxu0 %v14170_v41  ;;  %v14787_v56 = vpack.c.bf16 %v14726_v21, %v14725_v5  ;;  %v15117_v41 = vld [vmem:[#allocation4 + $0xac8] sm:$0xff]  ;;  %v14744_v47 = vld [vmem:[#allocation2 + $0x818] sm:$0xff]  ;;  %v14745_v36 = vld [vmem:[#allocation2 + $0x840] sm:$0xff] }
 0xb79   : > { %19032 = vmatmul.mubr.bf16.gmra.mrb[92].mxu0 %v14171_v8  ;;  %v14786_v8 = vpack.c.bf16 %v14724_v53, %v14723_v4  ;;  %v14746_v52 = vld [vmem:[#allocation2 + $0x848] sm:$0xff]  ;;  %v14749_v9 = vld [vmem:[#allocation2 + $0x8a0] sm:$0xff]  ;;  %v15035_v12 = vld [vmem:[#allocation2 + $0x610] sm:$0xff] }
 0xb7a   : > { %19051 = vmatprep.mubr.bf16.mxu0 %v14470_v26  ;;  %v14727_v26 = vld [vmem:[#allocation2 + $0x690] sm:$0xff]  ;;  %v14750_v14 = vld [vmem:[#allocation2 + $0x8a8] sm:$0xff]  ;;  %v15036_v50 = vld [vmem:[#allocation2 + $0x618] sm:$0xff] }
 0xb7b   : > { %v14799_v1 = vpack.c.bf16 %v14750_v14, %v14749_v9  ;;  %v15099_v46 = vpack.c.bf16 %v15036_v50, %v15035_v12  ;;  %v15039_v0 = vld [vmem:[#allocation2 + $0x670] sm:$0xff]  ;;  %v15040_v55 = vld [vmem:[#allocation2 + $0x678] sm:$0xff]  ;;  %v15042_v4 = vld [vmem:[#allocation2 + $0x6a8] sm:$0xff] }
 0xb7c   : > { %v15101_v28 = vpack.c.bf16 %v15040_v55, %v15039_v0  ;;  %v15043_v53 = vld [vmem:[#allocation2 + $0x6d0] sm:$0xff]  ;;  %v15044_v5 = vld [vmem:[#allocation2 + $0x6d8] sm:$0xff] }
 0xb7d   : > { %v15432_v21 = vld [vmem:[#allocation4 + $0xb10] sm:$0xff] }
 0xb7e   : > { %v15351_v14 = vld [vmem:[#allocation2 + $0x650] sm:$0xff] }
 0xb7f   : > { %v15355_v50 = vld [vmem:[#allocation2 + $0x6b0] sm:$0xff] }
 0xb80   : > { %v15359_v55 = vld [vmem:[#allocation2 + $0x710] sm:$0xff] }
 0xb81   : > { %19052 = vmatmul.mubr.bf16.vlgmr.msra.gmra.mrb[64].mxu0 %v14471_v34  ;;  %v14788_v34 = vpack.c.bf16 %v14728_v19, %v14727_v26  ;;  %v15045_v26 = vld [vmem:[#allocation2 + $0x700] sm:$0xff]  ;;  %v15046_v19 = vld [vmem:[#allocation2 + $0x708] sm:$0xff] }
 0xb82   : > { %19084 = vmatpush3.bf16.msra.mxu0 %v23454_v17  ;;  %19055 = vmatprep.mubr.bf16.mxu0 %v14472_v6  ;;  %v14806_v17 = vld [vmem:[#allocation4 + $0xaa0] sm:$0xff]  ;;  %v14789_v6 = vpack.c.bf16 %v14730_v51, %v14729_v32  ;;  %v15047_v32 = vld [vmem:[#allocation2 + $0x730] sm:$0xff]  ;;  %v15048_v51 = vld [vmem:[#allocation2 + $0x738] sm:$0xff] }
 0xb83   : > { %19085 = vmatprep.subr.bf16.mxu0 %v14803_v62 }
 0xb86   : > { %19086 = vmatpush3.bf16.msra.mxu0 %v14803_v62  ;;  %v15119_v62 = vld [vmem:[#allocation4 + $0xad8] sm:$0xff] }
 0xb87   : > { %19087 = vmatprep.subr.bf16.mxu0 %v14804_v23 }
 0xb89   : > { %19056 = vmatmul.mubr.bf16.gmra.mrb[68].mxu0 %v14473_v35  ;;  %v14790_v35 = vpack.c.bf16 %v14732_v25, %v14731_v33  ;;  %v15049_v33 = vld [vmem:[#allocation2 + $0x760] sm:$0xff]  ;;  %v15050_v25 = vld [vmem:[#allocation2 + $0x768] sm:$0xff] }
 0xb8a   : > { %19059 = vmatprep.mubr.bf16.mxu0 %v14474_v63  ;;  %19088 = vmatpush3.bf16.msra.mxu0 %v14804_v23  ;;  %v15120_v23 = vld [vmem:[#allocation4 + $0xae0] sm:$0xff]  ;;  %v14791_v63 = vpack.c.bf16 %v14734_v57, %v14733_v43  ;;  %v15051_v43 = vld [vmem:[#allocation2 + $0x790] sm:$0xff]  ;;  %v15052_v57 = vld [vmem:[#allocation2 + $0x798] sm:$0xff] }
 0xb8b   : > { %19089 = vmatprep.subr.bf16.mxu0 %v14805_v49 }
 0xb8e   : > { %19090 = vmatpush3.bf16.msra.mxu0 %v14805_v49  ;;  %v15121_v49 = vld [vmem:[#allocation4 + $0xae8] sm:$0xff] }
 0xb8f   : > { %19091 = vmatprep.subr.bf16.mxu0 %v14806_v17 }
 0xb91   : > { %19060 = vmatmul.mubr.bf16.gmra.mrb[72].mxu0 %v14475_v37  ;;  %v14792_v37 = vpack.c.bf16 %v14736_v3, %v14735_v60  ;;  %v15053_v60 = vld [vmem:[#allocation2 + $0x7c0] sm:$0xff]  ;;  %v15054_v3 = vld [vmem:[#allocation2 + $0x7c8] sm:$0xff] }
 0xb92   : > { %19063 = vmatprep.mubr.bf16.mxu0 %v14476_v15  ;;  %19092 = vmatpush3.bf16.msra.mxu0 %v14806_v17  ;;  %v15122_v17 = vld [vmem:[#allocation4 + $0xaf0] sm:$0xff]  ;;  %v14793_v15 = vpack.c.bf16 %v14738_v40, %v14737_v27  ;;  %v15056_v40 = vld [vmem:[#allocation2 + $0x7f8] sm:$0xff] }
 0xb93   : > { %19093 = vmatprep.subr.bf16.mxu0 %v14807_v20  ;;  %v15055_v27 = vld [vmem:[#allocation2 + $0x7f0] sm:$0xff] }
 0xb96   : > { %19094 = vmatpush3.bf16.msra.mxu0 %v14807_v20  ;;  %v15123_v20 = vld [vmem:[#allocation4 + $0xaf8] sm:$0xff] }
 0xb97   : > { %19095 = vmatprep.subr.bf16.mxu0 %v14808_v24 }
 0xb99   : > { %19064 = vmatmul.mubr.bf16.gmra.mrb[76].mxu0 %v14477_v13  ;;  %v14794_v13 = vpack.c.bf16 %v14740_v11, %v14739_v2  ;;  %v15059_v2 = vld [vmem:[#allocation2 + $0x850] sm:$0xff]  ;;  %v15060_v11 = vld [vmem:[#allocation2 + $0x858] sm:$0xff] }
 0xb9a   : > { %19067 = vmatprep.mubr.bf16.mxu0 %v14478_v45  ;;  %19096 = vmatpush3.bf16.msra.mxu0 %v14808_v24  ;;  %v15430_v24 = vld [vmem:[#allocation4 + $0xb00] sm:$0xff]  ;;  %v14795_v45 = vpack.c.bf16 %v14742_v30, %v14741_v42  ;;  %v15111_v30 = vpack.c.bf16 %v15060_v11, %v15059_v2 }
 0xb9b   : > { %19097 = vmatprep.subr.bf16.mxu0 %v14809_v7 }
 0xb9e   : > { %19098 = vmatpush3.bf16.msra.mxu0 %v14809_v7  ;;  %v14743_v7 = vld [vmem:[#allocation2 + $0x810] sm:$0xff] }
 0xb9f   : > { %19131 = vmatprep.subr.bf16.mxu0 %v15116_v44  ;;  %v14796_v22 = vpack.c.bf16 %v14744_v47, %v14743_v7  ;;  %v15064_v7 = vld [vmem:[#allocation2 + $0x8b8] sm:$0xff] }
 0xba1   : > { %19068 = vmatmul.mubr.bf16.gmra.mrb[80].mxu0 %v14479_v29  ;;  %v14747_v29 = vld [vmem:[#allocation2 + $0x870] sm:$0xff] }
 0xba2   : > { %19071 = vmatprep.mubr.bf16.mxu0 %v14480_v38  ;;  %v14748_v38 = vld [vmem:[#allocation2 + $0x878] sm:$0xff] }
 0xba3   : > { %v14798_v58 = vpack.c.bf16 %v14748_v38, %v14747_v29  ;;  %v15350_v29 = vld [vmem:[#allocation2 + $0x628] sm:$0xff] }
 0xba9   : > { %19072 = vmatmul.mubr.bf16.gmra.mrb[84].mxu0 %v14481_v59  ;;  %v14751_v59 = vld [vmem:[#allocation2 + $0x8d0] sm:$0xff] }
 0xbaa   : > { %19075 = vmatprep.mubr.bf16.mxu0 %v14482_v61  ;;  %v14752_v61 = vld [vmem:[#allocation2 + $0x8d8] sm:$0xff] }
 0xbab   : > { %v14800_v54 = vpack.c.bf16 %v14752_v61, %v14751_v59  ;;  %v15354_v59 = vld [vmem:[#allocation2 + $0x688] sm:$0xff] }
 0xbb1   : > { %19076 = vmatmul.mubr.bf16.gmra.mrb[88].mxu0 %v14483_v39  ;;  %v15037_v39 = vld [vmem:[#allocation2 + $0x640] sm:$0xff] }
 0xbb2   : > { %19079 = vmatprep.mubr.bf16.mxu0 %v14484_v48  ;;  %v15038_v48 = vld [vmem:[#allocation2 + $0x648] sm:$0xff] }
 0xbb3   : > { %v15100_v16 = vpack.c.bf16 %v15038_v48, %v15037_v39  ;;  %v15358_v39 = vld [vmem:[#allocation2 + $0x6e8] sm:$0xff] }
 0xbb9   : > { %19080 = vmatmul.mubr.bf16.gmra.mrb[92].mxu0 %v14485_v18  ;;  %v15431_v18 = vld [vmem:[#allocation4 + $0xb08] sm:$0xff] }
 0xbba   : > { %19099 = vmatprep.mubr.bf16.mxu0 %v14785_v31  ;;  %v15041_v31 = vld [vmem:[#allocation2 + $0x6a0] sm:$0xff] }
 0xbc1   : > { %19100 = vmatmul.mubr.bf16.vlgmr.msra.gmra.mrb[64].mxu0 %v14786_v8  ;;  %v15102_v8 = vpack.c.bf16 %v15042_v4, %v15041_v31 }
 0xbc2   : > { %19132 = vmatpush3.bf16.msra.mxu0 %v15116_v44  ;;  %19103 = vmatprep.mubr.bf16.mxu0 %v14787_v56  ;;  %v14797_v44 = vpack.c.bf16 %v14746_v52, %v14745_v36  ;;  %v15103_v56 = vpack.c.bf16 %v15044_v5, %v15043_v53  ;;  %v15065_v52 = vld [vmem:[#allocation2 + $0x8e0] sm:$0xff]  ;;  %v15363_v53 = vld [vmem:[#allocation2 + $0x770] sm:$0xff]  ;;  %v15364_v5 = vld [vmem:[#allocation2 + $0x778] sm:$0xff] }
 0xbc3   : > { %19133 = vmatprep.subr.bf16.mxu0 %v15117_v41 }
 0xbc6   : > { %19134 = vmatpush3.bf16.msra.mxu0 %v15117_v41  ;;  %v15433_v41 = vld [vmem:[#allocation4 + $0xb18] sm:$0xff] }
 0xbc7   : > { %19135 = vmatprep.subr.bf16.mxu0 %v15118_v10 }
 0xbc9   : > { %19104 = vmatmul.mubr.bf16.gmra.mrb[68].mxu0 %v14788_v34  ;;  %v15104_v34 = vpack.c.bf16 %v15046_v19, %v15045_v26  ;;  %v15367_v26 = vld [vmem:[#allocation2 + $0x7d0] sm:$0xff]  ;;  %v15368_v19 = vld [vmem:[#allocation2 + $0x7d8] sm:$0xff] }
 0xbca   : > { %19107 = vmatprep.mubr.bf16.mxu0 %v14789_v6  ;;  %19136 = vmatpush3.bf16.msra.mxu0 %v15118_v10  ;;  %v15434_v10 = vld [vmem:[#allocation4 + $0xb20] sm:$0xff]  ;;  %v15105_v6 = vpack.c.bf16 %v15048_v51, %v15047_v32  ;;  %v15370_v51 = vld [vmem:[#allocation2 + $0x808] sm:$0xff] }
 0xbcb   : > { %19137 = vmatprep.subr.bf16.mxu0 %v15119_v62  ;;  %v15369_v32 = vld [vmem:[#allocation2 + $0x800] sm:$0xff] }
 0xbce   : > { %19138 = vmatpush3.bf16.msra.mxu0 %v15119_v62  ;;  %v15435_v62 = vld [vmem:[#allocation4 + $0xb28] sm:$0xff] }
 0xbcf   : > { %19139 = vmatprep.subr.bf16.mxu0 %v15120_v23 }
 0xbd1   : > { %19108 = vmatmul.mubr.bf16.gmra.mrb[72].mxu0 %v14790_v35  ;;  %v15106_v35 = vpack.c.bf16 %v15050_v25, %v15049_v33  ;;  %v15373_v33 = vld [vmem:[#allocation2 + $0x860] sm:$0xff]  ;;  %v15374_v25 = vld [vmem:[#allocation2 + $0x868] sm:$0xff] }
 0xbd2   : > { %19111 = vmatprep.mubr.bf16.mxu0 %v14791_v63  ;;  %19140 = vmatpush3.bf16.msra.mxu0 %v15120_v23  ;;  %v15436_v23 = vld [vmem:[#allocation4 + $0xb30] sm:$0xff]  ;;  %v15107_v63 = vpack.c.bf16 %v15052_v57, %v15051_v43  ;;  %v15425_v57 = vpack.c.bf16 %v15374_v25, %v15373_v33 }
 0xbd3   : > { %19141 = vmatprep.subr.bf16.mxu0 %v15121_v49 }
 0xbd6   : > { %19142 = vmatpush3.bf16.msra.mxu0 %v15121_v49  ;;  %v15437_v49 = vld [vmem:[#allocation4 + $0xb38] sm:$0xff] }
 0xbd7   : > { %19143 = vmatprep.subr.bf16.mxu0 %v15122_v17 }
 0xbd9   : > { %19112 = vmatmul.mubr.bf16.gmra.mrb[76].mxu0 %v14792_v37  ;;  %v15109_v37 = vpack.c.bf16 %v15056_v40, %v15055_v27  ;;  %v15379_v27 = vld [vmem:[#allocation2 + $0x8f0] sm:$0xff]  ;;  %v15380_v40 = vld [vmem:[#allocation2 + $0x8f8] sm:$0xff] }
 0xbda   : > { %19115 = vmatprep.mubr.bf16.mxu0 %v14793_v15  ;;  %19144 = vmatpush3.bf16.msra.mxu0 %v15122_v17  ;;  %v15108_v17 = vpack.c.bf16 %v15054_v3, %v15053_v60  ;;  %v15057_v15 = vld [vmem:[#allocation2 + $0x820] sm:$0xff] }
 0xbdb   : > { %19145 = vmatprep.subr.bf16.mxu0 %v15123_v20 }
 0xbde   : > { %19146 = vmatpush3.bf16.msra.mxu0 %v15123_v20  ;;  %v15058_v20 = vld [vmem:[#allocation2 + $0x828] sm:$0xff] }
 0xbdf   : > { %19179 = vmatprep.subr.bf16.mxu0 %v15430_v24  ;;  %v15110_v42 = vpack.c.bf16 %v15058_v20, %v15057_v15 }
 0xbe1   : > { %19116 = vmatmul.mubr.bf16.gmra.mrb[80].mxu0 %v14794_v13  ;;  %v15062_v13 = vld [vmem:[#allocation2 + $0x888] sm:$0xff] }
 0xbe2   : > { %19119 = vmatprep.mubr.bf16.mxu0 %v14795_v45  ;;  %v15063_v45 = vld [vmem:[#allocation2 + $0x8b0] sm:$0xff] }
 0xbe3   : > { %v15113_v36 = vpack.c.bf16 %v15064_v7, %v15063_v45  ;;  %v15729_v45 = vld [vmem:[%s21397_s21 + $0x10] sm:$0xff] }
 0xbe9   : > { %19120 = vmatmul.mubr.bf16.gmra.mrb[84].mxu0 %v14796_v22  ;;  %v15066_v22 = vld [vmem:[#allocation2 + $0x8e8] sm:$0xff] }
 0xbea   : > { %19123 = vmatprep.mubr.bf16.mxu0 %v14797_v44  ;;  %v15349_v44 = vld [vmem:[#allocation2 + $0x620] sm:$0xff]  ;;  %v15114_v38 = vpack.c.bf16 %v15066_v22, %v15065_v52  ;;  %v15727_v52 = vld [vmem:[%s21397_s21] sm:$0xff] }
 0xbeb   : > { %v15413_v9 = vpack.c.bf16 %v15350_v29, %v15349_v44  ;;  %v15730_v29 = vld [vmem:[%s21397_s21 + $0x18] sm:$0xff] }
 0xbf1   : > { %19124 = vmatmul.mubr.bf16.gmra.mrb[88].mxu0 %v14798_v58  ;;  %v15352_v58 = vld [vmem:[#allocation2 + $0x658] sm:$0xff] }
 0xbf2   : > { %19127 = vmatprep.mubr.bf16.mxu0 %v14799_v1  ;;  %v15353_v1 = vld [vmem:[#allocation2 + $0x680] sm:$0xff]  ;;  %v15414_v61 = vpack.c.bf16 %v15352_v58, %v15351_v14  ;;  %v15728_v14 = vld [vmem:[%s21397_s21 + $0x8] sm:$0xff] }
 0xbf3   : > { %v15415_v12 = vpack.c.bf16 %v15354_v59, %v15353_v1 }
 0xbf9   : > { %19128 = vmatmul.mubr.bf16.gmra.mrb[92].mxu0 %v14800_v54  ;;  %v15356_v54 = vld [vmem:[#allocation2 + $0x6b8] sm:$0xff] }
 0xbfa   : > { %19147 = vmatprep.mubr.bf16.mxu0 %v15099_v46  ;;  %v15357_v46 = vld [vmem:[#allocation2 + $0x6e0] sm:$0xff]  ;;  %v15416_v48 = vpack.c.bf16 %v15356_v54, %v15355_v50 }
 0xbfb   : > { %v15417_v0 = vpack.c.bf16 %v15358_v39, %v15357_v46 }
 0xc01   : > { %19148 = vmatmul.mubr.bf16.vlgmr.msra.gmra.mrb[64].mxu0 %v15100_v16  ;;  %v15360_v16 = vld [vmem:[#allocation2 + $0x718] sm:$0xff] }
 0xc02   : > { %19180 = vmatpush3.bf16.msra.mxu0 %v15430_v24  ;;  %19151 = vmatprep.mubr.bf16.mxu0 %v15101_v28  ;;  %v15061_v24 = vld [vmem:[#allocation2 + $0x880] sm:$0xff]  ;;  %v15418_v31 = vpack.c.bf16 %v15360_v16, %v15359_v55 }
 0xc03   : > { %19181 = vmatprep.subr.bf16.mxu0 %v15431_v18  ;;  %v15112_v47 = vpack.c.bf16 %v15062_v13, %v15061_v24  ;;  %v15361_v28 = vld [vmem:[#allocation2 + $0x740] sm:$0xff] }
 0xc06   : > { %19182 = vmatpush3.bf16.msra.mxu0 %v15431_v18  ;;  %v15362_v18 = vld [vmem:[#allocation2 + $0x748] sm:$0xff] }
 0xc07   : > { %19183 = vmatprep.subr.bf16.mxu0 %v15432_v21  ;;  %v15419_v4 = vpack.c.bf16 %v15362_v18, %v15361_v28  ;;  %v15731_v28 = vld [vmem:[%s21397_s21 + $0x20] sm:$0xff] }
 0xc09   : > { %19152 = vmatmul.mubr.bf16.gmra.mrb[68].mxu0 %v15102_v8  ;;  %v15366_v8 = vld [vmem:[#allocation2 + $0x7a8] sm:$0xff] }
 0xc0a   : > { %19155 = vmatprep.mubr.bf16.mxu0 %v15103_v56  ;;  %19184 = vmatpush3.bf16.msra.mxu0 %v15432_v21  ;;  %v15365_v21 = vld [vmem:[#allocation2 + $0x7a0] sm:$0xff]  ;;  %v15420_v56 = vpack.c.bf16 %v15364_v5, %v15363_v53 }
 0xc0b   : > { %19185 = vmatprep.subr.bf16.mxu0 %v15433_v41 }
 0xc0e   : > { %19186 = vmatpush3.bf16.msra.mxu0 %v15433_v41  ;;  %v15421_v41 = vpack.c.bf16 %v15366_v8, %v15365_v21  ;;  %v15732_v21 = vld [vmem:[%s21397_s21 + $0x28] sm:$0xff] }
 0xc0f   : > { %19187 = vmatprep.subr.bf16.mxu0 %v15434_v10 }
 0xc11   : > { %19156 = vmatmul.mubr.bf16.gmra.mrb[72].mxu0 %v15104_v34  ;;  %v15423_v34 = vpack.c.bf16 %v15370_v51, %v15369_v32 }
 0xc12   : > { %19159 = vmatprep.mubr.bf16.mxu0 %v15105_v6  ;;  %19188 = vmatpush3.bf16.msra.mxu0 %v15434_v10  ;;  %v15422_v10 = vpack.c.bf16 %v15368_v19, %v15367_v26  ;;  %v15371_v6 = vld [vmem:[#allocation2 + $0x830] sm:$0xff] }
 0xc13   : > { %19189 = vmatprep.subr.bf16.mxu0 %v15435_v62 }
 0xc16   : > { %19190 = vmatpush3.bf16.msra.mxu0 %v15435_v62  ;;  %v15372_v62 = vld [vmem:[#allocation2 + $0x838] sm:$0xff] }
 0xc17   : > { %19191 = vmatprep.subr.bf16.mxu0 %v15436_v23  ;;  %v15424_v43 = vpack.c.bf16 %v15372_v62, %v15371_v6  ;;  %v15737_v6 = vld [vmem:[%s21397_s21 + $0x50] sm:$0xff] }
 0xc19   : > { %19160 = vmatmul.mubr.bf16.gmra.mrb[76].mxu0 %v15106_v35  ;;  %v15376_v35 = vld [vmem:[#allocation2 + $0x898] sm:$0xff] }
 0xc1a   : > { %19163 = vmatprep.mubr.bf16.mxu0 %v15107_v63  ;;  %19192 = vmatpush3.bf16.msra.mxu0 %v15436_v23  ;;  %v15375_v23 = vld [vmem:[#allocation2 + $0x890] sm:$0xff]  ;;  %v15377_v63 = vld [vmem:[#allocation2 + $0x8c0] sm:$0xff] }
 0xc1b   : > { %19193 = vmatprep.subr.bf16.mxu0 %v15437_v49  ;;  %v15426_v60 = vpack.c.bf16 %v15376_v35, %v15375_v23  ;;  %v15738_v35 = vld [vmem:[%s21397_s21 + $0x58] sm:$0xff] }
 0xc1e   : > { %19194 = vmatpush3.bf16.msra.mxu0 %v15437_v49  ;;  %v15378_v49 = vld [vmem:[#allocation2 + $0x8c8] sm:$0xff] }
 0xc1f   : > { %v15427_v3 = vpack.c.bf16 %v15378_v49, %v15377_v63 }
 0xc21   : > { %19164 = vmatmul.mubr.bf16.gmra.mrb[80].mxu0 %v15108_v17  ;;  %v15428_v17 = vpack.c.bf16 %v15380_v40, %v15379_v27 }
 0xc22   : > { %19167 = vmatprep.mubr.bf16.mxu0 %v15109_v37  ;;  %v23499_v37 = vld [vmem:[#allocation8 + $0x4] ss:$0 sm:$0xff] }
 0xc29   : > { %19168 = vmatmul.mubr.bf16.gmra.mrb[84].mxu0 %v15110_v42 }
 0xc2a   : > { %19171 = vmatprep.mubr.bf16.mxu0 %v15111_v30 }
 0xc31   : > { %19172 = vmatmul.mubr.bf16.gmra.mrb[88].mxu0 %v15112_v47 }
 0xc32   : > { %19175 = vmatprep.mubr.bf16.mxu0 %v15113_v36 }
 0xc39   : > { %19176 = vmatmul.mubr.bf16.gmra.mrb[92].mxu0 %v15114_v38 }
 0xc3a   : > { %19195 = vmatprep.mubr.bf16.mxu0 %v15413_v9 }
 0xc41   : > { %19196 = vmatmul.mubr.bf16.vlgmr.msra.gmra.mrb[64].mxu0 %v15414_v61 }
 0xc42   : > { %19199 = vmatprep.mubr.bf16.mxu0 %v15415_v12 }
 0xc49   : > { %19200 = vmatmul.mubr.bf16.gmra.mrb[68].mxu0 %v15416_v48  ;;  %v15733_v48 = vld [vmem:[%s21397_s21 + $0x30] sm:$0xff] }
 0xc4a   : > { %19203 = vmatprep.mubr.bf16.mxu0 %v15417_v0 }
 0xc51   : > { %19204 = vmatmul.mubr.bf16.gmra.mrb[72].mxu0 %v15418_v31 }
 0xc52   : > { %19207 = vmatprep.mubr.bf16.mxu0 %v15419_v4  ;;  %v15734_v4 = vld [vmem:[%s21397_s21 + $0x38] sm:$0xff] }
 0xc59   : > { %19208 = vmatmul.mubr.bf16.gmra.mrb[76].mxu0 %v15420_v56 }
 0xc5a   : > { %19211 = vmatprep.mubr.bf16.mxu0 %v15421_v41 }
 0xc61   : > { %19212 = vmatmul.mubr.bf16.gmra.mrb[80].mxu0 %v15422_v10 }
 0xc62   : > { %19215 = vmatprep.mubr.bf16.mxu0 %v15423_v34 }
 0xc69   : > { %19216 = vmatmul.mubr.bf16.gmra.mrb[84].mxu0 %v15424_v43  ;;  %v15735_v43 = vld [vmem:[%s21397_s21 + $0x40] sm:$0xff] }
 0xc6a   : > { %19219 = vmatprep.mubr.bf16.mxu0 %v15425_v57 }
 0xc71   : > { %19220 = vmatmul.mubr.bf16.gmra.mrb[88].mxu0 %v15426_v60  ;;  %v15736_v60 = vld [vmem:[%s21397_s21 + $0x48] sm:$0xff] }
 0xc72   : > { %19223 = vmatprep.mubr.bf16.mxu0 %v15427_v3 }
 0xc79   : > { %19224 = vmatmul.mubr.bf16.gmra.mrb[92].mxu0 %v15428_v17 }
 0xd14   : > { %v19197_v15 = vpop.f32.mrb[64].mxu0 }
 0xd15   : > { %v19403_v20 = vadd.f32 %v19197_v15, %v23499_v37  ;;  %v15472_v2 = vpop.f32.mrb[65].mxu0 }
 0xd16   : > { %v19404_v11 = vadd.f32 %v23499_v37, %v15472_v2  ;;  %v19198_v42 = vpop.f32.mrb[66].mxu0 }
 0xd17   : > { %v15697_v30 = vmax.f32 %v19403_v20, 0.0  ;;  %v19405_v24 = vadd.f32 %v19198_v42, %v23499_v37  ;;  %v15475_v13 = vpop.f32.mrb[67].mxu0 }
 0xd18   : > { %v15695_v7 = vmax.f32 %v19404_v11, 0.0  ;;  %v19406_v47 = vadd.f32 %v23499_v37, %v15475_v13 }
 0xd19   : > { %v15761_v36 = vadd.f32 %v15729_v45, %v15697_v30  ;;  %15825 = vst [vmem:[#allocation2 + $0x340] sm:$0xff] %v15697_v30  ;;  %v15698_v22 = vmax.f32 %v19405_v24, 0.0  ;;  %v15741_v30 = vld [vmem:[%s21397_s21 + $0x70] sm:$0xff] }
 0xd1a   : > { %v15759_v44 = vadd.f32 %v15727_v52, %v15695_v7  ;;  %15823 = vst [vmem:[#allocation2 + $0x310] sm:$0xff] %v15695_v7  ;;  %v15696_v38 = vmax.f32 %v19406_v47, 0.0  ;;  %v15739_v7 = vld [vmem:[%s21397_s21 + $0x60] sm:$0xff]  ;;  %v15742_v52 = vld [vmem:[%s21397_s21 + $0x78] sm:$0xff] }
 0xd1b   : > { %15793 = vst [vmem:[%s21397_s21 + $0x10] sm:$0xff] %v15761_v36  ;;  %v15762_v9 = vadd.f32 %v15730_v29, %v15698_v22  ;;  %15826 = vst [vmem:[#allocation2 + $0x348] sm:$0xff] %v15698_v22  ;;  %v15740_v29 = vld [vmem:[%s21397_s21 + $0x68] sm:$0xff] }
 0xd1c   : > { %15791 = vst [vmem:[%s21397_s21] sm:$0xff] %v15759_v44  ;;  %v15760_v58 = vadd.f32 %v15728_v14, %v15696_v38  ;;  %15824 = vst [vmem:[#allocation2 + $0x318] sm:$0xff] %v15696_v38  ;;  %v19201_v1 = vpop.f32.mrb[68].mxu0 }
 0xd1d   : > { %15794 = vst [vmem:[%s21397_s21 + $0x18] sm:$0xff] %v15762_v9  ;;  %v19407_v59 = vadd.f32 %v19201_v1, %v23499_v37  ;;  %v15488_v61 = vpop.f32.mrb[69].mxu0 }
 0xd1e   : > { %15792 = vst [vmem:[%s21397_s21 + $0x8] sm:$0xff] %v15760_v58  ;;  %v19408_v12 = vadd.f32 %v23499_v37, %v15488_v61  ;;  %v19202_v50 = vpop.f32.mrb[70].mxu0 }
 0xd1f   : > { %v15701_v54 = vmax.f32 %v19407_v59, 0.0  ;;  %v19409_v46 = vadd.f32 %v19202_v50, %v23499_v37  ;;  %v15491_v39 = vpop.f32.mrb[71].mxu0 }
 0xd20   : > { %v15699_v0 = vmax.f32 %v19408_v12, 0.0  ;;  %v19410_v55 = vadd.f32 %v23499_v37, %v15491_v39 }
 0xd21   : > { %v15765_v16 = vadd.f32 %v15733_v48, %v15701_v54  ;;  %15829 = vst [vmem:[#allocation2 + $0x3a0] sm:$0xff] %v15701_v54  ;;  %v15702_v18 = vmax.f32 %v19409_v46, 0.0  ;;  %v15745_v54 = vld [vmem:[%s21397_s21 + $0x90] sm:$0xff] }
 0xd22   : > { %v15763_v31 = vadd.f32 %v15731_v28, %v15699_v0  ;;  %15827 = vst [vmem:[#allocation2 + $0x370] sm:$0xff] %v15699_v0  ;;  %v15700_v53 = vmax.f32 %v19410_v55, 0.0  ;;  %v15743_v0 = vld [vmem:[%s21397_s21 + $0x80] sm:$0xff]  ;;  %v15746_v28 = vld [vmem:[%s21397_s21 + $0x98] sm:$0xff] }
 0xd23   : > { %15797 = vst [vmem:[%s21397_s21 + $0x30] sm:$0xff] %v15765_v16  ;;  %v15766_v5 = vadd.f32 %v15734_v4, %v15702_v18  ;;  %15830 = vst [vmem:[#allocation2 + $0x3a8] sm:$0xff] %v15702_v18  ;;  %v15744_v4 = vld [vmem:[%s21397_s21 + $0x88] sm:$0xff] }
 0xd24   : > { %15795 = vst [vmem:[%s21397_s21 + $0x20] sm:$0xff] %v15763_v31  ;;  %v15764_v8 = vadd.f32 %v15732_v21, %v15700_v53  ;;  %15828 = vst [vmem:[#allocation2 + $0x378] sm:$0xff] %v15700_v53  ;;  %v19205_v56 = vpop.f32.mrb[72].mxu0 }
 0xd25   : > { %15798 = vst [vmem:[%s21397_s21 + $0x38] sm:$0xff] %v15766_v5  ;;  %v19411_v41 = vadd.f32 %v19205_v56, %v23499_v37  ;;  %v15504_v26 = vpop.f32.mrb[73].mxu0 }
 0xd26   : > { %15796 = vst [vmem:[%s21397_s21 + $0x28] sm:$0xff] %v15764_v8  ;;  %v19412_v19 = vadd.f32 %v23499_v37, %v15504_v26  ;;  %v19206_v32 = vpop.f32.mrb[74].mxu0 }
 0xd27   : > { %v15705_v51 = vmax.f32 %v19411_v41, 0.0  ;;  %v19413_v10 = vadd.f32 %v19206_v32, %v23499_v37  ;;  %v15507_v34 = vpop.f32.mrb[75].mxu0 }
 0xd28   : > { %v15703_v62 = vmax.f32 %v19412_v19, 0.0  ;;  %v19414_v33 = vadd.f32 %v23499_v37, %v15507_v34 }
 0xd29   : > { %v15769_v25 = vadd.f32 %v15737_v6, %v15705_v51  ;;  %15833 = vst [vmem:[#allocation2 + $0x400] sm:$0xff] %v15705_v51  ;;  %v15706_v57 = vmax.f32 %v19413_v10, 0.0  ;;  %v15749_v51 = vld [vmem:[%s21397_s21 + $0xb0] sm:$0xff] }
 0xd2a   : > { %v15767_v23 = vadd.f32 %v15735_v43, %v15703_v62  ;;  %15831 = vst [vmem:[#allocation2 + $0x3d0] sm:$0xff] %v15703_v62  ;;  %v15704_v63 = vmax.f32 %v19414_v33, 0.0  ;;  %v15747_v62 = vld [vmem:[%s21397_s21 + $0xa0] sm:$0xff]  ;;  %v15750_v43 = vld [vmem:[%s21397_s21 + $0xb8] sm:$0xff] }
 0xd2b   : > { %15801 = vst [vmem:[%s21397_s21 + $0x50] sm:$0xff] %v15769_v25  ;;  %v15770_v49 = vadd.f32 %v15738_v35, %v15706_v57  ;;  %15834 = vst [vmem:[#allocation2 + $0x408] sm:$0xff] %v15706_v57  ;;  %v15748_v35 = vld [vmem:[%s21397_s21 + $0xa8] sm:$0xff] }
 0xd2c   : > { %15799 = vst [vmem:[%s21397_s21 + $0x40] sm:$0xff] %v15767_v23  ;;  %v15768_v3 = vadd.f32 %v15736_v60, %v15704_v63  ;;  %15832 = vst [vmem:[#allocation2 + $0x3d8] sm:$0xff] %v15704_v63  ;;  %v19209_v27 = vpop.f32.mrb[76].mxu0 }
 0xd2d   : > { %15802 = vst [vmem:[%s21397_s21 + $0x58] sm:$0xff] %v15770_v49  ;;  %v19415_v40 = vadd.f32 %v19209_v27, %v23499_v37  ;;  %v15520_v17 = vpop.f32.mrb[77].mxu0 }
 0xd2e   : > { %15800 = vst [vmem:[%s21397_s21 + $0x48] sm:$0xff] %v15768_v3  ;;  %v19416_v15 = vadd.f32 %v23499_v37, %v15520_v17  ;;  %v19210_v20 = vpop.f32.mrb[78].mxu0 }
 0xd2f   : > { %v15709_v2 = vmax.f32 %v19415_v40, 0.0  ;;  %v19417_v11 = vadd.f32 %v19210_v20, %v23499_v37  ;;  %v15523_v42 = vpop.f32.mrb[79].mxu0 }
 0xd30   : > { %v15707_v24 = vmax.f32 %v19416_v15, 0.0  ;;  %v19418_v13 = vadd.f32 %v23499_v37, %v15523_v42 }
 0xd31   : > { %v15773_v45 = vadd.f32 %v15741_v30, %v15709_v2  ;;  %15837 = vst [vmem:[#allocation2 + $0x460] sm:$0xff] %v15709_v2  ;;  %v15710_v47 = vmax.f32 %v19417_v11, 0.0  ;;  %v15753_v2 = vld [vmem:[%s21397_s21 + $0xd0] sm:$0xff] }
 0xd32   : > { %v15771_v36 = vadd.f32 %v15739_v7, %v15707_v24  ;;  %15835 = vst [vmem:[#allocation2 + $0x430] sm:$0xff] %v15707_v24  ;;  %v15708_v22 = vmax.f32 %v19418_v13, 0.0  ;;  %v15751_v24 = vld [vmem:[%s21397_s21 + $0xc0] sm:$0xff]  ;;  %v15754_v7 = vld [vmem:[%s21397_s21 + $0xd8] sm:$0xff] }
 0xd33   : > { %15805 = vst [vmem:[%s21397_s21 + $0x70] sm:$0xff] %v15773_v45  ;;  %v15774_v44 = vadd.f32 %v15742_v52, %v15710_v47  ;;  %15838 = vst [vmem:[#allocation2 + $0x468] sm:$0xff] %v15710_v47  ;;  %v15752_v52 = vld [vmem:[%s21397_s21 + $0xc8] sm:$0xff] }
 0xd34   : > { %15803 = vst [vmem:[%s21397_s21 + $0x60] sm:$0xff] %v15771_v36  ;;  %v15772_v38 = vadd.f32 %v15740_v29, %v15708_v22  ;;  %15836 = vst [vmem:[#allocation2 + $0x438] sm:$0xff] %v15708_v22  ;;  %v19213_v9 = vpop.f32.mrb[80].mxu0 }
 0xd35   : > { %15806 = vst [vmem:[%s21397_s21 + $0x78] sm:$0xff] %v15774_v44  ;;  %v19419_v14 = vadd.f32 %v19213_v9, %v23499_v37  ;;  %v15536_v58 = vpop.f32.mrb[81].mxu0 }
 0xd36   : > { %15804 = vst [vmem:[%s21397_s21 + $0x68] sm:$0xff] %v15772_v38  ;;  %v19420_v1 = vadd.f32 %v23499_v37, %v15536_v58  ;;  %v19214_v59 = vpop.f32.mrb[82].mxu0 }
 0xd37   : > { %v15713_v61 = vmax.f32 %v19419_v14, 0.0  ;;  %v19421_v12 = vadd.f32 %v19214_v59, %v23499_v37  ;;  %v15539_v50 = vpop.f32.mrb[83].mxu0 }
 0xd38   : > { %v15711_v46 = vmax.f32 %v19420_v1, 0.0  ;;  %v19422_v39 = vadd.f32 %v23499_v37, %v15539_v50 }
 0xd39   : > { %v15777_v48 = vadd.f32 %v15745_v54, %v15713_v61  ;;  %15841 = vst [vmem:[#allocation2 + $0x4c0] sm:$0xff] %v15713_v61  ;;  %v15714_v55 = vmax.f32 %v19421_v12, 0.0  ;;  %v15757_v61 = vld [vmem:[%s21397_s21 + $0xf0] sm:$0xff] }
 0xd3a   : > { %v15775_v16 = vadd.f32 %v15743_v0, %v15711_v46  ;;  %15839 = vst [vmem:[#allocation2 + $0x490] sm:$0xff] %v15711_v46  ;;  %v15712_v18 = vmax.f32 %v19422_v39, 0.0  ;;  %v15755_v46 = vld [vmem:[%s21397_s21 + $0xe0] sm:$0xff]  ;;  %v15758_v0 = vld [vmem:[%s21397_s21 + $0xf8] sm:$0xff] }
 0xd3b   : > { %15809 = vst [vmem:[%s21397_s21 + $0x90] sm:$0xff] %v15777_v48  ;;  %v15778_v31 = vadd.f32 %v15746_v28, %v15714_v55  ;;  %15842 = vst [vmem:[#allocation2 + $0x4c8] sm:$0xff] %v15714_v55  ;;  %v15756_v28 = vld [vmem:[%s21397_s21 + $0xe8] sm:$0xff] }
 0xd3c   : > { %15807 = vst [vmem:[%s21397_s21 + $0x80] sm:$0xff] %v15775_v16  ;;  %v15776_v53 = vadd.f32 %v15744_v4, %v15712_v18  ;;  %15840 = vst [vmem:[#allocation2 + $0x498] sm:$0xff] %v15712_v18  ;;  %v19217_v5 = vpop.f32.mrb[84].mxu0 }
 0xd3d   : > { %15810 = vst [vmem:[%s21397_s21 + $0x98] sm:$0xff] %v15778_v31  ;;  %v19423_v21 = vadd.f32 %v19217_v5, %v23499_v37  ;;  %v15552_v8 = vpop.f32.mrb[85].mxu0 }
 0xd3e   : > { %15808 = vst [vmem:[%s21397_s21 + $0x88] sm:$0xff] %v15776_v53  ;;  %v19424_v56 = vadd.f32 %v23499_v37, %v15552_v8  ;;  %v19218_v41 = vpop.f32.mrb[86].mxu0 }
 0xd3f   : > { %v15717_v26 = vmax.f32 %v19423_v21, 0.0  ;;  %v19425_v19 = vadd.f32 %v19218_v41, %v23499_v37  ;;  %v15555_v32 = vpop.f32.mrb[87].mxu0 }
 0xd40   : > { %v15715_v10 = vmax.f32 %v19424_v56, 0.0  ;;  %v19426_v34 = vadd.f32 %v23499_v37, %v15555_v32 }
 0xd41   : > { %v15781_v6 = vadd.f32 %v15749_v51, %v15717_v26  ;;  %15845 = vst [vmem:[#allocation2 + $0x520] sm:$0xff] %v15717_v26  ;;  %v15718_v33 = vmax.f32 %v19425_v19, 0.0 }
 0xd42   : > { %v15779_v25 = vadd.f32 %v15747_v62, %v15715_v10  ;;  %15843 = vst [vmem:[#allocation2 + $0x4f0] sm:$0xff] %v15715_v10  ;;  %v15716_v57 = vmax.f32 %v19426_v34, 0.0 }
 0xd43   : > { %15813 = vst [vmem:[%s21397_s21 + $0xb0] sm:$0xff] %v15781_v6  ;;  %v15782_v23 = vadd.f32 %v15750_v43, %v15718_v33  ;;  %15846 = vst [vmem:[#allocation2 + $0x528] sm:$0xff] %v15718_v33 }
 0xd44   : > { %15811 = vst [vmem:[%s21397_s21 + $0xa0] sm:$0xff] %v15779_v25  ;;  %v15780_v63 = vadd.f32 %v15748_v35, %v15716_v57  ;;  %15844 = vst [vmem:[#allocation2 + $0x4f8] sm:$0xff] %v15716_v57  ;;  %v19221_v49 = vpop.f32.mrb[88].mxu0 }
 0xd45   : > { %15814 = vst [vmem:[%s21397_s21 + $0xb8] sm:$0xff] %v15782_v23  ;;  %v19427_v60 = vadd.f32 %v19221_v49, %v23499_v37  ;;  %v15568_v3 = vpop.f32.mrb[89].mxu0 }
 0xd46   : > { %15812 = vst [vmem:[%s21397_s21 + $0xa8] sm:$0xff] %v15780_v63  ;;  %v19428_v27 = vadd.f32 %v23499_v37, %v15568_v3  ;;  %v19222_v40 = vpop.f32.mrb[90].mxu0 }
 0xd47   : > { %v15721_v17 = vmax.f32 %v19427_v60, 0.0  ;;  %v19429_v15 = vadd.f32 %v19222_v40, %v23499_v37  ;;  %v15571_v20 = vpop.f32.mrb[91].mxu0 }
 0xd48   : > { %v15719_v11 = vmax.f32 %v19428_v27, 0.0  ;;  %v19430_v42 = vadd.f32 %v23499_v37, %v15571_v20 }
 0xd49   : > { %v15785_v30 = vadd.f32 %v15753_v2, %v15721_v17  ;;  %15849 = vst [vmem:[#allocation2 + $0x580] sm:$0xff] %v15721_v17  ;;  %v15722_v13 = vmax.f32 %v19429_v15, 0.0 }
 0xd4a   : > { %v15783_v45 = vadd.f32 %v15751_v24, %v15719_v11  ;;  %15847 = vst [vmem:[#allocation2 + $0x550] sm:$0xff] %v15719_v11  ;;  %v15720_v47 = vmax.f32 %v19430_v42, 0.0 }
 0xd4b   : > { %15817 = vst [vmem:[%s21397_s21 + $0xd0] sm:$0xff] %v15785_v30  ;;  %v15786_v36 = vadd.f32 %v15754_v7, %v15722_v13  ;;  %15850 = vst [vmem:[#allocation2 + $0x588] sm:$0xff] %v15722_v13 }
 0xd4c   : > { %15815 = vst [vmem:[%s21397_s21 + $0xc0] sm:$0xff] %v15783_v45  ;;  %v15784_v22 = vadd.f32 %v15752_v52, %v15720_v47  ;;  %15848 = vst [vmem:[#allocation2 + $0x558] sm:$0xff] %v15720_v47  ;;  %v19225_v44 = vpop.f32.mrb[92].mxu0 }
 0xd4d   : > { %15818 = vst [vmem:[%s21397_s21 + $0xd8] sm:$0xff] %v15786_v36  ;;  %v19431_v29 = vadd.f32 %v19225_v44, %v23499_v37  ;;  %v15584_v38 = vpop.f32.mrb[93].mxu0 }
 0xd4e   : > { %15816 = vst [vmem:[%s21397_s21 + $0xc8] sm:$0xff] %v15784_v22  ;;  %v19432_v9 = vadd.f32 %v23499_v37, %v15584_v38  ;;  %v19226_v14 = vpop.f32.mrb[94].mxu0 }
 0xd4f   : > { %v15725_v58 = vmax.f32 %v19431_v29, 0.0  ;;  %v19433_v1 = vadd.f32 %v19226_v14, %v23499_v37  ;;  %v15587_v59 = vpop.f32.mrb[95].mxu0 }
 0xd50   : > { %v15723_v12 = vmax.f32 %v19432_v9, 0.0  ;;  %v19434_v50 = vadd.f32 %v23499_v37, %v15587_v59 }
 0xd51   : > { %v15789_v54 = vadd.f32 %v15757_v61, %v15725_v58  ;;  %15853 = vst [vmem:[#allocation2 + $0x5e0] sm:$0xff] %v15725_v58  ;;  %v15726_v39 = vmax.f32 %v19433_v1, 0.0 }
 0xd52   : > { %v15787_v48 = vadd.f32 %v15755_v46, %v15723_v12  ;;  %15851 = vst [vmem:[#allocation2 + $0x5b0] sm:$0xff] %v15723_v12  ;;  %v15724_v55 = vmax.f32 %v19434_v50, 0.0 }
 0xd53   : > { %15821 = vst [vmem:[%s21397_s21 + $0xf0] sm:$0xff] %v15789_v54  ;;  %v15790_v16 = vadd.f32 %v15758_v0, %v15726_v39  ;;  %15854 = vst [vmem:[#allocation2 + $0x5e8] sm:$0xff] %v15726_v39 }
 0xd54   : > { %15819 = vst [vmem:[%s21397_s21 + $0xe0] sm:$0xff] %v15787_v48  ;;  %v15788_v37 = vadd.f32 %v15756_v28, %v15724_v55  ;;  %15852 = vst [vmem:[#allocation2 + $0x5b8] sm:$0xff] %v15724_v55 }
 0xd55   : > { %15822 = vst [vmem:[%s21397_s21 + $0xf8] sm:$0xff] %v15790_v16 }
 0xd56   : > { %15820 = vst [vmem:[%s21397_s21 + $0xe8] sm:$0xff] %v15788_v37 }
 0xd57   : > { %20863 = shalt.err (!%p20860_p10)
}
 0xd58   : > { %s20864_s21 = scalar_lea.hbm %s23599_s23, 4096  ;;  %s20868_s11 = scalar_lea.hbm %s23656_s3, 8192 }
 0xd59   : > { %p20865_p11 = scmp.ne.s32.totalorder %s23599_s23, %s20864_s21  ;;  %p20869_p9 = scmp.lt.u32.totalorder %s23599_s23, %s23656_s3 }
 0xd5a   : > { %p20870_p3 = scmp.lt.u32.totalorder %s20868_s11, %s20864_s21  ;;  %p20872_p13 = scmp.lt.u32.totalorder %s20864_s21, %s23599_s23 }
 0xd5b   : > { %p20866_p1 = pnand %p20865_p11, %p23702_p2 }
 0xd5c   : > { %p20871_p7 = por %p20870_p3, %p20869_p9 }
 0xd5d   : > { %p20867_p0 = pneg %p20866_p1 }
 0xd5e   : > { %p20873_p6 = por %p20872_p13, %p20871_p7 }
 0xd60   : > { %p20874_p12 = pnand %p20873_p6, %p20867_p0 }
 0xd62   : > { %20877 = shalt.err (!%p20874_p12)
}
 0xd63   : > { %s20947_s7 = smov 128   ;;  %s20948_s8 = smov 8  }
 0xd64   : > { %20689 = dma.vmem_to_hbm [thread:$0]  (%p23702_p2), %s23601_s10, 4096, %s23599_s23, %s15856_s26, %s20947_s7, %s20947_s7, %s20948_s8  }
 0xd65 PF: > { %s15885_s30 = sand.u32 1, %s20918_s12   ;;  %p23703_p4 = scmp.ne.s32.totalorder %s23671_s25, 0 }
 0xd66   : > { %p23704_p8 = scmp.ge.s32.totalorder %s20938_s17, 2  ;;  %s15886_s15 = scalar_lea.sflag [#allocation7], %s15885_s30 }
 0xd68   : > { %p20700_p5 = pnand %p23704_p8, %p23703_p4 }
 0xd6a   : > { %20913 = dma.done.wait (!%p20700_p5), %s15886_s15, 4096  }
 0xd6b   : > { %20915 = vsyncadd (!%p20700_p5), %s15886_s15, 4294963200  ;;  %s20_s17 = sadd.s32 1, %s20938_s17   ;;  %s23705_s12 = smov %s20922_s13 }
 0xd6c   : > { %p17_p10 = scmp.ge.s32.totalorder %s20_s17, 4   ;;  %s23706_s13 = smov %s20926_s14 }
 0xd6d   : > { %s23707_s14 = smov %s21088_s28  ;;  %s23708_s15 = smov %s20934_s16 }
 0xd6e   : > { %s23709_s16 = smov %s23711_s4  ;;  %19 = sbr.rel (!%p17_p10) target bundleno = 7 (0x7), region = 142 }
 0xd75   :  { %15891 = vsyncpa [#allocation6], 1 }
 0xd76   :  { %15893 = vsyncpa [#allocation6 + $0x1], 1 }
 0xd77   :  { %15894 = vsyncpa [#allocation9], 1 }
 0xd78   :  { %15895 = vsyncpa [#allocation7], 1 }
 0xd79   :  { %15897 = vsyncpa [#allocation7 + $0x1], 1 }

</bundles_post_ra>
